<compile_context>
chip_gen: v7x
topology: tpu7x:2x2x1
jax: 0.10.0
libtpu: 0.0.40
codegen_flags: <defaults>
</compile_context>

<pallas_src>
import functools

import jax
import jax.numpy as jnp
from jax import lax
from jax.experimental import pallas as pl
from jax.experimental.pallas import tpu as pltpu

# ----------------------------- config -----------------------------
D = 128            # hidden size (stand-in for 768)
NHEAD = 4
DH = D // NHEAD
MLP = 4 * D
NLAYERS = 2
NUM_CLASSES = 4
CPAD = 128         # lane-padded class dim for the fusion head output

B = 2
# video
VT, VH, VW, VC = 4, 16, 16, 3
TT, TH, TW = 2, 8, 8                                   # tubelet size
N_TUB = (VT // TT) * (VH // TH) * (VW // TW)           # 8
TUB_DIM = TT * TH * TW * VC                            # 384
N_VID_TOK = N_TUB + 1                                  # + CLS token = 9
S_VID = 16                                             # padded video seq len (multiple of 8)
# text
T_TXT = 16
VOCAB = 1000


# ----------------------------- fused encoder kernel -----------------------------
def _encoder_kernel(x_ref, p0_ref, p1_ref,
                    ln1g_ref, ln1b_ref, wqkv_ref, bqkv_ref, wo_ref, bo_ref,
                    ln2g_ref, ln2b_ref, w1_ref, b1_ref, w2_ref, b2_ref,
                    o_ref, h_sc,
                    *, bsz, seq, nhead, valid_len, eps, pre_ln, input_mode, output_mode):
    """One encoder layer per grid step; hidden state (B*S, D) carried in VMEM scratch.

    input_mode:  "proj" -> h0 = x @ p0 + p1   (video tubelet embed; p1 = cls/pos/bias table)
                 "ln"   -> h0 = LayerNorm(x; p0, p1)   (BERT embedding LN)
    output_mode: "cls"  -> emit row 0 of each batch element   (video CLS, pre final-LN)
                 "mean" -> emit mean over valid rows per batch (BERT pooled last_hidden_state)
    """
    l = pl.program_id(0)
    S = seq
    Dd = h_sc.shape[1]
    dh = Dd // nhead
    scale = 1.0 / (dh ** 0.5)

    # ---- branch-specific prologue at layer 0 ----
    @pl.when(l == 0)
    def _():
        if input_mode == "proj":
            h0 = jnp.dot(x_ref[...].astype(jnp.bfloat16), p0_ref[...],
                         preferred_element_type=jnp.float32) + p1_ref[...]
        else:  # "ln"
            x = x_ref[...].astype(jnp.float32)
            mu = jnp.mean(x, axis=-1, keepdims=True)
            var = jnp.mean((x - mu) ** 2, axis=-1, keepdims=True)
            h0 = (x - mu) * lax.rsqrt(var + eps) * p0_ref[...] + p1_ref[...]
        h_sc[...] = h0

    h = h_sc[...]                                               # (B*S, D) f32

    def layer_norm(y, g_ref, b_ref):
        mu = jnp.mean(y, axis=-1, keepdims=True)
        var = jnp.mean((y - mu) ** 2, axis=-1, keepdims=True)
        return (y - mu) * lax.rsqrt(var + eps) * g_ref[0] + b_ref[0]

    def attention(y):
        # fused QKV matmul over all batch rows; cast to bf16 once after the bias add
        qkv = (jnp.dot(y.astype(jnp.bfloat16), wqkv_ref[0],
                       preferred_element_type=jnp.float32)
               + bqkv_ref[0]).astype(jnp.bfloat16)              # (B*S, 3D) bf16
        if valid_len < S:
            kidx = lax.broadcasted_iota(jnp.int32, (1, S), 1)
            kmask = kidx < valid_len
        rows = []
        for b in range(bsz):
            qkv_b = qkv[b * S:(b + 1) * S, :]
            acc = jnp.zeros((S, Dd), jnp.float32)
            for hh in range(nhead):
                q = qkv_b[:, hh * dh:(hh + 1) * dh]
                k = qkv_b[:, Dd + hh * dh:Dd + (hh + 1) * dh]
                v = qkv_b[:, 2 * Dd + hh * dh:2 * Dd + (hh + 1) * dh]
                s = lax.dot_general(q, k, (((1,), (1,)), ((), ())),
                                    preferred_element_type=jnp.float32) * scale  # (S, S)
                if valid_len < S:
                    s = jnp.where(kmask, s, -1e30)              # mask padded keys
                m = jnp.max(s, axis=-1, keepdims=True)
                p = jnp.exp(s - m)
                denom = jnp.sum(p, axis=-1, keepdims=True)
                p = p * pl.reciprocal(denom, approx=True)
                pv = jnp.dot(p.astype(jnp.bfloat16), v,
                             preferred_element_type=jnp.float32)                 # (S, dh)
                # accumulate this head straight into the out-projection (no lane concat)
                acc = acc + jnp.dot(pv.astype(jnp.bfloat16),
                                    wo_ref[0, hh * dh:(hh + 1) * dh, :],
                                    preferred_element_type=jnp.float32)
            rows.append(acc)
        o = jnp.concatenate(rows, axis=0) if bsz > 1 else rows[0]
        return o + bo_ref[0]

    def mlp(y):
        m1 = jnp.dot(y.astype(jnp.bfloat16), w1_ref[0],
                     preferred_element_type=jnp.float32) + b1_ref[0]
        # TODO(synk): PyTorch nn.GELU default is exact erf GELU; tanh approximation used here.
        m1 = jax.nn.gelu(m1, approximate=True)
        return jnp.dot(m1.astype(jnp.bfloat16), w2_ref[0],
                       preferred_element_type=jnp.float32) + b2_ref[0]

    if pre_ln:      # ViViT / ViT style (pre-LN)
        h = h + attention(layer_norm(h, ln1g_ref, ln1b_ref))
        h = h + mlp(layer_norm(h, ln2g_ref, ln2b_ref))
    else:           # BERT style (post-LN)
        h = layer_norm(h + attention(h), ln1g_ref, ln1b_ref)
        h = layer_norm(h + mlp(h), ln2g_ref, ln2b_ref)

    h_sc[...] = h

    # ---- branch-specific epilogue at the last layer: emit only what the head consumes ----
    @pl.when(l == pl.num_programs(0) - 1)
    def _():
        if output_mode == "cls":
            outs = [h[b * S:b * S + 1, :] for b in range(bsz)]
        else:  # "mean" over valid rows
            inv = 1.0 / float(valid_len)
            outs = [jnp.sum(h[b * S:b * S + valid_len, :], axis=0, keepdims=True) * inv
                    for b in range(bsz)]
        o_ref[...] = (jnp.concatenate(outs, axis=0)
                      if bsz > 1 else outs[0]).astype(o_ref.dtype)


def pallas_encoder(x, p0, p1, lw, *, bsz, seq, nhead, valid_len, eps, pre_ln,
                   input_mode, output_mode):
    """x: (B*S, K). p0/p1: branch-specific prologue params. lw: layer-stacked weights.

    Returns (B, D): per-batch CLS row (video) or mean-pooled last hidden state (text).
    """
    BS, _ = x.shape
    nlayers = lw["wqkv"].shape[0]
    Dd = lw["wo"].shape[2]
    Dm = lw["w1"].shape[2]
    kern = functools.partial(_encoder_kernel, bsz=bsz, seq=seq, nhead=nhead,
                             valid_len=valid_len, eps=eps, pre_ln=pre_ln,
                             input_mode=input_mode, output_mode=output_mode)
    fmap = lambda l: (0, 0)          # activations / prologue params: resident, fetched once
    wmap = lambda l: (l, 0, 0)       # layer-stacked weights: streamed over the layer axis
    in_specs = [
        pl.BlockSpec(x.shape, fmap),             # x
        pl.BlockSpec(p0.shape, fmap),            # p0
        pl.BlockSpec(p1.shape, fmap),            # p1
        pl.BlockSpec((1, 1, Dd), wmap),          # ln1_g
        pl.BlockSpec((1, 1, Dd), wmap),          # ln1_b
        pl.BlockSpec((1, Dd, 3 * Dd), wmap),     # wqkv
        pl.BlockSpec((1, 1, 3 * Dd), wmap),      # bqkv
        pl.BlockSpec((1, Dd, Dd), wmap),         # wo
        pl.BlockSpec((1, 1, Dd), wmap),          # bo
        pl.BlockSpec((1, 1, Dd), wmap),          # ln2_g
        pl.BlockSpec((1, 1, Dd), wmap),          # ln2_b
        pl.BlockSpec((1, Dd, Dm), wmap),         # w1
        pl.BlockSpec((1, 1, Dm), wmap),          # b1
        pl.BlockSpec((1, Dm, Dd), wmap),         # w2
        pl.BlockSpec((1, 1, Dd), wmap),          # b2
    ]
    return pl.pallas_call(
        kern,
        out_shape=jax.ShapeDtypeStruct((bsz, Dd), jnp.float32),
        grid=(nlayers,),
        in_specs=in_specs,
        out_specs=pl.BlockSpec((bsz, Dd), fmap),
        scratch_shapes=[pltpu.VMEM((BS, Dd), jnp.float32)],
        compiler_params=pltpu.CompilerParams(
            dimension_semantics=("arbitrary",)),
    )(x, p0, p1, lw["ln1_g"], lw["ln1_b"], lw["wqkv"], lw["bqkv"], lw["wo"], lw["bo"],
      lw["ln2_g"], lw["ln2_b"], lw["w1"], lw["b1"], lw["w2"], lw["b2"])


# ----------------------------- fusion head kernel -----------------------------
# ViViT final LN (on CLS) + replaced classifier Linear(D, D) + concat-equivalent final fc.
def _head_kernel(cls_ref, lnfg_ref, lnfb_ref, clsw_ref, clsb_ref,
                 tmean_ref, wt_ref, wv_ref, fcb_ref, o_ref, *, eps):
    cls = cls_ref[...].astype(jnp.float32)                      # (B, D)
    mu = jnp.mean(cls, axis=-1, keepdims=True)
    var = jnp.mean((cls - mu) ** 2, axis=-1, keepdims=True)
    cls_ln = (cls - mu) * lax.rsqrt(var + eps) * lnfg_ref[...] + lnfb_ref[...]
    vid = jnp.dot(cls_ln.astype(jnp.bfloat16), clsw_ref[...],
                  preferred_element_type=jnp.float32) + clsb_ref[...]       # (B, D)
    out = (jnp.dot(tmean_ref[...].astype(jnp.bfloat16), wt_ref[...],
                   preferred_element_type=jnp.float32)
           + jnp.dot(vid.astype(jnp.bfloat16), wv_ref[...],
                     preferred_element_type=jnp.float32)
           + fcb_ref[...])
    o_ref[...] = out.astype(o_ref.dtype)


def pallas_head(vid_cls, lnf_g, lnf_b, cls_w, cls_b, text_mean, wt, wv, fcb, *, eps):
    Bn, Dd = vid_cls.shape
    C = wt.shape[1]                                             # lane-padded class dim
    kern = functools.partial(_head_kernel, eps=eps)
    return pl.pallas_call(
        kern,
        out_shape=jax.ShapeDtypeStruct((Bn, C), jnp.float32),
        grid=(1,),
        in_specs=[pl.BlockSpec((Bn, Dd), lambda i: (0, 0)),
                  pl.BlockSpec((1, Dd), lambda i: (0, 0)),
                  pl.BlockSpec((1, Dd), lambda i: (0, 0)),
                  pl.BlockSpec((Dd, Dd), lambda i: (0, 0)),
                  pl.BlockSpec((1, Dd), lambda i: (0, 0)),
                  pl.BlockSpec((Bn, Dd), lambda i: (0, 0)),
                  pl.BlockSpec((Dd, C), lambda i: (0, 0)),
                  pl.BlockSpec((Dd, C), lambda i: (0, 0)),
                  pl.BlockSpec((1, C), lambda i: (0, 0))],
        out_specs=pl.BlockSpec((Bn, C), lambda i: (0, 0)),
    )(vid_cls, lnf_g, lnf_b, cls_w, cls_b, text_mean, wt, wv, fcb)


# ----------------------------- model (glue around kernels) -----------------------------
def vivit_encode(video, p):
    # tubelet "Conv3d" patch-embed == flatten tubelet then linear (done inside the kernel).
    # TODO(synk): flatten order (tt, th, tw, C) would need a weight permute to load real
    # pretrained Conv3d (C, tt, th, tw) weights; fine for random weights.
    x = video.reshape(B, VT // TT, TT, VH // TH, TH, VW // TW, TW, VC)
    x = x.transpose(0, 1, 3, 5, 2, 4, 6, 7).reshape(B, N_TUB, TUB_DIM)
    # rows: 0 = CLS slot (zeros -> addend supplies cls+pos), 1..8 tubelets, 9..15 padding
    x = jnp.pad(x, ((0, 0), (1, S_VID - N_VID_TOK), (0, 0))).reshape(B * S_VID, TUB_DIM)
    addend = jnp.tile(p["tok_addend"], (B, 1))                  # (B*S_VID, D)
    return pallas_encoder(x, p["patch_w"], addend, p["layers"],
                          bsz=B, seq=S_VID, nhead=NHEAD, valid_len=N_VID_TOK,
                          eps=1e-6, pre_ln=True,
                          input_mode="proj", output_mode="cls")   # (B, D) pre-final-LN CLS


def bert_encode(token_ids, p):
    # TODO(synk): HF tokenizer not reproducible in-script; embedding gather stays in XLA.
    tok = jnp.take(p["tok_emb"], token_ids, axis=0)             # (B, T, D)
    x = tok + p["pos_emb"][None, :, :] + p["type_emb"][0][None, None, :]
    x = x.reshape(B * T_TXT, D)
    # embedding LayerNorm + mean-pool over the sequence are fused into the encoder kernel
    return pallas_encoder(x, p["emb_ln_g"], p["emb_ln_b"], p["layers"],
                          bsz=B, seq=T_TXT, nhead=NHEAD, valid_len=T_TXT,
                          eps=1e-12, pre_ln=False,
                          input_mode="ln", output_mode="mean")    # (B, D) mean-pooled


@jax.jit
def multimodal_vivit_forward(params, video, token_ids):
    vid_cls = vivit_encode(video, params["vivit"])              # (B, D)
    text_mean = bert_encode(token_ids, params["bert"])          # (B, D)
    logits = pallas_head(vid_cls,
                         params["vivit"]["lnf_g"], params["vivit"]["lnf_b"],
                         params["vivit"]["cls_w"], params["vivit"]["cls_b"],
                         text_mean,
                         params["fc_wt"], params["fc_wv"], params["fc_b_pad"],
                         eps=1e-6)
    return logits[:, :NUM_CLASSES]                              # (B, NUM_CLASSES)


# ----------------------------- deterministic param init -----------------------------
def init_params(key):
    keys = iter(jax.random.split(key, 64))

    def nrm(shape, dtype=jnp.float32, scale=0.02):
        return (scale * jax.random.normal(next(keys), shape, jnp.float32)).astype(dtype)

    def zeros(shape):
        return jnp.zeros(shape, jnp.float32)

    def ones(shape):
        return jnp.ones(shape, jnp.float32)

    def stacked_layers(n):   # per-layer weights stacked on a leading axis, matmul weights bf16
        return dict(
            ln1_g=ones((n, 1, D)), ln1_b=zeros((n, 1, D)),
            wqkv=nrm((n, D, 3 * D), jnp.bfloat16), bqkv=zeros((n, 1, 3 * D)),
            wo=nrm((n, D, D), jnp.bfloat16), bo=zeros((n, 1, D)),
            ln2_g=ones((n, 1, D)), ln2_b=zeros((n, 1, D)),
            w1=nrm((n, D, MLP), jnp.bfloat16), b1=zeros((n, 1, MLP)),
            w2=nrm((n, MLP, D), jnp.bfloat16), b2=zeros((n, 1, D)),
        )

    # ViViT embedding: fold cls token, position embeddings, and patch bias into one additive
    # per-token table (row 0 = cls + pos[0]; rows 1..8 = pos[i] + patch_b; rows 9..15 = 0).
    patch_b = zeros((D,))
    cls_tok = nrm((D,))
    pos = nrm((N_VID_TOK, D))
    addend = jnp.zeros((S_VID, D), jnp.float32)
    addend = addend.at[0].set(cls_tok + pos[0])
    addend = addend.at[1:N_VID_TOK].set(pos[1:] + patch_b)

    # final fc, split per modality, lane-padded to CPAD, hoisted out of the forward pass
    fc_w = nrm((2 * D, NUM_CLASSES))
    fc_b = zeros((NUM_CLASSES,))
    fc_wt = jnp.pad(fc_w[:D], ((0, 0), (0, CPAD - NUM_CLASSES))).astype(jnp.bfloat16)
    fc_wv = jnp.pad(fc_w[D:], ((0, 0), (0, CPAD - NUM_CLASSES))).astype(jnp.bfloat16)
    fc_b_pad = jnp.pad(fc_b, (0, CPAD - NUM_CLASSES)).reshape(1, CPAD)

    return dict(
        vivit=dict(
            patch_w=nrm((TUB_DIM, D), jnp.bfloat16),
            tok_addend=addend,                                  # (S_VID, D)
            layers=stacked_layers(NLAYERS),
            lnf_g=ones((1, D)), lnf_b=zeros((1, D)),
            cls_w=nrm((D, D), jnp.bfloat16), cls_b=zeros((1, D)),
        ),
        bert=dict(
            tok_emb=nrm((VOCAB, D)), pos_emb=nrm((T_TXT, D)), type_emb=nrm((2, D)),
            emb_ln_g=ones((1, D)), emb_ln_b=zeros((1, D)),
            layers=stacked_layers(NLAYERS),
        ),
        fc_wt=fc_wt, fc_wv=fc_wv, fc_b_pad=fc_b_pad,
    )


if __name__ == "__main__":
    key = jax.random.PRNGKey(0)
    kp, kv, kt = jax.random.split(key, 3)
    params = init_params(kp)
    video = jax.random.normal(kv, (B, VT, VH, VW, VC), jnp.float32)
    # TODO(synk): HF tokenizer + pretrained ViViT/BERT weights are not reproducible
    # in-script; token ids are synthesized deterministically instead of tokenizing a title.
    token_ids = jax.random.randint(kt, (B, T_TXT), 0, VOCAB)

    out = multimodal_vivit_forward(params, video, token_ids)
    jax.block_until_ready(out)
    assert out.shape == (B, NUM_CLASSES), out.shape
    assert jnp.all(jnp.isfinite(out))
    print("KERNEL_OK")
</pallas_src>

<mosaic_0001>
module attributes {stable_mosaic.version = 11 : i64} {
  func.func @_encoder_kernel(%arg0: i32, %arg1: memref<32x384xf32, #tpu.memory_space<vmem>>, %arg2: memref<384x128xbf16, #tpu.memory_space<vmem>>, %arg3: memref<32x128xf32, #tpu.memory_space<vmem>>, %arg4: memref<1x1x128xf32, #tpu.memory_space<vmem>>, %arg5: memref<1x1x128xf32, #tpu.memory_space<vmem>>, %arg6: memref<1x128x384xbf16, #tpu.memory_space<vmem>>, %arg7: memref<1x1x384xf32, #tpu.memory_space<vmem>>, %arg8: memref<1x128x128xbf16, #tpu.memory_space<vmem>>, %arg9: memref<1x1x128xf32, #tpu.memory_space<vmem>>, %arg10: memref<1x1x128xf32, #tpu.memory_space<vmem>>, %arg11: memref<1x1x128xf32, #tpu.memory_space<vmem>>, %arg12: memref<1x128x512xbf16, #tpu.memory_space<vmem>>, %arg13: memref<1x1x512xf32, #tpu.memory_space<vmem>>, %arg14: memref<1x512x128xbf16, #tpu.memory_space<vmem>>, %arg15: memref<1x1x128xf32, #tpu.memory_space<vmem>>, %arg16: memref<2x128xf32, #tpu.memory_space<vmem>>, %arg17: memref<32x128xf32, #tpu.memory_space<vmem>>) attributes {dimension_semantics = [#tpu.dimension_semantics<arbitrary>], iteration_bounds = array<i64: 2>, scalar_prefetch = 0 : i64, scratch_operands = 1 : i64, tpu.core_type = #tpu.core_type<tc>, window_params = [{pipeline_mode = #tpu.pipeline_mode<synchronous>, transform_indices = @transform_0, window_bounds = array<i64: 32, 384>}, {pipeline_mode = #tpu.pipeline_mode<synchronous>, transform_indices = @transform_1, window_bounds = array<i64: 384, 128>}, {pipeline_mode = #tpu.pipeline_mode<synchronous>, transform_indices = @transform_2, window_bounds = array<i64: 32, 128>}, {transform_indices = @transform_3, window_bounds = array<i64: 1, 1, 128>}, {transform_indices = @transform_4, window_bounds = array<i64: 1, 1, 128>}, {transform_indices = @transform_5, window_bounds = array<i64: 1, 128, 384>}, {transform_indices = @transform_6, window_bounds = array<i64: 1, 1, 384>}, {transform_indices = @transform_7, window_bounds = array<i64: 1, 128, 128>}, {transform_indices = @transform_8, window_bounds = array<i64: 1, 1, 128>}, {transform_indices = @transform_9, window_bounds = array<i64: 1, 1, 128>}, {transform_indices = @transform_10, window_bounds = array<i64: 1, 1, 128>}, {transform_indices = @transform_11, window_bounds = array<i64: 1, 128, 512>}, {transform_indices = @transform_12, window_bounds = array<i64: 1, 1, 512>}, {transform_indices = @transform_13, window_bounds = array<i64: 1, 512, 128>}, {transform_indices = @transform_14, window_bounds = array<i64: 1, 1, 128>}, {pipeline_mode = #tpu.pipeline_mode<synchronous>, transform_indices = @transform_15, window_bounds = array<i64: 2, 128>}]} {
    %c0_i32 = arith.constant 0 : i32
    %0 = arith.cmpi eq, %arg0, %c0_i32 : i32
    %1 = arith.extui %0 : i1 to i32
    %c0_i32_0 = arith.constant 0 : i32
    %2 = arith.cmpi ne, %1, %c0_i32_0 : i32
    scf.if %2 {
      %c0_133 = arith.constant 0 : index
      %c0_134 = arith.constant 0 : index
      %328 = vector.load %arg1[%c0_133, %c0_134] : memref<32x384xf32, #tpu.memory_space<vmem>>, vector<32x384xf32>
      %329 = arith.truncf %328 : vector<32x384xf32> to vector<32x384xbf16>
      %c0_135 = arith.constant 0 : index
      %c0_136 = arith.constant 0 : index
      %330 = vector.load %arg2[%c0_135, %c0_136] : memref<384x128xbf16, #tpu.memory_space<vmem>>, vector<384x128xbf16>
      %cst_137 = arith.constant dense<0.000000e+00> : vector<32x128xf32>
      %331 = tpu.matmul %329, %330, %cst_137 {dimension_numbers = #tpu.dot_dimension_numbers<[1], [0], [0], [1], [0, 0, 1, 1], [], []>} : vector<32x384xbf16>, vector<384x128xbf16>, vector<32x128xf32> -> vector<32x128xf32>
      %c0_138 = arith.constant 0 : index
      %c0_139 = arith.constant 0 : index
      %332 = vector.load %arg3[%c0_138, %c0_139] : memref<32x128xf32, #tpu.memory_space<vmem>>, vector<32x128xf32>
      %333 = arith.addf %331, %332 : vector<32x128xf32>
      %c0_140 = arith.constant 0 : index
      %c0_141 = arith.constant 0 : index
      %334 = vector.load %arg17[%c0_140, %c0_141] : memref<32x128xf32, #tpu.memory_space<vmem>>, vector<32x128xf32>
      tpu.vector_store %arg17[%c0_140, %c0_141], %333 {strides = array<i32>} : memref<32x128xf32, #tpu.memory_space<vmem>>, vector<32x128xf32>,
    } else {
    }
    %c0 = arith.constant 0 : index
    %c0_1 = arith.constant 0 : index
    %3 = vector.load %arg17[%c0, %c0_1] : memref<32x128xf32, #tpu.memory_space<vmem>>, vector<32x128xf32>
    %cst = arith.constant dense<0.000000e+00> : vector<32xf32>
    %4 = vector.multi_reduction <add>, %3, %cst [1] : vector<32x128xf32> to vector<32xf32>
    %5 = vector.shape_cast %4 : vector<32xf32> to vector<32x1xf32>
    %cst_2 = arith.constant 1.280000e+02 : f32
    %6 = vector.broadcast %cst_2 : f32 to vector<32x1xf32>
    %7 = arith.divf %5, %6 : vector<32x1xf32>
    %8 = vector.broadcast %7 : vector<32x1xf32> to vector<32x128xf32>
    %9 = arith.subf %3, %8 : vector<32x128xf32>
    %10 = arith.mulf %9, %9 : vector<32x128xf32>
    %cst_3 = arith.constant dense<0.000000e+00> : vector<32xf32>
    %11 = vector.multi_reduction <add>, %10, %cst_3 [1] : vector<32x128xf32> to vector<32xf32>
    %12 = vector.shape_cast %11 : vector<32xf32> to vector<32x1xf32>
    %cst_4 = arith.constant 1.280000e+02 : f32
    %13 = vector.broadcast %cst_4 : f32 to vector<32x1xf32>
    %14 = arith.divf %12, %13 : vector<32x1xf32>
    %15 = vector.broadcast %7 : vector<32x1xf32> to vector<32x128xf32>
    %16 = arith.subf %3, %15 : vector<32x128xf32>
    %cst_5 = arith.constant 9.99999997E-7 : f32
    %17 = vector.broadcast %cst_5 : f32 to vector<32x1xf32>
    %18 = arith.addf %14, %17 : vector<32x1xf32>
    %19 = math.rsqrt %18 : vector<32x1xf32>
    %20 = vector.broadcast %19 : vector<32x1xf32> to vector<32x128xf32>
    %21 = arith.mulf %16, %20 : vector<32x128xf32>
    %c0_6 = arith.constant 0 : index
    %c0_7 = arith.constant 0 : index
    %c0_8 = arith.constant 0 : index
    %22 = vector.load %arg4[%c0_6, %c0_7, %c0_8] : memref<1x1x128xf32, #tpu.memory_space<vmem>>, vector<1x1x128xf32>
    %23 = vector.shape_cast %22 : vector<1x1x128xf32> to vector<1x128xf32>
    %24 = vector.broadcast %23 : vector<1x128xf32> to vector<32x128xf32>
    %25 = arith.mulf %21, %24 : vector<32x128xf32>
    %c0_9 = arith.constant 0 : index
    %c0_10 = arith.constant 0 : index
    %c0_11 = arith.constant 0 : index
    %26 = vector.load %arg5[%c0_9, %c0_10, %c0_11] : memref<1x1x128xf32, #tpu.memory_space<vmem>>, vector<1x1x128xf32>
    %27 = vector.shape_cast %26 : vector<1x1x128xf32> to vector<1x128xf32>
    %28 = vector.broadcast %27 : vector<1x128xf32> to vector<32x128xf32>
    %29 = arith.addf %25, %28 : vector<32x128xf32>
    %30 = arith.truncf %29 : vector<32x128xf32> to vector<32x128xbf16>
    %c0_12 = arith.constant 0 : index
    %c0_13 = arith.constant 0 : index
    %c0_14 = arith.constant 0 : index
    %31 = vector.load %arg6[%c0_12, %c0_13, %c0_14] : memref<1x128x384xbf16, #tpu.memory_space<vmem>>, vector<1x128x384xbf16>
    %32 = vector.shape_cast %31 : vector<1x128x384xbf16> to vector<128x384xbf16>
    %cst_15 = arith.constant dense<0.000000e+00> : vector<32x384xf32>
    %33 = tpu.matmul %30, %32, %cst_15 {dimension_numbers = #tpu.dot_dimension_numbers<[1], [0], [0], [1], [0, 0, 1, 1], [], []>} : vector<32x128xbf16>, vector<128x384xbf16>, vector<32x384xf32> -> vector<32x384xf32>
    %c0_16 = arith.constant 0 : index
    %c0_17 = arith.constant 0 : index
    %c0_18 = arith.constant 0 : index
    %34 = vector.load %arg7[%c0_16, %c0_17, %c0_18] : memref<1x1x384xf32, #tpu.memory_space<vmem>>, vector<1x1x384xf32>
    %35 = vector.shape_cast %34 : vector<1x1x384xf32> to vector<1x384xf32>
    %36 = vector.broadcast %35 : vector<1x384xf32> to vector<32x384xf32>
    %37 = arith.addf %33, %36 : vector<32x384xf32>
    %38 = arith.truncf %37 : vector<32x384xf32> to vector<32x384xbf16>
    %39 = tpu.iota {dimensions = array<i32: 1>} : vector<1x16xi32>
    %c9_i32 = arith.constant 9 : i32
    %40 = vector.broadcast %c9_i32 : i32 to vector<1x16xi32>
    %41 = arith.cmpi slt, %39, %40 : vector<1x16xi32>
    %42 = vector.extract_strided_slice %38 {offsets = [0, 0], sizes = [16, 384], strides = [1, 1]} : vector<32x384xbf16> to vector<16x384xbf16>
    %cst_19 = arith.constant 0.000000e+00 : f32
    %43 = vector.broadcast %cst_19 : f32 to vector<16x128xf32>
    %44 = vector.extract_strided_slice %42 {offsets = [0, 0], sizes = [16, 32], strides = [1, 1]} : vector<16x384xbf16> to vector<16x32xbf16>
    %45 = vector.extract_strided_slice %42 {offsets = [0, 128], sizes = [16, 32], strides = [1, 1]} : vector<16x384xbf16> to vector<16x32xbf16>
    %46 = vector.extract_strided_slice %42 {offsets = [0, 256], sizes = [16, 32], strides = [1, 1]} : vector<16x384xbf16> to vector<16x32xbf16>
    %cst_20 = arith.constant dense<0.000000e+00> : vector<16x16xf32>
    %47 = tpu.matmul %44, %45, %cst_20 {dimension_numbers = #tpu.dot_dimension_numbers<[1], [1], [0], [0], [0, 0, 1, 0], [], []>} : vector<16x32xbf16>, vector<16x32xbf16>, vector<16x16xf32> -> vector<16x16xf32>
    %cst_21 = arith.constant 0.176776692 : f32
    %48 = vector.broadcast %cst_21 : f32 to vector<16x16xf32>
    %49 = arith.mulf %47, %48 : vector<16x16xf32>
    %cst_22 = arith.constant -1.000000e+30 : f32
    %50 = vector.shape_cast %41 : vector<1x16xi1> to vector<1x16xi1>
    %51 = vector.broadcast %50 : vector<1x16xi1> to vector<16x16xi1>
    %52 = vector.broadcast %cst_22 : f32 to vector<16x16xf32>
    %53 = arith.select %51, %49, %52 : vector<16x16xi1>, vector<16x16xf32>
    %cst_23 = arith.constant dense<0xFF800000> : vector<16xf32>
    %54 = vector.multi_reduction <maximumf>, %53, %cst_23 [1] : vector<16x16xf32> to vector<16xf32>
    %55 = vector.shape_cast %54 : vector<16xf32> to vector<16x1xf32>
    %56 = vector.broadcast %55 : vector<16x1xf32> to vector<16x16xf32>
    %57 = arith.subf %53, %56 : vector<16x16xf32>
    %58 = math.exp %57 : vector<16x16xf32>
    %cst_24 = arith.constant dense<0.000000e+00> : vector<16xf32>
    %59 = vector.multi_reduction <add>, %58, %cst_24 [1] : vector<16x16xf32> to vector<16xf32>
    %60 = vector.shape_cast %59 : vector<16xf32> to vector<16x1xf32>
    %61 = tpu.reciprocal %60 {approx = true} : vector<16x1xf32> -> vector<16x1xf32>
    %62 = vector.broadcast %61 : vector<16x1xf32> to vector<16x16xf32>
    %63 = arith.mulf %58, %62 : vector<16x16xf32>
    %64 = arith.truncf %63 : vector<16x16xf32> to vector<16x16xbf16>
    %cst_25 = arith.constant dense<0.000000e+00> : vector<16x32xf32>
    %65 = tpu.matmul %64, %46, %cst_25 {dimension_numbers = #tpu.dot_dimension_numbers<[1], [0], [0], [1], [0, 0, 1, 1], [], []>} : vector<16x16xbf16>, vector<16x32xbf16>, vector<16x32xf32> -> vector<16x32xf32>
    %66 = arith.truncf %65 : vector<16x32xf32> to vector<16x32xbf16>
    %c0_26 = arith.constant 0 : index
    %c0_27 = arith.constant 0 : index
    %c0_28 = arith.constant 0 : index
    %67 = vector.load %arg8[%c0_26, %c0_27, %c0_28] : memref<1x128x128xbf16, #tpu.memory_space<vmem>>, vector<1x32x128xbf16>
    %68 = vector.shape_cast %67 : vector<1x32x128xbf16> to vector<32x128xbf16>
    %cst_29 = arith.constant dense<0.000000e+00> : vector<16x128xf32>
    %69 = tpu.matmul %66, %68, %cst_29 {dimension_numbers = #tpu.dot_dimension_numbers<[1], [0], [0], [1], [0, 0, 1, 1], [], []>} : vector<16x32xbf16>, vector<32x128xbf16>, vector<16x128xf32> -> vector<16x128xf32>
    %70 = arith.addf %43, %69 : vector<16x128xf32>
    %71 = vector.extract_strided_slice %42 {offsets = [0, 32], sizes = [16, 32], strides = [1, 1]} : vector<16x384xbf16> to vector<16x32xbf16>
    %72 = vector.extract_strided_slice %42 {offsets = [0, 160], sizes = [16, 32], strides = [1, 1]} : vector<16x384xbf16> to vector<16x32xbf16>
    %73 = vector.extract_strided_slice %42 {offsets = [0, 288], sizes = [16, 32], strides = [1, 1]} : vector<16x384xbf16> to vector<16x32xbf16>
    %cst_30 = arith.constant dense<0.000000e+00> : vector<16x16xf32>
    %74 = tpu.matmul %71, %72, %cst_30 {dimension_numbers = #tpu.dot_dimension_numbers<[1], [1], [0], [0], [0, 0, 1, 0], [], []>} : vector<16x32xbf16>, vector<16x32xbf16>, vector<16x16xf32> -> vector<16x16xf32>
    %cst_31 = arith.constant 0.176776692 : f32
    %75 = vector.broadcast %cst_31 : f32 to vector<16x16xf32>
    %76 = arith.mulf %74, %75 : vector<16x16xf32>
    %cst_32 = arith.constant -1.000000e+30 : f32
    %77 = vector.shape_cast %41 : vector<1x16xi1> to vector<1x16xi1>
    %78 = vector.broadcast %77 : vector<1x16xi1> to vector<16x16xi1>
    %79 = vector.broadcast %cst_32 : f32 to vector<16x16xf32>
    %80 = arith.select %78, %76, %79 : vector<16x16xi1>, vector<16x16xf32>
    %cst_33 = arith.constant dense<0xFF800000> : vector<16xf32>
    %81 = vector.multi_reduction <maximumf>, %80, %cst_33 [1] : vector<16x16xf32> to vector<16xf32>
    %82 = vector.shape_cast %81 : vector<16xf32> to vector<16x1xf32>
    %83 = vector.broadcast %82 : vector<16x1xf32> to vector<16x16xf32>
    %84 = arith.subf %80, %83 : vector<16x16xf32>
    %85 = math.exp %84 : vector<16x16xf32>
    %cst_34 = arith.constant dense<0.000000e+00> : vector<16xf32>
    %86 = vector.multi_reduction <add>, %85, %cst_34 [1] : vector<16x16xf32> to vector<16xf32>
    %87 = vector.shape_cast %86 : vector<16xf32> to vector<16x1xf32>
    %88 = tpu.reciprocal %87 {approx = true} : vector<16x1xf32> -> vector<16x1xf32>
    %89 = vector.broadcast %88 : vector<16x1xf32> to vector<16x16xf32>
    %90 = arith.mulf %85, %89 : vector<16x16xf32>
    %91 = arith.truncf %90 : vector<16x16xf32> to vector<16x16xbf16>
    %cst_35 = arith.constant dense<0.000000e+00> : vector<16x32xf32>
    %92 = tpu.matmul %91, %73, %cst_35 {dimension_numbers = #tpu.dot_dimension_numbers<[1], [0], [0], [1], [0, 0, 1, 1], [], []>} : vector<16x16xbf16>, vector<16x32xbf16>, vector<16x32xf32> -> vector<16x32xf32>
    %93 = arith.truncf %92 : vector<16x32xf32> to vector<16x32xbf16>
    %c0_36 = arith.constant 0 : index
    %c32 = arith.constant 32 : index
    %c0_37 = arith.constant 0 : index
    %94 = vector.load %arg8[%c0_36, %c32, %c0_37] : memref<1x128x128xbf16, #tpu.memory_space<vmem>>, vector<1x32x128xbf16>
    %95 = vector.shape_cast %94 : vector<1x32x128xbf16> to vector<32x128xbf16>
    %cst_38 = arith.constant dense<0.000000e+00> : vector<16x128xf32>
    %96 = tpu.matmul %93, %95, %cst_38 {dimension_numbers = #tpu.dot_dimension_numbers<[1], [0], [0], [1], [0, 0, 1, 1], [], []>} : vector<16x32xbf16>, vector<32x128xbf16>, vector<16x128xf32> -> vector<16x128xf32>
    %97 = arith.addf %70, %96 : vector<16x128xf32>
    %98 = vector.extract_strided_slice %42 {offsets = [0, 64], sizes = [16, 32], strides = [1, 1]} : vector<16x384xbf16> to vector<16x32xbf16>
    %99 = vector.extract_strided_slice %42 {offsets = [0, 192], sizes = [16, 32], strides = [1, 1]} : vector<16x384xbf16> to vector<16x32xbf16>
    %100 = vector.extract_strided_slice %42 {offsets = [0, 320], sizes = [16, 32], strides = [1, 1]} : vector<16x384xbf16> to vector<16x32xbf16>
    %cst_39 = arith.constant dense<0.000000e+00> : vector<16x16xf32>
    %101 = tpu.matmul %98, %99, %cst_39 {dimension_numbers = #tpu.dot_dimension_numbers<[1], [1], [0], [0], [0, 0, 1, 0], [], []>} : vector<16x32xbf16>, vector<16x32xbf16>, vector<16x16xf32> -> vector<16x16xf32>
    %cst_40 = arith.constant 0.176776692 : f32
    %102 = vector.broadcast %cst_40 : f32 to vector<16x16xf32>
    %103 = arith.mulf %101, %102 : vector<16x16xf32>
    %cst_41 = arith.constant -1.000000e+30 : f32
    %104 = vector.shape_cast %41 : vector<1x16xi1> to vector<1x16xi1>
    %105 = vector.broadcast %104 : vector<1x16xi1> to vector<16x16xi1>
    %106 = vector.broadcast %cst_41 : f32 to vector<16x16xf32>
    %107 = arith.select %105, %103, %106 : vector<16x16xi1>, vector<16x16xf32>
    %cst_42 = arith.constant dense<0xFF800000> : vector<16xf32>
    %108 = vector.multi_reduction <maximumf>, %107, %cst_42 [1] : vector<16x16xf32> to vector<16xf32>
    %109 = vector.shape_cast %108 : vector<16xf32> to vector<16x1xf32>
    %110 = vector.broadcast %109 : vector<16x1xf32> to vector<16x16xf32>
    %111 = arith.subf %107, %110 : vector<16x16xf32>
    %112 = math.exp %111 : vector<16x16xf32>
    %cst_43 = arith.constant dense<0.000000e+00> : vector<16xf32>
    %113 = vector.multi_reduction <add>, %112, %cst_43 [1] : vector<16x16xf32> to vector<16xf32>
    %114 = vector.shape_cast %113 : vector<16xf32> to vector<16x1xf32>
    %115 = tpu.reciprocal %114 {approx = true} : vector<16x1xf32> -> vector<16x1xf32>
    %116 = vector.broadcast %115 : vector<16x1xf32> to vector<16x16xf32>
    %117 = arith.mulf %112, %116 : vector<16x16xf32>
    %118 = arith.truncf %117 : vector<16x16xf32> to vector<16x16xbf16>
    %cst_44 = arith.constant dense<0.000000e+00> : vector<16x32xf32>
    %119 = tpu.matmul %118, %100, %cst_44 {dimension_numbers = #tpu.dot_dimension_numbers<[1], [0], [0], [1], [0, 0, 1, 1], [], []>} : vector<16x16xbf16>, vector<16x32xbf16>, vector<16x32xf32> -> vector<16x32xf32>
    %120 = arith.truncf %119 : vector<16x32xf32> to vector<16x32xbf16>
    %c0_45 = arith.constant 0 : index
    %c64 = arith.constant 64 : index
    %c0_46 = arith.constant 0 : index
    %121 = vector.load %arg8[%c0_45, %c64, %c0_46] : memref<1x128x128xbf16, #tpu.memory_space<vmem>>, vector<1x32x128xbf16>
    %122 = vector.shape_cast %121 : vector<1x32x128xbf16> to vector<32x128xbf16>
    %cst_47 = arith.constant dense<0.000000e+00> : vector<16x128xf32>
    %123 = tpu.matmul %120, %122, %cst_47 {dimension_numbers = #tpu.dot_dimension_numbers<[1], [0], [0], [1], [0, 0, 1, 1], [], []>} : vector<16x32xbf16>, vector<32x128xbf16>, vector<16x128xf32> -> vector<16x128xf32>
    %124 = arith.addf %97, %123 : vector<16x128xf32>
    %125 = vector.extract_strided_slice %42 {offsets = [0, 96], sizes = [16, 32], strides = [1, 1]} : vector<16x384xbf16> to vector<16x32xbf16>
    %126 = vector.extract_strided_slice %42 {offsets = [0, 224], sizes = [16, 32], strides = [1, 1]} : vector<16x384xbf16> to vector<16x32xbf16>
    %127 = vector.extract_strided_slice %42 {offsets = [0, 352], sizes = [16, 32], strides = [1, 1]} : vector<16x384xbf16> to vector<16x32xbf16>
    %cst_48 = arith.constant dense<0.000000e+00> : vector<16x16xf32>
    %128 = tpu.matmul %125, %126, %cst_48 {dimension_numbers = #tpu.dot_dimension_numbers<[1], [1], [0], [0], [0, 0, 1, 0], [], []>} : vector<16x32xbf16>, vector<16x32xbf16>, vector<16x16xf32> -> vector<16x16xf32>
    %cst_49 = arith.constant 0.176776692 : f32
    %129 = vector.broadcast %cst_49 : f32 to vector<16x16xf32>
    %130 = arith.mulf %128, %129 : vector<16x16xf32>
    %cst_50 = arith.constant -1.000000e+30 : f32
    %131 = vector.shape_cast %41 : vector<1x16xi1> to vector<1x16xi1>
    %132 = vector.broadcast %131 : vector<1x16xi1> to vector<16x16xi1>
    %133 = vector.broadcast %cst_50 : f32 to vector<16x16xf32>
    %134 = arith.select %132, %130, %133 : vector<16x16xi1>, vector<16x16xf32>
    %cst_51 = arith.constant dense<0xFF800000> : vector<16xf32>
    %135 = vector.multi_reduction <maximumf>, %134, %cst_51 [1] : vector<16x16xf32> to vector<16xf32>
    %136 = vector.shape_cast %135 : vector<16xf32> to vector<16x1xf32>
    %137 = vector.broadcast %136 : vector<16x1xf32> to vector<16x16xf32>
    %138 = arith.subf %134, %137 : vector<16x16xf32>
    %139 = math.exp %138 : vector<16x16xf32>
    %cst_52 = arith.constant dense<0.000000e+00> : vector<16xf32>
    %140 = vector.multi_reduction <add>, %139, %cst_52 [1] : vector<16x16xf32> to vector<16xf32>
    %141 = vector.shape_cast %140 : vector<16xf32> to vector<16x1xf32>
    %142 = tpu.reciprocal %141 {approx = true} : vector<16x1xf32> -> vector<16x1xf32>
    %143 = vector.broadcast %142 : vector<16x1xf32> to vector<16x16xf32>
    %144 = arith.mulf %139, %143 : vector<16x16xf32>
    %145 = arith.truncf %144 : vector<16x16xf32> to vector<16x16xbf16>
    %cst_53 = arith.constant dense<0.000000e+00> : vector<16x32xf32>
    %146 = tpu.matmul %145, %127, %cst_53 {dimension_numbers = #tpu.dot_dimension_numbers<[1], [0], [0], [1], [0, 0, 1, 1], [], []>} : vector<16x16xbf16>, vector<16x32xbf16>, vector<16x32xf32> -> vector<16x32xf32>
    %147 = arith.truncf %146 : vector<16x32xf32> to vector<16x32xbf16>
    %c0_54 = arith.constant 0 : index
    %c96 = arith.constant 96 : index
    %c0_55 = arith.constant 0 : index
    %148 = vector.load %arg8[%c0_54, %c96, %c0_55] : memref<1x128x128xbf16, #tpu.memory_space<vmem>>, vector<1x32x128xbf16>
    %149 = vector.shape_cast %148 : vector<1x32x128xbf16> to vector<32x128xbf16>
    %cst_56 = arith.constant dense<0.000000e+00> : vector<16x128xf32>
    %150 = tpu.matmul %147, %149, %cst_56 {dimension_numbers = #tpu.dot_dimension_numbers<[1], [0], [0], [1], [0, 0, 1, 1], [], []>} : vector<16x32xbf16>, vector<32x128xbf16>, vector<16x128xf32> -> vector<16x128xf32>
    %151 = arith.addf %124, %150 : vector<16x128xf32>
    %152 = vector.extract_strided_slice %38 {offsets = [16, 0], sizes = [16, 384], strides = [1, 1]} : vector<32x384xbf16> to vector<16x384xbf16>
    %cst_57 = arith.constant 0.000000e+00 : f32
    %153 = vector.broadcast %cst_57 : f32 to vector<16x128xf32>
    %154 = vector.extract_strided_slice %152 {offsets = [0, 0], sizes = [16, 32], strides = [1, 1]} : vector<16x384xbf16> to vector<16x32xbf16>
    %155 = vector.extract_strided_slice %152 {offsets = [0, 128], sizes = [16, 32], strides = [1, 1]} : vector<16x384xbf16> to vector<16x32xbf16>
    %156 = vector.extract_strided_slice %152 {offsets = [0, 256], sizes = [16, 32], strides = [1, 1]} : vector<16x384xbf16> to vector<16x32xbf16>
    %cst_58 = arith.constant dense<0.000000e+00> : vector<16x16xf32>
    %157 = tpu.matmul %154, %155, %cst_58 {dimension_numbers = #tpu.dot_dimension_numbers<[1], [1], [0], [0], [0, 0, 1, 0], [], []>} : vector<16x32xbf16>, vector<16x32xbf16>, vector<16x16xf32> -> vector<16x16xf32>
    %cst_59 = arith.constant 0.176776692 : f32
    %158 = vector.broadcast %cst_59 : f32 to vector<16x16xf32>
    %159 = arith.mulf %157, %158 : vector<16x16xf32>
    %cst_60 = arith.constant -1.000000e+30 : f32
    %160 = vector.shape_cast %41 : vector<1x16xi1> to vector<1x16xi1>
    %161 = vector.broadcast %160 : vector<1x16xi1> to vector<16x16xi1>
    %162 = vector.broadcast %cst_60 : f32 to vector<16x16xf32>
    %163 = arith.select %161, %159, %162 : vector<16x16xi1>, vector<16x16xf32>
    %cst_61 = arith.constant dense<0xFF800000> : vector<16xf32>
    %164 = vector.multi_reduction <maximumf>, %163, %cst_61 [1] : vector<16x16xf32> to vector<16xf32>
    %165 = vector.shape_cast %164 : vector<16xf32> to vector<16x1xf32>
    %166 = vector.broadcast %165 : vector<16x1xf32> to vector<16x16xf32>
    %167 = arith.subf %163, %166 : vector<16x16xf32>
    %168 = math.exp %167 : vector<16x16xf32>
    %cst_62 = arith.constant dense<0.000000e+00> : vector<16xf32>
    %169 = vector.multi_reduction <add>, %168, %cst_62 [1] : vector<16x16xf32> to vector<16xf32>
    %170 = vector.shape_cast %169 : vector<16xf32> to vector<16x1xf32>
    %171 = tpu.reciprocal %170 {approx = true} : vector<16x1xf32> -> vector<16x1xf32>
    %172 = vector.broadcast %171 : vector<16x1xf32> to vector<16x16xf32>
    %173 = arith.mulf %168, %172 : vector<16x16xf32>
    %174 = arith.truncf %173 : vector<16x16xf32> to vector<16x16xbf16>
    %cst_63 = arith.constant dense<0.000000e+00> : vector<16x32xf32>
    %175 = tpu.matmul %174, %156, %cst_63 {dimension_numbers = #tpu.dot_dimension_numbers<[1], [0], [0], [1], [0, 0, 1, 1], [], []>} : vector<16x16xbf16>, vector<16x32xbf16>, vector<16x32xf32> -> vector<16x32xf32>
    %176 = arith.truncf %175 : vector<16x32xf32> to vector<16x32xbf16>
    %c0_64 = arith.constant 0 : index
    %c0_65 = arith.constant 0 : index
    %c0_66 = arith.constant 0 : index
    %177 = vector.load %arg8[%c0_64, %c0_65, %c0_66] : memref<1x128x128xbf16, #tpu.memory_space<vmem>>, vector<1x32x128xbf16>
    %178 = vector.shape_cast %177 : vector<1x32x128xbf16> to vector<32x128xbf16>
    %cst_67 = arith.constant dense<0.000000e+00> : vector<16x128xf32>
    %179 = tpu.matmul %176, %178, %cst_67 {dimension_numbers = #tpu.dot_dimension_numbers<[1], [0], [0], [1], [0, 0, 1, 1], [], []>} : vector<16x32xbf16>, vector<32x128xbf16>, vector<16x128xf32> -> vector<16x128xf32>
    %180 = arith.addf %153, %179 : vector<16x128xf32>
    %181 = vector.extract_strided_slice %152 {offsets = [0, 32], sizes = [16, 32], strides = [1, 1]} : vector<16x384xbf16> to vector<16x32xbf16>
    %182 = vector.extract_strided_slice %152 {offsets = [0, 160], sizes = [16, 32], strides = [1, 1]} : vector<16x384xbf16> to vector<16x32xbf16>
    %183 = vector.extract_strided_slice %152 {offsets = [0, 288], sizes = [16, 32], strides = [1, 1]} : vector<16x384xbf16> to vector<16x32xbf16>
    %cst_68 = arith.constant dense<0.000000e+00> : vector<16x16xf32>
    %184 = tpu.matmul %181, %182, %cst_68 {dimension_numbers = #tpu.dot_dimension_numbers<[1], [1], [0], [0], [0, 0, 1, 0], [], []>} : vector<16x32xbf16>, vector<16x32xbf16>, vector<16x16xf32> -> vector<16x16xf32>
    %cst_69 = arith.constant 0.176776692 : f32
    %185 = vector.broadcast %cst_69 : f32 to vector<16x16xf32>
    %186 = arith.mulf %184, %185 : vector<16x16xf32>
    %cst_70 = arith.constant -1.000000e+30 : f32
    %187 = vector.shape_cast %41 : vector<1x16xi1> to vector<1x16xi1>
    %188 = vector.broadcast %187 : vector<1x16xi1> to vector<16x16xi1>
    %189 = vector.broadcast %cst_70 : f32 to vector<16x16xf32>
    %190 = arith.select %188, %186, %189 : vector<16x16xi1>, vector<16x16xf32>
    %cst_71 = arith.constant dense<0xFF800000> : vector<16xf32>
    %191 = vector.multi_reduction <maximumf>, %190, %cst_71 [1] : vector<16x16xf32> to vector<16xf32>
    %192 = vector.shape_cast %191 : vector<16xf32> to vector<16x1xf32>
    %193 = vector.broadcast %192 : vector<16x1xf32> to vector<16x16xf32>
    %194 = arith.subf %190, %193 : vector<16x16xf32>
    %195 = math.exp %194 : vector<16x16xf32>
    %cst_72 = arith.constant dense<0.000000e+00> : vector<16xf32>
    %196 = vector.multi_reduction <add>, %195, %cst_72 [1] : vector<16x16xf32> to vector<16xf32>
    %197 = vector.shape_cast %196 : vector<16xf32> to vector<16x1xf32>
    %198 = tpu.reciprocal %197 {approx = true} : vector<16x1xf32> -> vector<16x1xf32>
    %199 = vector.broadcast %198 : vector<16x1xf32> to vector<16x16xf32>
    %200 = arith.mulf %195, %199 : vector<16x16xf32>
    %201 = arith.truncf %200 : vector<16x16xf32> to vector<16x16xbf16>
    %cst_73 = arith.constant dense<0.000000e+00> : vector<16x32xf32>
    %202 = tpu.matmul %201, %183, %cst_73 {dimension_numbers = #tpu.dot_dimension_numbers<[1], [0], [0], [1], [0, 0, 1, 1], [], []>} : vector<16x16xbf16>, vector<16x32xbf16>, vector<16x32xf32> -> vector<16x32xf32>
    %203 = arith.truncf %202 : vector<16x32xf32> to vector<16x32xbf16>
    %c0_74 = arith.constant 0 : index
    %c32_75 = arith.constant 32 : index
    %c0_76 = arith.constant 0 : index
    %204 = vector.load %arg8[%c0_74, %c32_75, %c0_76] : memref<1x128x128xbf16, #tpu.memory_space<vmem>>, vector<1x32x128xbf16>
    %205 = vector.shape_cast %204 : vector<1x32x128xbf16> to vector<32x128xbf16>
    %cst_77 = arith.constant dense<0.000000e+00> : vector<16x128xf32>
    %206 = tpu.matmul %203, %205, %cst_77 {dimension_numbers = #tpu.dot_dimension_numbers<[1], [0], [0], [1], [0, 0, 1, 1], [], []>} : vector<16x32xbf16>, vector<32x128xbf16>, vector<16x128xf32> -> vector<16x128xf32>
    %207 = arith.addf %180, %206 : vector<16x128xf32>
    %208 = vector.extract_strided_slice %152 {offsets = [0, 64], sizes = [16, 32], strides = [1, 1]} : vector<16x384xbf16> to vector<16x32xbf16>
    %209 = vector.extract_strided_slice %152 {offsets = [0, 192], sizes = [16, 32], strides = [1, 1]} : vector<16x384xbf16> to vector<16x32xbf16>
    %210 = vector.extract_strided_slice %152 {offsets = [0, 320], sizes = [16, 32], strides = [1, 1]} : vector<16x384xbf16> to vector<16x32xbf16>
    %cst_78 = arith.constant dense<0.000000e+00> : vector<16x16xf32>
    %211 = tpu.matmul %208, %209, %cst_78 {dimension_numbers = #tpu.dot_dimension_numbers<[1], [1], [0], [0], [0, 0, 1, 0], [], []>} : vector<16x32xbf16>, vector<16x32xbf16>, vector<16x16xf32> -> vector<16x16xf32>
    %cst_79 = arith.constant 0.176776692 : f32
    %212 = vector.broadcast %cst_79 : f32 to vector<16x16xf32>
    %213 = arith.mulf %211, %212 : vector<16x16xf32>
    %cst_80 = arith.constant -1.000000e+30 : f32
    %214 = vector.shape_cast %41 : vector<1x16xi1> to vector<1x16xi1>
    %215 = vector.broadcast %214 : vector<1x16xi1> to vector<16x16xi1>
    %216 = vector.broadcast %cst_80 : f32 to vector<16x16xf32>
    %217 = arith.select %215, %213, %216 : vector<16x16xi1>, vector<16x16xf32>
    %cst_81 = arith.constant dense<0xFF800000> : vector<16xf32>
    %218 = vector.multi_reduction <maximumf>, %217, %cst_81 [1] : vector<16x16xf32> to vector<16xf32>
    %219 = vector.shape_cast %218 : vector<16xf32> to vector<16x1xf32>
    %220 = vector.broadcast %219 : vector<16x1xf32> to vector<16x16xf32>
    %221 = arith.subf %217, %220 : vector<16x16xf32>
    %222 = math.exp %221 : vector<16x16xf32>
    %cst_82 = arith.constant dense<0.000000e+00> : vector<16xf32>
    %223 = vector.multi_reduction <add>, %222, %cst_82 [1] : vector<16x16xf32> to vector<16xf32>
    %224 = vector.shape_cast %223 : vector<16xf32> to vector<16x1xf32>
    %225 = tpu.reciprocal %224 {approx = true} : vector<16x1xf32> -> vector<16x1xf32>
    %226 = vector.broadcast %225 : vector<16x1xf32> to vector<16x16xf32>
    %227 = arith.mulf %222, %226 : vector<16x16xf32>
    %228 = arith.truncf %227 : vector<16x16xf32> to vector<16x16xbf16>
    %cst_83 = arith.constant dense<0.000000e+00> : vector<16x32xf32>
    %229 = tpu.matmul %228, %210, %cst_83 {dimension_numbers = #tpu.dot_dimension_numbers<[1], [0], [0], [1], [0, 0, 1, 1], [], []>} : vector<16x16xbf16>, vector<16x32xbf16>, vector<16x32xf32> -> vector<16x32xf32>
    %230 = arith.truncf %229 : vector<16x32xf32> to vector<16x32xbf16>
    %c0_84 = arith.constant 0 : index
    %c64_85 = arith.constant 64 : index
    %c0_86 = arith.constant 0 : index
    %231 = vector.load %arg8[%c0_84, %c64_85, %c0_86] : memref<1x128x128xbf16, #tpu.memory_space<vmem>>, vector<1x32x128xbf16>
    %232 = vector.shape_cast %231 : vector<1x32x128xbf16> to vector<32x128xbf16>
    %cst_87 = arith.constant dense<0.000000e+00> : vector<16x128xf32>
    %233 = tpu.matmul %230, %232, %cst_87 {dimension_numbers = #tpu.dot_dimension_numbers<[1], [0], [0], [1], [0, 0, 1, 1], [], []>} : vector<16x32xbf16>, vector<32x128xbf16>, vector<16x128xf32> -> vector<16x128xf32>
    %234 = arith.addf %207, %233 : vector<16x128xf32>
    %235 = vector.extract_strided_slice %152 {offsets = [0, 96], sizes = [16, 32], strides = [1, 1]} : vector<16x384xbf16> to vector<16x32xbf16>
    %236 = vector.extract_strided_slice %152 {offsets = [0, 224], sizes = [16, 32], strides = [1, 1]} : vector<16x384xbf16> to vector<16x32xbf16>
    %237 = vector.extract_strided_slice %152 {offsets = [0, 352], sizes = [16, 32], strides = [1, 1]} : vector<16x384xbf16> to vector<16x32xbf16>
    %cst_88 = arith.constant dense<0.000000e+00> : vector<16x16xf32>
    %238 = tpu.matmul %235, %236, %cst_88 {dimension_numbers = #tpu.dot_dimension_numbers<[1], [1], [0], [0], [0, 0, 1, 0], [], []>} : vector<16x32xbf16>, vector<16x32xbf16>, vector<16x16xf32> -> vector<16x16xf32>
    %cst_89 = arith.constant 0.176776692 : f32
    %239 = vector.broadcast %cst_89 : f32 to vector<16x16xf32>
    %240 = arith.mulf %238, %239 : vector<16x16xf32>
    %cst_90 = arith.constant -1.000000e+30 : f32
    %241 = vector.shape_cast %41 : vector<1x16xi1> to vector<1x16xi1>
    %242 = vector.broadcast %241 : vector<1x16xi1> to vector<16x16xi1>
    %243 = vector.broadcast %cst_90 : f32 to vector<16x16xf32>
    %244 = arith.select %242, %240, %243 : vector<16x16xi1>, vector<16x16xf32>
    %cst_91 = arith.constant dense<0xFF800000> : vector<16xf32>
    %245 = vector.multi_reduction <maximumf>, %244, %cst_91 [1] : vector<16x16xf32> to vector<16xf32>
    %246 = vector.shape_cast %245 : vector<16xf32> to vector<16x1xf32>
    %247 = vector.broadcast %246 : vector<16x1xf32> to vector<16x16xf32>
    %248 = arith.subf %244, %247 : vector<16x16xf32>
    %249 = math.exp %248 : vector<16x16xf32>
    %cst_92 = arith.constant dense<0.000000e+00> : vector<16xf32>
    %250 = vector.multi_reduction <add>, %249, %cst_92 [1] : vector<16x16xf32> to vector<16xf32>
    %251 = vector.shape_cast %250 : vector<16xf32> to vector<16x1xf32>
    %252 = tpu.reciprocal %251 {approx = true} : vector<16x1xf32> -> vector<16x1xf32>
    %253 = vector.broadcast %252 : vector<16x1xf32> to vector<16x16xf32>
    %254 = arith.mulf %249, %253 : vector<16x16xf32>
    %255 = arith.truncf %254 : vector<16x16xf32> to vector<16x16xbf16>
    %cst_93 = arith.constant dense<0.000000e+00> : vector<16x32xf32>
    %256 = tpu.matmul %255, %237, %cst_93 {dimension_numbers = #tpu.dot_dimension_numbers<[1], [0], [0], [1], [0, 0, 1, 1], [], []>} : vector<16x16xbf16>, vector<16x32xbf16>, vector<16x32xf32> -> vector<16x32xf32>
    %257 = arith.truncf %256 : vector<16x32xf32> to vector<16x32xbf16>
    %c0_94 = arith.constant 0 : index
    %c96_95 = arith.constant 96 : index
    %c0_96 = arith.constant 0 : index
    %258 = vector.load %arg8[%c0_94, %c96_95, %c0_96] : memref<1x128x128xbf16, #tpu.memory_space<vmem>>, vector<1x32x128xbf16>
    %259 = vector.shape_cast %258 : vector<1x32x128xbf16> to vector<32x128xbf16>
    %cst_97 = arith.constant dense<0.000000e+00> : vector<16x128xf32>
    %260 = tpu.matmul %257, %259, %cst_97 {dimension_numbers = #tpu.dot_dimension_numbers<[1], [0], [0], [1], [0, 0, 1, 1], [], []>} : vector<16x32xbf16>, vector<32x128xbf16>, vector<16x128xf32> -> vector<16x128xf32>
    %261 = arith.addf %234, %260 : vector<16x128xf32>
    %262 = tpu.concatenate %151, %261 in 0 : vector<16x128xf32>, vector<16x128xf32> -> vector<32x128xf32>
    %c0_98 = arith.constant 0 : index
    %c0_99 = arith.constant 0 : index
    %c0_100 = arith.constant 0 : index
    %263 = vector.load %arg9[%c0_98, %c0_99, %c0_100] : memref<1x1x128xf32, #tpu.memory_space<vmem>>, vector<1x1x128xf32>
    %264 = vector.shape_cast %263 : vector<1x1x128xf32> to vector<1x128xf32>
    %265 = vector.broadcast %264 : vector<1x128xf32> to vector<32x128xf32>
    %266 = arith.addf %262, %265 : vector<32x128xf32>
    %267 = arith.addf %3, %266 : vector<32x128xf32>
    %cst_101 = arith.constant dense<0.000000e+00> : vector<32xf32>
    %268 = vector.multi_reduction <add>, %267, %cst_101 [1] : vector<32x128xf32> to vector<32xf32>
    %269 = vector.shape_cast %268 : vector<32xf32> to vector<32x1xf32>
    %cst_102 = arith.constant 1.280000e+02 : f32
    %270 = vector.broadcast %cst_102 : f32 to vector<32x1xf32>
    %271 = arith.divf %269, %270 : vector<32x1xf32>
    %272 = vector.broadcast %271 : vector<32x1xf32> to vector<32x128xf32>
    %273 = arith.subf %267, %272 : vector<32x128xf32>
    %274 = arith.mulf %273, %273 : vector<32x128xf32>
    %cst_103 = arith.constant dense<0.000000e+00> : vector<32xf32>
    %275 = vector.multi_reduction <add>, %274, %cst_103 [1] : vector<32x128xf32> to vector<32xf32>
    %276 = vector.shape_cast %275 : vector<32xf32> to vector<32x1xf32>
    %cst_104 = arith.constant 1.280000e+02 : f32
    %277 = vector.broadcast %cst_104 : f32 to vector<32x1xf32>
    %278 = arith.divf %276, %277 : vector<32x1xf32>
    %279 = vector.broadcast %271 : vector<32x1xf32> to vector<32x128xf32>
    %280 = arith.subf %267, %279 : vector<32x128xf32>
    %cst_105 = arith.constant 9.99999997E-7 : f32
    %281 = vector.broadcast %cst_105 : f32 to vector<32x1xf32>
    %282 = arith.addf %278, %281 : vector<32x1xf32>
    %283 = math.rsqrt %282 : vector<32x1xf32>
    %284 = vector.broadcast %283 : vector<32x1xf32> to vector<32x128xf32>
    %285 = arith.mulf %280, %284 : vector<32x128xf32>
    %c0_106 = arith.constant 0 : index
    %c0_107 = arith.constant 0 : index
    %c0_108 = arith.constant 0 : index
    %286 = vector.load %arg10[%c0_106, %c0_107, %c0_108] : memref<1x1x128xf32, #tpu.memory_space<vmem>>, vector<1x1x128xf32>
    %287 = vector.shape_cast %286 : vector<1x1x128xf32> to vector<1x128xf32>
    %288 = vector.broadcast %287 : vector<1x128xf32> to vector<32x128xf32>
    %289 = arith.mulf %285, %288 : vector<32x128xf32>
    %c0_109 = arith.constant 0 : index
    %c0_110 = arith.constant 0 : index
    %c0_111 = arith.constant 0 : index
    %290 = vector.load %arg11[%c0_109, %c0_110, %c0_111] : memref<1x1x128xf32, #tpu.memory_space<vmem>>, vector<1x1x128xf32>
    %291 = vector.shape_cast %290 : vector<1x1x128xf32> to vector<1x128xf32>
    %292 = vector.broadcast %291 : vector<1x128xf32> to vector<32x128xf32>
    %293 = arith.addf %289, %292 : vector<32x128xf32>
    %294 = arith.truncf %293 : vector<32x128xf32> to vector<32x128xbf16>
    %c0_112 = arith.constant 0 : index
    %c0_113 = arith.constant 0 : index
    %c0_114 = arith.constant 0 : index
    %295 = vector.load %arg12[%c0_112, %c0_113, %c0_114] : memref<1x128x512xbf16, #tpu.memory_space<vmem>>, vector<1x128x512xbf16>
    %296 = vector.shape_cast %295 : vector<1x128x512xbf16> to vector<128x512xbf16>
    %cst_115 = arith.constant dense<0.000000e+00> : vector<32x512xf32>
    %297 = tpu.matmul %294, %296, %cst_115 {dimension_numbers = #tpu.dot_dimension_numbers<[1], [0], [0], [1], [0, 0, 1, 1], [], []>} : vector<32x128xbf16>, vector<128x512xbf16>, vector<32x512xf32> -> vector<32x512xf32>
    %c0_116 = arith.constant 0 : index
    %c0_117 = arith.constant 0 : index
    %c0_118 = arith.constant 0 : index
    %298 = vector.load %arg13[%c0_116, %c0_117, %c0_118] : memref<1x1x512xf32, #tpu.memory_space<vmem>>, vector<1x1x512xf32>
    %299 = vector.shape_cast %298 : vector<1x1x512xf32> to vector<1x512xf32>
    %300 = vector.broadcast %299 : vector<1x512xf32> to vector<32x512xf32>
    %301 = arith.addf %297, %300 : vector<32x512xf32>
    %302 = arith.mulf %301, %301 : vector<32x512xf32>
    %303 = arith.mulf %301, %302 : vector<32x512xf32>
    %cst_119 = arith.constant 4.471500e-02 : f32
    %304 = vector.broadcast %cst_119 : f32 to vector<32x512xf32>
    %305 = arith.mulf %304, %303 : vector<32x512xf32>
    %306 = arith.addf %301, %305 : vector<32x512xf32>
    %cst_120 = arith.constant 0.797884583 : f32
    %307 = vector.broadcast %cst_120 : f32 to vector<32x512xf32>
    %308 = arith.mulf %307, %306 : vector<32x512xf32>
    %309 = math.tanh %308 : vector<32x512xf32>
    %cst_121 = arith.constant 1.000000e+00 : f32
    %310 = vector.broadcast %cst_121 : f32 to vector<32x512xf32>
    %311 = arith.addf %310, %309 : vector<32x512xf32>
    %cst_122 = arith.constant 5.000000e-01 : f32
    %312 = vector.broadcast %cst_122 : f32 to vector<32x512xf32>
    %313 = arith.mulf %312, %311 : vector<32x512xf32>
    %314 = arith.mulf %301, %313 : vector<32x512xf32>
    %315 = arith.truncf %314 : vector<32x512xf32> to vector<32x512xbf16>
    %c0_123 = arith.constant 0 : index
    %c0_124 = arith.constant 0 : index
    %c0_125 = arith.constant 0 : index
    %316 = vector.load %arg14[%c0_123, %c0_124, %c0_125] : memref<1x512x128xbf16, #tpu.memory_space<vmem>>, vector<1x512x128xbf16>
    %317 = vector.shape_cast %316 : vector<1x512x128xbf16> to vector<512x128xbf16>
    %cst_126 = arith.constant dense<0.000000e+00> : vector<32x128xf32>
    %318 = tpu.matmul %315, %317, %cst_126 {dimension_numbers = #tpu.dot_dimension_numbers<[1], [0], [0], [1], [0, 0, 1, 1], [], []>} : vector<32x512xbf16>, vector<512x128xbf16>, vector<32x128xf32> -> vector<32x128xf32>
    %c0_127 = arith.constant 0 : index
    %c0_128 = arith.constant 0 : index
    %c0_129 = arith.constant 0 : index
    %319 = vector.load %arg15[%c0_127, %c0_128, %c0_129] : memref<1x1x128xf32, #tpu.memory_space<vmem>>, vector<1x1x128xf32>
    %320 = vector.shape_cast %319 : vector<1x1x128xf32> to vector<1x128xf32>
    %321 = vector.broadcast %320 : vector<1x128xf32> to vector<32x128xf32>
    %322 = arith.addf %318, %321 : vector<32x128xf32>
    %323 = arith.addf %267, %322 : vector<32x128xf32>
    %c0_130 = arith.constant 0 : index
    %c0_131 = arith.constant 0 : index
    %324 = vector.load %arg17[%c0_130, %c0_131] : memref<32x128xf32, #tpu.memory_space<vmem>>, vector<32x128xf32>
    tpu.vector_store %arg17[%c0_130, %c0_131], %323 {strides = array<i32>} : memref<32x128xf32, #tpu.memory_space<vmem>>, vector<32x128xf32>,
    %c1_i32 = arith.constant 1 : i32
    %325 = arith.cmpi eq, %arg0, %c1_i32 : i32
    %326 = arith.extui %325 : i1 to i32
    %c0_i32_132 = arith.constant 0 : i32
    %327 = arith.cmpi ne, %326, %c0_i32_132 : i32
    scf.if %327 {
      %328 = vector.extract_strided_slice %323 {offsets = [0, 0], sizes = [1, 128], strides = [1, 1]} : vector<32x128xf32> to vector<1x128xf32>
      %329 = vector.extract_strided_slice %323 {offsets = [16, 0], sizes = [1, 128], strides = [1, 1]} : vector<32x128xf32> to vector<1x128xf32>
      %330 = tpu.concatenate %328, %329 in 0 : vector<1x128xf32>, vector<1x128xf32> -> vector<2x128xf32>
      %c0_133 = arith.constant 0 : index
      %c0_134 = arith.constant 0 : index
      %331 = vector.load %arg16[%c0_133, %c0_134] : memref<2x128xf32, #tpu.memory_space<vmem>>, vector<2x128xf32>
      tpu.vector_store %arg16[%c0_133, %c0_134], %330 {strides = array<i32>} : memref<2x128xf32, #tpu.memory_space<vmem>>, vector<2x128xf32>,
    } else {
    }
    return
  }
  func.func @transform_0(%arg0: i32) -> (i32, i32) {
    %c0_i32 = arith.constant 0 : i32
    %c0_i32_0 = arith.constant 0 : i32
    %c0_i32_1 = arith.constant 0 : i32
    return %c0_i32, %c0_i32_0 : i32, i32
  }
  func.func @transform_1(%arg0: i32) -> (i32, i32) {
    %c0_i32 = arith.constant 0 : i32
    %c0_i32_0 = arith.constant 0 : i32
    %c0_i32_1 = arith.constant 0 : i32
    return %c0_i32, %c0_i32_0 : i32, i32
  }
  func.func @transform_2(%arg0: i32) -> (i32, i32) {
    %c0_i32 = arith.constant 0 : i32
    %c0_i32_0 = arith.constant 0 : i32
    %c0_i32_1 = arith.constant 0 : i32
    return %c0_i32, %c0_i32_0 : i32, i32
  }
  func.func @transform_3(%arg0: i32) -> (i32, i32, i32) {
    %c0_i32 = arith.constant 0 : i32
    %c0_i32_0 = arith.constant 0 : i32
    %c0_i32_1 = arith.constant 0 : i32
    return %arg0, %c0_i32, %c0_i32_0 : i32, i32, i32
  }
  func.func @transform_4(%arg0: i32) -> (i32, i32, i32) {
    %c0_i32 = arith.constant 0 : i32
    %c0_i32_0 = arith.constant 0 : i32
    %c0_i32_1 = arith.constant 0 : i32
    return %arg0, %c0_i32, %c0_i32_0 : i32, i32, i32
  }
  func.func @transform_5(%arg0: i32) -> (i32, i32, i32) {
    %c0_i32 = arith.constant 0 : i32
    %c0_i32_0 = arith.constant 0 : i32
    %c0_i32_1 = arith.constant 0 : i32
    return %arg0, %c0_i32, %c0_i32_0 : i32, i32, i32
  }
  func.func @transform_6(%arg0: i32) -> (i32, i32, i32) {
    %c0_i32 = arith.constant 0 : i32
    %c0_i32_0 = arith.constant 0 : i32
    %c0_i32_1 = arith.constant 0 : i32
    return %arg0, %c0_i32, %c0_i32_0 : i32, i32, i32
  }
  func.func @transform_7(%arg0: i32) -> (i32, i32, i32) {
    %c0_i32 = arith.constant 0 : i32
    %c0_i32_0 = arith.constant 0 : i32
    %c0_i32_1 = arith.constant 0 : i32
    return %arg0, %c0_i32, %c0_i32_0 : i32, i32, i32
  }
  func.func @transform_8(%arg0: i32) -> (i32, i32, i32) {
    %c0_i32 = arith.constant 0 : i32
    %c0_i32_0 = arith.constant 0 : i32
    %c0_i32_1 = arith.constant 0 : i32
    return %arg0, %c0_i32, %c0_i32_0 : i32, i32, i32
  }
  func.func @transform_9(%arg0: i32) -> (i32, i32, i32) {
    %c0_i32 = arith.constant 0 : i32
    %c0_i32_0 = arith.constant 0 : i32
    %c0_i32_1 = arith.constant 0 : i32
    return %arg0, %c0_i32, %c0_i32_0 : i32, i32, i32
  }
  func.func @transform_10(%arg0: i32) -> (i32, i32, i32) {
    %c0_i32 = arith.constant 0 : i32
    %c0_i32_0 = arith.constant 0 : i32
    %c0_i32_1 = arith.constant 0 : i32
    return %arg0, %c0_i32, %c0_i32_0 : i32, i32, i32
  }
  func.func @transform_11(%arg0: i32) -> (i32, i32, i32) {
    %c0_i32 = arith.constant 0 : i32
    %c0_i32_0 = arith.constant 0 : i32
    %c0_i32_1 = arith.constant 0 : i32
    return %arg0, %c0_i32, %c0_i32_0 : i32, i32, i32
  }
  func.func @transform_12(%arg0: i32) -> (i32, i32, i32) {
    %c0_i32 = arith.constant 0 : i32
    %c0_i32_0 = arith.constant 0 : i32
    %c0_i32_1 = arith.constant 0 : i32
    return %arg0, %c0_i32, %c0_i32_0 : i32, i32, i32
  }
  func.func @transform_13(%arg0: i32) -> (i32, i32, i32) {
    %c0_i32 = arith.constant 0 : i32
    %c0_i32_0 = arith.constant 0 : i32
    %c0_i32_1 = arith.constant 0 : i32
    return %arg0, %c0_i32, %c0_i32_0 : i32, i32, i32
  }
  func.func @transform_14(%arg0: i32) -> (i32, i32, i32) {
    %c0_i32 = arith.constant 0 : i32
    %c0_i32_0 = arith.constant 0 : i32
    %c0_i32_1 = arith.constant 0 : i32
    return %arg0, %c0_i32, %c0_i32_0 : i32, i32, i32
  }
  func.func @transform_15(%arg0: i32) -> (i32, i32) {
    %c0_i32 = arith.constant 0 : i32
    %c0_i32_0 = arith.constant 0 : i32
    %c0_i32_1 = arith.constant 0 : i32
    return %c0_i32, %c0_i32_0 : i32, i32
  }
}

module attributes {stable_mosaic.version = 11 : i64} {
  func.func @_encoder_kernel(%arg0: i32, %arg1: memref<32x128xf32, #tpu.memory_space<vmem>>, %arg2: memref<1x128xf32, #tpu.memory_space<vmem>>, %arg3: memref<1x128xf32, #tpu.memory_space<vmem>>, %arg4: memref<1x1x128xf32, #tpu.memory_space<vmem>>, %arg5: memref<1x1x128xf32, #tpu.memory_space<vmem>>, %arg6: memref<1x128x384xbf16, #tpu.memory_space<vmem>>, %arg7: memref<1x1x384xf32, #tpu.memory_space<vmem>>, %arg8: memref<1x128x128xbf16, #tpu.memory_space<vmem>>, %arg9: memref<1x1x128xf32, #tpu.memory_space<vmem>>, %arg10: memref<1x1x128xf32, #tpu.memory_space<vmem>>, %arg11: memref<1x1x128xf32, #tpu.memory_space<vmem>>, %arg12: memref<1x128x512xbf16, #tpu.memory_space<vmem>>, %arg13: memref<1x1x512xf32, #tpu.memory_space<vmem>>, %arg14: memref<1x512x128xbf16, #tpu.memory_space<vmem>>, %arg15: memref<1x1x128xf32, #tpu.memory_space<vmem>>, %arg16: memref<2x128xf32, #tpu.memory_space<vmem>>, %arg17: memref<32x128xf32, #tpu.memory_space<vmem>>) attributes {dimension_semantics = [#tpu.dimension_semantics<arbitrary>], iteration_bounds = array<i64: 2>, scalar_prefetch = 0 : i64, scratch_operands = 1 : i64, tpu.core_type = #tpu.core_type<tc>, window_params = [{pipeline_mode = #tpu.pipeline_mode<synchronous>, transform_indices = @transform_0, window_bounds = array<i64: 32, 128>}, {pipeline_mode = #tpu.pipeline_mode<synchronous>, transform_indices = @transform_1, window_bounds = array<i64: 1, 128>}, {pipeline_mode = #tpu.pipeline_mode<synchronous>, transform_indices = @transform_2, window_bounds = array<i64: 1, 128>}, {transform_indices = @transform_3, window_bounds = array<i64: 1, 1, 128>}, {transform_indices = @transform_4, window_bounds = array<i64: 1, 1, 128>}, {transform_indices = @transform_5, window_bounds = array<i64: 1, 128, 384>}, {transform_indices = @transform_6, window_bounds = array<i64: 1, 1, 384>}, {transform_indices = @transform_7, window_bounds = array<i64: 1, 128, 128>}, {transform_indices = @transform_8, window_bounds = array<i64: 1, 1, 128>}, {transform_indices = @transform_9, window_bounds = array<i64: 1, 1, 128>}, {transform_indices = @transform_10, window_bounds = array<i64: 1, 1, 128>}, {transform_indices = @transform_11, window_bounds = array<i64: 1, 128, 512>}, {transform_indices = @transform_12, window_bounds = array<i64: 1, 1, 512>}, {transform_indices = @transform_13, window_bounds = array<i64: 1, 512, 128>}, {transform_indices = @transform_14, window_bounds = array<i64: 1, 1, 128>}, {pipeline_mode = #tpu.pipeline_mode<synchronous>, transform_indices = @transform_15, window_bounds = array<i64: 2, 128>}]} {
    %c0_i32 = arith.constant 0 : i32
    %0 = arith.cmpi eq, %arg0, %c0_i32 : i32
    %1 = arith.extui %0 : i1 to i32
    %c0_i32_0 = arith.constant 0 : i32
    %2 = arith.cmpi ne, %1, %c0_i32_0 : i32
    scf.if %2 {
      %c0_125 = arith.constant 0 : index
      %c0_126 = arith.constant 0 : index
      %293 = vector.load %arg1[%c0_125, %c0_126] : memref<32x128xf32, #tpu.memory_space<vmem>>, vector<32x128xf32>
      %cst_127 = arith.constant dense<0.000000e+00> : vector<32xf32>
      %294 = vector.multi_reduction <add>, %293, %cst_127 [1] : vector<32x128xf32> to vector<32xf32>
      %295 = vector.shape_cast %294 : vector<32xf32> to vector<32x1xf32>
      %cst_128 = arith.constant 1.280000e+02 : f32
      %296 = vector.broadcast %cst_128 : f32 to vector<32x1xf32>
      %297 = arith.divf %295, %296 : vector<32x1xf32>
      %298 = vector.broadcast %297 : vector<32x1xf32> to vector<32x128xf32>
      %299 = arith.subf %293, %298 : vector<32x128xf32>
      %300 = arith.mulf %299, %299 : vector<32x128xf32>
      %cst_129 = arith.constant dense<0.000000e+00> : vector<32xf32>
      %301 = vector.multi_reduction <add>, %300, %cst_129 [1] : vector<32x128xf32> to vector<32xf32>
      %302 = vector.shape_cast %301 : vector<32xf32> to vector<32x1xf32>
      %cst_130 = arith.constant 1.280000e+02 : f32
      %303 = vector.broadcast %cst_130 : f32 to vector<32x1xf32>
      %304 = arith.divf %302, %303 : vector<32x1xf32>
      %305 = vector.broadcast %297 : vector<32x1xf32> to vector<32x128xf32>
      %306 = arith.subf %293, %305 : vector<32x128xf32>
      %cst_131 = arith.constant 9.99999996E-13 : f32
      %307 = vector.broadcast %cst_131 : f32 to vector<32x1xf32>
      %308 = arith.addf %304, %307 : vector<32x1xf32>
      %309 = math.rsqrt %308 : vector<32x1xf32>
      %310 = vector.broadcast %309 : vector<32x1xf32> to vector<32x128xf32>
      %311 = arith.mulf %306, %310 : vector<32x128xf32>
      %c0_132 = arith.constant 0 : index
      %c0_133 = arith.constant 0 : index
      %312 = vector.load %arg2[%c0_132, %c0_133] : memref<1x128xf32, #tpu.memory_space<vmem>>, vector<1x128xf32>
      %313 = vector.broadcast %312 : vector<1x128xf32> to vector<32x128xf32>
      %314 = arith.mulf %311, %313 : vector<32x128xf32>
      %c0_134 = arith.constant 0 : index
      %c0_135 = arith.constant 0 : index
      %315 = vector.load %arg3[%c0_134, %c0_135] : memref<1x128xf32, #tpu.memory_space<vmem>>, vector<1x128xf32>
      %316 = vector.broadcast %315 : vector<1x128xf32> to vector<32x128xf32>
      %317 = arith.addf %314, %316 : vector<32x128xf32>
      %c0_136 = arith.constant 0 : index
      %c0_137 = arith.constant 0 : index
      %318 = vector.load %arg17[%c0_136, %c0_137] : memref<32x128xf32, #tpu.memory_space<vmem>>, vector<32x128xf32>
      tpu.vector_store %arg17[%c0_136, %c0_137], %317 {strides = array<i32>} : memref<32x128xf32, #tpu.memory_space<vmem>>, vector<32x128xf32>,
    } else {
    }
    %c0 = arith.constant 0 : index
    %c0_1 = arith.constant 0 : index
    %3 = vector.load %arg17[%c0, %c0_1] : memref<32x128xf32, #tpu.memory_space<vmem>>, vector<32x128xf32>
    %4 = arith.truncf %3 : vector<32x128xf32> to vector<32x128xbf16>
    %c0_2 = arith.constant 0 : index
    %c0_3 = arith.constant 0 : index
    %c0_4 = arith.constant 0 : index
    %5 = vector.load %arg6[%c0_2, %c0_3, %c0_4] : memref<1x128x384xbf16, #tpu.memory_space<vmem>>, vector<1x128x384xbf16>
    %6 = vector.shape_cast %5 : vector<1x128x384xbf16> to vector<128x384xbf16>
    %cst = arith.constant dense<0.000000e+00> : vector<32x384xf32>
    %7 = tpu.matmul %4, %6, %cst {dimension_numbers = #tpu.dot_dimension_numbers<[1], [0], [0], [1], [0, 0, 1, 1], [], []>} : vector<32x128xbf16>, vector<128x384xbf16>, vector<32x384xf32> -> vector<32x384xf32>
    %c0_5 = arith.constant 0 : index
    %c0_6 = arith.constant 0 : index
    %c0_7 = arith.constant 0 : index
    %8 = vector.load %arg7[%c0_5, %c0_6, %c0_7] : memref<1x1x384xf32, #tpu.memory_space<vmem>>, vector<1x1x384xf32>
    %9 = vector.shape_cast %8 : vector<1x1x384xf32> to vector<1x384xf32>
    %10 = vector.broadcast %9 : vector<1x384xf32> to vector<32x384xf32>
    %11 = arith.addf %7, %10 : vector<32x384xf32>
    %12 = arith.truncf %11 : vector<32x384xf32> to vector<32x384xbf16>
    %13 = vector.extract_strided_slice %12 {offsets = [0, 0], sizes = [16, 384], strides = [1, 1]} : vector<32x384xbf16> to vector<16x384xbf16>
    %cst_8 = arith.constant 0.000000e+00 : f32
    %14 = vector.broadcast %cst_8 : f32 to vector<16x128xf32>
    %15 = vector.extract_strided_slice %13 {offsets = [0, 0], sizes = [16, 32], strides = [1, 1]} : vector<16x384xbf16> to vector<16x32xbf16>
    %16 = vector.extract_strided_slice %13 {offsets = [0, 128], sizes = [16, 32], strides = [1, 1]} : vector<16x384xbf16> to vector<16x32xbf16>
    %17 = vector.extract_strided_slice %13 {offsets = [0, 256], sizes = [16, 32], strides = [1, 1]} : vector<16x384xbf16> to vector<16x32xbf16>
    %cst_9 = arith.constant dense<0.000000e+00> : vector<16x16xf32>
    %18 = tpu.matmul %15, %16, %cst_9 {dimension_numbers = #tpu.dot_dimension_numbers<[1], [1], [0], [0], [0, 0, 1, 0], [], []>} : vector<16x32xbf16>, vector<16x32xbf16>, vector<16x16xf32> -> vector<16x16xf32>
    %cst_10 = arith.constant 0.176776692 : f32
    %19 = vector.broadcast %cst_10 : f32 to vector<16x16xf32>
    %20 = arith.mulf %18, %19 : vector<16x16xf32>
    %cst_11 = arith.constant dense<0xFF800000> : vector<16xf32>
    %21 = vector.multi_reduction <maximumf>, %20, %cst_11 [1] : vector<16x16xf32> to vector<16xf32>
    %22 = vector.shape_cast %21 : vector<16xf32> to vector<16x1xf32>
    %23 = vector.broadcast %22 : vector<16x1xf32> to vector<16x16xf32>
    %24 = arith.subf %20, %23 : vector<16x16xf32>
    %25 = math.exp %24 : vector<16x16xf32>
    %cst_12 = arith.constant dense<0.000000e+00> : vector<16xf32>
    %26 = vector.multi_reduction <add>, %25, %cst_12 [1] : vector<16x16xf32> to vector<16xf32>
    %27 = vector.shape_cast %26 : vector<16xf32> to vector<16x1xf32>
    %28 = tpu.reciprocal %27 {approx = true} : vector<16x1xf32> -> vector<16x1xf32>
    %29 = vector.broadcast %28 : vector<16x1xf32> to vector<16x16xf32>
    %30 = arith.mulf %25, %29 : vector<16x16xf32>
    %31 = arith.truncf %30 : vector<16x16xf32> to vector<16x16xbf16>
    %cst_13 = arith.constant dense<0.000000e+00> : vector<16x32xf32>
    %32 = tpu.matmul %31, %17, %cst_13 {dimension_numbers = #tpu.dot_dimension_numbers<[1], [0], [0], [1], [0, 0, 1, 1], [], []>} : vector<16x16xbf16>, vector<16x32xbf16>, vector<16x32xf32> -> vector<16x32xf32>
    %33 = arith.truncf %32 : vector<16x32xf32> to vector<16x32xbf16>
    %c0_14 = arith.constant 0 : index
    %c0_15 = arith.constant 0 : index
    %c0_16 = arith.constant 0 : index
    %34 = vector.load %arg8[%c0_14, %c0_15, %c0_16] : memref<1x128x128xbf16, #tpu.memory_space<vmem>>, vector<1x32x128xbf16>
    %35 = vector.shape_cast %34 : vector<1x32x128xbf16> to vector<32x128xbf16>
    %cst_17 = arith.constant dense<0.000000e+00> : vector<16x128xf32>
    %36 = tpu.matmul %33, %35, %cst_17 {dimension_numbers = #tpu.dot_dimension_numbers<[1], [0], [0], [1], [0, 0, 1, 1], [], []>} : vector<16x32xbf16>, vector<32x128xbf16>, vector<16x128xf32> -> vector<16x128xf32>
    %37 = arith.addf %14, %36 : vector<16x128xf32>
    %38 = vector.extract_strided_slice %13 {offsets = [0, 32], sizes = [16, 32], strides = [1, 1]} : vector<16x384xbf16> to vector<16x32xbf16>
    %39 = vector.extract_strided_slice %13 {offsets = [0, 160], sizes = [16, 32], strides = [1, 1]} : vector<16x384xbf16> to vector<16x32xbf16>
    %40 = vector.extract_strided_slice %13 {offsets = [0, 288], sizes = [16, 32], strides = [1, 1]} : vector<16x384xbf16> to vector<16x32xbf16>
    %cst_18 = arith.constant dense<0.000000e+00> : vector<16x16xf32>
    %41 = tpu.matmul %38, %39, %cst_18 {dimension_numbers = #tpu.dot_dimension_numbers<[1], [1], [0], [0], [0, 0, 1, 0], [], []>} : vector<16x32xbf16>, vector<16x32xbf16>, vector<16x16xf32> -> vector<16x16xf32>
    %cst_19 = arith.constant 0.176776692 : f32
    %42 = vector.broadcast %cst_19 : f32 to vector<16x16xf32>
    %43 = arith.mulf %41, %42 : vector<16x16xf32>
    %cst_20 = arith.constant dense<0xFF800000> : vector<16xf32>
    %44 = vector.multi_reduction <maximumf>, %43, %cst_20 [1] : vector<16x16xf32> to vector<16xf32>
    %45 = vector.shape_cast %44 : vector<16xf32> to vector<16x1xf32>
    %46 = vector.broadcast %45 : vector<16x1xf32> to vector<16x16xf32>
    %47 = arith.subf %43, %46 : vector<16x16xf32>
    %48 = math.exp %47 : vector<16x16xf32>
    %cst_21 = arith.constant dense<0.000000e+00> : vector<16xf32>
    %49 = vector.multi_reduction <add>, %48, %cst_21 [1] : vector<16x16xf32> to vector<16xf32>
    %50 = vector.shape_cast %49 : vector<16xf32> to vector<16x1xf32>
    %51 = tpu.reciprocal %50 {approx = true} : vector<16x1xf32> -> vector<16x1xf32>
    %52 = vector.broadcast %51 : vector<16x1xf32> to vector<16x16xf32>
    %53 = arith.mulf %48, %52 : vector<16x16xf32>
    %54 = arith.truncf %53 : vector<16x16xf32> to vector<16x16xbf16>
    %cst_22 = arith.constant dense<0.000000e+00> : vector<16x32xf32>
    %55 = tpu.matmul %54, %40, %cst_22 {dimension_numbers = #tpu.dot_dimension_numbers<[1], [0], [0], [1], [0, 0, 1, 1], [], []>} : vector<16x16xbf16>, vector<16x32xbf16>, vector<16x32xf32> -> vector<16x32xf32>
    %56 = arith.truncf %55 : vector<16x32xf32> to vector<16x32xbf16>
    %c0_23 = arith.constant 0 : index
    %c32 = arith.constant 32 : index
    %c0_24 = arith.constant 0 : index
    %57 = vector.load %arg8[%c0_23, %c32, %c0_24] : memref<1x128x128xbf16, #tpu.memory_space<vmem>>, vector<1x32x128xbf16>
    %58 = vector.shape_cast %57 : vector<1x32x128xbf16> to vector<32x128xbf16>
    %cst_25 = arith.constant dense<0.000000e+00> : vector<16x128xf32>
    %59 = tpu.matmul %56, %58, %cst_25 {dimension_numbers = #tpu.dot_dimension_numbers<[1], [0], [0], [1], [0, 0, 1, 1], [], []>} : vector<16x32xbf16>, vector<32x128xbf16>, vector<16x128xf32> -> vector<16x128xf32>
    %60 = arith.addf %37, %59 : vector<16x128xf32>
    %61 = vector.extract_strided_slice %13 {offsets = [0, 64], sizes = [16, 32], strides = [1, 1]} : vector<16x384xbf16> to vector<16x32xbf16>
    %62 = vector.extract_strided_slice %13 {offsets = [0, 192], sizes = [16, 32], strides = [1, 1]} : vector<16x384xbf16> to vector<16x32xbf16>
    %63 = vector.extract_strided_slice %13 {offsets = [0, 320], sizes = [16, 32], strides = [1, 1]} : vector<16x384xbf16> to vector<16x32xbf16>
    %cst_26 = arith.constant dense<0.000000e+00> : vector<16x16xf32>
    %64 = tpu.matmul %61, %62, %cst_26 {dimension_numbers = #tpu.dot_dimension_numbers<[1], [1], [0], [0], [0, 0, 1, 0], [], []>} : vector<16x32xbf16>, vector<16x32xbf16>, vector<16x16xf32> -> vector<16x16xf32>
    %cst_27 = arith.constant 0.176776692 : f32
    %65 = vector.broadcast %cst_27 : f32 to vector<16x16xf32>
    %66 = arith.mulf %64, %65 : vector<16x16xf32>
    %cst_28 = arith.constant dense<0xFF800000> : vector<16xf32>
    %67 = vector.multi_reduction <maximumf>, %66, %cst_28 [1] : vector<16x16xf32> to vector<16xf32>
    %68 = vector.shape_cast %67 : vector<16xf32> to vector<16x1xf32>
    %69 = vector.broadcast %68 : vector<16x1xf32> to vector<16x16xf32>
    %70 = arith.subf %66, %69 : vector<16x16xf32>
    %71 = math.exp %70 : vector<16x16xf32>
    %cst_29 = arith.constant dense<0.000000e+00> : vector<16xf32>
    %72 = vector.multi_reduction <add>, %71, %cst_29 [1] : vector<16x16xf32> to vector<16xf32>
    %73 = vector.shape_cast %72 : vector<16xf32> to vector<16x1xf32>
    %74 = tpu.reciprocal %73 {approx = true} : vector<16x1xf32> -> vector<16x1xf32>
    %75 = vector.broadcast %74 : vector<16x1xf32> to vector<16x16xf32>
    %76 = arith.mulf %71, %75 : vector<16x16xf32>
    %77 = arith.truncf %76 : vector<16x16xf32> to vector<16x16xbf16>
    %cst_30 = arith.constant dense<0.000000e+00> : vector<16x32xf32>
    %78 = tpu.matmul %77, %63, %cst_30 {dimension_numbers = #tpu.dot_dimension_numbers<[1], [0], [0], [1], [0, 0, 1, 1], [], []>} : vector<16x16xbf16>, vector<16x32xbf16>, vector<16x32xf32> -> vector<16x32xf32>
    %79 = arith.truncf %78 : vector<16x32xf32> to vector<16x32xbf16>
    %c0_31 = arith.constant 0 : index
    %c64 = arith.constant 64 : index
    %c0_32 = arith.constant 0 : index
    %80 = vector.load %arg8[%c0_31, %c64, %c0_32] : memref<1x128x128xbf16, #tpu.memory_space<vmem>>, vector<1x32x128xbf16>
    %81 = vector.shape_cast %80 : vector<1x32x128xbf16> to vector<32x128xbf16>
    %cst_33 = arith.constant dense<0.000000e+00> : vector<16x128xf32>
    %82 = tpu.matmul %79, %81, %cst_33 {dimension_numbers = #tpu.dot_dimension_numbers<[1], [0], [0], [1], [0, 0, 1, 1], [], []>} : vector<16x32xbf16>, vector<32x128xbf16>, vector<16x128xf32> -> vector<16x128xf32>
    %83 = arith.addf %60, %82 : vector<16x128xf32>
    %84 = vector.extract_strided_slice %13 {offsets = [0, 96], sizes = [16, 32], strides = [1, 1]} : vector<16x384xbf16> to vector<16x32xbf16>
    %85 = vector.extract_strided_slice %13 {offsets = [0, 224], sizes = [16, 32], strides = [1, 1]} : vector<16x384xbf16> to vector<16x32xbf16>
    %86 = vector.extract_strided_slice %13 {offsets = [0, 352], sizes = [16, 32], strides = [1, 1]} : vector<16x384xbf16> to vector<16x32xbf16>
    %cst_34 = arith.constant dense<0.000000e+00> : vector<16x16xf32>
    %87 = tpu.matmul %84, %85, %cst_34 {dimension_numbers = #tpu.dot_dimension_numbers<[1], [1], [0], [0], [0, 0, 1, 0], [], []>} : vector<16x32xbf16>, vector<16x32xbf16>, vector<16x16xf32> -> vector<16x16xf32>
    %cst_35 = arith.constant 0.176776692 : f32
    %88 = vector.broadcast %cst_35 : f32 to vector<16x16xf32>
    %89 = arith.mulf %87, %88 : vector<16x16xf32>
    %cst_36 = arith.constant dense<0xFF800000> : vector<16xf32>
    %90 = vector.multi_reduction <maximumf>, %89, %cst_36 [1] : vector<16x16xf32> to vector<16xf32>
    %91 = vector.shape_cast %90 : vector<16xf32> to vector<16x1xf32>
    %92 = vector.broadcast %91 : vector<16x1xf32> to vector<16x16xf32>
    %93 = arith.subf %89, %92 : vector<16x16xf32>
    %94 = math.exp %93 : vector<16x16xf32>
    %cst_37 = arith.constant dense<0.000000e+00> : vector<16xf32>
    %95 = vector.multi_reduction <add>, %94, %cst_37 [1] : vector<16x16xf32> to vector<16xf32>
    %96 = vector.shape_cast %95 : vector<16xf32> to vector<16x1xf32>
    %97 = tpu.reciprocal %96 {approx = true} : vector<16x1xf32> -> vector<16x1xf32>
    %98 = vector.broadcast %97 : vector<16x1xf32> to vector<16x16xf32>
    %99 = arith.mulf %94, %98 : vector<16x16xf32>
    %100 = arith.truncf %99 : vector<16x16xf32> to vector<16x16xbf16>
    %cst_38 = arith.constant dense<0.000000e+00> : vector<16x32xf32>
    %101 = tpu.matmul %100, %86, %cst_38 {dimension_numbers = #tpu.dot_dimension_numbers<[1], [0], [0], [1], [0, 0, 1, 1], [], []>} : vector<16x16xbf16>, vector<16x32xbf16>, vector<16x32xf32> -> vector<16x32xf32>
    %102 = arith.truncf %101 : vector<16x32xf32> to vector<16x32xbf16>
    %c0_39 = arith.constant 0 : index
    %c96 = arith.constant 96 : index
    %c0_40 = arith.constant 0 : index
    %103 = vector.load %arg8[%c0_39, %c96, %c0_40] : memref<1x128x128xbf16, #tpu.memory_space<vmem>>, vector<1x32x128xbf16>
    %104 = vector.shape_cast %103 : vector<1x32x128xbf16> to vector<32x128xbf16>
    %cst_41 = arith.constant dense<0.000000e+00> : vector<16x128xf32>
    %105 = tpu.matmul %102, %104, %cst_41 {dimension_numbers = #tpu.dot_dimension_numbers<[1], [0], [0], [1], [0, 0, 1, 1], [], []>} : vector<16x32xbf16>, vector<32x128xbf16>, vector<16x128xf32> -> vector<16x128xf32>
    %106 = arith.addf %83, %105 : vector<16x128xf32>
    %107 = vector.extract_strided_slice %12 {offsets = [16, 0], sizes = [16, 384], strides = [1, 1]} : vector<32x384xbf16> to vector<16x384xbf16>
    %cst_42 = arith.constant 0.000000e+00 : f32
    %108 = vector.broadcast %cst_42 : f32 to vector<16x128xf32>
    %109 = vector.extract_strided_slice %107 {offsets = [0, 0], sizes = [16, 32], strides = [1, 1]} : vector<16x384xbf16> to vector<16x32xbf16>
    %110 = vector.extract_strided_slice %107 {offsets = [0, 128], sizes = [16, 32], strides = [1, 1]} : vector<16x384xbf16> to vector<16x32xbf16>
    %111 = vector.extract_strided_slice %107 {offsets = [0, 256], sizes = [16, 32], strides = [1, 1]} : vector<16x384xbf16> to vector<16x32xbf16>
    %cst_43 = arith.constant dense<0.000000e+00> : vector<16x16xf32>
    %112 = tpu.matmul %109, %110, %cst_43 {dimension_numbers = #tpu.dot_dimension_numbers<[1], [1], [0], [0], [0, 0, 1, 0], [], []>} : vector<16x32xbf16>, vector<16x32xbf16>, vector<16x16xf32> -> vector<16x16xf32>
    %cst_44 = arith.constant 0.176776692 : f32
    %113 = vector.broadcast %cst_44 : f32 to vector<16x16xf32>
    %114 = arith.mulf %112, %113 : vector<16x16xf32>
    %cst_45 = arith.constant dense<0xFF800000> : vector<16xf32>
    %115 = vector.multi_reduction <maximumf>, %114, %cst_45 [1] : vector<16x16xf32> to vector<16xf32>
    %116 = vector.shape_cast %115 : vector<16xf32> to vector<16x1xf32>
    %117 = vector.broadcast %116 : vector<16x1xf32> to vector<16x16xf32>
    %118 = arith.subf %114, %117 : vector<16x16xf32>
    %119 = math.exp %118 : vector<16x16xf32>
    %cst_46 = arith.constant dense<0.000000e+00> : vector<16xf32>
    %120 = vector.multi_reduction <add>, %119, %cst_46 [1] : vector<16x16xf32> to vector<16xf32>
    %121 = vector.shape_cast %120 : vector<16xf32> to vector<16x1xf32>
    %122 = tpu.reciprocal %121 {approx = true} : vector<16x1xf32> -> vector<16x1xf32>
    %123 = vector.broadcast %122 : vector<16x1xf32> to vector<16x16xf32>
    %124 = arith.mulf %119, %123 : vector<16x16xf32>
    %125 = arith.truncf %124 : vector<16x16xf32> to vector<16x16xbf16>
    %cst_47 = arith.constant dense<0.000000e+00> : vector<16x32xf32>
    %126 = tpu.matmul %125, %111, %cst_47 {dimension_numbers = #tpu.dot_dimension_numbers<[1], [0], [0], [1], [0, 0, 1, 1], [], []>} : vector<16x16xbf16>, vector<16x32xbf16>, vector<16x32xf32> -> vector<16x32xf32>
    %127 = arith.truncf %126 : vector<16x32xf32> to vector<16x32xbf16>
    %c0_48 = arith.constant 0 : index
    %c0_49 = arith.constant 0 : index
    %c0_50 = arith.constant 0 : index
    %128 = vector.load %arg8[%c0_48, %c0_49, %c0_50] : memref<1x128x128xbf16, #tpu.memory_space<vmem>>, vector<1x32x128xbf16>
    %129 = vector.shape_cast %128 : vector<1x32x128xbf16> to vector<32x128xbf16>
    %cst_51 = arith.constant dense<0.000000e+00> : vector<16x128xf32>
    %130 = tpu.matmul %127, %129, %cst_51 {dimension_numbers = #tpu.dot_dimension_numbers<[1], [0], [0], [1], [0, 0, 1, 1], [], []>} : vector<16x32xbf16>, vector<32x128xbf16>, vector<16x128xf32> -> vector<16x128xf32>
    %131 = arith.addf %108, %130 : vector<16x128xf32>
    %132 = vector.extract_strided_slice %107 {offsets = [0, 32], sizes = [16, 32], strides = [1, 1]} : vector<16x384xbf16> to vector<16x32xbf16>
    %133 = vector.extract_strided_slice %107 {offsets = [0, 160], sizes = [16, 32], strides = [1, 1]} : vector<16x384xbf16> to vector<16x32xbf16>
    %134 = vector.extract_strided_slice %107 {offsets = [0, 288], sizes = [16, 32], strides = [1, 1]} : vector<16x384xbf16> to vector<16x32xbf16>
    %cst_52 = arith.constant dense<0.000000e+00> : vector<16x16xf32>
    %135 = tpu.matmul %132, %133, %cst_52 {dimension_numbers = #tpu.dot_dimension_numbers<[1], [1], [0], [0], [0, 0, 1, 0], [], []>} : vector<16x32xbf16>, vector<16x32xbf16>, vector<16x16xf32> -> vector<16x16xf32>
    %cst_53 = arith.constant 0.176776692 : f32
    %136 = vector.broadcast %cst_53 : f32 to vector<16x16xf32>
    %137 = arith.mulf %135, %136 : vector<16x16xf32>
    %cst_54 = arith.constant dense<0xFF800000> : vector<16xf32>
    %138 = vector.multi_reduction <maximumf>, %137, %cst_54 [1] : vector<16x16xf32> to vector<16xf32>
    %139 = vector.shape_cast %138 : vector<16xf32> to vector<16x1xf32>
    %140 = vector.broadcast %139 : vector<16x1xf32> to vector<16x16xf32>
    %141 = arith.subf %137, %140 : vector<16x16xf32>
    %142 = math.exp %141 : vector<16x16xf32>
    %cst_55 = arith.constant dense<0.000000e+00> : vector<16xf32>
    %143 = vector.multi_reduction <add>, %142, %cst_55 [1] : vector<16x16xf32> to vector<16xf32>
    %144 = vector.shape_cast %143 : vector<16xf32> to vector<16x1xf32>
    %145 = tpu.reciprocal %144 {approx = true} : vector<16x1xf32> -> vector<16x1xf32>
    %146 = vector.broadcast %145 : vector<16x1xf32> to vector<16x16xf32>
    %147 = arith.mulf %142, %146 : vector<16x16xf32>
    %148 = arith.truncf %147 : vector<16x16xf32> to vector<16x16xbf16>
    %cst_56 = arith.constant dense<0.000000e+00> : vector<16x32xf32>
    %149 = tpu.matmul %148, %134, %cst_56 {dimension_numbers = #tpu.dot_dimension_numbers<[1], [0], [0], [1], [0, 0, 1, 1], [], []>} : vector<16x16xbf16>, vector<16x32xbf16>, vector<16x32xf32> -> vector<16x32xf32>
    %150 = arith.truncf %149 : vector<16x32xf32> to vector<16x32xbf16>
    %c0_57 = arith.constant 0 : index
    %c32_58 = arith.constant 32 : index
    %c0_59 = arith.constant 0 : index
    %151 = vector.load %arg8[%c0_57, %c32_58, %c0_59] : memref<1x128x128xbf16, #tpu.memory_space<vmem>>, vector<1x32x128xbf16>
    %152 = vector.shape_cast %151 : vector<1x32x128xbf16> to vector<32x128xbf16>
    %cst_60 = arith.constant dense<0.000000e+00> : vector<16x128xf32>
    %153 = tpu.matmul %150, %152, %cst_60 {dimension_numbers = #tpu.dot_dimension_numbers<[1], [0], [0], [1], [0, 0, 1, 1], [], []>} : vector<16x32xbf16>, vector<32x128xbf16>, vector<16x128xf32> -> vector<16x128xf32>
    %154 = arith.addf %131, %153 : vector<16x128xf32>
    %155 = vector.extract_strided_slice %107 {offsets = [0, 64], sizes = [16, 32], strides = [1, 1]} : vector<16x384xbf16> to vector<16x32xbf16>
    %156 = vector.extract_strided_slice %107 {offsets = [0, 192], sizes = [16, 32], strides = [1, 1]} : vector<16x384xbf16> to vector<16x32xbf16>
    %157 = vector.extract_strided_slice %107 {offsets = [0, 320], sizes = [16, 32], strides = [1, 1]} : vector<16x384xbf16> to vector<16x32xbf16>
    %cst_61 = arith.constant dense<0.000000e+00> : vector<16x16xf32>
    %158 = tpu.matmul %155, %156, %cst_61 {dimension_numbers = #tpu.dot_dimension_numbers<[1], [1], [0], [0], [0, 0, 1, 0], [], []>} : vector<16x32xbf16>, vector<16x32xbf16>, vector<16x16xf32> -> vector<16x16xf32>
    %cst_62 = arith.constant 0.176776692 : f32
    %159 = vector.broadcast %cst_62 : f32 to vector<16x16xf32>
    %160 = arith.mulf %158, %159 : vector<16x16xf32>
    %cst_63 = arith.constant dense<0xFF800000> : vector<16xf32>
    %161 = vector.multi_reduction <maximumf>, %160, %cst_63 [1] : vector<16x16xf32> to vector<16xf32>
    %162 = vector.shape_cast %161 : vector<16xf32> to vector<16x1xf32>
    %163 = vector.broadcast %162 : vector<16x1xf32> to vector<16x16xf32>
    %164 = arith.subf %160, %163 : vector<16x16xf32>
    %165 = math.exp %164 : vector<16x16xf32>
    %cst_64 = arith.constant dense<0.000000e+00> : vector<16xf32>
    %166 = vector.multi_reduction <add>, %165, %cst_64 [1] : vector<16x16xf32> to vector<16xf32>
    %167 = vector.shape_cast %166 : vector<16xf32> to vector<16x1xf32>
    %168 = tpu.reciprocal %167 {approx = true} : vector<16x1xf32> -> vector<16x1xf32>
    %169 = vector.broadcast %168 : vector<16x1xf32> to vector<16x16xf32>
    %170 = arith.mulf %165, %169 : vector<16x16xf32>
    %171 = arith.truncf %170 : vector<16x16xf32> to vector<16x16xbf16>
    %cst_65 = arith.constant dense<0.000000e+00> : vector<16x32xf32>
    %172 = tpu.matmul %171, %157, %cst_65 {dimension_numbers = #tpu.dot_dimension_numbers<[1], [0], [0], [1], [0, 0, 1, 1], [], []>} : vector<16x16xbf16>, vector<16x32xbf16>, vector<16x32xf32> -> vector<16x32xf32>
    %173 = arith.truncf %172 : vector<16x32xf32> to vector<16x32xbf16>
    %c0_66 = arith.constant 0 : index
    %c64_67 = arith.constant 64 : index
    %c0_68 = arith.constant 0 : index
    %174 = vector.load %arg8[%c0_66, %c64_67, %c0_68] : memref<1x128x128xbf16, #tpu.memory_space<vmem>>, vector<1x32x128xbf16>
    %175 = vector.shape_cast %174 : vector<1x32x128xbf16> to vector<32x128xbf16>
    %cst_69 = arith.constant dense<0.000000e+00> : vector<16x128xf32>
    %176 = tpu.matmul %173, %175, %cst_69 {dimension_numbers = #tpu.dot_dimension_numbers<[1], [0], [0], [1], [0, 0, 1, 1], [], []>} : vector<16x32xbf16>, vector<32x128xbf16>, vector<16x128xf32> -> vector<16x128xf32>
    %177 = arith.addf %154, %176 : vector<16x128xf32>
    %178 = vector.extract_strided_slice %107 {offsets = [0, 96], sizes = [16, 32], strides = [1, 1]} : vector<16x384xbf16> to vector<16x32xbf16>
    %179 = vector.extract_strided_slice %107 {offsets = [0, 224], sizes = [16, 32], strides = [1, 1]} : vector<16x384xbf16> to vector<16x32xbf16>
    %180 = vector.extract_strided_slice %107 {offsets = [0, 352], sizes = [16, 32], strides = [1, 1]} : vector<16x384xbf16> to vector<16x32xbf16>
    %cst_70 = arith.constant dense<0.000000e+00> : vector<16x16xf32>
    %181 = tpu.matmul %178, %179, %cst_70 {dimension_numbers = #tpu.dot_dimension_numbers<[1], [1], [0], [0], [0, 0, 1, 0], [], []>} : vector<16x32xbf16>, vector<16x32xbf16>, vector<16x16xf32> -> vector<16x16xf32>
    %cst_71 = arith.constant 0.176776692 : f32
    %182 = vector.broadcast %cst_71 : f32 to vector<16x16xf32>
    %183 = arith.mulf %181, %182 : vector<16x16xf32>
    %cst_72 = arith.constant dense<0xFF800000> : vector<16xf32>
    %184 = vector.multi_reduction <maximumf>, %183, %cst_72 [1] : vector<16x16xf32> to vector<16xf32>
    %185 = vector.shape_cast %184 : vector<16xf32> to vector<16x1xf32>
    %186 = vector.broadcast %185 : vector<16x1xf32> to vector<16x16xf32>
    %187 = arith.subf %183, %186 : vector<16x16xf32>
    %188 = math.exp %187 : vector<16x16xf32>
    %cst_73 = arith.constant dense<0.000000e+00> : vector<16xf32>
    %189 = vector.multi_reduction <add>, %188, %cst_73 [1] : vector<16x16xf32> to vector<16xf32>
    %190 = vector.shape_cast %189 : vector<16xf32> to vector<16x1xf32>
    %191 = tpu.reciprocal %190 {approx = true} : vector<16x1xf32> -> vector<16x1xf32>
    %192 = vector.broadcast %191 : vector<16x1xf32> to vector<16x16xf32>
    %193 = arith.mulf %188, %192 : vector<16x16xf32>
    %194 = arith.truncf %193 : vector<16x16xf32> to vector<16x16xbf16>
    %cst_74 = arith.constant dense<0.000000e+00> : vector<16x32xf32>
    %195 = tpu.matmul %194, %180, %cst_74 {dimension_numbers = #tpu.dot_dimension_numbers<[1], [0], [0], [1], [0, 0, 1, 1], [], []>} : vector<16x16xbf16>, vector<16x32xbf16>, vector<16x32xf32> -> vector<16x32xf32>
    %196 = arith.truncf %195 : vector<16x32xf32> to vector<16x32xbf16>
    %c0_75 = arith.constant 0 : index
    %c96_76 = arith.constant 96 : index
    %c0_77 = arith.constant 0 : index
    %197 = vector.load %arg8[%c0_75, %c96_76, %c0_77] : memref<1x128x128xbf16, #tpu.memory_space<vmem>>, vector<1x32x128xbf16>
    %198 = vector.shape_cast %197 : vector<1x32x128xbf16> to vector<32x128xbf16>
    %cst_78 = arith.constant dense<0.000000e+00> : vector<16x128xf32>
    %199 = tpu.matmul %196, %198, %cst_78 {dimension_numbers = #tpu.dot_dimension_numbers<[1], [0], [0], [1], [0, 0, 1, 1], [], []>} : vector<16x32xbf16>, vector<32x128xbf16>, vector<16x128xf32> -> vector<16x128xf32>
    %200 = arith.addf %177, %199 : vector<16x128xf32>
    %201 = tpu.concatenate %106, %200 in 0 : vector<16x128xf32>, vector<16x128xf32> -> vector<32x128xf32>
    %c0_79 = arith.constant 0 : index
    %c0_80 = arith.constant 0 : index
    %c0_81 = arith.constant 0 : index
    %202 = vector.load %arg9[%c0_79, %c0_80, %c0_81] : memref<1x1x128xf32, #tpu.memory_space<vmem>>, vector<1x1x128xf32>
    %203 = vector.shape_cast %202 : vector<1x1x128xf32> to vector<1x128xf32>
    %204 = vector.broadcast %203 : vector<1x128xf32> to vector<32x128xf32>
    %205 = arith.addf %201, %204 : vector<32x128xf32>
    %206 = arith.addf %3, %205 : vector<32x128xf32>
    %cst_82 = arith.constant dense<0.000000e+00> : vector<32xf32>
    %207 = vector.multi_reduction <add>, %206, %cst_82 [1] : vector<32x128xf32> to vector<32xf32>
    %208 = vector.shape_cast %207 : vector<32xf32> to vector<32x1xf32>
    %cst_83 = arith.constant 1.280000e+02 : f32
    %209 = vector.broadcast %cst_83 : f32 to vector<32x1xf32>
    %210 = arith.divf %208, %209 : vector<32x1xf32>
    %211 = vector.broadcast %210 : vector<32x1xf32> to vector<32x128xf32>
    %212 = arith.subf %206, %211 : vector<32x128xf32>
    %213 = arith.mulf %212, %212 : vector<32x128xf32>
    %cst_84 = arith.constant dense<0.000000e+00> : vector<32xf32>
    %214 = vector.multi_reduction <add>, %213, %cst_84 [1] : vector<32x128xf32> to vector<32xf32>
    %215 = vector.shape_cast %214 : vector<32xf32> to vector<32x1xf32>
    %cst_85 = arith.constant 1.280000e+02 : f32
    %216 = vector.broadcast %cst_85 : f32 to vector<32x1xf32>
    %217 = arith.divf %215, %216 : vector<32x1xf32>
    %218 = vector.broadcast %210 : vector<32x1xf32> to vector<32x128xf32>
    %219 = arith.subf %206, %218 : vector<32x128xf32>
    %cst_86 = arith.constant 9.99999996E-13 : f32
    %220 = vector.broadcast %cst_86 : f32 to vector<32x1xf32>
    %221 = arith.addf %217, %220 : vector<32x1xf32>
    %222 = math.rsqrt %221 : vector<32x1xf32>
    %223 = vector.broadcast %222 : vector<32x1xf32> to vector<32x128xf32>
    %224 = arith.mulf %219, %223 : vector<32x128xf32>
    %c0_87 = arith.constant 0 : index
    %c0_88 = arith.constant 0 : index
    %c0_89 = arith.constant 0 : index
    %225 = vector.load %arg4[%c0_87, %c0_88, %c0_89] : memref<1x1x128xf32, #tpu.memory_space<vmem>>, vector<1x1x128xf32>
    %226 = vector.shape_cast %225 : vector<1x1x128xf32> to vector<1x128xf32>
    %227 = vector.broadcast %226 : vector<1x128xf32> to vector<32x128xf32>
    %228 = arith.mulf %224, %227 : vector<32x128xf32>
    %c0_90 = arith.constant 0 : index
    %c0_91 = arith.constant 0 : index
    %c0_92 = arith.constant 0 : index
    %229 = vector.load %arg5[%c0_90, %c0_91, %c0_92] : memref<1x1x128xf32, #tpu.memory_space<vmem>>, vector<1x1x128xf32>
    %230 = vector.shape_cast %229 : vector<1x1x128xf32> to vector<1x128xf32>
    %231 = vector.broadcast %230 : vector<1x128xf32> to vector<32x128xf32>
    %232 = arith.addf %228, %231 : vector<32x128xf32>
    %233 = arith.truncf %232 : vector<32x128xf32> to vector<32x128xbf16>
    %c0_93 = arith.constant 0 : index
    %c0_94 = arith.constant 0 : index
    %c0_95 = arith.constant 0 : index
    %234 = vector.load %arg12[%c0_93, %c0_94, %c0_95] : memref<1x128x512xbf16, #tpu.memory_space<vmem>>, vector<1x128x512xbf16>
    %235 = vector.shape_cast %234 : vector<1x128x512xbf16> to vector<128x512xbf16>
    %cst_96 = arith.constant dense<0.000000e+00> : vector<32x512xf32>
    %236 = tpu.matmul %233, %235, %cst_96 {dimension_numbers = #tpu.dot_dimension_numbers<[1], [0], [0], [1], [0, 0, 1, 1], [], []>} : vector<32x128xbf16>, vector<128x512xbf16>, vector<32x512xf32> -> vector<32x512xf32>
    %c0_97 = arith.constant 0 : index
    %c0_98 = arith.constant 0 : index
    %c0_99 = arith.constant 0 : index
    %237 = vector.load %arg13[%c0_97, %c0_98, %c0_99] : memref<1x1x512xf32, #tpu.memory_space<vmem>>, vector<1x1x512xf32>
    %238 = vector.shape_cast %237 : vector<1x1x512xf32> to vector<1x512xf32>
    %239 = vector.broadcast %238 : vector<1x512xf32> to vector<32x512xf32>
    %240 = arith.addf %236, %239 : vector<32x512xf32>
    %241 = arith.mulf %240, %240 : vector<32x512xf32>
    %242 = arith.mulf %240, %241 : vector<32x512xf32>
    %cst_100 = arith.constant 4.471500e-02 : f32
    %243 = vector.broadcast %cst_100 : f32 to vector<32x512xf32>
    %244 = arith.mulf %243, %242 : vector<32x512xf32>
    %245 = arith.addf %240, %244 : vector<32x512xf32>
    %cst_101 = arith.constant 0.797884583 : f32
    %246 = vector.broadcast %cst_101 : f32 to vector<32x512xf32>
    %247 = arith.mulf %246, %245 : vector<32x512xf32>
    %248 = math.tanh %247 : vector<32x512xf32>
    %cst_102 = arith.constant 1.000000e+00 : f32
    %249 = vector.broadcast %cst_102 : f32 to vector<32x512xf32>
    %250 = arith.addf %249, %248 : vector<32x512xf32>
    %cst_103 = arith.constant 5.000000e-01 : f32
    %251 = vector.broadcast %cst_103 : f32 to vector<32x512xf32>
    %252 = arith.mulf %251, %250 : vector<32x512xf32>
    %253 = arith.mulf %240, %252 : vector<32x512xf32>
    %254 = arith.truncf %253 : vector<32x512xf32> to vector<32x512xbf16>
    %c0_104 = arith.constant 0 : index
    %c0_105 = arith.constant 0 : index
    %c0_106 = arith.constant 0 : index
    %255 = vector.load %arg14[%c0_104, %c0_105, %c0_106] : memref<1x512x128xbf16, #tpu.memory_space<vmem>>, vector<1x512x128xbf16>
    %256 = vector.shape_cast %255 : vector<1x512x128xbf16> to vector<512x128xbf16>
    %cst_107 = arith.constant dense<0.000000e+00> : vector<32x128xf32>
    %257 = tpu.matmul %254, %256, %cst_107 {dimension_numbers = #tpu.dot_dimension_numbers<[1], [0], [0], [1], [0, 0, 1, 1], [], []>} : vector<32x512xbf16>, vector<512x128xbf16>, vector<32x128xf32> -> vector<32x128xf32>
    %c0_108 = arith.constant 0 : index
    %c0_109 = arith.constant 0 : index
    %c0_110 = arith.constant 0 : index
    %258 = vector.load %arg15[%c0_108, %c0_109, %c0_110] : memref<1x1x128xf32, #tpu.memory_space<vmem>>, vector<1x1x128xf32>
    %259 = vector.shape_cast %258 : vector<1x1x128xf32> to vector<1x128xf32>
    %260 = vector.broadcast %259 : vector<1x128xf32> to vector<32x128xf32>
    %261 = arith.addf %257, %260 : vector<32x128xf32>
    %262 = arith.addf %232, %261 : vector<32x128xf32>
    %cst_111 = arith.constant dense<0.000000e+00> : vector<32xf32>
    %263 = vector.multi_reduction <add>, %262, %cst_111 [1] : vector<32x128xf32> to vector<32xf32>
    %264 = vector.shape_cast %263 : vector<32xf32> to vector<32x1xf32>
    %cst_112 = arith.constant 1.280000e+02 : f32
    %265 = vector.broadcast %cst_112 : f32 to vector<32x1xf32>
    %266 = arith.divf %264, %265 : vector<32x1xf32>
    %267 = vector.broadcast %266 : vector<32x1xf32> to vector<32x128xf32>
    %268 = arith.subf %262, %267 : vector<32x128xf32>
    %269 = arith.mulf %268, %268 : vector<32x128xf32>
    %cst_113 = arith.constant dense<0.000000e+00> : vector<32xf32>
    %270 = vector.multi_reduction <add>, %269, %cst_113 [1] : vector<32x128xf32> to vector<32xf32>
    %271 = vector.shape_cast %270 : vector<32xf32> to vector<32x1xf32>
    %cst_114 = arith.constant 1.280000e+02 : f32
    %272 = vector.broadcast %cst_114 : f32 to vector<32x1xf32>
    %273 = arith.divf %271, %272 : vector<32x1xf32>
    %274 = vector.broadcast %266 : vector<32x1xf32> to vector<32x128xf32>
    %275 = arith.subf %262, %274 : vector<32x128xf32>
    %cst_115 = arith.constant 9.99999996E-13 : f32
    %276 = vector.broadcast %cst_115 : f32 to vector<32x1xf32>
    %277 = arith.addf %273, %276 : vector<32x1xf32>
    %278 = math.rsqrt %277 : vector<32x1xf32>
    %279 = vector.broadcast %278 : vector<32x1xf32> to vector<32x128xf32>
    %280 = arith.mulf %275, %279 : vector<32x128xf32>
    %c0_116 = arith.constant 0 : index
    %c0_117 = arith.constant 0 : index
    %c0_118 = arith.constant 0 : index
    %281 = vector.load %arg10[%c0_116, %c0_117, %c0_118] : memref<1x1x128xf32, #tpu.memory_space<vmem>>, vector<1x1x128xf32>
    %282 = vector.shape_cast %281 : vector<1x1x128xf32> to vector<1x128xf32>
    %283 = vector.broadcast %282 : vector<1x128xf32> to vector<32x128xf32>
    %284 = arith.mulf %280, %283 : vector<32x128xf32>
    %c0_119 = arith.constant 0 : index
    %c0_120 = arith.constant 0 : index
    %c0_121 = arith.constant 0 : index
    %285 = vector.load %arg11[%c0_119, %c0_120, %c0_121] : memref<1x1x128xf32, #tpu.memory_space<vmem>>, vector<1x1x128xf32>
    %286 = vector.shape_cast %285 : vector<1x1x128xf32> to vector<1x128xf32>
    %287 = vector.broadcast %286 : vector<1x128xf32> to vector<32x128xf32>
    %288 = arith.addf %284, %287 : vector<32x128xf32>
    %c0_122 = arith.constant 0 : index
    %c0_123 = arith.constant 0 : index
    %289 = vector.load %arg17[%c0_122, %c0_123] : memref<32x128xf32, #tpu.memory_space<vmem>>, vector<32x128xf32>
    tpu.vector_store %arg17[%c0_122, %c0_123], %288 {strides = array<i32>} : memref<32x128xf32, #tpu.memory_space<vmem>>, vector<32x128xf32>,
    %c1_i32 = arith.constant 1 : i32
    %290 = arith.cmpi eq, %arg0, %c1_i32 : i32
    %291 = arith.extui %290 : i1 to i32
    %c0_i32_124 = arith.constant 0 : i32
    %292 = arith.cmpi ne, %291, %c0_i32_124 : i32
    scf.if %292 {
      %293 = vector.extract_strided_slice %288 {offsets = [0, 0], sizes = [16, 128], strides = [1, 1]} : vector<32x128xf32> to vector<16x128xf32>
      %cst_125 = arith.constant dense<0.000000e+00> : vector<128xf32>
      %294 = vector.multi_reduction <add>, %293, %cst_125 [0] : vector<16x128xf32> to vector<128xf32>
      %295 = vector.shape_cast %294 : vector<128xf32> to vector<1x128xf32>
      %cst_126 = arith.constant 6.250000e-02 : f32
      %296 = vector.broadcast %cst_126 : f32 to vector<1x128xf32>
      %297 = arith.mulf %295, %296 : vector<1x128xf32>
      %298 = vector.extract_strided_slice %288 {offsets = [16, 0], sizes = [16, 128], strides = [1, 1]} : vector<32x128xf32> to vector<16x128xf32>
      %cst_127 = arith.constant dense<0.000000e+00> : vector<128xf32>
      %299 = vector.multi_reduction <add>, %298, %cst_127 [0] : vector<16x128xf32> to vector<128xf32>
      %300 = vector.shape_cast %299 : vector<128xf32> to vector<1x128xf32>
      %cst_128 = arith.constant 6.250000e-02 : f32
      %301 = vector.broadcast %cst_128 : f32 to vector<1x128xf32>
      %302 = arith.mulf %300, %301 : vector<1x128xf32>
      %303 = tpu.concatenate %297, %302 in 0 : vector<1x128xf32>, vector<1x128xf32> -> vector<2x128xf32>
      %c0_129 = arith.constant 0 : index
      %c0_130 = arith.constant 0 : index
      %304 = vector.load %arg16[%c0_129, %c0_130] : memref<2x128xf32, #tpu.memory_space<vmem>>, vector<2x128xf32>
      tpu.vector_store %arg16[%c0_129, %c0_130], %303 {strides = array<i32>} : memref<2x128xf32, #tpu.memory_space<vmem>>, vector<2x128xf32>,
    } else {
    }
    return
  }
  func.func @transform_0(%arg0: i32) -> (i32, i32) {
    %c0_i32 = arith.constant 0 : i32
    %c0_i32_0 = arith.constant 0 : i32
    %c0_i32_1 = arith.constant 0 : i32
    return %c0_i32, %c0_i32_0 : i32, i32
  }
  func.func @transform_1(%arg0: i32) -> (i32, i32) {
    %c0_i32 = arith.constant 0 : i32
    %c0_i32_0 = arith.constant 0 : i32
    %c0_i32_1 = arith.constant 0 : i32
    return %c0_i32, %c0_i32_0 : i32, i32
  }
  func.func @transform_2(%arg0: i32) -> (i32, i32) {
    %c0_i32 = arith.constant 0 : i32
    %c0_i32_0 = arith.constant 0 : i32
    %c0_i32_1 = arith.constant 0 : i32
    return %c0_i32, %c0_i32_0 : i32, i32
  }
  func.func @transform_3(%arg0: i32) -> (i32, i32, i32) {
    %c0_i32 = arith.constant 0 : i32
    %c0_i32_0 = arith.constant 0 : i32
    %c0_i32_1 = arith.constant 0 : i32
    return %arg0, %c0_i32, %c0_i32_0 : i32, i32, i32
  }
  func.func @transform_4(%arg0: i32) -> (i32, i32, i32) {
    %c0_i32 = arith.constant 0 : i32
    %c0_i32_0 = arith.constant 0 : i32
    %c0_i32_1 = arith.constant 0 : i32
    return %arg0, %c0_i32, %c0_i32_0 : i32, i32, i32
  }
  func.func @transform_5(%arg0: i32) -> (i32, i32, i32) {
    %c0_i32 = arith.constant 0 : i32
    %c0_i32_0 = arith.constant 0 : i32
    %c0_i32_1 = arith.constant 0 : i32
    return %arg0, %c0_i32, %c0_i32_0 : i32, i32, i32
  }
  func.func @transform_6(%arg0: i32) -> (i32, i32, i32) {
    %c0_i32 = arith.constant 0 : i32
    %c0_i32_0 = arith.constant 0 : i32
    %c0_i32_1 = arith.constant 0 : i32
    return %arg0, %c0_i32, %c0_i32_0 : i32, i32, i32
  }
  func.func @transform_7(%arg0: i32) -> (i32, i32, i32) {
    %c0_i32 = arith.constant 0 : i32
    %c0_i32_0 = arith.constant 0 : i32
    %c0_i32_1 = arith.constant 0 : i32
    return %arg0, %c0_i32, %c0_i32_0 : i32, i32, i32
  }
  func.func @transform_8(%arg0: i32) -> (i32, i32, i32) {
    %c0_i32 = arith.constant 0 : i32
    %c0_i32_0 = arith.constant 0 : i32
    %c0_i32_1 = arith.constant 0 : i32
    return %arg0, %c0_i32, %c0_i32_0 : i32, i32, i32
  }
  func.func @transform_9(%arg0: i32) -> (i32, i32, i32) {
    %c0_i32 = arith.constant 0 : i32
    %c0_i32_0 = arith.constant 0 : i32
    %c0_i32_1 = arith.constant 0 : i32
    return %arg0, %c0_i32, %c0_i32_0 : i32, i32, i32
  }
  func.func @transform_10(%arg0: i32) -> (i32, i32, i32) {
    %c0_i32 = arith.constant 0 : i32
    %c0_i32_0 = arith.constant 0 : i32
    %c0_i32_1 = arith.constant 0 : i32
    return %arg0, %c0_i32, %c0_i32_0 : i32, i32, i32
  }
  func.func @transform_11(%arg0: i32) -> (i32, i32, i32) {
    %c0_i32 = arith.constant 0 : i32
    %c0_i32_0 = arith.constant 0 : i32
    %c0_i32_1 = arith.constant 0 : i32
    return %arg0, %c0_i32, %c0_i32_0 : i32, i32, i32
  }
  func.func @transform_12(%arg0: i32) -> (i32, i32, i32) {
    %c0_i32 = arith.constant 0 : i32
    %c0_i32_0 = arith.constant 0 : i32
    %c0_i32_1 = arith.constant 0 : i32
    return %arg0, %c0_i32, %c0_i32_0 : i32, i32, i32
  }
  func.func @transform_13(%arg0: i32) -> (i32, i32, i32) {
    %c0_i32 = arith.constant 0 : i32
    %c0_i32_0 = arith.constant 0 : i32
    %c0_i32_1 = arith.constant 0 : i32
    return %arg0, %c0_i32, %c0_i32_0 : i32, i32, i32
  }
  func.func @transform_14(%arg0: i32) -> (i32, i32, i32) {
    %c0_i32 = arith.constant 0 : i32
    %c0_i32_0 = arith.constant 0 : i32
    %c0_i32_1 = arith.constant 0 : i32
    return %arg0, %c0_i32, %c0_i32_0 : i32, i32, i32
  }
  func.func @transform_15(%arg0: i32) -> (i32, i32) {
    %c0_i32 = arith.constant 0 : i32
    %c0_i32_0 = arith.constant 0 : i32
    %c0_i32_1 = arith.constant 0 : i32
    return %c0_i32, %c0_i32_0 : i32, i32
  }
}

module attributes {stable_mosaic.version = 11 : i64} {
  func.func @_head_kernel(%arg0: i32, %arg1: memref<2x128xf32, #tpu.memory_space<vmem>>, %arg2: memref<1x128xf32, #tpu.memory_space<vmem>>, %arg3: memref<1x128xf32, #tpu.memory_space<vmem>>, %arg4: memref<128x128xbf16, #tpu.memory_space<vmem>>, %arg5: memref<1x128xf32, #tpu.memory_space<vmem>>, %arg6: memref<2x128xf32, #tpu.memory_space<vmem>>, %arg7: memref<128x128xbf16, #tpu.memory_space<vmem>>, %arg8: memref<128x128xbf16, #tpu.memory_space<vmem>>, %arg9: memref<1x128xf32, #tpu.memory_space<vmem>>, %arg10: memref<2x128xf32, #tpu.memory_space<vmem>>) attributes {dimension_semantics = [#tpu.dimension_semantics<arbitrary>], iteration_bounds = array<i64: 1>, scalar_prefetch = 0 : i64, scratch_operands = 0 : i64, tpu.core_type = #tpu.core_type<tc>, window_params = [{pipeline_mode = #tpu.pipeline_mode<synchronous>, transform_indices = @transform_0, window_bounds = array<i64: 2, 128>}, {pipeline_mode = #tpu.pipeline_mode<synchronous>, transform_indices = @transform_1, window_bounds = array<i64: 1, 128>}, {pipeline_mode = #tpu.pipeline_mode<synchronous>, transform_indices = @transform_2, window_bounds = array<i64: 1, 128>}, {pipeline_mode = #tpu.pipeline_mode<synchronous>, transform_indices = @transform_3, window_bounds = array<i64: 128, 128>}, {pipeline_mode = #tpu.pipeline_mode<synchronous>, transform_indices = @transform_4, window_bounds = array<i64: 1, 128>}, {pipeline_mode = #tpu.pipeline_mode<synchronous>, transform_indices = @transform_5, window_bounds = array<i64: 2, 128>}, {pipeline_mode = #tpu.pipeline_mode<synchronous>, transform_indices = @transform_6, window_bounds = array<i64: 128, 128>}, {pipeline_mode = #tpu.pipeline_mode<synchronous>, transform_indices = @transform_7, window_bounds = array<i64: 128, 128>}, {pipeline_mode = #tpu.pipeline_mode<synchronous>, transform_indices = @transform_8, window_bounds = array<i64: 1, 128>}, {pipeline_mode = #tpu.pipeline_mode<synchronous>, transform_indices = @transform_9, window_bounds = array<i64: 2, 128>}]} {
    %c0 = arith.constant 0 : index
    %c0_0 = arith.constant 0 : index
    %0 = vector.load %arg1[%c0, %c0_0] : memref<2x128xf32, #tpu.memory_space<vmem>>, vector<2x128xf32>
    %cst = arith.constant dense<0.000000e+00> : vector<2xf32>
    %1 = vector.multi_reduction <add>, %0, %cst [1] : vector<2x128xf32> to vector<2xf32>
    %2 = vector.shape_cast %1 : vector<2xf32> to vector<2x1xf32>
    %cst_1 = arith.constant 1.280000e+02 : f32
    %3 = vector.broadcast %cst_1 : f32 to vector<2x1xf32>
    %4 = arith.divf %2, %3 : vector<2x1xf32>
    %5 = vector.broadcast %4 : vector<2x1xf32> to vector<2x128xf32>
    %6 = arith.subf %0, %5 : vector<2x128xf32>
    %7 = arith.mulf %6, %6 : vector<2x128xf32>
    %cst_2 = arith.constant dense<0.000000e+00> : vector<2xf32>
    %8 = vector.multi_reduction <add>, %7, %cst_2 [1] : vector<2x128xf32> to vector<2xf32>
    %9 = vector.shape_cast %8 : vector<2xf32> to vector<2x1xf32>
    %cst_3 = arith.constant 1.280000e+02 : f32
    %10 = vector.broadcast %cst_3 : f32 to vector<2x1xf32>
    %11 = arith.divf %9, %10 : vector<2x1xf32>
    %12 = vector.broadcast %4 : vector<2x1xf32> to vector<2x128xf32>
    %13 = arith.subf %0, %12 : vector<2x128xf32>
    %cst_4 = arith.constant 9.99999997E-7 : f32
    %14 = vector.broadcast %cst_4 : f32 to vector<2x1xf32>
    %15 = arith.addf %11, %14 : vector<2x1xf32>
    %16 = math.rsqrt %15 : vector<2x1xf32>
    %17 = vector.broadcast %16 : vector<2x1xf32> to vector<2x128xf32>
    %18 = arith.mulf %13, %17 : vector<2x128xf32>
    %c0_5 = arith.constant 0 : index
    %c0_6 = arith.constant 0 : index
    %19 = vector.load %arg2[%c0_5, %c0_6] : memref<1x128xf32, #tpu.memory_space<vmem>>, vector<1x128xf32>
    %20 = vector.broadcast %19 : vector<1x128xf32> to vector<2x128xf32>
    %21 = arith.mulf %18, %20 : vector<2x128xf32>
    %c0_7 = arith.constant 0 : index
    %c0_8 = arith.constant 0 : index
    %22 = vector.load %arg3[%c0_7, %c0_8] : memref<1x128xf32, #tpu.memory_space<vmem>>, vector<1x128xf32>
    %23 = vector.broadcast %22 : vector<1x128xf32> to vector<2x128xf32>
    %24 = arith.addf %21, %23 : vector<2x128xf32>
    %25 = arith.truncf %24 : vector<2x128xf32> to vector<2x128xbf16>
    %c0_9 = arith.constant 0 : index
    %c0_10 = arith.constant 0 : index
    %26 = vector.load %arg4[%c0_9, %c0_10] : memref<128x128xbf16, #tpu.memory_space<vmem>>, vector<128x128xbf16>
    %cst_11 = arith.constant dense<0.000000e+00> : vector<2x128xf32>
    %27 = tpu.matmul %25, %26, %cst_11 {dimension_numbers = #tpu.dot_dimension_numbers<[1], [0], [0], [1], [0, 0, 1, 1], [], []>} : vector<2x128xbf16>, vector<128x128xbf16>, vector<2x128xf32> -> vector<2x128xf32>
    %c0_12 = arith.constant 0 : index
    %c0_13 = arith.constant 0 : index
    %28 = vector.load %arg5[%c0_12, %c0_13] : memref<1x128xf32, #tpu.memory_space<vmem>>, vector<1x128xf32>
    %29 = vector.broadcast %28 : vector<1x128xf32> to vector<2x128xf32>
    %30 = arith.addf %27, %29 : vector<2x128xf32>
    %c0_14 = arith.constant 0 : index
    %c0_15 = arith.constant 0 : index
    %31 = vector.load %arg6[%c0_14, %c0_15] : memref<2x128xf32, #tpu.memory_space<vmem>>, vector<2x128xf32>
    %32 = arith.truncf %31 : vector<2x128xf32> to vector<2x128xbf16>
    %c0_16 = arith.constant 0 : index
    %c0_17 = arith.constant 0 : index
    %33 = vector.load %arg7[%c0_16, %c0_17] : memref<128x128xbf16, #tpu.memory_space<vmem>>, vector<128x128xbf16>
    %cst_18 = arith.constant dense<0.000000e+00> : vector<2x128xf32>
    %34 = tpu.matmul %32, %33, %cst_18 {dimension_numbers = #tpu.dot_dimension_numbers<[1], [0], [0], [1], [0, 0, 1, 1], [], []>} : vector<2x128xbf16>, vector<128x128xbf16>, vector<2x128xf32> -> vector<2x128xf32>
    %35 = arith.truncf %30 : vector<2x128xf32> to vector<2x128xbf16>
    %c0_19 = arith.constant 0 : index
    %c0_20 = arith.constant 0 : index
    %36 = vector.load %arg8[%c0_19, %c0_20] : memref<128x128xbf16, #tpu.memory_space<vmem>>, vector<128x128xbf16>
    %cst_21 = arith.constant dense<0.000000e+00> : vector<2x128xf32>
    %37 = tpu.matmul %35, %36, %cst_21 {dimension_numbers = #tpu.dot_dimension_numbers<[1], [0], [0], [1], [0, 0, 1, 1], [], []>} : vector<2x128xbf16>, vector<128x128xbf16>, vector<2x128xf32> -> vector<2x128xf32>
    %38 = arith.addf %34, %37 : vector<2x128xf32>
    %c0_22 = arith.constant 0 : index
    %c0_23 = arith.constant 0 : index
    %39 = vector.load %arg9[%c0_22, %c0_23] : memref<1x128xf32, #tpu.memory_space<vmem>>, vector<1x128xf32>
    %40 = vector.broadcast %39 : vector<1x128xf32> to vector<2x128xf32>
    %41 = arith.addf %38, %40 : vector<2x128xf32>
    %c0_24 = arith.constant 0 : index
    %c0_25 = arith.constant 0 : index
    %42 = vector.load %arg10[%c0_24, %c0_25] : memref<2x128xf32, #tpu.memory_space<vmem>>, vector<2x128xf32>
    tpu.vector_store %arg10[%c0_24, %c0_25], %41 {strides = array<i32>} : memref<2x128xf32, #tpu.memory_space<vmem>>, vector<2x128xf32>,
    return
  }
  func.func @transform_0(%arg0: i32) -> (i32, i32) {
    %c0_i32 = arith.constant 0 : i32
    %c0_i32_0 = arith.constant 0 : i32
    %c0_i32_1 = arith.constant 0 : i32
    return %c0_i32, %c0_i32_0 : i32, i32
  }
  func.func @transform_1(%arg0: i32) -> (i32, i32) {
    %c0_i32 = arith.constant 0 : i32
    %c0_i32_0 = arith.constant 0 : i32
    %c0_i32_1 = arith.constant 0 : i32
    return %c0_i32, %c0_i32_0 : i32, i32
  }
  func.func @transform_2(%arg0: i32) -> (i32, i32) {
    %c0_i32 = arith.constant 0 : i32
    %c0_i32_0 = arith.constant 0 : i32
    %c0_i32_1 = arith.constant 0 : i32
    return %c0_i32, %c0_i32_0 : i32, i32
  }
  func.func @transform_3(%arg0: i32) -> (i32, i32) {
    %c0_i32 = arith.constant 0 : i32
    %c0_i32_0 = arith.constant 0 : i32
    %c0_i32_1 = arith.constant 0 : i32
    return %c0_i32, %c0_i32_0 : i32, i32
  }
  func.func @transform_4(%arg0: i32) -> (i32, i32) {
    %c0_i32 = arith.constant 0 : i32
    %c0_i32_0 = arith.constant 0 : i32
    %c0_i32_1 = arith.constant 0 : i32
    return %c0_i32, %c0_i32_0 : i32, i32
  }
  func.func @transform_5(%arg0: i32) -> (i32, i32) {
    %c0_i32 = arith.constant 0 : i32
    %c0_i32_0 = arith.constant 0 : i32
    %c0_i32_1 = arith.constant 0 : i32
    return %c0_i32, %c0_i32_0 : i32, i32
  }
  func.func @transform_6(%arg0: i32) -> (i32, i32) {
    %c0_i32 = arith.constant 0 : i32
    %c0_i32_0 = arith.constant 0 : i32
    %c0_i32_1 = arith.constant 0 : i32
    return %c0_i32, %c0_i32_0 : i32, i32
  }
  func.func @transform_7(%arg0: i32) -> (i32, i32) {
    %c0_i32 = arith.constant 0 : i32
    %c0_i32_0 = arith.constant 0 : i32
    %c0_i32_1 = arith.constant 0 : i32
    return %c0_i32, %c0_i32_0 : i32, i32
  }
  func.func @transform_8(%arg0: i32) -> (i32, i32) {
    %c0_i32 = arith.constant 0 : i32
    %c0_i32_0 = arith.constant 0 : i32
    %c0_i32_1 = arith.constant 0 : i32
    return %c0_i32, %c0_i32_0 : i32, i32
  }
  func.func @transform_9(%arg0: i32) -> (i32, i32) {
    %c0_i32 = arith.constant 0 : i32
    %c0_i32_0 = arith.constant 0 : i32
    %c0_i32_1 = arith.constant 0 : i32
    return %c0_i32, %c0_i32_0 : i32, i32
  }
}

</mosaic_0001>

<bundles_post_ra>
// kernel: multimodal_vivit_forward.3
= control target key start
LH: loop header
LB: loop body
LE: loop exit
PB: predicated region body
PF: predicated region fallthrough
CT: control target
= control target key end

     0   :  { %s4743_s18 = smov 0   ;;  %s5588_s0 = inlined_call_operand.vmem [shape: f32[32,384], index: 0, kind: input, shape index: {}]   ;;  %s5589_s1 = inlined_call_operand.vmem [shape: bf16[384,128], index: 1, kind: input, shape index: {}]   ;;  %s5590_s2 = inlined_call_operand.vmem [shape: f32[32,128], index: 2, kind: input, shape index: {}]   ;;  %s5591_s3 = inlined_call_operand.vmem [shape: f32[2,1,128], index: 3, kind: input, shape index: {}]   ;;  %s5592_s4 = inlined_call_operand.vmem [shape: f32[2,1,128], index: 4, kind: input, shape index: {}]   ;;  %s5593_s5 = inlined_call_operand.vmem [shape: bf16[2,128,384], index: 5, kind: input, shape index: {}]   ;;  %s5594_s6 = inlined_call_operand.vmem [shape: f32[2,1,384], index: 6, kind: input, shape index: {}]   ;;  %s5595_s7 = inlined_call_operand.vmem [shape: bf16[2,128,128], index: 7, kind: input, shape index: {}]   ;;  %s5596_s8 = inlined_call_operand.vmem [shape: f32[2,1,128], index: 8, kind: input, shape index: {}]   ;;  %s5597_s9 = inlined_call_operand.vmem [shape: f32[2,1,128], index: 9, kind: input, shape index: {}]   ;;  %s5598_s10 = inlined_call_operand.vmem [shape: f32[2,1,128], index: 10, kind: input, shape index: {}]   ;;  %s5599_s11 = inlined_call_operand.vmem [shape: bf16[2,128,512], index: 11, kind: input, shape index: {}]   ;;  %s5600_s12 = inlined_call_operand.vmem [shape: f32[2,1,512], index: 12, kind: input, shape index: {}]   ;;  %s5601_s13 = inlined_call_operand.vmem [shape: bf16[2,512,128], index: 13, kind: input, shape index: {}]   ;;  %s5602_s14 = inlined_call_operand.vmem [shape: f32[2,1,128], index: 14, kind: input, shape index: {}]   ;;  %s5603_s15 = inlined_call_operand.vmem [shape: f32[2,128], index: 15, kind: output, shape index: {}]  }
   0x1   :  { %5606 = sst [smem:[#allocation4_spill]] %s5590_s2 }
   0x2   :  { %5607 = sst [smem:[#allocation5_spill]] %s5591_s3 }
   0x3   :  { %5608 = sst [smem:[#allocation6_spill]] %s5592_s4 }
   0x4   :  { %5609 = sst [smem:[#allocation7_spill]] %s5593_s5 }
   0x5   :  { %5610 = sst [smem:[#allocation8_spill]] %s5595_s7 }
   0x6   :  { %5611 = sst [smem:[#allocation9_spill]] %s5603_s15 }
   0x7 LB: > { %5612 = sst [smem:[#allocation3_spill]] %s4655_s18  ;;  %s4749_s19 = sadd.s32 4294967295, %s4655_s18   ;;  %s4655_s18 = sphi %s4743_s18, %s25_s18  }
   0x8   : > { %p3847_p0 = scmp.ge.s32.totalorder %s4655_s18, 1  ;;  %p528_p1 = scmp.lt.s32.totalorder %s4655_s18, 3 }
   0xa   : > { %p529_p2 = pnand %p3847_p0, %p528_p1 }
   0xb   : > { %p612_p3 = scmp.lt.s32.totalorder (!%p529_p2), %s4749_s19, 1  ;;  %s5615_s7 = sld [smem:[#allocation8_spill]] (!%p529_p2) }
   0xc   : > { %532 = sbr.rel (%p529_p2) target bundleno = 5853 (0x16dd), region = 80  ;;  %s5616_s5 = sld [smem:[#allocation7_spill]] (!%p529_p2) }
   0xd   : > { %p3856_p4 = scmp.ne.s32.totalorder (!%p529_p2), %s4749_s19, 0 }
  0x13   : > { %s4755_s20 = scalar_select %p612_p3, %s4749_s19, 1 }
  0x14   : > { %v4389_v0 = vld [vmem:[%s5589_s1 + $0x40] sm:$0xff] (!%p3856_p4)   ;;  %v4391_v2 = vld [vmem:[%s5589_s1 + $0x48] sm:$0xff] (!%p3856_p4)   ;;  %v4394_v5 = vld [vmem:[%s5589_s1 + $0x50] sm:$0xff] (!%p3856_p4)   ;;  %s5617_s25 = sld [smem:[#allocation4_spill]] (!%p3856_p4) }
  0x15   : > { %s4373_s27 = smul.u32 192, %s4755_s20  ;;  %s4010_s28 = sshll.u32 %s4755_s20, 6  ;;  %v4390_v1 = vld [vmem:[%s5589_s1] sm:$0xff] (!%p3856_p4)   ;;  %4013 = vmatprep.subr.bf16.mxu0 (!%p3856_p4), %v4389_v0  ;;  %v4393_v4 = vld [vmem:[%s5589_s1 + $0x8] sm:$0xff] (!%p3856_p4)   ;;  %v4396_v7 = vld [vmem:[%s5589_s1 + $0x10] sm:$0xff] (!%p3856_p4)  }
  0x16   : > { %s4374_s29 = smul.u32 3, %s4755_s20  ;;  %s4771_s17 = scalar_lea.vmem %s5615_s7, %s4010_s28  ;;  %4014 = vmatpush3.bf16.msra.mxu0 (!%p3856_p4), %v4390_v1  ;;  %v4392_v3 = vld [vmem:[%s5589_s1 + $0x80] sm:$0xff] (!%p3856_p4)   ;;  %v4395_v6 = vld [vmem:[%s5589_s1 + $0x88] sm:$0xff] (!%p3856_p4)   ;;  %v4397_v8 = vld [vmem:[%s5589_s1 + $0x58] sm:$0xff] (!%p3856_p4)  }
  0x17   : > { %s4776_s18 = scalar_lea.vmem %s5616_s5, %s4373_s27  ;;  %s637_s30 = scalar_lea.vmem %s5597_s9, %s4755_s20  ;;  %4015 = vmatprep.subr.bf16.mxu0 (!%p3856_p4), %v4391_v2  ;;  %4173 = vmatprep.subr.bf16.mxu1 (!%p3856_p4), %v4392_v3  ;;  %v4398_v9 = vld [vmem:[%s5589_s1 + $0x90] sm:$0xff] (!%p3856_p4)   ;;  %v4399_v10 = vld [vmem:[%s5589_s1 + $0x18] sm:$0xff] (!%p3856_p4)   ;;  %v4400_v11 = vld [vmem:[%s5589_s1 + $0x60] sm:$0xff] (!%p3856_p4)  }
  0x18   : > { %s4785_s26 = scalar_lea.vmem %s5594_s6, %s4374_s29  ;;  %s4011_s21 = sshll.u32 %s4755_s20, 8  ;;  %4174 = vmatpush3.bf16.msra.mxu1 (!%p3856_p4), %v4392_v3  ;;  %v4401_v12 = vld [vmem:[%s5589_s1 + $0x98] sm:$0xff] (!%p3856_p4)   ;;  %v4402_v13 = vld [vmem:[%s5589_s1 + $0x20] sm:$0xff] (!%p3856_p4)   ;;  %v4403_v15 = vld [vmem:[%s5589_s1 + $0x68] sm:$0xff] (!%p3856_p4)  }
  0x19   : > { %s4799_s5 = scalar_lea.vmem %s5599_s11, %s4011_s21  ;;  %s3853_s15 = sshll.u32 %s4755_s20, 2  ;;  %4175 = vmatprep.subr.bf16.mxu1 (!%p3856_p4), %v4395_v6  ;;  %v4404_v14 = vld [vmem:[%s5589_s1 + $0xa0] sm:$0xff] (!%p3856_p4)   ;;  %v4405_v16 = vld [vmem:[%s5589_s1 + $0x28] sm:$0xff] (!%p3856_p4)   ;;  %v4406_v18 = vld [vmem:[%s5589_s1 + $0x70] sm:$0xff] (!%p3856_p4)  }
  0x1a   : > { %s4805_s29 = scalar_lea.vmem %s5600_s12, %s3853_s15  ;;  %s4810_s2 = scalar_lea.vmem %s5601_s13, %s4011_s21  ;;  %4016 = vmatpush3.bf16.msra.mxu0 (!%p3856_p4), %v4393_v4  ;;  %v4407_v17 = vld [vmem:[%s5589_s1 + $0xa8] sm:$0xff] (!%p3856_p4)   ;;  %v4408_v19 = vld [vmem:[%s5589_s1 + $0x30] sm:$0xff] (!%p3856_p4)   ;;  %v667_v22 = vld [vmem:[%s5588_s0 + $0x20] sm:$0xff] (!%p3856_p4) }
  0x1b   : > { %s657_s16 = scalar_lea.vmem %s5602_s14, %s4755_s20  ;;  %662 = sbr.rel (%p3856_p4) target bundleno = 283 (0x11b), region = 84  ;;  %4017 = vmatprep.subr.bf16.mxu0 (!%p3856_p4), %v4394_v5  ;;  %v4410_v20 = vld [vmem:[%s5589_s1 + $0xb0] sm:$0xff] (!%p3856_p4)   ;;  %v664_v21 = vld [vmem:[%s5588_s0 + $0x8] sm:$0xff] (!%p3856_p4)  ;;  %v4409_v23 = vld [vmem:[%s5589_s1 + $0x78] sm:$0xff] (!%p3856_p4)  }
  0x1c   : > { %4176 = vmatpush3.bf16.msra.mxu1 (!%p3856_p4), %v4395_v6  ;;  %v676_v24 = vpack.c.bf16 (!%p3856_p4), %v667_v22, %v664_v21  ;;  %v665_v25 = vld [vmem:[%s5588_s0 + $0x10] sm:$0xff] (!%p3856_p4)  ;;  %v668_v26 = vld [vmem:[%s5588_s0 + $0x28] sm:$0xff] (!%p3856_p4)  ;;  %v4411_v27 = vld [vmem:[%s5589_s1 + $0x38] sm:$0xff] (!%p3856_p4)  }
  0x1d   : > { %4177 = vmatprep.subr.bf16.mxu1 (!%p3856_p4), %v4398_v9  ;;  %v677_v28 = vpack.c.bf16 (!%p3856_p4), %v668_v26, %v665_v25  ;;  %v663_v29 = vld [vmem:[%s5588_s0] sm:$0xff] (!%p3856_p4)  ;;  %v666_v30 = vld [vmem:[%s5588_s0 + $0x18] sm:$0xff] (!%p3856_p4)  ;;  %v673_v33 = vld [vmem:[%s5588_s0 + $0x50] sm:$0xff] (!%p3856_p4) }
  0x1e   : > { %4018 = vmatpush3.bf16.msra.mxu0 (!%p3856_p4), %v4396_v7  ;;  %909 = vmatprep.mubr.bf16.mxu0 (!%p3856_p4), %v676_v24  ;;  %v4412_v31 = vld [vmem:[%s5589_s1 + $0xb8] sm:$0xff] (!%p3856_p4)   ;;  %v675_v34 = vpack.c.bf16 (!%p3856_p4), %v666_v30, %v663_v29  ;;  %v671_v35 = vld [vmem:[%s5588_s0 + $0x40] sm:$0xff] (!%p3856_p4)  ;;  %v669_v39 = vld [vmem:[%s5588_s0 + $0x30] sm:$0xff] (!%p3856_p4) }
  0x1f   : > { %4019 = vmatprep.subr.bf16.mxu0 (!%p3856_p4), %v4397_v8  ;;  %4189 = vmatprep.mubr.bf16.mxu1 (!%p3856_p4), %v677_v28  ;;  %v670_v32 = vld [vmem:[%s5588_s0 + $0x38] sm:$0xff] (!%p3856_p4)  ;;  %v672_v40 = vld [vmem:[%s5588_s0 + $0x48] sm:$0xff] (!%p3856_p4)  ;;  %v729_v44 = vld [vmem:[%s5617_s25] sm:$0xff] (!%p3856_p4) }
  0x20   : > { %4178 = vmatpush3.bf16.msra.mxu1 (!%p3856_p4), %v4398_v9  ;;  %v674_v36 = vld [vmem:[%s5588_s0 + $0x58] sm:$0xff] (!%p3856_p4)  ;;  %v679_v37 = vpack.c.bf16 (!%p3856_p4), %v673_v33, %v670_v32  ;;  %v678_v41 = vpack.c.bf16 (!%p3856_p4), %v672_v40, %v669_v39  ;;  %v730_v49 = vld [vmem:[%s5617_s25 + $0x8] sm:$0xff] (!%p3856_p4)  ;;  %v731_v59 = vld [vmem:[%s5617_s25 + $0x10] sm:$0xff] (!%p3856_p4) }
  0x21   : > { %4179 = vmatprep.subr.bf16.mxu1 (!%p3856_p4), %v4401_v12  ;;  %v680_v38 = vpack.c.bf16 (!%p3856_p4), %v674_v36, %v671_v35  ;;  %v732_v63 = vld [vmem:[%s5617_s25 + $0x18] sm:$0xff] (!%p3856_p4) }
  0x22   : > { %4020 = vmatpush3.bf16.msra.mxu0 %v4399_v10 }
  0x23   : > { %4021 = vmatprep.subr.bf16.mxu0 %v4400_v11 }
  0x24   : > { %4180 = vmatpush3.bf16.msra.mxu1 %v4401_v12 }
  0x25   : > { %4181 = vmatprep.subr.bf16.mxu1 %v4404_v14 }
  0x26   : > { %4022 = vmatpush3.bf16.msra.mxu0 %v4402_v13 }
  0x27   : > { %4023 = vmatprep.subr.bf16.mxu0 %v4403_v15 }
  0x28   : > { %4182 = vmatpush3.bf16.msra.mxu1 %v4404_v14 }
  0x29   : > { %4183 = vmatprep.subr.bf16.mxu1 %v4407_v17 }
  0x2a   : > { %4024 = vmatpush3.bf16.msra.mxu0 %v4405_v16 }
  0x2b   : > { %4025 = vmatprep.subr.bf16.mxu0 %v4406_v18 }
  0x2c   : > { %4184 = vmatpush3.bf16.msra.mxu1 %v4407_v17 }
  0x2d   : > { %4185 = vmatprep.subr.bf16.mxu1 %v4410_v20 }
  0x2e   : > { %4026 = vmatpush3.bf16.msra.mxu0 %v4408_v19 }
  0x2f   : > { %4027 = vmatprep.subr.bf16.mxu0 %v4409_v23 }
  0x30   : > { %4186 = vmatpush3.bf16.msra.mxu1 %v4410_v20 }
  0x31   : > { %4187 = vmatprep.subr.bf16.mxu1 %v4412_v31 }
  0x32   : > { %4028 = vmatpush3.bf16.msra.mxu0 %v4411_v27 }
  0x34   : > { %4188 = vmatpush3.bf16.msra.mxu1 %v4412_v31 }
  0x35   : > { %910 = vmatmul.mubr.bf16.vlgmr.msra.gmra.mrb[0].mxu0 %v675_v34 }
  0x36   : > { %917 = vmatprep.mubr.bf16.mxu0 %v679_v37 }
  0x37   : > { %4190 = vmatmul.mubr.bf16.vlgmr.msra.gmra.mrb[0].mxu1 %v680_v38 }
  0x3d   : > { %918 = vmatmul.mubr.bf16.gmra.mrb[4].mxu0 %v678_v41 }
 0x108   : > { %v4029_v42 = vpop.f32.mrb[0].mxu0 }
 0x109   : > { %v4030_v43 = vpop.f32.mrb[1].mxu0 }
 0x10a   : > { %v4031_v45 = vadd.f32 %v4030_v43, %v4029_v42  ;;  %v4032_v46 = vpop.f32.mrb[2].mxu0  ;;  %v4191_v48 = vpop.f32.mrb[0].mxu1 }
 0x10b   : > { %v4033_v47 = vpop.f32.mrb[3].mxu0  ;;  %v960_v52 = vpop.f32.mrb[1].mxu1 }
 0x10c   : > { %v4034_v50 = vadd.f32 %v4033_v47, %v4032_v46  ;;  %v912_v51 = vadd.f32 %v4031_v45, %v729_v44  ;;  %v4192_v53 = vpop.f32.mrb[2].mxu1 }
 0x10d   : > { %v963_v56 = vpop.f32.mrb[3].mxu1 }
 0x10e   : > { %v961_v54 = vadd.f32 %v960_v52, %v912_v51  ;;  %v915_v55 = vadd.f32 %v4034_v50, %v730_v49 }
 0x110   : > { %975 = vst [vmem:[#allocation2] sm:$0xff] %v961_v54  ;;  %v964_v57 = vadd.f32 %v963_v56, %v915_v55  ;;  %v4035_v58 = vpop.f32.mrb[4].mxu0 }
 0x111   : > { %v4036_v60 = vpop.f32.mrb[5].mxu0 }
 0x112   : > { %976 = vst [vmem:[#allocation2 + $0x8] sm:$0xff] %v964_v57  ;;  %v4037_v61 = vadd.f32 %v4036_v60, %v4035_v58  ;;  %v4038_v62 = vpop.f32.mrb[6].mxu0 }
 0x113   : > { %v4039_v0 = vpop.f32.mrb[7].mxu0 }
 0x114   : > { %v920_v1 = vadd.f32 %v4037_v61, %v731_v59  ;;  %v4040_v2 = vadd.f32 %v4039_v0, %v4038_v62 }
 0x116   : > { %v969_v3 = vadd.f32 %v4191_v48, %v920_v1  ;;  %v923_v4 = vadd.f32 %v4040_v2, %v732_v63 }
 0x118   : > { %977 = vst [vmem:[#allocation2 + $0x10] sm:$0xff] %v969_v3  ;;  %v972_v5 = vadd.f32 %v4192_v53, %v923_v4 }
 0x11a   : > { %978 = vst [vmem:[#allocation2 + $0x18] sm:$0xff] %v972_v5 }
 0x11b PF: > { %v979_v6 = vld [vmem:[#allocation2] sm:$0xff]  ;;  %v980_v7 = vld [vmem:[#allocation2 + $0x8] sm:$0xff]  ;;  %v4421_v23 = vld [vmem:[%s4776_s18 + $0x30] ss:$12 sps:$4 sm:$0xff]   ;;  %v4657_v29 = vmov 0   ;;  %s5618_s21 = sld [smem:[#allocation5_spill]]  ;;  %s5622_s15 = scalar_lea.vmem %s5596_s8, %s4755_s20 }
 0x11c   : > { %983 = vadd.xlane.f32.xlu0 %v979_v6  ;;  %v4413_v9 = vld [vmem:[%s4776_s18 + $0x4] ss:$12 sps:$4 sm:$0xff]   ;;  %v4415_v10 = vld [vmem:[%s4776_s18] ss:$12 sps:$4 sm:$0xff]   ;;  %v4416_v11 = vld [vmem:[%s4776_s18 + $0x1c] ss:$12 sps:$4 sm:$0xff]   ;;  %1261 = vmatprep.mubr.bf16.mxu0 %v4657_v29  ;;  %s5623_s4 = scalar_lea.vmem %s5598_s10, %s4755_s20 }
 0x11d   : > { %1229 = vmatprep.subr.bf16.mxu0 %v4413_v9  ;;  %v4418_v21 = vld [vmem:[%s4776_s18 + $0x18] ss:$12 sps:$4 sm:$0xff]   ;;  %v4419_v22 = vld [vmem:[%s4776_s18 + $0x34] ss:$12 sps:$4 sm:$0xff]   ;;  %v4428_v28 = vld [vmem:[%s4776_s18 + $0x7c] ss:$12 sps:$4 sm:$0xff]  }
 0x11e   : > { %1230 = vmatpush1.bf16.msra.mxu0 %v4415_v10  ;;  %v4422_v24 = vld [vmem:[%s4776_s18 + $0x4c] ss:$12 sps:$4 sm:$0xff]   ;;  %v4424_v25 = vld [vmem:[%s4776_s18 + $0x48] ss:$12 sps:$4 sm:$0xff]   ;;  %v4425_v26 = vld [vmem:[%s4776_s18 + $0x64] ss:$12 sps:$4 sm:$0xff]  }
 0x11f   : > { %v981_v8 = vld [vmem:[#allocation2 + $0x10] sm:$0xff]  ;;  %1231 = vmatprep.subr.bf16.mxu0 %v4416_v11  ;;  %v4427_v27 = vld [vmem:[%s4776_s18 + $0x60] ss:$12 sps:$4 sm:$0xff]   ;;  %v4430_v30 = vld [vmem:[%s4776_s18 + $0x78] ss:$12 sps:$4 sm:$0xff]   ;;  %s5620_s27 = sld [smem:[#allocation6_spill]] }
 0x120   : > { %985 = vadd.xlane.f32.xlu0 %v980_v7  ;;  %v4431_v31 = vld [vmem:[%s4776_s18 + $0x94] ss:$12 sps:$4 sm:$0xff]   ;;  %v4433_v33 = vld [vmem:[%s4776_s18 + $0x90] ss:$12 sps:$4 sm:$0xff]   ;;  %v4434_v35 = vld [vmem:[%s4776_s18 + $0xac] ss:$12 sps:$4 sm:$0xff]  }
 0x121   : > { %v982_v20 = vld [vmem:[#allocation2 + $0x18] sm:$0xff]  ;;  %v4436_v37 = vld [vmem:[%s4776_s18 + $0xa8] ss:$12 sps:$4 sm:$0xff]   ;;  %v4438_v40 = vld [vmem:[%s4776_s18 + $0x20] ss:$12 sps:$4 sm:$0xff]   ;;  %s5619_s24 = scalar_lea.vmem %s5618_s21, %s4755_s20  ;;  %v4658_v4 = vmov 0.0  }
 0x122   : > { %1232 = vmatpush1.bf16.msra.mxu0 %v4418_v21  ;;  %v4437_v39 = vld [vmem:[%s4776_s18 + $0x8] ss:$12 sps:$4 sm:$0xff]   ;;  %v4439_v41 = vld [vmem:[%s4776_s18 + $0x38] ss:$12 sps:$4 sm:$0xff]   ;;  %v3881_v54 = vld [vmem:[%s5619_s24] ss:$0 sm:$0xff] }
 0x123   : > { %1233 = vmatprep.subr.bf16.mxu0 %v4419_v22  ;;  %4193 = vmatprep.subr.bf16.mxu1 %v4437_v39  ;;  %v4440_v63 = vld [vmem:[%s4776_s18 + $0x50] ss:$12 sps:$4 sm:$0xff]   ;;  %v4441_v0 = vld [vmem:[%s4776_s18 + $0x68] ss:$12 sps:$4 sm:$0xff]   ;;  %v4442_v1 = vld [vmem:[%s4776_s18 + $0x80] ss:$12 sps:$4 sm:$0xff]  }
 0x124   : > { %987 = vadd.xlane.f32.xlu0 %v981_v8  ;;  %4194 = vmatpush3.bf16.msra.mxu1 %v4437_v39  ;;  %v4443_v2 = vld [vmem:[%s4776_s18 + $0x98] ss:$12 sps:$4 sm:$0xff]   ;;  %v4444_v3 = vld [vmem:[%s4776_s18 + $0xb0] ss:$12 sps:$4 sm:$0xff]   ;;  %vm4659_vm0 = vmmov 0   ;;  %vm1340_vm1 = vcmask 261120  }
 0x125   : > { %4195 = vmatprep.subr.bf16.mxu1 %v4438_v40  ;;  %s5621_s7 = scalar_lea.vmem %s5620_s27, %s4755_s20  ;;  %s4660_s18 = smov 96   ;;  %vm1394_vm3 = vcmask 130048  }
 0x126   : > { %1234 = vmatpush1.bf16.msra.mxu0 %v4421_v23  ;;  %v3882_v58 = vld [vmem:[%s5621_s7] ss:$0 sm:$0xff]  ;;  %s4662_s22 = smov 32   ;;  %p4007_p5 = scmp.ne.s32.totalorder %s4749_s19, 1 }
 0x127   : > { %1235 = vmatprep.subr.bf16.mxu0 %v4422_v24  ;;  %v1084_v23 = vld [vmem:[%s4785_s26] sm:$0x7]  ;;  %s4661_s26 = smov 64   ;;  %vm3699_vm4 = vcmask (!%p4007_p5), 1040384  }
 0x128   : > { %4196 = vmatpush3.bf16.msra.mxu1 %v4438_v40 }
 0x129   : > { %4197 = vmatprep.subr.bf16.mxu1 %v4439_v41 }
 0x12a   : > { %1236 = vmatpush1.bf16.msra.mxu0 %v4424_v25 }
 0x12b   : > { %1237 = vmatprep.subr.bf16.mxu0 %v4425_v26 }
 0x12c   : > { %4198 = vmatpush3.bf16.msra.mxu1 %v4439_v41 }
 0x12d   : > { %4199 = vmatprep.subr.bf16.mxu1 %v4440_v63 }
 0x12e   : > { %1238 = vmatpush1.bf16.msra.mxu0 %v4427_v27 }
 0x12f   : > { %1239 = vmatprep.subr.bf16.mxu0 %v4428_v28 }
 0x130   : > { %4200 = vmatpush3.bf16.msra.mxu1 %v4440_v63 }
 0x131   : > { %4201 = vmatprep.subr.bf16.mxu1 %v4441_v0 }
 0x132   : > { %1240 = vmatpush1.bf16.msra.mxu0 %v4430_v30 }
 0x133   : > { %1241 = vmatprep.subr.bf16.mxu0 %v4431_v31 }
 0x134   : > { %4202 = vmatpush3.bf16.msra.mxu1 %v4441_v0 }
 0x135   : > { %4203 = vmatprep.subr.bf16.mxu1 %v4442_v1 }
 0x136   : > { %1242 = vmatpush1.bf16.msra.mxu0 %v4433_v33 }
 0x137   : > { %1243 = vmatprep.subr.bf16.mxu0 %v4434_v35 }
 0x138   : > { %4204 = vmatpush3.bf16.msra.mxu1 %v4442_v1 }
 0x139   : > { %4205 = vmatprep.subr.bf16.mxu1 %v4443_v2 }
 0x13a   : > { %1244 = vmatpush1.bf16.msra.mxu0 %v4436_v37 }
 0x13b   : > { %4219 = vmatprep.subr.bf16.mxu0 %v4658_v4 }
 0x13c   : > { %4206 = vmatpush3.bf16.msra.mxu1 %v4443_v2 }
 0x13d   : > { %4207 = vmatprep.subr.bf16.mxu1 %v4444_v3 }
 0x140   : > { %4208 = vmatpush3.bf16.msra.mxu1 %v4444_v3 }
 0x141   : > { %4213 = vmatprep.subr.bf16.mxu1 %v4658_v4 }
 0x1a9   : > { %v984_v12 = vpop.xlane.xlu0 %983 }
 0x1aa   : > { %v992_v13 = vmul.f32 0.0078125, %v984_v12 }
 0x1ac   : > { %v4940_v14 = vsub.f32 %v979_v6, %v992_v13 }
 0x1ad   : > { %v986_v15 = vpop.xlane.xlu0 %985 }
 0x1ae   : > { %v993_v16 = vmul.f32 0.0078125, %v986_v15  ;;  %v1000_v17 = vmul.f32 %v4940_v14, %v4940_v14 }
 0x1b0   : > { %v4944_v18 = vsub.f32 %v980_v7, %v993_v16  ;;  %1004 = vadd.xlane.f32.xlu1 %v1000_v17 }
 0x1b1   : > { %v988_v32 = vpop.xlane.xlu0 %987 }
 0x1b2   : > { %v1001_v19 = vmul.f32 %v4944_v18, %v4944_v18  ;;  %v994_v34 = vmul.f32 0.0078125, %v988_v32 }
 0x1b4   : > { %1006 = vadd.xlane.f32.xlu1 %v1001_v19  ;;  %v4961_v36 = vsub.f32 %v981_v8, %v994_v34 }
 0x1b6   : > { %v1002_v38 = vmul.f32 %v4961_v36, %v4961_v36 }
 0x1b8   : > { %989 = vadd.xlane.f32.xlu1 %v982_v20  ;;  %1008 = vadd.xlane.f32.xlu0 %v1002_v38 }
 0x23d   : > { %v1005_v42 = vpop.xlane.xlu1 %1004 }
 0x23e   : > { %v1012_v43 = vmul.f32 0.0078125, %v1005_v42 }
 0x240   : > { %v1016_v44 = vadd.f32 1e-06, %v1012_v43 }
 0x241   : > { %v1007_v45 = vpop.xlane.xlu1 %1006 }
 0x242   : > { %4533 = vrsqrt.f32 %v1016_v44  ;;  %v1013_v46 = vmul.f32 0.0078125, %v1007_v45 }
 0x244   : > { %v1017_v47 = vadd.f32 1e-06, %v1013_v46 }
 0x245   : > { %v990_v48 = vpop.xlane.xlu1 %989  ;;  %v1009_v5 = vpop.xlane.xlu0 %1008 }
 0x246   : > { %4535 = vrsqrt.f32 %v1017_v47  ;;  %v995_v49 = vmul.f32 0.0078125, %v990_v48  ;;  %v1014_v6 = vmul.f32 0.0078125, %v1009_v5 }
 0x248   : > { %v999_v50 = vsub.f32 %v982_v20, %v995_v49  ;;  %v1018_v7 = vadd.f32 1e-06, %v1014_v6  ;;  %v1086_v20 = vlaneseq }
 0x24a   : > { %v1003_v51 = vmul.f32 %v999_v50, %v999_v50  ;;  %4537 = vrsqrt.f32 %v1018_v7  ;;  %v4994_v21 = vshrl.u32 %v1086_v20, 7  ;;  %v5036_v0 = vand.u32 127, %v1086_v20 }
 0x24c   : > { %v4534_v52 = vpop.eup %4533  ;;  %1010 = vadd.xlane.f32.xlu1 %v1003_v51  ;;  %v1088_v22 = vsub.s32 0, %v4994_v21  ;;  %v1092_v24 = vsub.s32 1, %v4994_v21  ;;  %v1096_v42 = vsub.s32 2, %v4994_v21  ;;  %vm1339_vm2 = vcmp.lt.s32.totalorder %v5036_v0, 9  ;;  %v3939_v0 = vld [vmem:[%s5622_s15] ss:$0 sm:$0xff] }
 0x24d   : > { %v1024_v53 = vmul.f32 %v4534_v52, %v4940_v14 }
 0x24e   : > { %v1089_v25 = vrot.slane %v1084_v23, %v1088_v22  ;;  %v1093_v27 = vrot.slane %v1084_v23, %v1092_v24  ;;  %v1097_v43 = vrot.slane %v1084_v23, %v1096_v42 }
 0x24f   : > { %v1035_v57 = vmul.f32 %v3881_v54, %v1024_v53 }
 0x250   : > { %v4536_v55 = vpop.eup %4535 }
 0x251   : > { %v1025_v56 = vmul.f32 %v4536_v55, %v4944_v18  ;;  %v1046_v60 = vadd.f32 %v3882_v58, %v1035_v57 }
 0x253   : > { %v1036_v59 = vmul.f32 %v3881_v54, %v1025_v56 }
 0x254   : > { %v4538_v11 = vpop.eup %4537 }
 0x255   : > { %v1047_v61 = vadd.f32 %v3882_v58, %v1036_v59  ;;  %v1026_v12 = vmul.f32 %v4538_v11, %v4961_v36 }
 0x257   : > { %v1050_v62 = vpack.c.bf16 %v1047_v61, %v1046_v60  ;;  %v1037_v13 = vmul.f32 %v3881_v54, %v1026_v12 }
 0x259   : > { %1262 = vmatmul.mubr.bf16.vlgmr.msra.gmra.mrb[0].mxu0 %v1050_v62  ;;  %4209 = vmatprep.mubr.bf16.mxu1 %v1050_v62  ;;  %v1048_v17 = vadd.f32 %v3882_v58, %v1037_v13 }
 0x25a   : > { %1271 = vmatprep.mubr.bf16.mxu0 %v4657_v29 }
 0x2d9   : > { %v1011_v8 = vpop.xlane.xlu1 %1010 }
 0x2da   : > { %v1015_v9 = vmul.f32 0.0078125, %v1011_v8 }
 0x2dc   : > { %v1019_v10 = vadd.f32 1e-06, %v1015_v9 }
 0x2de   : > { %4539 = vrsqrt.f32 %v1019_v10 }
 0x2e8   : > { %v4540_v14 = vpop.eup %4539 }
 0x2e9   : > { %v1027_v15 = vmul.f32 %v4540_v14, %v999_v50 }
 0x2eb   : > { %v1038_v16 = vmul.f32 %v3881_v54, %v1027_v15 }
 0x2ed   : > { %v1049_v18 = vadd.f32 %v3882_v58, %v1038_v16 }
 0x2ef   : > { %v1051_v19 = vpack.c.bf16 %v1049_v18, %v1048_v17 }
 0x2f1   : > { %1272 = vmatmul.mubr.bf16.gmra.mrb[4].mxu0 %v1051_v19  ;;  %4210 = vmatmul.mubr.bf16.vlgmr.msra.gmra.mrb[0].mxu1 %v1051_v19 }
 0x2f2   : > { %4215 = vmatprep.mubr.msk.bf16.mxu1 %vm4659_vm0, %v4658_v4  ;;  %4221 = vmatprep.mubr.msk.bf16.mxu0 %vm4659_vm0, %v4658_v4 }
 0x32c   : > { %v1263_v26 = vpop.f32.mrb[0].mxu0 }
 0x32d   : > { %v1265_v28 = vpop.f32.mrb[1].mxu0  ;;  %v1264_v31 = vadd.f32 %v1263_v26, %v1089_v25 }
 0x32e   : > { %v1267_v30 = vpop.f32.mrb[2].mxu0  ;;  %v1266_v34 = vadd.f32 %v1265_v28, %v1093_v27 }
 0x32f   : > { %v1268_v32 = vadd.f32 %v1267_v30, %v1089_v25  ;;  %v1269_v33 = vpop.f32.mrb[3].mxu0 }
 0x330   : > { %v1270_v35 = vadd.f32 %v1269_v33, %v1093_v27 }
 0x331   : > { %v5003_v36 = vpack.c.bf16 %v1268_v32, %v1264_v31 }
 0x332   : > { %v5005_v37 = vpack.c.bf16 %v1270_v35, %v1266_v34 }
 0x333   : > { %1468 = vrot.lane.b32.xlu1 %v5003_v36, %s4660_s18 }
 0x334   : > { %1471 = vrot.lane.b32.xlu0 %v5005_v37, %s4660_s18  ;;  %v1345_v38 = vsel %vm1340_vm1, %v5005_v37, 0 }
 0x335   : > { %4214 = vmatpush3.bf16.xpose.msra.mxu1 %v1345_v38 }
 0x336   : > { %4225 = vmatprep.subr.bf16.mxu1 %v4658_v4 }
 0x33c   : > { %4216 = vmatmul.mubr.msk.bf16.vlgmr.msra.gmra.mrb[4].mxu1 %vm1340_vm1, %v5003_v36 }
 0x33d   : > { %4227 = vmatprep.mubr.msk.bf16.mxu1 %vm4659_vm0, %v4658_v4 }
 0x3a5   : > { %v1469_v41 = vpop.permute.xlu1 %1468 }
 0x3a6   : > { %v1472_v39 = vpop.permute.xlu0 %1471 }
 0x3a7   : > { %v1477_v40 = vsel %vm1340_vm1, %v1472_v39, 0 }
 0x3a8   : > { %4226 = vmatpush3.bf16.xpose.msra.mxu1 %v1477_v40 }
 0x3a9   : > { %4237 = vmatprep.subr.bf16.mxu1 %v4658_v4 }
 0x3af   : > { %4228 = vmatmul.mubr.msk.bf16.vlgmr.msra.gmra.mrb[8].mxu1 %vm1340_vm1, %v1469_v41 }
 0x3b0   : > { %4241 = vmatprep.mubr.msk.bf16.mxu1 %vm4659_vm0, %v4658_v4 }
 0x3c4   : > { %v1273_v44 = vpop.f32.mrb[4].mxu0  ;;  %v4211_v45 = vpop.f32.mrb[0].mxu1 }
 0x3c5   : > { %v1274_v46 = vadd.f32 %v1273_v44, %v1089_v25  ;;  %v1325_v47 = vadd.f32 %v4211_v45, %v1097_v43  ;;  %v1275_v48 = vpop.f32.mrb[5].mxu0  ;;  %v1316_v49 = vpop.f32.mrb[1].mxu1 }
 0x3c6   : > { %v1276_v50 = vadd.f32 %v1275_v48, %v1093_v27  ;;  %v1317_v51 = vadd.f32 %v1316_v49, %v1097_v43  ;;  %v1277_v52 = vpop.f32.mrb[6].mxu0  ;;  %v4212_v53 = vpop.f32.mrb[2].mxu1 }
 0x3c7   : > { %v1278_v54 = vadd.f32 %v1277_v52, %v1089_v25  ;;  %v1328_v55 = vadd.f32 %v4212_v53, %v1097_v43  ;;  %v1279_v56 = vpop.f32.mrb[7].mxu0  ;;  %v1319_v57 = vpop.f32.mrb[3].mxu1 }
 0x3c8   : > { %v1280_v58 = vadd.f32 %v1279_v56, %v1093_v27  ;;  %v1320_v59 = vadd.f32 %v1319_v57, %v1097_v43  ;;  %v5065_v56 = vld [vmem:[%s4771_s17 + $0x10] sm:$0xff]   ;;  %v5069_v57 = vld [vmem:[%s4771_s17 + $0x18] sm:$0xff]  }
 0x3c9   : > { %v5026_v60 = vpack.c.bf16 %v1278_v54, %v1274_v46  ;;  %v5028_v61 = vpack.c.bf16 %v1328_v55, %v1325_v47  ;;  %4238 = vmatpush3.bf16.msra.mxu1 %v5065_v56 }
 0x3ca   : > { %v5030_v62 = vpack.c.bf16 %v1280_v58, %v1276_v50  ;;  %v5032_v63 = vpack.c.bf16 %v1320_v59, %v1317_v51  ;;  %4239 = vmatprep.subr.bf16.mxu1 %v4658_v4 }
 0x3cc   : > { %4220 = vmatpush3.bf16.msra.mxu0 %v5032_v63 }
 0x3cd   : > { %4231 = vmatprep.subr.bf16.mxu0 %v4658_v4  ;;  %4240 = vmatpush3.bf16.msra.mxu1 %v5069_v57 }
 0x3ce   : > { %4253 = vmatprep.subr.bf16.mxu1 %v4658_v4 }
 0x40f   : > { %v1381_v1 = vpop.f32.mrb[4].mxu1 }
 0x410   : > { %v1388_v2 = vmul.f32 0.17677669, %v1381_v1  ;;  %v4217_v3 = vpop.f32.mrb[5].mxu1 }
 0x411   : > { %v1384_v5 = vpop.f32.mrb[6].mxu1 }
 0x412   : > { %v1389_v6 = vmul.f32 0.17677669, %v1384_v5  ;;  %v4218_v7 = vpop.f32.mrb[7].mxu1  ;;  %v1392_v8 = vsel %vm1339_vm2, %v1388_v2, -1e+30 }
 0x413   : > { %v1395_v9 = vsel %vm1394_vm3, %v1392_v8, -inf  ;;  %v5076_v7 = vld [vmem:[%s4771_s17] sm:$0xff]  }
 0x414   : > { %1396 = vmax.xlane.f32.xlu1 %v1395_v9  ;;  %v1393_v10 = vsel %vm1339_vm2, %v1389_v6, -1e+30  ;;  %v5081_v9 = vld [vmem:[%s4771_s17 + $0x8] sm:$0xff]  }
 0x415   : > { %v1398_v11 = vsel %vm1394_vm3, %v1393_v10, -inf }
 0x416   : > { %1399 = vmax.xlane.f32.xlu0 %v1398_v11 }
 0x482   : > { %v1513_v12 = vpop.f32.mrb[8].mxu1 }
 0x483   : > { %v1520_v13 = vmul.f32 0.17677669, %v1513_v12  ;;  %v4229_v14 = vpop.f32.mrb[9].mxu1 }
 0x484   : > { %v1516_v15 = vpop.f32.mrb[10].mxu1 }
 0x485   : > { %v1521_v16 = vmul.f32 0.17677669, %v1516_v15  ;;  %v4230_v17 = vpop.f32.mrb[11].mxu1  ;;  %v1522_v18 = vsel %vm1339_vm2, %v1520_v13, -1e+30 }
 0x486   : > { %v1524_v19 = vsel %vm1394_vm3, %v1522_v18, -inf }
 0x487   : > { %1525 = vmax.xlane.f32.xlu0 %v1524_v19  ;;  %v1523_v20 = vsel %vm1339_vm2, %v1521_v16, -1e+30 }
 0x488   : > { %v1527_v23 = vsel %vm1394_vm3, %v1523_v20, -inf }
 0x489   : > { %1528 = vmax.xlane.f32.xlu1 %v1527_v23 }
 0x4a1   : > { %v1397_v25 = vpop.xlane.xlu1 %1396 }
 0x4a2   : > { %v1401_v26 = vsub.f32 %v1392_v8, %v1397_v25 }
 0x4a3   : > { %v1400_v27 = vpop.xlane.xlu0 %1399 }
 0x4a4   : > { %v1403_v28 = vmul.f32 1.442695, %v1401_v26  ;;  %v1402_v30 = vsub.f32 %v1393_v10, %v1400_v27 }
 0x4a6   : > { %4541 = vpow2.f32 %v1403_v28  ;;  %v1405_v31 = vmul.f32 1.442695, %v1402_v30 }
 0x4a8   : > { %4543 = vpow2.f32 %v1405_v31 }
 0x4b0   : > { %v4542_v32 = vpop.eup %4541 }
 0x4b1   : > { %v1407_v33 = vsel %vm1394_vm3, %v4542_v32, 0.0 }
 0x4b2   : > { %v4544_v34 = vpop.eup %4543  ;;  %1408 = vadd.xlane.f32.xlu0 %v1407_v33 }
 0x4b3   : > { %v1410_v35 = vsel %vm1394_vm3, %v4544_v34, 0.0 }
 0x4b4   : > { %1411 = vadd.xlane.f32.xlu1 %v1410_v35 }
 0x514   : > { %v1526_v38 = vpop.xlane.xlu0 %1525 }
 0x515   : > { %v1530_v39 = vsub.f32 %v1522_v18, %v1526_v38 }
 0x516   : > { %v1529_v40 = vpop.xlane.xlu1 %1528 }
 0x517   : > { %v1532_v41 = vmul.f32 1.442695, %v1530_v39  ;;  %v1531_v43 = vsub.f32 %v1523_v20, %v1529_v40 }
 0x519   : > { %4545 = vpow2.f32 %v1532_v41  ;;  %v1534_v44 = vmul.f32 1.442695, %v1531_v43 }
 0x51b   : > { %4547 = vpow2.f32 %v1534_v44 }
 0x523   : > { %v4546_v45 = vpop.eup %4545 }
 0x524   : > { %v1536_v46 = vsel %vm1394_vm3, %v4546_v45, 0.0 }
 0x525   : > { %v4548_v47 = vpop.eup %4547  ;;  %1537 = vadd.xlane.f32.xlu0 %v1536_v46 }
 0x526   : > { %v1539_v48 = vsel %vm1394_vm3, %v4548_v47, 0.0 }
 0x527   : > { %1540 = vadd.xlane.f32.xlu1 %v1539_v48 }
 0x538   : > { %1714 = vrot.lane.b32.xlu1 %v5005_v37, %s4661_s26 }
 0x53b   : > { %1548 = vrot.lane.b32.xlu0 %v5032_v63, %s4660_s18 }
 0x53c   : > { %1712 = vrot.lane.b32.xlu1 %v5003_v36, %s4661_s26 }
 0x53f   : > { %v1409_v49 = vpop.xlane.xlu0 %1408 }
 0x540   : > { %4549 = vrcp.f32 %v1409_v49 }
 0x541   : > { %v1412_v50 = vpop.xlane.xlu1 %1411 }
 0x542   : > { %4551 = vrcp.f32 %v1412_v50 }
 0x54a   : > { %v4550_v51 = vpop.eup %4549 }
 0x54b   : > { %v1415_v53 = vmul.f32 %v4550_v51, %v4542_v32 }
 0x54c   : > { %v4552_v52 = vpop.eup %4551 }
 0x54d   : > { %v1416_v54 = vmul.f32 %v4552_v52, %v4544_v34 }
 0x54f   : > { %v1417_v55 = vpack.c.bf16 %v1416_v54, %v1415_v53 }
 0x551   : > { %4222 = vmatmul.mubr.msk.bf16.vlgmr.msra.gmra.mrb[8].mxu0 %vm1394_vm3, %v1417_v55 }
 0x552   : > { %4233 = vmatprep.mubr.msk.bf16.mxu0 %vm4659_vm0, %v4658_v4 }
 0x5b2   : > { %v1538_v58 = vpop.xlane.xlu0 %1537 }
 0x5b3   : > { %4553 = vrcp.f32 %v1538_v58 }
 0x5b4   : > { %v1541_v59 = vpop.xlane.xlu1 %1540 }
 0x5b5   : > { %4555 = vrcp.f32 %v1541_v59 }
 0x5b6   : > { %v1549_v1 = vpop.permute.xlu0 %1548 }
 0x5b7   : > { %4232 = vmatpush3.bf16.msra.mxu0 %v1549_v1 }
 0x5b8   : > { %4245 = vmatprep.subr.bf16.mxu0 %v4658_v4  ;;  %v1715_v17 = vpop.permute.xlu1 %1714 }
 0x5b9   : > { %v1720_v23 = vsel %vm1340_vm1, %v1715_v17, 0 }
 0x5bc   : > { %v1713_v25 = vpop.permute.xlu1 %1712 }
 0x5bd   : > { %v4554_v2 = vpop.eup %4553 }
 0x5be   : > { %v1544_v5 = vmul.f32 %v4554_v2, %v4546_v45 }
 0x5bf   : > { %v4556_v3 = vpop.eup %4555 }
 0x5c0   : > { %v1545_v6 = vmul.f32 %v4556_v3, %v4548_v47  ;;  %v5119_v3 = vld [vmem:[%s4771_s17 + $0x20] sm:$0xff]  }
 0x5c2   : > { %v1546_v8 = vpack.c.bf16 %v1545_v6, %v1544_v5 }
 0x5c4   : > { %4234 = vmatmul.mubr.msk.bf16.vlgmr.msra.gmra.mrb[12].mxu0 %vm1394_vm3, %v1546_v8 }
 0x5c5   : > { %4246 = vmatpush3.bf16.msra.mxu0 %v5076_v7  ;;  %4249 = vmatprep.mubr.msk.bf16.mxu0 %vm4659_vm0, %v4658_v4 }
 0x5c6   : > { %4247 = vmatprep.subr.bf16.mxu0 %v4658_v4 }
 0x5c9   : > { %4248 = vmatpush3.bf16.msra.mxu0 %v5081_v9 }
 0x5ca   : > { %4259 = vmatprep.subr.bf16.mxu0 %v4658_v4 }
 0x624   : > { %v1455_v10 = vpop.f32.mrb[8].mxu0 }
 0x625   : > { %v4223_v11 = vpop.f32.mrb[9].mxu0 }
 0x626   : > { %v1458_v12 = vpop.f32.mrb[10].mxu0 }
 0x627   : > { %v1462_v13 = vpack.c.bf16 %v1458_v12, %v1455_v10  ;;  %v4224_v14 = vpop.f32.mrb[11].mxu0 }
 0x629   : > { %4250 = vmatmul.mubr.msk.bf16.vlgmr.msra.gmra.mrb[16].mxu0 %vm1340_vm1, %v1462_v13 }
 0x62a   : > { %4261 = vmatprep.mubr.msk.bf16.mxu0 %vm4659_vm0, %v4658_v4 }
 0x697   : > { %v1588_v15 = vpop.f32.mrb[12].mxu0 }
 0x698   : > { %v4235_v16 = vpop.f32.mrb[13].mxu0 }
 0x699   : > { %v1591_v18 = vpop.f32.mrb[14].mxu0  ;;  %v5132_v16 = vld [vmem:[%s4771_s17 + $0x28] sm:$0xff]  }
 0x69a   : > { %v1595_v19 = vpack.c.bf16 %v1591_v18, %v1588_v15  ;;  %v4236_v20 = vpop.f32.mrb[15].mxu0 }
 0x69c   : > { %4242 = vmatmul.mubr.msk.bf16.vlgmr.msra.gmra.mrb[12].mxu1 %vm1340_vm1, %v1595_v19 }
 0x69d   : > { %4254 = vmatpush3.bf16.xpose.msra.mxu1 %v1720_v23  ;;  %4255 = vmatprep.mubr.msk.bf16.mxu1 %vm4659_vm0, %v4658_v4 }
 0x69e   : > { %4265 = vmatprep.subr.bf16.mxu1 %v4658_v4 }
 0x6a4   : > { %4256 = vmatmul.mubr.msk.bf16.vlgmr.msra.gmra.mrb[16].mxu1 %vm1340_vm1, %v1713_v25 }
 0x6a5   : > { %4269 = vmatprep.mubr.msk.bf16.mxu1 %vm4659_vm0, %v4658_v4  ;;  %4266 = vmatpush3.bf16.msra.mxu1 %v5119_v3 }
 0x6a6   : > { %4267 = vmatprep.subr.bf16.mxu1 %v4658_v4 }
 0x6a9   : > { %4268 = vmatpush3.bf16.msra.mxu1 %v5132_v16 }
 0x6aa   : > { %4279 = vmatprep.subr.bf16.mxu1 %v4658_v4 }
 0x6fc   : > { %v1705_v26 = vpop.f32.mrb[16].mxu0 }
 0x6fd   : > { %v4251_v27 = vpop.f32.mrb[17].mxu0 }
 0x6fe   : > { %v1708_v28 = vpop.f32.mrb[18].mxu0 }
 0x6ff   : > { %v4252_v30 = vpop.f32.mrb[19].mxu0 }
 0x76f   : > { %v1649_v31 = vpop.f32.mrb[12].mxu1 }
 0x770   : > { %v5099_v32 = vadd.f32 %v1705_v26, %v1649_v31  ;;  %v4243_v33 = vpop.f32.mrb[13].mxu1 }
 0x771   : > { %v1652_v34 = vpop.f32.mrb[14].mxu1 }
 0x772   : > { %v5101_v35 = vadd.f32 %v1708_v28, %v1652_v34  ;;  %v4244_v38 = vpop.f32.mrb[15].mxu1 }
 0x777   : > { %v1756_v39 = vpop.f32.mrb[16].mxu1 }
 0x778   : > { %v1763_v40 = vmul.f32 0.17677669, %v1756_v39  ;;  %v4257_v41 = vpop.f32.mrb[17].mxu1 }
 0x779   : > { %v1759_v43 = vpop.f32.mrb[18].mxu1 }
 0x77a   : > { %v1764_v44 = vmul.f32 0.17677669, %v1759_v43  ;;  %v4258_v45 = vpop.f32.mrb[19].mxu1  ;;  %v1765_v46 = vsel %vm1339_vm2, %v1763_v40, -1e+30 }
 0x77b   : > { %v1767_v47 = vsel %vm1394_vm3, %v1765_v46, -inf }
 0x77c   : > { %1768 = vmax.xlane.f32.xlu1 %v1767_v47  ;;  %v1766_v48 = vsel %vm1339_vm2, %v1764_v44, -1e+30 }
 0x77d   : > { %v1770_v49 = vsel %vm1394_vm3, %v1766_v48, -inf }
 0x77e   : > { %1771 = vmax.xlane.f32.xlu0 %v1770_v49 }
 0x78d   : > { %1790 = vrot.lane.b32.xlu1 %v5032_v63, %s4661_s26 }
 0x791   : > { %1900 = vrot.lane.b32.xlu1 %v5003_v36, %s4662_s22 }
 0x809   : > { %v1769_v50 = vpop.xlane.xlu1 %1768 }
 0x80a   : > { %v1773_v51 = vsub.f32 %v1765_v46, %v1769_v50 }
 0x80b   : > { %v1772_v52 = vpop.xlane.xlu0 %1771 }
 0x80c   : > { %v1775_v53 = vmul.f32 1.442695, %v1773_v51  ;;  %v1774_v54 = vsub.f32 %v1766_v48, %v1772_v52 }
 0x80d   : > { %v1791_v55 = vpop.permute.xlu1 %1790 }
 0x80e   : > { %4557 = vpow2.f32 %v1775_v53  ;;  %v1777_v58 = vmul.f32 1.442695, %v1774_v54  ;;  %4260 = vmatpush3.bf16.msra.mxu0 %v1791_v55  ;;  %v5157_v55 = vld [vmem:[%s4771_s17 + $0x30] sm:$0xff]  }
 0x80f   : > { %4273 = vmatprep.subr.bf16.mxu0 %v4658_v4 }
 0x810   : > { %4559 = vpow2.f32 %v1777_v58 }
 0x818   : > { %v4558_v59 = vpop.eup %4557 }
 0x819   : > { %v1779_v1 = vsel %vm1394_vm3, %v4558_v59, 0.0 }
 0x81a   : > { %v4560_v2 = vpop.eup %4559  ;;  %1780 = vadd.xlane.f32.xlu0 %v1779_v1 }
 0x81b   : > { %v1782_v36 = vsel %vm1394_vm3, %v4560_v2, 0.0 }
 0x81e   : > { %1783 = vadd.xlane.f32.xlu0 %v1782_v36 }
 0x834   : > { %1902 = vrot.lane.b32.xlu0 %v5005_v37, %s4662_s22  ;;  %v1901_v37 = vpop.permute.xlu1 %1900 }
 0x8a7   : > { %v1781_v5 = vpop.xlane.xlu0 %1780 }
 0x8a8   : > { %4561 = vrcp.f32 %v1781_v5 }
 0x8ab   : > { %v1784_v6 = vpop.xlane.xlu0 %1783 }
 0x8ac   : > { %4563 = vrcp.f32 %v1784_v6 }
 0x8af   : > { %v1903_v13 = vpop.permute.xlu0 %1902 }
 0x8b0   : > { %v1908_v15 = vsel %vm1340_vm1, %v1903_v13, 0  ;;  %v5185_v13 = vld [vmem:[%s4771_s17 + $0x38] sm:$0xff]  }
 0x8b2   : > { %v4562_v8 = vpop.eup %4561 }
 0x8b3   : > { %v1787_v11 = vmul.f32 %v4562_v8, %v4558_v59 }
 0x8b6   : > { %v4564_v10 = vpop.eup %4563 }
 0x8b7   : > { %v1788_v12 = vmul.f32 %v4564_v10, %v4560_v2 }
 0x8b9   : > { %v1789_v14 = vpack.c.bf16 %v1788_v12, %v1787_v11 }
 0x8bb   : > { %4262 = vmatmul.mubr.msk.bf16.vlgmr.msra.gmra.mrb[20].mxu0 %vm1394_vm3, %v1789_v14 }
 0x8bc   : > { %4274 = vmatpush3.bf16.xpose.msra.mxu0 %v1908_v15  ;;  %4275 = vmatprep.mubr.msk.bf16.mxu0 %vm4659_vm0, %v4658_v4 }
 0x8bd   : > { %4285 = vmatprep.subr.bf16.mxu0 %v4658_v4 }
 0x8c3   : > { %4276 = vmatmul.mubr.msk.bf16.vlgmr.msra.gmra.mrb[24].mxu0 %vm1340_vm1, %v1901_v37 }
 0x8c4   : > { %4289 = vmatprep.mubr.msk.bf16.mxu0 %vm4659_vm0, %v4658_v4  ;;  %4286 = vmatpush3.bf16.msra.mxu0 %v5157_v55 }
 0x8c5   : > { %4287 = vmatprep.subr.bf16.mxu0 %v4658_v4 }
 0x8c8   : > { %4288 = vmatpush3.bf16.msra.mxu0 %v5185_v13 }
 0x8c9   : > { %4299 = vmatprep.subr.bf16.mxu0 %v4658_v4 }
 0x98e   : > { %v1830_v17 = vpop.f32.mrb[20].mxu0 }
 0x98f   : > { %v4263_v18 = vpop.f32.mrb[21].mxu0 }
 0x990   : > { %v1833_v19 = vpop.f32.mrb[22].mxu0 }
 0x991   : > { %v1837_v20 = vpack.c.bf16 %v1833_v19, %v1830_v17  ;;  %v4264_v23 = vpop.f32.mrb[23].mxu0 }
 0x993   : > { %4270 = vmatmul.mubr.msk.bf16.vlgmr.msra.gmra.mrb[20].mxu1 %vm1340_vm1, %v1837_v20 }
 0x994   : > { %4281 = vmatprep.mubr.msk.bf16.mxu1 %vm4659_vm0, %v4658_v4 }
 0x996   : > { %v1944_v25 = vpop.f32.mrb[24].mxu0 }
 0x997   : > { %v1951_v26 = vmul.f32 0.17677669, %v1944_v25  ;;  %v4277_v27 = vpop.f32.mrb[25].mxu0 }
 0x998   : > { %v1947_v28 = vpop.f32.mrb[26].mxu0 }
 0x999   : > { %v1952_v30 = vmul.f32 0.17677669, %v1947_v28  ;;  %v4278_v31 = vpop.f32.mrb[27].mxu0  ;;  %v1953_v33 = vsel %vm1339_vm2, %v1951_v26, -1e+30 }
 0x99a   : > { %v1955_v34 = vsel %vm1394_vm3, %v1953_v33, -inf }
 0x99b   : > { %1956 = vmax.xlane.f32.xlu1 %v1955_v34  ;;  %v1954_v38 = vsel %vm1339_vm2, %v1952_v30, -1e+30 }
 0x99c   : > { %v1958_v39 = vsel %vm1394_vm3, %v1954_v38, -inf }
 0x99d   : > { %1959 = vmax.xlane.f32.xlu0 %v1958_v39 }
 0xa28   : > { %v1957_v40 = vpop.xlane.xlu1 %1956 }
 0xa29   : > { %v1961_v41 = vsub.f32 %v1953_v33, %v1957_v40 }
 0xa2a   : > { %v1960_v43 = vpop.xlane.xlu0 %1959 }
 0xa2b   : > { %v1963_v44 = vmul.f32 1.442695, %v1961_v41  ;;  %v1962_v45 = vsub.f32 %v1954_v38, %v1960_v43 }
 0xa2d   : > { %4565 = vpow2.f32 %v1963_v44  ;;  %v1965_v46 = vmul.f32 1.442695, %v1962_v45 }
 0xa2f   : > { %4567 = vpow2.f32 %v1965_v46 }
 0xa37   : > { %v4566_v47 = vpop.eup %4565 }
 0xa38   : > { %v1967_v48 = vsel %vm1394_vm3, %v4566_v47, 0.0 }
 0xa39   : > { %v4568_v49 = vpop.eup %4567  ;;  %1968 = vadd.xlane.f32.xlu0 %v1967_v48 }
 0xa3a   : > { %v1970_v50 = vsel %vm1394_vm3, %v4568_v49, 0.0 }
 0xa3b   : > { %1971 = vadd.xlane.f32.xlu1 %v1970_v50 }
 0xa4c   : > { %2211 = vrot.lane.b32.xlu1 %v5030_v62, %s4660_s18 }
 0xa4f   : > { %1978 = vrot.lane.b32.xlu0 %v5032_v63, %s4662_s22 }
 0xa50   : > { %2208 = vrot.lane.b32.xlu1 %v5026_v60, %s4660_s18 }
 0xa66   : > { %v1891_v51 = vpop.f32.mrb[20].mxu1 }
 0xa67   : > { %v5154_v52 = vadd.f32 %v1891_v51, %v5099_v32  ;;  %v4271_v53 = vpop.f32.mrb[21].mxu1 }
 0xa68   : > { %v1894_v54 = vpop.f32.mrb[22].mxu1 }
 0xa69   : > { %v5160_v58 = vadd.f32 %v1894_v54, %v5101_v35  ;;  %v4272_v59 = vpop.f32.mrb[23].mxu1  ;;  %v2092_v35 = vsel %vm1340_vm1, %v5030_v62, 0 }
 0xac6   : > { %v1969_v63 = vpop.xlane.xlu0 %1968 }
 0xac7   : > { %4569 = vrcp.f32 %v1969_v63 }
 0xac8   : > { %v1972_v1 = vpop.xlane.xlu1 %1971 }
 0xac9   : > { %4571 = vrcp.f32 %v1972_v1 }
 0xaca   : > { %v1979_v2 = vpop.permute.xlu0 %1978 }
 0xacb   : > { %4280 = vmatpush3.bf16.msra.mxu1 %v1979_v2 }
 0xacc   : > { %4293 = vmatprep.subr.bf16.mxu1 %v4658_v4  ;;  %v2212_v10 = vpop.permute.xlu1 %2211 }
 0xacd   : > { %v2217_v11 = vsel %vm1340_vm1, %v2212_v10, 0 }
 0xad0   : > { %v2209_v12 = vpop.permute.xlu1 %2208 }
 0xad1   : > { %v4570_v32 = vpop.eup %4569 }
 0xad2   : > { %v1975_v5 = vmul.f32 %v4570_v32, %v4566_v47 }
 0xad3   : > { %v4572_v36 = vpop.eup %4571 }
 0xad4   : > { %v1976_v6 = vmul.f32 %v4572_v36, %v4568_v49 }
 0xad6   : > { %v1977_v8 = vpack.c.bf16 %v1976_v6, %v1975_v5 }
 0xad8   : > { %4282 = vmatmul.mubr.msk.bf16.vlgmr.msra.gmra.mrb[24].mxu1 %vm1394_vm3, %v1977_v8 }
 0xad9   : > { %4294 = vmatpush3.bf16.xpose.msra.mxu1 %v2092_v35  ;;  %4295 = vmatprep.mubr.msk.bf16.mxu1 %vm4659_vm0, %v4658_v4 }
 0xada   : > { %4305 = vmatprep.subr.bf16.mxu1 %v4658_v4 }
 0xae0   : > { %4296 = vmatmul.mubr.msk.bf16.vlgmr.msra.gmra.mrb[28].mxu1 %vm1340_vm1, %v5026_v60 }
 0xae1   : > { %4306 = vmatpush3.bf16.xpose.msra.mxu1 %v2217_v11  ;;  %4307 = vmatprep.mubr.msk.bf16.mxu1 %vm4659_vm0, %v4658_v4 }
 0xae2   : > { %4317 = vmatprep.subr.bf16.mxu1 %v4658_v4 }
 0xae8   : > { %4308 = vmatmul.mubr.msk.bf16.vlgmr.msra.gmra.mrb[32].mxu1 %vm1340_vm1, %v2209_v12 }
 0xae9   : > { %4318 = vmatpush3.bf16.msra.mxu1 %v5065_v56  ;;  %4321 = vmatprep.mubr.msk.bf16.mxu1 %vm4659_vm0, %v4658_v4 }
 0xaea   : > { %4319 = vmatprep.subr.bf16.mxu1 %v4658_v4 }
 0xaed   : > { %4320 = vmatpush3.bf16.msra.mxu1 %v5069_v57 }
 0xaee   : > { %4333 = vmatprep.subr.bf16.mxu1 %v4658_v4 }
 0xbab   : > { %v2018_v14 = vpop.f32.mrb[24].mxu1 }
 0xbac   : > { %v4283_v15 = vpop.f32.mrb[25].mxu1 }
 0xbad   : > { %v2021_v37 = vpop.f32.mrb[26].mxu1 }
 0xbae   : > { %v2025_v17 = vpack.c.bf16 %v2021_v37, %v2018_v14  ;;  %v4284_v56 = vpop.f32.mrb[27].mxu1 }
 0xbb0   : > { %4290 = vmatmul.mubr.msk.bf16.vlgmr.msra.gmra.mrb[28].mxu0 %vm1340_vm1, %v2025_v17 }
 0xbb1   : > { %4300 = vmatpush3.bf16.msra.mxu0 %v5028_v61  ;;  %4301 = vmatprep.mubr.msk.bf16.mxu0 %vm4659_vm0, %v4658_v4 }
 0xbb2   : > { %4311 = vmatprep.subr.bf16.mxu0 %v4658_v4 }
 0xbb3   : > { %v2128_v57 = vpop.f32.mrb[28].mxu1 }
 0xbb4   : > { %v2135_v18 = vmul.f32 0.17677669, %v2128_v57  ;;  %v4297_v19 = vpop.f32.mrb[29].mxu1 }
 0xbb5   : > { %v2131_v20 = vpop.f32.mrb[30].mxu1 }
 0xbb6   : > { %v2136_v23 = vmul.f32 0.17677669, %v2131_v20  ;;  %v4298_v25 = vpop.f32.mrb[31].mxu1  ;;  %v2137_v26 = vsel %vm1339_vm2, %v2135_v18, -1e+30 }
 0xbb7   : > { %v2139_v27 = vsel %vm1394_vm3, %v2137_v26, -inf }
 0xbb8   : > { %2140 = vmax.xlane.f32.xlu1 %v2139_v27  ;;  %v2138_v28 = vsel %vm1339_vm2, %v2136_v23, -1e+30 }
 0xbb9   : > { %v2142_v30 = vsel %vm1394_vm3, %v2138_v28, -inf }
 0xbba   : > { %2143 = vmax.xlane.f32.xlu0 %v2142_v30 }
 0xbbb   : > { %v2253_v31 = vpop.f32.mrb[32].mxu1 }
 0xbbc   : > { %v2260_v33 = vmul.f32 0.17677669, %v2253_v31  ;;  %v4309_v34 = vpop.f32.mrb[33].mxu1 }
 0xbbd   : > { %v2256_v38 = vpop.f32.mrb[34].mxu1 }
 0xbbe   : > { %v2261_v39 = vmul.f32 0.17677669, %v2256_v38  ;;  %v4310_v40 = vpop.f32.mrb[35].mxu1  ;;  %v2262_v41 = vsel %vm1339_vm2, %v2260_v33, -1e+30 }
 0xbbf   : > { %v2264_v43 = vsel %vm1394_vm3, %v2262_v41, -inf }
 0xbc0   : > { %2265 = vmax.xlane.f32.xlu0 %v2264_v43  ;;  %v2263_v44 = vsel %vm1339_vm2, %v2261_v39, -1e+30 }
 0xbc1   : > { %v2267_v45 = vsel %vm1394_vm3, %v2263_v44, -inf }
 0xbc4   : > { %2268 = vmax.xlane.f32.xlu0 %v2267_v45 }
 0xc45   : > { %v2141_v46 = vpop.xlane.xlu1 %2140 }
 0xc46   : > { %v2145_v47 = vsub.f32 %v2137_v26, %v2141_v46 }
 0xc47   : > { %v2144_v48 = vpop.xlane.xlu0 %2143 }
 0xc48   : > { %v2147_v49 = vmul.f32 1.442695, %v2145_v47  ;;  %v2146_v50 = vsub.f32 %v2138_v28, %v2144_v48 }
 0xc4a   : > { %4573 = vpow2.f32 %v2147_v49  ;;  %v2149_v51 = vmul.f32 1.442695, %v2146_v50 }
 0xc4c   : > { %4575 = vpow2.f32 %v2149_v51 }
 0xc4d   : > { %v2266_v53 = vpop.xlane.xlu0 %2265 }
 0xc4e   : > { %v2270_v54 = vsub.f32 %v2262_v41, %v2266_v53 }
 0xc50   : > { %v2272_v59 = vmul.f32 1.442695, %v2270_v54 }
 0xc51   : > { %v2269_v63 = vpop.xlane.xlu0 %2268 }
 0xc52   : > { %4577 = vpow2.f32 %v2272_v59  ;;  %v2271_v1 = vsub.f32 %v2263_v44, %v2269_v63 }
 0xc54   : > { %v4574_v2 = vpop.eup %4573  ;;  %v2274_v32 = vmul.f32 1.442695, %v2271_v1 }
 0xc55   : > { %v2151_v36 = vsel %vm1394_vm3, %v4574_v2, 0.0 }
 0xc56   : > { %v4576_v5 = vpop.eup %4575  ;;  %4579 = vpow2.f32 %v2274_v32  ;;  %2152 = vadd.xlane.f32.xlu1 %v2151_v36 }
 0xc57   : > { %v2154_v6 = vsel %vm1394_vm3, %v4576_v5, 0.0 }
 0xc58   : > { %2155 = vadd.xlane.f32.xlu0 %v2154_v6 }
 0xc5c   : > { %v4578_v8 = vpop.eup %4577 }
 0xc5d   : > { %v2276_v35 = vsel %vm1394_vm3, %v4578_v8, 0.0 }
 0xc5e   : > { %2277 = vadd.xlane.f32.xlu1 %v2276_v35 }
 0xc60   : > { %v4580_v10 = vpop.eup %4579 }
 0xc61   : > { %v2279_v11 = vsel %vm1394_vm3, %v4580_v10, 0.0 }
 0xc62   : > { %2280 = vadd.xlane.f32.xlu0 %v2279_v11 }
 0xc6f   : > { %2288 = vrot.lane.b32.xlu1 %v5028_v61, %s4660_s18 }
 0xc73   : > { %2424 = vrot.lane.b32.xlu1 %v5026_v60, %s4661_s26 }
 0xc78   : > { %2426 = vrot.lane.b32.xlu0 %v5030_v62, %s4661_s26 }
 0xc83   : > { %v2079_v12 = vpop.f32.mrb[28].mxu0 }
 0xc84   : > { %v5217_v14 = vadd.f32 %v2079_v12, %v5154_v52  ;;  %v4291_v15 = vpop.f32.mrb[29].mxu0 }
 0xc85   : > { %v2082_v37 = vpop.f32.mrb[30].mxu0 }
 0xc86   : > { %v5220_v17 = vadd.f32 %v2082_v37, %v5160_v58  ;;  %v4292_v56 = vpop.f32.mrb[31].mxu0 }
 0xce3   : > { %v2153_v57 = vpop.xlane.xlu1 %2152 }
 0xce4   : > { %4581 = vrcp.f32 %v2153_v57 }
 0xce5   : > { %v2156_v18 = vpop.xlane.xlu0 %2155 }
 0xce6   : > { %4583 = vrcp.f32 %v2156_v18 }
 0xceb   : > { %v2278_v19 = vpop.xlane.xlu1 %2277 }
 0xcec   : > { %4585 = vrcp.f32 %v2278_v19 }
 0xcee   : > { %v4582_v20 = vpop.eup %4581 }
 0xcef   : > { %v2281_v23 = vpop.xlane.xlu0 %2280  ;;  %v2159_v26 = vmul.f32 %v4582_v20, %v4574_v2  ;;  %v2289_v28 = vpop.permute.xlu1 %2288 }
 0xcf0   : > { %v4584_v25 = vpop.eup %4583  ;;  %4587 = vrcp.f32 %v2281_v23 }
 0xcf1   : > { %v2160_v27 = vmul.f32 %v4584_v25, %v4576_v5 }
 0xcf3   : > { %v2161_v52 = vpack.c.bf16 %v2160_v27, %v2159_v26  ;;  %v2427_v45 = vpop.permute.xlu0 %2426  ;;  %v2425_v49 = vpop.permute.xlu1 %2424 }
 0xcf5   : > { %4302 = vmatmul.mubr.msk.bf16.vlgmr.msra.gmra.mrb[32].mxu0 %vm1394_vm3, %v2161_v52 }
 0xcf6   : > { %4312 = vmatpush3.bf16.msra.mxu0 %v2289_v28  ;;  %4313 = vmatprep.mubr.msk.bf16.mxu0 %vm4659_vm0, %v4658_v4  ;;  %v4586_v58 = vpop.eup %4585 }
 0xcf7   : > { %4325 = vmatprep.subr.bf16.mxu0 %v4658_v4  ;;  %v2284_v31 = vmul.f32 %v4586_v58, %v4578_v8 }
 0xcfa   : > { %v4588_v30 = vpop.eup %4587 }
 0xcfb   : > { %v2285_v33 = vmul.f32 %v4588_v30, %v4580_v10 }
 0xcfd   : > { %v2286_v34 = vpack.c.bf16 %v2285_v33, %v2284_v31 }
 0xcff   : > { %4314 = vmatmul.mubr.msk.bf16.vlgmr.msra.gmra.mrb[36].mxu0 %vm1394_vm3, %v2286_v34 }
 0xd00   : > { %4326 = vmatpush3.bf16.msra.mxu0 %v5076_v7  ;;  %4329 = vmatprep.mubr.msk.bf16.mxu0 %vm4659_vm0, %v4658_v4 }
 0xd01   : > { %4327 = vmatprep.subr.bf16.mxu0 %v4658_v4 }
 0xd04   : > { %4328 = vmatpush3.bf16.msra.mxu0 %v5081_v9  ;;  %v2432_v9 = vsel %vm1340_vm1, %v2427_v45, 0 }
 0xd05   : > { %4339 = vmatprep.subr.bf16.mxu0 %v4658_v4 }
 0xdc8   : > { %v2199_v38 = vpop.f32.mrb[32].mxu0 }
 0xdc9   : > { %v4303_v39 = vpop.f32.mrb[33].mxu0 }
 0xdca   : > { %v2202_v40 = vpop.f32.mrb[34].mxu0 }
 0xdcb   : > { %v2206_v41 = vpack.c.bf16 %v2202_v40, %v2199_v38  ;;  %v4304_v43 = vpop.f32.mrb[35].mxu0 }
 0xdcd   : > { %4330 = vmatmul.mubr.msk.bf16.vlgmr.msra.gmra.mrb[40].mxu0 %vm1340_vm1, %v2206_v41 }
 0xdce   : > { %4341 = vmatprep.mubr.msk.bf16.mxu0 %vm4659_vm0, %v4658_v4 }
 0xdd2   : > { %v2328_v7 = vpop.f32.mrb[36].mxu0 }
 0xdd3   : > { %v4315_v44 = vpop.f32.mrb[37].mxu0 }
 0xdd4   : > { %v2331_v46 = vpop.f32.mrb[38].mxu0 }
 0xdd5   : > { %v2335_v47 = vpack.c.bf16 %v2331_v46, %v2328_v7  ;;  %v4316_v48 = vpop.f32.mrb[39].mxu0 }
 0xdd7   : > { %4322 = vmatmul.mubr.msk.bf16.vlgmr.msra.gmra.mrb[36].mxu1 %vm1340_vm1, %v2335_v47 }
 0xdd8   : > { %4334 = vmatpush3.bf16.xpose.msra.mxu1 %v2432_v9  ;;  %4335 = vmatprep.mubr.msk.bf16.mxu1 %vm4659_vm0, %v4658_v4 }
 0xdd9   : > { %4345 = vmatprep.subr.bf16.mxu1 %v4658_v4 }
 0xddf   : > { %4336 = vmatmul.mubr.msk.bf16.vlgmr.msra.gmra.mrb[40].mxu1 %vm1340_vm1, %v2425_v49 }
 0xde0   : > { %4346 = vmatpush3.bf16.msra.mxu1 %v5119_v3  ;;  %4349 = vmatprep.mubr.msk.bf16.mxu1 %vm4659_vm0, %v4658_v4 }
 0xde1   : > { %4347 = vmatprep.subr.bf16.mxu1 %v4658_v4 }
 0xde4   : > { %4348 = vmatpush3.bf16.msra.mxu1 %v5132_v16 }
 0xde5   : > { %4359 = vmatprep.subr.bf16.mxu1 %v4658_v4 }
 0xea0   : > { %v2417_v50 = vpop.f32.mrb[40].mxu0 }
 0xea1   : > { %v4331_v51 = vpop.f32.mrb[41].mxu0 }
 0xea2   : > { %v2420_v53 = vpop.f32.mrb[42].mxu0 }
 0xea3   : > { %v4332_v54 = vpop.f32.mrb[43].mxu0 }
 0xeaa   : > { %v2373_v59 = vpop.f32.mrb[36].mxu1 }
 0xeab   : > { %v5248_v63 = vadd.f32 %v2417_v50, %v2373_v59  ;;  %v4323_v1 = vpop.f32.mrb[37].mxu1 }
 0xeac   : > { %v2376_v2 = vpop.f32.mrb[38].mxu1 }
 0xead   : > { %v5250_v32 = vadd.f32 %v2420_v53, %v2376_v2  ;;  %v4324_v3 = vpop.f32.mrb[39].mxu1 }
 0xeb2   : > { %v2468_v36 = vpop.f32.mrb[40].mxu1 }
 0xeb3   : > { %v2475_v5 = vmul.f32 0.17677669, %v2468_v36  ;;  %v4337_v6 = vpop.f32.mrb[41].mxu1 }
 0xeb4   : > { %v2471_v8 = vpop.f32.mrb[42].mxu1 }
 0xeb5   : > { %v2476_v35 = vmul.f32 0.17677669, %v2471_v8  ;;  %v4338_v16 = vpop.f32.mrb[43].mxu1  ;;  %v2477_v10 = vsel %vm1339_vm2, %v2475_v5, -1e+30 }
 0xeb6   : > { %v2479_v11 = vsel %vm1394_vm3, %v2477_v10, -inf  ;;  %v4645_v16 = vld [vmem:[#allocation2] sm:$0xff] }
 0xeb7   : > { %2480 = vmax.xlane.f32.xlu1 %v2479_v11  ;;  %v2478_v12 = vsel %vm1339_vm2, %v2476_v35, -1e+30  ;;  %v2776_v35 = vadd.f32 %v3939_v0, %v5220_v17  ;;  %v4646_v11 = vld [vmem:[#allocation2 + $0x8] sm:$0xff] }
 0xeb8   : > { %v2482_v15 = vsel %vm1394_vm3, %v2478_v12, -inf }
 0xeb9   : > { %2483 = vmax.xlane.f32.xlu0 %v2482_v15 }
 0xf44   : > { %v2481_v37 = vpop.xlane.xlu1 %2480 }
 0xf45   : > { %v2485_v56 = vsub.f32 %v2477_v10, %v2481_v37 }
 0xf46   : > { %v2484_v57 = vpop.xlane.xlu0 %2483 }
 0xf47   : > { %v2487_v18 = vmul.f32 1.442695, %v2485_v56  ;;  %v2486_v19 = vsub.f32 %v2478_v12, %v2484_v57  ;;  %v5301_v12 = vadd.f32 %v4646_v11, %v2776_v35  ;;  %v4479_v35 = vld [vmem:[%s4799_s5 + $0x84] ss:$16 sps:$4 sm:$0xff]   ;;  %v4477_v11 = vld [vmem:[%s4799_s5 + $0x80] ss:$16 sps:$4 sm:$0xff]  }
 0xf49   : > { %4589 = vpow2.f32 %v2487_v18  ;;  %v2489_v20 = vmul.f32 1.442695, %v2486_v19 }
 0xf4b   : > { %4591 = vpow2.f32 %v2489_v20 }
 0xf53   : > { %v4590_v23 = vpop.eup %4589 }
 0xf54   : > { %v2491_v25 = vsel %vm1394_vm3, %v4590_v23, 0.0 }
 0xf55   : > { %v4592_v26 = vpop.eup %4591  ;;  %2492 = vadd.xlane.f32.xlu0 %v2491_v25 }
 0xf56   : > { %v2494_v27 = vsel %vm1394_vm3, %v4592_v26, 0.0 }
 0xf57   : > { %2495 = vadd.xlane.f32.xlu1 %v2494_v27 }
 0xf68   : > { %2598 = vrot.lane.b32.xlu1 %v5030_v62, %s4662_s22 }
 0xf6b   : > { %2502 = vrot.lane.b32.xlu0 %v5028_v61, %s4661_s26 }
 0xf6c   : > { %2596 = vrot.lane.b32.xlu1 %v5026_v60, %s4662_s22 }
 0xfe2   : > { %v2493_v52 = vpop.xlane.xlu0 %2492 }
 0xfe3   : > { %4593 = vrcp.f32 %v2493_v52 }
 0xfe4   : > { %v2496_v28 = vpop.xlane.xlu1 %2495 }
 0xfe5   : > { %4595 = vrcp.f32 %v2496_v28 }
 0xfe6   : > { %v2503_v58 = vpop.permute.xlu0 %2502 }
 0xfe7   : > { %4340 = vmatpush3.bf16.msra.mxu0 %v2503_v58 }
 0xfe8   : > { %4353 = vmatprep.subr.bf16.mxu0 %v4658_v4  ;;  %v2599_v38 = vpop.permute.xlu1 %2598 }
 0xfe9   : > { %v2604_v39 = vsel %vm1340_vm1, %v2599_v38, 0  ;;  %v4453_v38 = vld [vmem:[%s4799_s5] ss:$16 sps:$4 sm:$0xff]  }
 0xfec   : > { %v2597_v60 = vpop.permute.xlu1 %2596 }
 0xfed   : > { %v4594_v30 = vpop.eup %4593 }
 0xfee   : > { %v2499_v33 = vmul.f32 %v4594_v30, %v4590_v23 }
 0xfef   : > { %v4596_v31 = vpop.eup %4595 }
 0xff0   : > { %v2500_v34 = vmul.f32 %v4596_v31, %v4592_v26 }
 0xff2   : > { %v2501_v62 = vpack.c.bf16 %v2500_v34, %v2499_v33 }
 0xff4   : > { %4342 = vmatmul.mubr.msk.bf16.vlgmr.msra.gmra.mrb[44].mxu0 %vm1394_vm3, %v2501_v62  ;;  %v4455_v62 = vld [vmem:[%s4799_s5 + $0x4] ss:$16 sps:$4 sm:$0xff]  }
 0xff5   : > { %4354 = vmatpush3.bf16.xpose.msra.mxu0 %v2604_v39  ;;  %4355 = vmatprep.mubr.msk.bf16.mxu0 %vm4659_vm0, %v4658_v4  ;;  %v4456_v39 = vld [vmem:[%s4799_s5 + $0x8] ss:$16 sps:$4 sm:$0xff]  }
 0xff6   : > { %4365 = vmatprep.subr.bf16.mxu0 %v4658_v4 }
 0xffc   : > { %4356 = vmatmul.mubr.msk.bf16.vlgmr.msra.gmra.mrb[48].mxu0 %vm1340_vm1, %v2597_v60  ;;  %v4458_v60 = vld [vmem:[%s4799_s5 + $0xc] ss:$16 sps:$4 sm:$0xff]  }
 0xffd   : > { %4366 = vmatpush3.bf16.msra.mxu0 %v5157_v55  ;;  %4369 = vmatprep.mubr.msk.bf16.mxu0 %vm4659_vm0, %v4658_v4 }
 0xffe   : > { %4367 = vmatprep.subr.bf16.mxu0 %v4658_v4 }
0x1001   : > { %4368 = vmatpush3.bf16.msra.mxu0 %v5185_v13 }
0x1002   : > { %3118 = vmatprep.subr.bf16.mxu0 %v4458_v60 }
0x10c7   : > { %v2542_v40 = vpop.f32.mrb[44].mxu0 }
0x10c8   : > { %v4343_v41 = vpop.f32.mrb[45].mxu0 }
0x10c9   : > { %v2545_v43 = vpop.f32.mrb[46].mxu0 }
0x10ca   : > { %v2549_v7 = vpack.c.bf16 %v2545_v43, %v2542_v40  ;;  %v4344_v44 = vpop.f32.mrb[47].mxu0 }
0x10cc   : > { %4350 = vmatmul.mubr.msk.bf16.vlgmr.msra.gmra.mrb[44].mxu1 %vm1340_vm1, %v2549_v7 }
0x10cd   : > { %4361 = vmatprep.mubr.msk.bf16.mxu1 %vm4659_vm0, %v4658_v4 }
0x10cf   : > { %v2640_v45 = vpop.f32.mrb[48].mxu0 }
0x10d0   : > { %v2647_v46 = vmul.f32 0.17677669, %v2640_v45  ;;  %v4357_v55 = vpop.f32.mrb[49].mxu0 }
0x10d1   : > { %v2643_v47 = vpop.f32.mrb[50].mxu0 }
0x10d2   : > { %v2648_v48 = vmul.f32 0.17677669, %v2643_v47  ;;  %v4358_v9 = vpop.f32.mrb[51].mxu0  ;;  %v2649_v49 = vsel %vm1339_vm2, %v2647_v46, -1e+30 }
0x10d3   : > { %v2651_v13 = vsel %vm1394_vm3, %v2649_v49, -inf  ;;  %v4647_v9 = vld [vmem:[#allocation2 + $0x10] sm:$0xff] }
0x10d4   : > { %2652 = vmax.xlane.f32.xlu1 %v2651_v13  ;;  %v2650_v50 = vsel %vm1339_vm2, %v2648_v48, -1e+30 }
0x10d5   : > { %v2654_v51 = vsel %vm1394_vm3, %v2650_v50, -inf }
0x10d6   : > { %2655 = vmax.xlane.f32.xlu0 %v2654_v51 }
0x10e5   : > { %2674 = vrot.lane.b32.xlu1 %v5028_v61, %s4662_s22  ;;  %v2775_v61 = vadd.f32 %v3939_v0, %v5217_v14 }
0x10e7   : > { %v5298_v10 = vadd.f32 %v4645_v16, %v2775_v61  ;;  %v4471_v61 = vld [vmem:[%s4799_s5 + $0x60] ss:$16 sps:$4 sm:$0xff]   ;;  %v4482_v16 = vld [vmem:[%s4799_s5 + $0x8c] ss:$16 sps:$4 sm:$0xff]  }
0x1161   : > { %v2653_v4 = vpop.xlane.xlu1 %2652 }
0x1162   : > { %v2657_v53 = vsub.f32 %v2649_v49, %v2653_v4 }
0x1163   : > { %v2656_v54 = vpop.xlane.xlu0 %2655 }
0x1164   : > { %v2659_v59 = vmul.f32 1.442695, %v2657_v53  ;;  %v2658_v1 = vsub.f32 %v2650_v50, %v2656_v54  ;;  %v4648_v50 = vld [vmem:[#allocation2 + $0x18] sm:$0xff]  ;;  %v4459_v53 = vld [vmem:[%s4799_s5 + $0x20] ss:$16 sps:$4 sm:$0xff]  }
0x1165   : > { %v2675_v2 = vpop.permute.xlu1 %2674  ;;  %v4461_v54 = vld [vmem:[%s4799_s5 + $0x24] ss:$16 sps:$4 sm:$0xff]  }
0x1166   : > { %4597 = vpow2.f32 %v2659_v59  ;;  %v2661_v3 = vmul.f32 1.442695, %v2658_v1  ;;  %4360 = vmatpush3.bf16.msra.mxu1 %v2675_v2  ;;  %v4462_v59 = vld [vmem:[%s4799_s5 + $0x28] ss:$16 sps:$4 sm:$0xff]   ;;  %v4464_v1 = vld [vmem:[%s4799_s5 + $0x2c] ss:$16 sps:$4 sm:$0xff]  }
0x1167   : > { %3065 = vmatprep.subr.bf16.mxu1 %v4455_v62  ;;  %v4465_v2 = vld [vmem:[%s4799_s5 + $0x40] ss:$16 sps:$4 sm:$0xff]  }
0x1168   : > { %4599 = vpow2.f32 %v2661_v3  ;;  %v4467_v3 = vld [vmem:[%s4799_s5 + $0x44] ss:$16 sps:$4 sm:$0xff]  }
0x1170   : > { %v4598_v36 = vpop.eup %4597 }
0x1171   : > { %v2663_v5 = vsel %vm1394_vm3, %v4598_v36, 0.0 }
0x1172   : > { %v4600_v6 = vpop.eup %4599  ;;  %2664 = vadd.xlane.f32.xlu0 %v2663_v5  ;;  %v4473_v5 = vld [vmem:[%s4799_s5 + $0x64] ss:$16 sps:$4 sm:$0xff]  }
0x1173   : > { %v2666_v8 = vsel %vm1394_vm3, %v4600_v6, 0.0 }
0x1176   : > { %2667 = vadd.xlane.f32.xlu0 %v2666_v8  ;;  %v4474_v8 = vld [vmem:[%s4799_s5 + $0x68] ss:$16 sps:$4 sm:$0xff]  }
0x117a   : > { %2783 = vadd.xlane.f32.xlu0 %v5298_v10 }
0x117e   : > { %2785 = vadd.xlane.f32.xlu0 %v5301_v12 }
0x119f   : > { %v2587_v15 = vpop.f32.mrb[44].mxu1 }
0x11a0   : > { %v2594_v37 = vadd.f32 %v2587_v15, %v5248_v63  ;;  %v4351_v56 = vpop.f32.mrb[45].mxu1  ;;  %v4480_v15 = vld [vmem:[%s4799_s5 + $0x88] ss:$16 sps:$4 sm:$0xff]  }
0x11a1   : > { %v2590_v14 = vpop.f32.mrb[46].mxu1  ;;  %v4488_v56 = vld [vmem:[%s4799_s5 + $0xac] ss:$16 sps:$4 sm:$0xff]  }
0x11a2   : > { %v2595_v57 = vadd.f32 %v2590_v14, %v5250_v32  ;;  %v4352_v18 = vpop.f32.mrb[47].mxu1  ;;  %v4483_v14 = vld [vmem:[%s4799_s5 + $0xa0] ss:$16 sps:$4 sm:$0xff]  }
0x11a3   : > { %v4491_v18 = vld [vmem:[%s4799_s5 + $0xc4] ss:$16 sps:$4 sm:$0xff]  }
0x11ff   : > { %v2665_v19 = vpop.xlane.xlu0 %2664 }
0x1200   : > { %4601 = vrcp.f32 %v2665_v19  ;;  %v4494_v19 = vld [vmem:[%s4799_s5 + $0xcc] ss:$16 sps:$4 sm:$0xff]  }
0x1203   : > { %v2668_v17 = vpop.xlane.xlu0 %2667 }
0x1204   : > { %4603 = vrcp.f32 %v2668_v17  ;;  %v4489_v17 = vld [vmem:[%s4799_s5 + $0xc0] ss:$16 sps:$4 sm:$0xff]  }
0x1207   : > { %v2784_v20 = vpop.xlane.xlu0 %2783 }
0x1208   : > { %v2791_v23 = vmul.f32 0.0078125, %v2784_v20  ;;  %v4492_v20 = vld [vmem:[%s4799_s5 + $0xc8] ss:$16 sps:$4 sm:$0xff]  }
0x120a   : > { %v5307_v25 = vsub.f32 %v5298_v10, %v2791_v23  ;;  %v4602_v26 = vpop.eup %4601  ;;  %v4497_v23 = vld [vmem:[%s4799_s5 + $0xe4] ss:$16 sps:$4 sm:$0xff]  }
0x120b   : > { %v2671_v32 = vmul.f32 %v4602_v26, %v4598_v36  ;;  %v2786_v7 = vpop.xlane.xlu0 %2785  ;;  %v4468_v36 = vld [vmem:[%s4799_s5 + $0x48] ss:$16 sps:$4 sm:$0xff]   ;;  %v4500_v26 = vld [vmem:[%s4799_s5 + $0xec] ss:$16 sps:$4 sm:$0xff]  }
0x120c   : > { %v2799_v27 = vmul.f32 %v5307_v25, %v5307_v25  ;;  %v2792_v47 = vmul.f32 0.0078125, %v2786_v7 }
0x120e   : > { %v4604_v63 = vpop.eup %4603  ;;  %2803 = vadd.xlane.f32.xlu1 %v2799_v27  ;;  %v5323_v13 = vsub.f32 %v5301_v12, %v2792_v47  ;;  %v4495_v27 = vld [vmem:[%s4799_s5 + $0xe0] ss:$16 sps:$4 sm:$0xff]  }
0x120f   : > { %v2672_v52 = vmul.f32 %v4604_v63, %v4600_v6  ;;  %v4476_v6 = vld [vmem:[%s4799_s5 + $0x6c] ss:$16 sps:$4 sm:$0xff]   ;;  %v4498_v63 = vld [vmem:[%s4799_s5 + $0xe8] ss:$16 sps:$4 sm:$0xff]   ;;  %v5383_v47 = vld [vmem:[%s5623_s4] ss:$0 sm:$0xff] }
0x1210   : > { %v2800_v4 = vmul.f32 %v5323_v13, %v5323_v13 }
0x1211   : > { %v2673_v28 = vpack.c.bf16 %v2672_v52, %v2671_v32 }
0x1213   : > { %4362 = vmatmul.mubr.msk.bf16.vlgmr.msra.gmra.mrb[48].mxu1 %vm1394_vm3, %v2673_v28 }
0x1214   : > { %3097 = vmatprep.mubr.bf16.mxu1 %v4657_v29  ;;  %3066 = vmatpush1.bf16.msra.mxu1 %v4453_v38 }
0x1215   : > { %3067 = vmatprep.subr.bf16.mxu1 %v4461_v54  ;;  %v4504_v54 = vld [vmem:[%s4810_s2 + $0x80] sm:$0xff]  }
0x1218   : > { %3068 = vmatpush1.bf16.msra.mxu1 %v4459_v53  ;;  %v4503_v53 = vld [vmem:[%s4810_s2] sm:$0xff]  }
0x1219   : > { %3069 = vmatprep.subr.bf16.mxu1 %v4467_v3  ;;  %v4508_v3 = vld [vmem:[%s4810_s2 + $0x88] sm:$0xff]  }
0x121c   : > { %3070 = vmatpush1.bf16.msra.mxu1 %v4465_v2  ;;  %v4507_v2 = vld [vmem:[%s4810_s2 + $0x8] sm:$0xff]  }
0x121d   : > { %3071 = vmatprep.subr.bf16.mxu1 %v4473_v5  ;;  %v4512_v5 = vld [vmem:[%s4810_s2 + $0x90] sm:$0xff]  }
0x1220   : > { %3072 = vmatpush1.bf16.msra.mxu1 %v4471_v61  ;;  %v4514_v61 = vld [vmem:[%s4810_s2 + $0xd8] sm:$0xff]  }
0x1221   : > { %3073 = vmatprep.subr.bf16.mxu1 %v4479_v35  ;;  %v4516_v35 = vld [vmem:[%s4810_s2 + $0x98] sm:$0xff]  }
0x1224   : > { %3074 = vmatpush1.bf16.msra.mxu1 %v4477_v11  ;;  %v4518_v11 = vld [vmem:[%s4810_s2 + $0xe0] sm:$0xff]  }
0x129b   : > { %v2804_v32 = vpop.xlane.xlu1 %2803 }
0x129c   : > { %v2811_v52 = vmul.f32 0.0078125, %v2804_v32  ;;  %v4530_v32 = vld [vmem:[%s4810_s2 + $0xf8] sm:$0xff]  }
0x12e6   : > { %v2714_v58 = vpop.f32.mrb[48].mxu1 }
0x12e7   : > { %v4363_v30 = vpop.f32.mrb[49].mxu1 }
0x12e8   : > { %v2717_v31 = vpop.f32.mrb[50].mxu1  ;;  %v2815_v30 = vadd.f32 1e-06, %v2811_v52  ;;  %v4531_v52 = vld [vmem:[%s4810_s2 + $0x38] sm:$0xff]  }
0x12e9   : > { %v2721_v33 = vpack.c.bf16 %v2717_v31, %v2714_v58  ;;  %v4364_v34 = vpop.f32.mrb[51].mxu1 }
0x12ea   : > { %4605 = vrsqrt.f32 %v2815_v30 }
0x12eb   : > { %4370 = vmatmul.mubr.msk.bf16.vlgmr.msra.gmra.mrb[52].mxu0 %vm1340_vm1, %v2721_v33 }
0x12ec   : > { %3150 = vmatprep.mubr.bf16.mxu0 %v4657_v29  ;;  %3119 = vmatpush1.bf16.msra.mxu0 %v4456_v39 }
0x12ed   : > { %3120 = vmatprep.subr.bf16.mxu0 %v4464_v1  ;;  %v4506_v1 = vld [vmem:[%s4810_s2 + $0xc8] sm:$0xff]  }
0x12f0   : > { %3121 = vmatpush1.bf16.msra.mxu0 %v4462_v59  ;;  %v4505_v59 = vld [vmem:[%s4810_s2 + $0x48] sm:$0xff]  }
0x13be   : > { %v2759_v40 = vpop.f32.mrb[52].mxu0 }
0x13bf   : > { %v2766_v41 = vadd.f32 %v2759_v40, %v2594_v37  ;;  %v4371_v43 = vpop.f32.mrb[53].mxu0  ;;  %v4485_v37 = vld [vmem:[%s4799_s5 + $0xa4] ss:$16 sps:$4 sm:$0xff]  }
0x13c0   : > { %v2762_v44 = vpop.f32.mrb[54].mxu0  ;;  %3075 = vmatprep.subr.bf16.mxu1 %v4485_v37  ;;  %v4606_v43 = vpop.eup %4605  ;;  %v4520_v37 = vld [vmem:[%s4810_s2 + $0xa0] sm:$0xff]  }
0x13c1   : > { %v2777_v45 = vadd.f32 %v3939_v0, %v2766_v41  ;;  %v2767_v46 = vadd.f32 %v2762_v44, %v2595_v57  ;;  %v4372_v55 = vpop.f32.mrb[55].mxu0  ;;  %v4486_v57 = vld [vmem:[%s4799_s5 + $0xa8] ss:$16 sps:$4 sm:$0xff]   ;;  %3076 = vmatpush1.bf16.msra.mxu1 %v4483_v14  ;;  %v2823_v7 = vmul.f32 %v4606_v43, %v5307_v25  ;;  %v5374_v44 = vld [vmem:[%s637_s30] ss:$0 sm:$0xff] }
0x13c2   : > { %3077 = vmatprep.subr.bf16.mxu1 %v4491_v18  ;;  %v4522_v14 = vld [vmem:[%s4810_s2 + $0xe8] sm:$0xff]  }
0x13c3   : > { %v2778_v48 = vadd.f32 %v3939_v0, %v2767_v46  ;;  %v5319_v49 = vadd.f32 %v4647_v9, %v2777_v45  ;;  %v4470_v0 = vld [vmem:[%s4799_s5 + $0x4c] ss:$16 sps:$4 sm:$0xff]   ;;  %v2834_v55 = vmul.f32 %v5374_v44, %v2823_v7 }
0x13c4   : > { %3122 = vmatprep.subr.bf16.mxu0 %v4470_v0  ;;  %v4511_v0 = vld [vmem:[%s4810_s2 + $0x10] sm:$0xff]   ;;  %v4524_v18 = vld [vmem:[%s4810_s2 + $0xa8] sm:$0xff]  }
0x13c5   : > { %2787 = vadd.xlane.f32.xlu0 %v5319_v49  ;;  %v5325_v51 = vadd.f32 %v4648_v50, %v2778_v48  ;;  %3123 = vmatpush1.bf16.msra.mxu0 %v4468_v36  ;;  %v2845_v48 = vadd.f32 %v5383_v47, %v2834_v55  ;;  %v4510_v36 = vld [vmem:[%s4810_s2 + $0xd0] sm:$0xff]   ;;  %v2883_v55 = vld [vmem:[%s4805_s29] sm:$0xf] }
0x13c6   : > { %3124 = vmatprep.subr.bf16.mxu0 %v4476_v6  ;;  %3078 = vmatpush1.bf16.msra.mxu1 %v4489_v17  ;;  %v4513_v6 = vld [vmem:[%s4810_s2 + $0x58] sm:$0xff]   ;;  %v4526_v17 = vld [vmem:[%s4810_s2 + $0xf0] sm:$0xff]  }
0x13c7   : > { %3079 = vmatprep.subr.bf16.mxu1 %v4497_v23  ;;  %v4528_v23 = vld [vmem:[%s4810_s2 + $0xb0] sm:$0xff]  }
0x13c9   : > { %2789 = vadd.xlane.f32.xlu0 %v5325_v51  ;;  %3125 = vmatpush1.bf16.msra.mxu0 %v4474_v8  ;;  %v4515_v8 = vld [vmem:[%s4810_s2 + $0x18] sm:$0xff]  }
0x13ca   : > { %3126 = vmatprep.subr.bf16.mxu0 %v4482_v16  ;;  %3080 = vmatpush1.bf16.msra.mxu1 %v4495_v27  ;;  %v4517_v16 = vld [vmem:[%s4810_s2 + $0x60] sm:$0xff]  }
0x13cd   : > { %2805 = vadd.xlane.f32.xlu0 %v2800_v4  ;;  %3127 = vmatpush1.bf16.msra.mxu0 %v4480_v15  ;;  %v4502_v4 = vld [vmem:[%s4810_s2 + $0xc0] sm:$0xff]  }
0x13ce   : > { %3128 = vmatprep.subr.bf16.mxu0 %v4488_v56  ;;  %v4519_v15 = vld [vmem:[%s4810_s2 + $0x20] sm:$0xff]   ;;  %v4521_v56 = vld [vmem:[%s4810_s2 + $0x68] sm:$0xff]  }
0x13d1   : > { %3129 = vmatpush1.bf16.msra.mxu0 %v4486_v57  ;;  %v4523_v57 = vld [vmem:[%s4810_s2 + $0x28] sm:$0xff]  }
0x13d2   : > { %3130 = vmatprep.subr.bf16.mxu0 %v4494_v19  ;;  %v4525_v19 = vld [vmem:[%s4810_s2 + $0x70] sm:$0xff]  }
0x13d5   : > { %3131 = vmatpush1.bf16.msra.mxu0 %v4492_v20  ;;  %v4527_v20 = vld [vmem:[%s4810_s2 + $0x30] sm:$0xff]  }
0x13d6   : > { %3132 = vmatprep.subr.bf16.mxu0 %v4500_v26 }
0x13d9   : > { %3133 = vmatpush1.bf16.msra.mxu0 %v4498_v63  ;;  %v4529_v63 = vld [vmem:[%s4810_s2 + $0x78] sm:$0xff]  }
0x13da   : > { %4145 = vmatprep.subr.bf16.mxu0 %v4502_v4 }
0x1452   : > { %v2788_v28 = vpop.xlane.xlu0 %2787 }
0x1453   : > { %v2793_v58 = vmul.f32 0.0078125, %v2788_v28  ;;  %v4532_v28 = vld [vmem:[%s4810_s2 + $0xb8] sm:$0xff]  }
0x1455   : > { %v5359_v31 = vsub.f32 %v5319_v49, %v2793_v58 }
0x1456   : > { %v2790_v33 = vpop.xlane.xlu0 %2789 }
0x1457   : > { %v2794_v34 = vmul.f32 0.0078125, %v2790_v33  ;;  %v2801_v38 = vmul.f32 %v5359_v31, %v5359_v31 }
0x1459   : > { %v5364_v62 = vsub.f32 %v5325_v51, %v2794_v34  ;;  %2807 = vadd.xlane.f32.xlu0 %v2801_v38 }
0x145a   : > { %v2806_v39 = vpop.xlane.xlu0 %2805 }
0x145b   : > { %v2812_v60 = vmul.f32 0.0078125, %v2806_v39  ;;  %v2802_v40 = vmul.f32 %v5364_v62, %v5364_v62 }
0x145d   : > { %v2816_v41 = vadd.f32 1e-06, %v2812_v60  ;;  %2809 = vadd.xlane.f32.xlu0 %v2802_v40 }
0x145f   : > { %4607 = vrsqrt.f32 %v2816_v41 }
0x1469   : > { %v4608_v45 = vpop.eup %4607 }
0x146a   : > { %v2824_v46 = vmul.f32 %v4608_v45, %v5323_v13  ;;  %v4501_v13 = vld [vmem:[%s4810_s2 + $0x40] sm:$0xff]  }
0x146b   : > { %4117 = vmatprep.subr.bf16.mxu1 %v4501_v13 }
0x146c   : > { %v2835_v25 = vmul.f32 %v5374_v44, %v2824_v46 }
0x146e   : > { %v2846_v9 = vadd.f32 %v5383_v47, %v2835_v25  ;;  %v2899_v25 = vsub.s32 3, %v4994_v21 }
0x1470   : > { %v2849_v50 = vpack.c.bf16 %v2846_v9, %v2845_v48  ;;  %v5442_v48 = vrot.slane %v2883_v55, %v2899_v25 }
0x1472   : > { %3098 = vmatmul.mubr.bf16.vlgmr.msra.gmra.mrb[52].mxu1 %v2849_v50  ;;  %3151 = vmatmul.mubr.bf16.vlgmr.msra.gmra.mrb[56].mxu0 %v2849_v50 }
0x1473   : > { %3107 = vmatprep.mubr.bf16.mxu1 %v4657_v29  ;;  %3160 = vmatprep.mubr.bf16.mxu0 %v4657_v29  ;;  %v4509_v29 = vld [vmem:[%s4810_s2 + $0x50] sm:$0xff]  }
0x1474   : > { %4118 = vmatpush3.bf16.msra.mxu1 %v4503_v53  ;;  %4146 = vmatpush3.bf16.msra.mxu0 %v4504_v54 }
0x1475   : > { %4119 = vmatprep.subr.bf16.mxu1 %v4505_v59  ;;  %4147 = vmatprep.subr.bf16.mxu0 %v4506_v1 }
0x1478   : > { %4120 = vmatpush3.bf16.msra.mxu1 %v4507_v2  ;;  %4148 = vmatpush3.bf16.msra.mxu0 %v4508_v3 }
0x1479   : > { %4121 = vmatprep.subr.bf16.mxu1 %v4509_v29  ;;  %4149 = vmatprep.subr.bf16.mxu0 %v4510_v36 }
0x147c   : > { %4122 = vmatpush3.bf16.msra.mxu1 %v4511_v0  ;;  %4150 = vmatpush3.bf16.msra.mxu0 %v4512_v5 }
0x147d   : > { %4123 = vmatprep.subr.bf16.mxu1 %v4513_v6  ;;  %4151 = vmatprep.subr.bf16.mxu0 %v4514_v61 }
0x1480   : > { %4124 = vmatpush3.bf16.msra.mxu1 %v4515_v8  ;;  %4152 = vmatpush3.bf16.msra.mxu0 %v4516_v35 }
0x1481   : > { %4125 = vmatprep.subr.bf16.mxu1 %v4517_v16  ;;  %4153 = vmatprep.subr.bf16.mxu0 %v4518_v11 }
0x1484   : > { %4126 = vmatpush3.bf16.msra.mxu1 %v4519_v15  ;;  %4154 = vmatpush3.bf16.msra.mxu0 %v4520_v37 }
0x1485   : > { %4127 = vmatprep.subr.bf16.mxu1 %v4521_v56  ;;  %4155 = vmatprep.subr.bf16.mxu0 %v4522_v14 }
0x1488   : > { %4128 = vmatpush3.bf16.msra.mxu1 %v4523_v57  ;;  %4156 = vmatpush3.bf16.msra.mxu0 %v4524_v18 }
0x1489   : > { %4129 = vmatprep.subr.bf16.mxu1 %v4525_v19  ;;  %4157 = vmatprep.subr.bf16.mxu0 %v4526_v17 }
0x148c   : > { %4130 = vmatpush3.bf16.msra.mxu1 %v4527_v20  ;;  %4158 = vmatpush3.bf16.msra.mxu0 %v4528_v23 }
0x148d   : > { %4131 = vmatprep.subr.bf16.mxu1 %v4529_v63  ;;  %4159 = vmatprep.subr.bf16.mxu0 %v4530_v32 }
0x1490   : > { %4132 = vmatpush3.bf16.msra.mxu1 %v4531_v52  ;;  %4160 = vmatpush3.bf16.msra.mxu0 %v4532_v28 }
0x14e6   : > { %v2808_v26 = vpop.xlane.xlu0 %2807 }
0x14e7   : > { %v2813_v27 = vmul.f32 0.0078125, %v2808_v26 }
0x14e9   : > { %v2817_v58 = vadd.f32 1e-06, %v2813_v27 }
0x14ea   : > { %v2810_v30 = vpop.xlane.xlu0 %2809 }
0x14eb   : > { %4609 = vrsqrt.f32 %v2817_v58  ;;  %v2814_v33 = vmul.f32 0.0078125, %v2810_v30 }
0x14ed   : > { %v2818_v34 = vadd.f32 1e-06, %v2814_v33 }
0x14ef   : > { %4611 = vrsqrt.f32 %v2818_v34 }
0x14f5   : > { %v4610_v38 = vpop.eup %4609 }
0x14f6   : > { %v2825_v39 = vmul.f32 %v4610_v38, %v5359_v31  ;;  %v5432_v31 = vrot.slane %v2883_v55, %v1088_v22 }
0x14f8   : > { %v2836_v41 = vmul.f32 %v5374_v44, %v2825_v39 }
0x14f9   : > { %v4612_v60 = vpop.eup %4611 }
0x14fa   : > { %v2826_v40 = vmul.f32 %v4612_v60, %v5364_v62  ;;  %v2847_v7 = vadd.f32 %v5383_v47, %v2836_v41  ;;  %v5436_v62 = vrot.slane %v2883_v55, %v1096_v42 }
0x14fc   : > { %v2837_v43 = vmul.f32 %v5374_v44, %v2826_v40  ;;  %v5440_v44 = vrot.slane %v2883_v55, %v1092_v24 }
0x14fe   : > { %v2848_v45 = vadd.f32 %v5383_v47, %v2837_v43 }
0x1500   : > { %v2850_v46 = vpack.c.bf16 %v2848_v45, %v2847_v7 }
0x1502   : > { %3108 = vmatmul.mubr.bf16.gmra.mrb[56].mxu1 %v2850_v46  ;;  %3161 = vmatmul.mubr.bf16.gmra.mrb[60].mxu0 %v2850_v46 }
0x1545   : > { %v3099_v47 = vpop.f32.mrb[52].mxu1  ;;  %v3152_v9 = vpop.f32.mrb[56].mxu0 }
0x1546   : > { %v5445_v50 = vadd.f32 %v3099_v47, %v5432_v31  ;;  %v5448_v13 = vadd.f32 %v3152_v9, %v5436_v62  ;;  %v3101_v22 = vpop.f32.mrb[53].mxu1  ;;  %v3154_v4 = vpop.f32.mrb[57].mxu0 }
0x1547   : > { %v5451_v53 = vadd.f32 %v3101_v22, %v5440_v44  ;;  %v5454_v42 = vadd.f32 %v3154_v4, %v5442_v48  ;;  %v3103_v21 = vpop.f32.mrb[54].mxu1  ;;  %v3156_v24 = vpop.f32.mrb[58].mxu0 }
0x1548   : > { %v3171_v54 = vmul.f32 %v5445_v50, %v5445_v50  ;;  %v3173_v59 = vmul.f32 %v5448_v13, %v5448_v13  ;;  %v5461_v1 = vadd.f32 %v3103_v21, %v5432_v31  ;;  %v5464_v2 = vadd.f32 %v3156_v24, %v5436_v62  ;;  %v3105_v3 = vpop.f32.mrb[55].mxu1  ;;  %v3158_v29 = vpop.f32.mrb[59].mxu0 }
0x1549   : > { %v3172_v36 = vmul.f32 %v5451_v53, %v5451_v53  ;;  %v3174_v0 = vmul.f32 %v5454_v42, %v5454_v42  ;;  %v5471_v5 = vadd.f32 %v3105_v3, %v5440_v44  ;;  %v5474_v6 = vadd.f32 %v3158_v29, %v5442_v48 }
0x154a   : > { %v3187_v61 = vmul.f32 %v3171_v54, %v5445_v50  ;;  %v3189_v8 = vmul.f32 %v3173_v59, %v5448_v13  ;;  %v3175_v35 = vmul.f32 %v5461_v1, %v5461_v1  ;;  %v3177_v16 = vmul.f32 %v5464_v2, %v5464_v2 }
0x154b   : > { %v3188_v11 = vmul.f32 %v3172_v36, %v5451_v53  ;;  %v3190_v15 = vmul.f32 %v3174_v0, %v5454_v42  ;;  %v3176_v37 = vmul.f32 %v5471_v5, %v5471_v5  ;;  %v3178_v56 = vmul.f32 %v5474_v6, %v5474_v6 }
0x154c   : > { %v3203_v14 = vmul.f32 0.044715, %v3187_v61  ;;  %v3205_v57 = vmul.f32 0.044715, %v3189_v8  ;;  %v3191_v18 = vmul.f32 %v3175_v35, %v5461_v1  ;;  %v3193_v19 = vmul.f32 %v3177_v16, %v5464_v2 }
0x154d   : > { %v3204_v17 = vmul.f32 0.044715, %v3188_v11  ;;  %v3206_v20 = vmul.f32 0.044715, %v3190_v15  ;;  %v3192_v23 = vmul.f32 %v3176_v37, %v5471_v5  ;;  %v3194_v26 = vmul.f32 %v3178_v56, %v5474_v6 }
0x154e   : > { %v3219_v27 = vadd.f32 %v3203_v14, %v5445_v50  ;;  %v3221_v63 = vadd.f32 %v3205_v57, %v5448_v13  ;;  %v3207_v32 = vmul.f32 0.044715, %v3191_v18  ;;  %v3209_v52 = vmul.f32 0.044715, %v3193_v19 }
0x154f   : > { %v3220_v28 = vadd.f32 %v3204_v17, %v5451_v53  ;;  %v3222_v58 = vadd.f32 %v3206_v20, %v5454_v42  ;;  %v3208_v30 = vmul.f32 0.044715, %v3192_v23  ;;  %v3210_v33 = vmul.f32 0.044715, %v3194_v26 }
0x1550   : > { %v3235_v34 = vmul.f32 0.7978846, %v3219_v27  ;;  %v3237_v38 = vmul.f32 0.7978846, %v3221_v63  ;;  %v3223_v39 = vadd.f32 %v3207_v32, %v5461_v1  ;;  %v3225_v60 = vadd.f32 %v3209_v52, %v5464_v2 }
0x1551   : > { %v3236_v40 = vmul.f32 0.7978846, %v3220_v28  ;;  %v3238_v41 = vmul.f32 0.7978846, %v3222_v58  ;;  %v3224_v43 = vadd.f32 %v3208_v30, %v5471_v5  ;;  %v3226_v7 = vadd.f32 %v3210_v33, %v5474_v6 }
0x1552   : > { %4613 = vtanh.f32 %v3235_v34  ;;  %v3239_v45 = vmul.f32 0.7978846, %v3223_v39  ;;  %v3241_v46 = vmul.f32 0.7978846, %v3225_v60 }
0x1553   : > { %4615 = vtanh.f32 %v3237_v38  ;;  %v3240_v55 = vmul.f32 0.7978846, %v3224_v43  ;;  %v3242_v25 = vmul.f32 0.7978846, %v3226_v7 }
0x1554   : > { %4617 = vtanh.f32 %v3236_v40 }
0x1555   : > { %4619 = vtanh.f32 %v3238_v41 }
0x1556   : > { %4621 = vtanh.f32 %v3239_v45 }
0x1557   : > { %4623 = vtanh.f32 %v3241_v46 }
0x1558   : > { %4625 = vtanh.f32 %v3240_v55 }
0x1559   : > { %4627 = vtanh.f32 %v3242_v25 }
0x155c   : > { %v4614_v47 = vpop.eup %4613 }
0x155d   : > { %v4616_v9 = vpop.eup %4615  ;;  %v3267_v22 = vadd.f32 1.0, %v4614_v47 }
0x155e   : > { %v4618_v4 = vpop.eup %4617  ;;  %v3269_v21 = vadd.f32 1.0, %v4616_v9 }
0x155f   : > { %v4620_v24 = vpop.eup %4619  ;;  %v3268_v54 = vadd.f32 1.0, %v4618_v4  ;;  %v3283_v36 = vmul.f32 0.5, %v3267_v22 }
0x1560   : > { %v4622_v59 = vpop.eup %4621  ;;  %v3270_v3 = vadd.f32 1.0, %v4620_v24  ;;  %v3285_v8 = vmul.f32 0.5, %v3269_v21 }
0x1561   : > { %v4624_v29 = vpop.eup %4623  ;;  %v3271_v0 = vadd.f32 1.0, %v4622_v59  ;;  %v3284_v37 = vmul.f32 0.5, %v3268_v54  ;;  %v3299_v18 = vmul.f32 %v3283_v36, %v5445_v50 }
0x1562   : > { %v4626_v61 = vpop.eup %4625  ;;  %v3273_v35 = vadd.f32 1.0, %v4624_v29  ;;  %v3286_v57 = vmul.f32 0.5, %v3270_v3  ;;  %v3301_v20 = vmul.f32 %v3285_v8, %v5448_v13 }
0x1563   : > { %v4628_v16 = vpop.eup %4627  ;;  %v3287_v11 = vmul.f32 0.5, %v3271_v0  ;;  %v3272_v15 = vadd.f32 1.0, %v4626_v61  ;;  %v3300_v63 = vmul.f32 %v3284_v37, %v5451_v53 }
0x1564   : > { %v3289_v56 = vmul.f32 0.5, %v3273_v35  ;;  %v3274_v14 = vadd.f32 1.0, %v4628_v16  ;;  %v3302_v28 = vmul.f32 %v3286_v57, %v5454_v42 }
0x1565   : > { %v3303_v19 = vmul.f32 %v3287_v11, %v5461_v1  ;;  %v3288_v17 = vmul.f32 0.5, %v3272_v15 }
0x1566   : > { %v3305_v23 = vmul.f32 %v3289_v56, %v5464_v2  ;;  %v3290_v26 = vmul.f32 0.5, %v3274_v14 }
0x1567   : > { %v3315_v27 = vpack.c.bf16 %v3303_v19, %v3299_v18  ;;  %v3304_v32 = vmul.f32 %v3288_v17, %v5471_v5 }
0x1568   : > { %v3317_v52 = vpack.c.bf16 %v3305_v23, %v3301_v20  ;;  %v3306_v58 = vmul.f32 %v3290_v26, %v5474_v6 }
0x1569   : > { %v3316_v30 = vpack.c.bf16 %v3304_v32, %v3300_v63 }
0x156a   : > { %v3318_v50 = vpack.c.bf16 %v3306_v58, %v3302_v28 }
0x156b   : > { %3618 = vmatprep.mubr.bf16.mxu1 %v3316_v30 }
0x156c   : > { %3667 = vmatprep.mubr.bf16.mxu0 %v3318_v50  ;;  %3619 = vmatmul.mubr.bf16.vlgmr.msra.gmra.mrb[60].mxu1 %v3315_v27 }
0x156d   : > { %3668 = vmatmul.mubr.bf16.vlgmr.msra.gmra.mrb[64].mxu0 %v3317_v52 }
0x15d5   : > { %v3109_v13 = vpop.f32.mrb[56].mxu1  ;;  %v3162_v1 = vpop.f32.mrb[60].mxu0 }
0x15d6   : > { %v5509_v2 = vadd.f32 %v3109_v13, %v5432_v31  ;;  %v5512_v53 = vadd.f32 %v3162_v1, %v5436_v62  ;;  %v3111_v5 = vpop.f32.mrb[57].mxu1  ;;  %v3164_v33 = vpop.f32.mrb[61].mxu0 }
0x15d7   : > { %v5515_v42 = vadd.f32 %v3111_v5, %v5440_v44  ;;  %v5518_v6 = vadd.f32 %v3164_v33, %v5442_v48  ;;  %v3113_v34 = vpop.f32.mrb[58].mxu1  ;;  %v3166_v38 = vpop.f32.mrb[62].mxu0 }
0x15d8   : > { %v3179_v39 = vmul.f32 %v5509_v2, %v5509_v2  ;;  %v3181_v60 = vmul.f32 %v5512_v53, %v5512_v53  ;;  %v5525_v40 = vadd.f32 %v3113_v34, %v5432_v31  ;;  %v5528_v41 = vadd.f32 %v3166_v38, %v5436_v62  ;;  %v3115_v43 = vpop.f32.mrb[59].mxu1  ;;  %v3168_v7 = vpop.f32.mrb[63].mxu0 }
0x15d9   : > { %v3180_v45 = vmul.f32 %v5515_v42, %v5515_v42  ;;  %v3182_v46 = vmul.f32 %v5518_v6, %v5518_v6  ;;  %v5535_v55 = vadd.f32 %v3115_v43, %v5440_v44  ;;  %v5538_v25 = vadd.f32 %v3168_v7, %v5442_v48 }
0x15da   : > { %v3195_v31 = vmul.f32 %v3179_v39, %v5509_v2  ;;  %v3197_v47 = vmul.f32 %v3181_v60, %v5512_v53  ;;  %v3183_v62 = vmul.f32 %v5525_v40, %v5525_v40  ;;  %v3185_v9 = vmul.f32 %v5528_v41, %v5528_v41 }
0x15db   : > { %v3196_v22 = vmul.f32 %v3180_v45, %v5515_v42  ;;  %v3198_v4 = vmul.f32 %v3182_v46, %v5518_v6  ;;  %v3184_v44 = vmul.f32 %v5535_v55, %v5535_v55  ;;  %v3186_v48 = vmul.f32 %v5538_v25, %v5538_v25 }
0x15dc   : > { %v3211_v21 = vmul.f32 0.044715, %v3195_v31  ;;  %v3213_v24 = vmul.f32 0.044715, %v3197_v47  ;;  %v3199_v54 = vmul.f32 %v3183_v62, %v5525_v40  ;;  %v3201_v59 = vmul.f32 %v3185_v9, %v5528_v41 }
0x15dd   : > { %v3212_v3 = vmul.f32 0.044715, %v3196_v22  ;;  %v3214_v29 = vmul.f32 0.044715, %v3198_v4  ;;  %v3200_v36 = vmul.f32 %v3184_v44, %v5535_v55  ;;  %v3202_v0 = vmul.f32 %v3186_v48, %v5538_v25 }
0x15de   : > { %v3227_v61 = vadd.f32 %v3211_v21, %v5509_v2  ;;  %v3229_v8 = vadd.f32 %v3213_v24, %v5512_v53  ;;  %v3215_v35 = vmul.f32 0.044715, %v3199_v54  ;;  %v3217_v16 = vmul.f32 0.044715, %v3201_v59 }
0x15df   : > { %v3228_v11 = vadd.f32 %v3212_v3, %v5515_v42  ;;  %v3230_v15 = vadd.f32 %v3214_v29, %v5518_v6  ;;  %v3216_v37 = vmul.f32 0.044715, %v3200_v36  ;;  %v3218_v56 = vmul.f32 0.044715, %v3202_v0 }
0x15e0   : > { %v3243_v14 = vmul.f32 0.7978846, %v3227_v61  ;;  %v3245_v57 = vmul.f32 0.7978846, %v3229_v8  ;;  %v3231_v18 = vadd.f32 %v3215_v35, %v5525_v40  ;;  %v3233_v19 = vadd.f32 %v3217_v16, %v5528_v41 }
0x15e1   : > { %v3244_v17 = vmul.f32 0.7978846, %v3228_v11  ;;  %v3246_v20 = vmul.f32 0.7978846, %v3230_v15  ;;  %v3232_v23 = vadd.f32 %v3216_v37, %v5535_v55  ;;  %v3234_v26 = vadd.f32 %v3218_v56, %v5538_v25 }
0x15e2   : > { %4629 = vtanh.f32 %v3243_v14  ;;  %v3247_v27 = vmul.f32 0.7978846, %v3231_v18  ;;  %v3249_v63 = vmul.f32 0.7978846, %v3233_v19 }
0x15e3   : > { %4631 = vtanh.f32 %v3245_v57  ;;  %v3248_v32 = vmul.f32 0.7978846, %v3232_v23  ;;  %v3250_v52 = vmul.f32 0.7978846, %v3234_v26 }
0x15e4   : > { %4633 = vtanh.f32 %v3244_v17 }
0x15e5   : > { %4635 = vtanh.f32 %v3246_v20 }
0x15e6   : > { %4637 = vtanh.f32 %v3247_v27 }
0x15e7   : > { %4639 = vtanh.f32 %v3249_v63 }
0x15e8   : > { %4641 = vtanh.f32 %v3248_v32 }
0x15e9   : > { %4643 = vtanh.f32 %v3250_v52 }
0x15ec   : > { %v4630_v28 = vpop.eup %4629 }
0x15ed   : > { %v4632_v58 = vpop.eup %4631  ;;  %v3275_v30 = vadd.f32 1.0, %v4630_v28 }
0x15ee   : > { %v4634_v50 = vpop.eup %4633  ;;  %v3277_v13 = vadd.f32 1.0, %v4632_v58 }
0x15ef   : > { %v4636_v1 = vpop.eup %4635  ;;  %v3276_v5 = vadd.f32 1.0, %v4634_v50  ;;  %v3291_v60 = vmul.f32 0.5, %v3275_v30 }
0x15f0   : > { %v4638_v33 = vpop.eup %4637  ;;  %v3278_v34 = vadd.f32 1.0, %v4636_v1  ;;  %v3293_v45 = vmul.f32 0.5, %v3277_v13 }
0x15f1   : > { %v4640_v38 = vpop.eup %4639  ;;  %v3279_v39 = vadd.f32 1.0, %v4638_v33  ;;  %v3292_v47 = vmul.f32 0.5, %v3276_v5  ;;  %v3307_v48 = vmul.f32 %v3291_v60, %v5509_v2 }
0x15f2   : > { %v4642_v43 = vpop.eup %4641  ;;  %v3281_v7 = vadd.f32 1.0, %v4640_v38  ;;  %v3294_v22 = vmul.f32 0.5, %v3278_v34  ;;  %v3309_v54 = vmul.f32 %v3293_v45, %v5512_v53 }
0x15f3   : > { %v4644_v46 = vpop.eup %4643  ;;  %v3280_v31 = vadd.f32 1.0, %v4642_v43  ;;  %v3295_v62 = vmul.f32 0.5, %v3279_v39  ;;  %v3308_v3 = vmul.f32 %v3292_v47, %v5515_v42  ;;  %v3974_v42 = vld [vmem:[%s657_s16] ss:$0 sm:$0xff]  ;;  %s5624_s16 = sld [smem:[#allocation9_spill]] (!%p4007_p5) }
0x15f4   : > { %v3282_v9 = vadd.f32 1.0, %v4644_v46  ;;  %v3297_v4 = vmul.f32 0.5, %v3281_v7  ;;  %v3310_v0 = vmul.f32 %v3294_v22, %v5518_v6 }
0x15f5   : > { %v3296_v44 = vmul.f32 0.5, %v3280_v31  ;;  %v3311_v21 = vmul.f32 %v3295_v62, %v5525_v40 }
0x15f6   : > { %v3298_v24 = vmul.f32 0.5, %v3282_v9  ;;  %v3313_v59 = vmul.f32 %v3297_v4, %v5528_v41 }
0x15f7   : > { %v3312_v29 = vmul.f32 %v3296_v44, %v5535_v55  ;;  %v3319_v36 = vpack.c.bf16 %v3311_v21, %v3307_v48 }
0x15f8   : > { %v3314_v61 = vmul.f32 %v3298_v24, %v5538_v25  ;;  %v3321_v8 = vpack.c.bf16 %v3313_v59, %v3309_v54 }
0x15f9   : > { %v3320_v35 = vpack.c.bf16 %v3312_v29, %v3308_v3 }
0x15fa   : > { %v3322_v2 = vpack.c.bf16 %v3314_v61, %v3310_v0 }
0x15fb   : > { %3626 = vmatprep.mubr.bf16.mxu1 %v3320_v35 }
0x15fc   : > { %3675 = vmatprep.mubr.bf16.mxu0 %v3322_v2  ;;  %3627 = vmatmul.mubr.bf16.gmra.mrb[64].mxu1 %v3319_v36 }
0x15fd   : > { %3676 = vmatmul.mubr.bf16.gmra.mrb[68].mxu0 %v3321_v8 }
0x163f   : > { %v4133_v53 = vpop.f32.mrb[60].mxu1 }
0x1640   : > { %v4161_v40 = vpop.f32.mrb[64].mxu0  ;;  %v4134_v41 = vpop.f32.mrb[61].mxu1 }
0x1641   : > { %v4135_v55 = vadd.f32 %v4134_v41, %v4133_v53  ;;  %v4162_v16 = vpop.f32.mrb[65].mxu0  ;;  %v4136_v6 = vpop.f32.mrb[62].mxu1 }
0x1642   : > { %v4163_v11 = vadd.f32 %v4162_v16, %v4161_v40  ;;  %v4164_v25 = vpop.f32.mrb[66].mxu0  ;;  %v4137_v15 = vpop.f32.mrb[63].mxu1 }
0x1643   : > { %v3621_v37 = vadd.f32 %v4135_v55, %v3974_v42  ;;  %v4138_v56 = vadd.f32 %v4137_v15, %v4136_v6  ;;  %v4165_v14 = vpop.f32.mrb[67].mxu0 }
0x1644   : > { %v4166_v57 = vadd.f32 %v4165_v14, %v4164_v25 }
0x1645   : > { %v3670_v18 = vadd.f32 %v4163_v11, %v3621_v37  ;;  %v3624_v19 = vadd.f32 %v4138_v56, %v3974_v42 }
0x1647   : > { %v3684_v17 = vadd.f32 %v3670_v18, %v5298_v10  ;;  %v3673_v20 = vadd.f32 %v4166_v57, %v3624_v19 }
0x1649   : > { %3688 = vst [vmem:[#allocation2] sm:$0xff] %v3684_v17  ;;  %v3685_v23 = vadd.f32 %v3673_v20, %v5301_v12 }
0x164b   : > { %3689 = vst [vmem:[#allocation2 + $0x8] sm:$0xff] %v3685_v23 }
0x16cf   : > { %v4139_v26 = vpop.f32.mrb[64].mxu1 }
0x16d0   : > { %v4167_v27 = vpop.f32.mrb[68].mxu0  ;;  %v4140_v63 = vpop.f32.mrb[65].mxu1 }
0x16d1   : > { %v4141_v32 = vadd.f32 %v4140_v63, %v4139_v26  ;;  %v4168_v52 = vpop.f32.mrb[69].mxu0  ;;  %v4142_v28 = vpop.f32.mrb[66].mxu1 }
0x16d2   : > { %v4169_v58 = vadd.f32 %v4168_v52, %v4167_v27  ;;  %v4170_v30 = vpop.f32.mrb[70].mxu0  ;;  %v4143_v50 = vpop.f32.mrb[67].mxu1 }
0x16d3   : > { %v3629_v13 = vadd.f32 %v4141_v32, %v3974_v42  ;;  %v4144_v1 = vadd.f32 %v4143_v50, %v4142_v28  ;;  %v4171_v5 = vpop.f32.mrb[71].mxu0 }
0x16d4   : > { %v4172_v33 = vadd.f32 %v4171_v5, %v4170_v30 }
0x16d5   : > { %v3678_v34 = vadd.f32 %v4169_v58, %v3629_v13  ;;  %v3632_v10 = vadd.f32 %v4144_v1, %v3974_v42  ;;  %3695 = sbr.rel (%p4007_p5) target bundleno = 5853 (0x16dd), region = 88 }
0x16d7   : > { %v3686_v38 = vadd.f32 %v3678_v34, %v5319_v49  ;;  %v3681_v39 = vadd.f32 %v4172_v33, %v3632_v10 }
0x16d9   : > { %3690 = vst [vmem:[#allocation2 + $0x10] sm:$0xff] %v3686_v38  ;;  %v3687_v12 = vadd.f32 %v3681_v39, %v5325_v51  ;;  %v3697_v60 = vrot.slane (!%p4007_p5), %v3686_v38, 7 }
0x16db   : > { %3691 = vst [vmem:[#allocation2 + $0x18] sm:$0xff] %v3687_v12  ;;  %v3700_v43 = vsel (!%p4007_p5), %vm3699_vm4, %v3684_v17, %v3697_v60 }
0x16dc   : > { %3701 = vst [vmem:[%s5624_s16] sm:$0x3] %v3700_v43 }
0x16dd PF: > { %s5625_s28 = sld [smem:[#allocation3_spill]] }
0x16e3   : > { %s25_s18 = sadd.s32 1, %s5625_s28  }
0x16e4   : > { %p22_p6 = scmp.ge.s32.totalorder %s25_s18, 4  }
0x16e6   :  { %24 = sbr.rel (!%p22_p6) target bundleno = 7 (0x7), region = 147 }

// kernel: multimodal_vivit_forward.4
= control target key start
LH: loop header
LB: loop body
LE: loop exit
PB: predicated region body
PF: predicated region fallthrough
CT: control target
= control target key end

     0   :  { %s4398_s18 = smov 0   ;;  %s5107_s0 = inlined_call_operand.vmem [shape: f32[32,128], index: 0, kind: input, shape index: {}]   ;;  %s5108_s1 = inlined_call_operand.vmem [shape: f32[1,128], index: 1, kind: input, shape index: {}]   ;;  %s5109_s2 = inlined_call_operand.vmem [shape: f32[1,128], index: 2, kind: input, shape index: {}]   ;;  %s5110_s3 = inlined_call_operand.vmem [shape: f32[2,1,128], index: 3, kind: input, shape index: {}]   ;;  %s5111_s4 = inlined_call_operand.vmem [shape: f32[2,1,128], index: 4, kind: input, shape index: {}]   ;;  %s5112_s5 = inlined_call_operand.vmem [shape: bf16[2,128,384], index: 5, kind: input, shape index: {}]   ;;  %s5113_s6 = inlined_call_operand.vmem [shape: f32[2,1,384], index: 6, kind: input, shape index: {}]   ;;  %s5114_s7 = inlined_call_operand.vmem [shape: bf16[2,128,128], index: 7, kind: input, shape index: {}]   ;;  %s5115_s8 = inlined_call_operand.vmem [shape: f32[2,1,128], index: 8, kind: input, shape index: {}]   ;;  %s5116_s9 = inlined_call_operand.vmem [shape: f32[2,1,128], index: 9, kind: input, shape index: {}]   ;;  %s5117_s10 = inlined_call_operand.vmem [shape: f32[2,1,128], index: 10, kind: input, shape index: {}]   ;;  %s5118_s11 = inlined_call_operand.vmem [shape: bf16[2,128,512], index: 11, kind: input, shape index: {}]   ;;  %s5119_s12 = inlined_call_operand.vmem [shape: f32[2,1,512], index: 12, kind: input, shape index: {}]   ;;  %s5120_s13 = inlined_call_operand.vmem [shape: bf16[2,512,128], index: 13, kind: input, shape index: {}]   ;;  %s5121_s14 = inlined_call_operand.vmem [shape: f32[2,1,128], index: 14, kind: input, shape index: {}]   ;;  %s5122_s15 = inlined_call_operand.vmem [shape: f32[2,128], index: 15, kind: output, shape index: {}]  }
   0x1   :  { %5124 = sst [smem:[#allocation4_spill]] %s5109_s2 }
   0x2   :  { %5125 = sst [smem:[#allocation5_spill]] %s5110_s3 }
   0x3   :  { %5126 = sst [smem:[#allocation6_spill]] %s5111_s4 }
   0x4   :  { %5127 = sst [smem:[#allocation7_spill]] %s5112_s5 }
   0x5   :  { %5128 = sst [smem:[#allocation8_spill]] %s5114_s7 }
   0x6   :  { %5129 = sst [smem:[#allocation9_spill]] %s5122_s15 }
   0x7 LB: > { %5130 = sst [smem:[#allocation3_spill]] %s4310_s18  ;;  %s4404_s19 = sadd.s32 4294967295, %s4310_s18   ;;  %s4310_s18 = sphi %s4398_s18, %s25_s18  }
   0x8   : > { %p3598_p0 = scmp.ge.s32.totalorder %s4310_s18, 1  ;;  %p528_p1 = scmp.lt.s32.totalorder %s4310_s18, 3 }
   0xa   : > { %p529_p2 = pnand %p3598_p0, %p528_p1 }
   0xb   : > { %p612_p3 = scmp.lt.s32.totalorder (!%p529_p2), %s4404_s19, 1  ;;  %s5133_s7 = sld [smem:[#allocation8_spill]] (!%p529_p2) }
   0xc   : > { %532 = sbr.rel (%p529_p2) target bundleno = 5951 (0x173f), region = 80  ;;  %s5134_s5 = sld [smem:[#allocation7_spill]] (!%p529_p2) }
   0xd   : > { %p3607_p4 = scmp.ne.s32.totalorder (!%p529_p2), %s4404_s19, 0 }
  0x13   : > { %s4410_s20 = scalar_select %p612_p3, %s4404_s19, 1 }
  0x14   : > { %v663_v0 = vld [vmem:[%s5107_s0] sm:$0xff] (!%p3607_p4)  ;;  %v665_v1 = vld [vmem:[%s5107_s0 + $0x10] sm:$0xff] (!%p3607_p4)  ;;  %v664_v2 = vld [vmem:[%s5107_s0 + $0x8] sm:$0xff] (!%p3607_p4) }
  0x15   : > { %s4044_s27 = smul.u32 192, %s4410_s20  ;;  %s3739_s28 = sshll.u32 %s4410_s20, 6  ;;  %667 = vadd.xlane.f32.xlu0 (!%p3607_p4), %v663_v0  ;;  %671 = vadd.xlane.f32.xlu1 (!%p3607_p4), %v665_v1  ;;  %v666_v3 = vld [vmem:[%s5107_s0 + $0x18] sm:$0xff] (!%p3607_p4)  ;;  %v3608_v33 = vld [vmem:[%s5108_s1] ss:$0 sm:$0xff] (!%p3607_p4) }
  0x16   : > { %s4045_s29 = smul.u32 3, %s4410_s20  ;;  %s4426_s17 = scalar_lea.vmem %s5133_s7, %s3739_s28 }
  0x17   : > { %s4431_s18 = scalar_lea.vmem %s5134_s5, %s4044_s27  ;;  %s637_s30 = scalar_lea.vmem %s5116_s9, %s4410_s20 }
  0x18   : > { %s4440_s26 = scalar_lea.vmem %s5113_s6, %s4045_s29  ;;  %s3740_s21 = sshll.u32 %s4410_s20, 8 }
  0x19   : > { %s4454_s5 = scalar_lea.vmem %s5118_s11, %s3740_s21  ;;  %s3604_s15 = sshll.u32 %s4410_s20, 2  ;;  %669 = vadd.xlane.f32.xlu0 (!%p3607_p4), %v664_v2  ;;  %673 = vadd.xlane.f32.xlu1 (!%p3607_p4), %v666_v3 }
  0x1a   : > { %s4460_s29 = scalar_lea.vmem %s5119_s12, %s3604_s15  ;;  %s4465_s2 = scalar_lea.vmem %s5120_s13, %s3740_s21 }
  0x1b   : > { %s657_s16 = scalar_lea.vmem %s5121_s14, %s4410_s20  ;;  %662 = sbr.rel (%p3607_p4) target bundleno = 341 (0x155), region = 84 }
  0x1c   : > { %s5135_s27 = sld [smem:[#allocation4_spill]] (!%p3607_p4) }
  0x22   : > { %v3609_v35 = vld [vmem:[%s5135_s27] ss:$0 sm:$0xff] }
  0xa2   : > { %v668_v4 = vpop.xlane.xlu0 %667  ;;  %v672_v5 = vpop.xlane.xlu1 %671 }
  0xa3   : > { %v676_v6 = vmul.f32 0.0078125, %v668_v4  ;;  %v678_v7 = vmul.f32 0.0078125, %v672_v5 }
  0xa5   : > { %v680_v8 = vsub.f32 %v663_v0, %v676_v6  ;;  %v682_v9 = vsub.f32 %v665_v1, %v678_v7 }
  0xa6   : > { %v670_v10 = vpop.xlane.xlu0 %669  ;;  %v674_v11 = vpop.xlane.xlu1 %673 }
  0xa7   : > { %v677_v12 = vmul.f32 0.0078125, %v670_v10  ;;  %v684_v13 = vmul.f32 %v680_v8, %v680_v8  ;;  %v679_v14 = vmul.f32 0.0078125, %v674_v11  ;;  %v686_v17 = vmul.f32 %v682_v9, %v682_v9 }
  0xa9   : > { %v681_v15 = vsub.f32 %v664_v2, %v677_v12  ;;  %688 = vadd.xlane.f32.xlu0 %v684_v13  ;;  %v683_v16 = vsub.f32 %v666_v3, %v679_v14 }
  0xab   : > { %v685_v18 = vmul.f32 %v681_v15, %v681_v15  ;;  %v687_v19 = vmul.f32 %v683_v16, %v683_v16 }
  0xad   : > { %692 = vadd.xlane.f32.xlu0 %v686_v17  ;;  %690 = vadd.xlane.f32.xlu1 %v685_v18 }
  0xb1   : > { %694 = vadd.xlane.f32.xlu1 %v687_v19 }
 0x136   : > { %v689_v20 = vpop.xlane.xlu0 %688 }
 0x137   : > { %v696_v21 = vmul.f32 0.0078125, %v689_v20 }
 0x139   : > { %v700_v22 = vadd.f32 1e-12, %v696_v21 }
 0x13a   : > { %v691_v23 = vpop.xlane.xlu1 %690  ;;  %v693_v24 = vpop.xlane.xlu0 %692 }
 0x13b   : > { %4060 = vrsqrt.f32 %v700_v22  ;;  %v697_v25 = vmul.f32 0.0078125, %v691_v23  ;;  %v698_v26 = vmul.f32 0.0078125, %v693_v24 }
 0x13d   : > { %v701_v27 = vadd.f32 1e-12, %v697_v25  ;;  %v702_v28 = vadd.f32 1e-12, %v698_v26 }
 0x13e   : > { %v695_v29 = vpop.xlane.xlu1 %694 }
 0x13f   : > { %4062 = vrsqrt.f32 %v701_v27  ;;  %v699_v30 = vmul.f32 0.0078125, %v695_v29 }
 0x140   : > { %4064 = vrsqrt.f32 %v702_v28 }
 0x141   : > { %v703_v31 = vadd.f32 1e-12, %v699_v30 }
 0x143   : > { %4066 = vrsqrt.f32 %v703_v31 }
 0x145   : > { %v4061_v32 = vpop.eup %4060 }
 0x146   : > { %v708_v34 = vmul.f32 %v4061_v32, %v680_v8 }
 0x148   : > { %v719_v36 = vmul.f32 %v3608_v33, %v708_v34 }
 0x149   : > { %v4063_v37 = vpop.eup %4062 }
 0x14a   : > { %v4065_v38 = vpop.eup %4064  ;;  %v730_v39 = vadd.f32 %v3609_v35, %v719_v36  ;;  %v709_v40 = vmul.f32 %v4063_v37, %v681_v15 }
 0x14b   : > { %v710_v41 = vmul.f32 %v4065_v38, %v682_v9 }
 0x14c   : > { %734 = vst [vmem:[#allocation2] sm:$0xff] %v730_v39  ;;  %v720_v42 = vmul.f32 %v3608_v33, %v709_v40 }
 0x14d   : > { %v4067_v43 = vpop.eup %4066  ;;  %v721_v44 = vmul.f32 %v3608_v33, %v710_v41 }
 0x14e   : > { %v731_v45 = vadd.f32 %v3609_v35, %v720_v42  ;;  %v711_v46 = vmul.f32 %v4067_v43, %v683_v16 }
 0x14f   : > { %v732_v47 = vadd.f32 %v3609_v35, %v721_v44 }
 0x150   : > { %735 = vst [vmem:[#allocation2 + $0x8] sm:$0xff] %v731_v45  ;;  %v722_v48 = vmul.f32 %v3608_v33, %v711_v46 }
 0x151   : > { %736 = vst [vmem:[#allocation2 + $0x10] sm:$0xff] %v732_v47 }
 0x152   : > { %v733_v49 = vadd.f32 %v3609_v35, %v722_v48 }
 0x154   : > { %737 = vst [vmem:[#allocation2 + $0x18] sm:$0xff] %v733_v49 }
 0x155 PF: > { %v4068_v50 = vld [vmem:[%s4431_s18 + $0x4] ss:$12 sps:$4 sm:$0xff]   ;;  %v4070_v51 = vld [vmem:[%s4431_s18] ss:$12 sps:$4 sm:$0xff]   ;;  %v4312_v52 = vmov 0   ;;  %v4313_v17 = vmov 0.0   ;;  %v778_v18 = vlaneseq  ;;  %s5136_s15 = scalar_lea.vmem %s5115_s8, %s4410_s20 }
 0x156   : > { %953 = vmatprep.mubr.bf16.mxu0 %v4312_v52  ;;  %921 = vmatprep.subr.bf16.mxu0 %v4068_v50  ;;  %v4071_v53 = vld [vmem:[%s4431_s18 + $0x1c] ss:$12 sps:$4 sm:$0xff]   ;;  %v4073_v54 = vld [vmem:[%s4431_s18 + $0x18] ss:$12 sps:$4 sm:$0xff]   ;;  %v4074_v55 = vld [vmem:[%s4431_s18 + $0x34] ss:$12 sps:$4 sm:$0xff]  }
 0x157   : > { %922 = vmatpush1.bf16.msra.mxu0 %v4070_v51  ;;  %v4076_v56 = vld [vmem:[%s4431_s18 + $0x30] ss:$12 sps:$4 sm:$0xff]   ;;  %v4077_v57 = vld [vmem:[%s4431_s18 + $0x4c] ss:$12 sps:$4 sm:$0xff]   ;;  %v4079_v58 = vld [vmem:[%s4431_s18 + $0x48] ss:$12 sps:$4 sm:$0xff]  }
 0x158   : > { %923 = vmatprep.subr.bf16.mxu0 %v4071_v53  ;;  %v4080_v59 = vld [vmem:[%s4431_s18 + $0x64] ss:$12 sps:$4 sm:$0xff]   ;;  %v739_v61 = vld [vmem:[#allocation2 + $0x8] sm:$0xff]  ;;  %v4086_v5 = vld [vmem:[%s4431_s18 + $0x94] ss:$12 sps:$4 sm:$0xff]   ;;  %vm4314_vm0 = vmmov 0  }
 0x159   : > { %v738_v60 = vld [vmem:[#allocation2] sm:$0xff]  ;;  %v4092_v63 = vld [vmem:[%s4431_s18 + $0x8] ss:$12 sps:$4 sm:$0xff]   ;;  %v4095_v6 = vld [vmem:[%s4431_s18 + $0x50] ss:$12 sps:$4 sm:$0xff]   ;;  %v4522_v19 = vshrl.u32 %v778_v18, 7 }
 0x15a   : > { %v742_v62 = vpack.c.bf16 %v739_v61, %v738_v60  ;;  %v4093_v0 = vld [vmem:[%s4431_s18 + $0x20] ss:$12 sps:$4 sm:$0xff]   ;;  %3864 = vmatprep.subr.bf16.mxu1 %v4092_v63  ;;  %v4083_v2 = vld [vmem:[%s4431_s18 + $0x7c] ss:$12 sps:$4 sm:$0xff]   ;;  %v4094_v3 = vld [vmem:[%s4431_s18 + $0x38] ss:$12 sps:$4 sm:$0xff]  }
 0x15b   : > { %924 = vmatpush1.bf16.msra.mxu0 %v4073_v54  ;;  %v4082_v1 = vld [vmem:[%s4431_s18 + $0x60] ss:$12 sps:$4 sm:$0xff]   ;;  %3865 = vmatpush3.bf16.msra.mxu1 %v4092_v63  ;;  %v4085_v4 = vld [vmem:[%s4431_s18 + $0x78] ss:$12 sps:$4 sm:$0xff]   ;;  %v4088_v7 = vld [vmem:[%s4431_s18 + $0x90] ss:$12 sps:$4 sm:$0xff]  }
 0x15c   : > { %925 = vmatprep.subr.bf16.mxu0 %v4074_v55  ;;  %3880 = vmatprep.mubr.bf16.mxu1 %v742_v62  ;;  %v4089_v8 = vld [vmem:[%s4431_s18 + $0xac] ss:$12 sps:$4 sm:$0xff]   ;;  %v4096_v9 = vld [vmem:[%s4431_s18 + $0x68] ss:$12 sps:$4 sm:$0xff]   ;;  %v4099_v13 = vld [vmem:[%s4431_s18 + $0xb0] ss:$12 sps:$4 sm:$0xff]  }
 0x15d   : > { %3866 = vmatprep.subr.bf16.mxu1 %v4093_v0  ;;  %v4091_v10 = vld [vmem:[%s4431_s18 + $0xa8] ss:$12 sps:$4 sm:$0xff]   ;;  %v4097_v11 = vld [vmem:[%s4431_s18 + $0x80] ss:$12 sps:$4 sm:$0xff]   ;;  %v4098_v12 = vld [vmem:[%s4431_s18 + $0x98] ss:$12 sps:$4 sm:$0xff]  }
 0x15e   : > { %v740_v14 = vld [vmem:[#allocation2 + $0x10] sm:$0xff]  ;;  %v741_v15 = vld [vmem:[#allocation2 + $0x18] sm:$0xff]  ;;  %v780_v20 = vsub.s32 0, %v4522_v19  ;;  %v776_v21 = vld [vmem:[%s4440_s26] sm:$0x7]  ;;  %v784_v22 = vsub.s32 1, %v4522_v19 }
 0x15f   : > { %926 = vmatpush1.bf16.msra.mxu0 %v4076_v56  ;;  %3867 = vmatpush3.bf16.msra.mxu1 %v4093_v0  ;;  %v743_v16 = vpack.c.bf16 %v741_v15, %v740_v14  ;;  %vm1029_vm1 = vcmask 261120   ;;  %s4315_s18 = smov 96   ;;  %v788_v36 = vsub.s32 2, %v4522_v19  ;;  %vm1079_vm2 = vcmask 130048   ;;  %s4316_s26 = smov 64  }
 0x160   : > { %927 = vmatprep.subr.bf16.mxu0 %v4077_v57  ;;  %3868 = vmatprep.subr.bf16.mxu1 %v4094_v3  ;;  %v4529_v23 = vrot.slane %v776_v21, %v780_v20  ;;  %v4533_v25 = vrot.slane %v776_v21, %v784_v22  ;;  %s4317_s22 = smov 32   ;;  %s5137_s23 = sld [smem:[#allocation5_spill]] }
 0x161   : > { %v789_v37 = vrot.slane %v776_v21, %v788_v36  ;;  %s5139_s4 = sld [smem:[#allocation6_spill]]  ;;  %p3736_p5 = scmp.ne.s32.totalorder %s4404_s19, 1 }
 0x162   : > { %vm3450_vm3 = vcmask (!%p3736_p5), 1040384  }
 0x163   : > { %928 = vmatpush1.bf16.msra.mxu0 %v4079_v58  ;;  %3869 = vmatpush3.bf16.msra.mxu1 %v4094_v3 }
 0x164   : > { %929 = vmatprep.subr.bf16.mxu0 %v4080_v59  ;;  %3870 = vmatprep.subr.bf16.mxu1 %v4095_v6 }
 0x166   : > { %s5138_s24 = scalar_lea.vmem %s5137_s23, %s4410_s20 }
 0x167   : > { %930 = vmatpush1.bf16.msra.mxu0 %v4082_v1  ;;  %3871 = vmatpush3.bf16.msra.mxu1 %v4095_v6  ;;  %s5140_s28 = scalar_lea.vmem %s5139_s4, %s4410_s20 }
 0x168   : > { %931 = vmatprep.subr.bf16.mxu0 %v4083_v2  ;;  %3872 = vmatprep.subr.bf16.mxu1 %v4096_v9 }
 0x16b   : > { %932 = vmatpush1.bf16.msra.mxu0 %v4085_v4  ;;  %3873 = vmatpush3.bf16.msra.mxu1 %v4096_v9 }
 0x16c   : > { %933 = vmatprep.subr.bf16.mxu0 %v4086_v5  ;;  %3874 = vmatprep.subr.bf16.mxu1 %v4097_v11 }
 0x16f   : > { %934 = vmatpush1.bf16.msra.mxu0 %v4088_v7  ;;  %3875 = vmatpush3.bf16.msra.mxu1 %v4097_v11 }
 0x170   : > { %935 = vmatprep.subr.bf16.mxu0 %v4089_v8  ;;  %3876 = vmatprep.subr.bf16.mxu1 %v4098_v12 }
 0x173   : > { %936 = vmatpush1.bf16.msra.mxu0 %v4091_v10  ;;  %3877 = vmatpush3.bf16.msra.mxu1 %v4098_v12 }
 0x174   : > { %3878 = vmatprep.subr.bf16.mxu1 %v4099_v13  ;;  %3890 = vmatprep.subr.bf16.mxu0 %v4313_v17 }
 0x176   : > { %954 = vmatmul.mubr.bf16.vlgmr.msra.gmra.mrb[0].mxu0 %v742_v62 }
 0x177   : > { %963 = vmatprep.mubr.bf16.mxu0 %v4312_v52  ;;  %3879 = vmatpush3.bf16.msra.mxu1 %v4099_v13 }
 0x178   : > { %3884 = vmatprep.subr.bf16.mxu1 %v4313_v17 }
 0x17a   : > { %3881 = vmatmul.mubr.bf16.vlgmr.msra.gmra.mrb[0].mxu1 %v743_v16 }
 0x17b   : > { %3886 = vmatprep.mubr.msk.bf16.mxu1 %vm4314_vm0, %v4313_v17 }
 0x17e   : > { %964 = vmatmul.mubr.bf16.gmra.mrb[4].mxu0 %v743_v16 }
 0x17f   : > { %3892 = vmatprep.mubr.msk.bf16.mxu0 %vm4314_vm0, %v4313_v17 }
 0x249   : > { %v955_v24 = vpop.f32.mrb[0].mxu0 }
 0x24a   : > { %v957_v26 = vpop.f32.mrb[1].mxu0  ;;  %v956_v28 = vadd.f32 %v955_v24, %v4529_v23 }
 0x24b   : > { %v959_v27 = vpop.f32.mrb[2].mxu0  ;;  %v958_v31 = vadd.f32 %v957_v26, %v4533_v25 }
 0x24c   : > { %v960_v29 = vadd.f32 %v959_v27, %v4529_v23  ;;  %v961_v30 = vpop.f32.mrb[3].mxu0 }
 0x24d   : > { %v962_v32 = vadd.f32 %v961_v30, %v4533_v25  ;;  %v3882_v38 = vpop.f32.mrb[0].mxu1 }
 0x24e   : > { %v4539_v33 = vpack.c.bf16 %v960_v29, %v956_v28  ;;  %v1017_v39 = vadd.f32 %v3882_v38, %v789_v37  ;;  %v1008_v40 = vpop.f32.mrb[1].mxu1 }
 0x24f   : > { %v4541_v34 = vpack.c.bf16 %v962_v32, %v958_v31  ;;  %v1009_v41 = vadd.f32 %v1008_v40, %v789_v37  ;;  %v3883_v42 = vpop.f32.mrb[2].mxu1 }
 0x250   : > { %v1020_v43 = vadd.f32 %v3883_v42, %v789_v37  ;;  %v1011_v44 = vpop.f32.mrb[3].mxu1 }
 0x251   : > { %1156 = vrot.lane.b32.xlu0 %v4541_v34, %s4315_s18  ;;  %v1034_v35 = vsel %vm1029_vm1, %v4541_v34, 0  ;;  %v1012_v45 = vadd.f32 %v1011_v44, %v789_v37  ;;  %v965_v32 = vpop.f32.mrb[4].mxu0 }
 0x252   : > { %3885 = vmatpush3.bf16.xpose.msra.mxu1 %v1034_v35  ;;  %v4557_v46 = vpack.c.bf16 %v1020_v43, %v1017_v39  ;;  %v966_v35 = vadd.f32 %v965_v32, %v4529_v23  ;;  %v967_v37 = vpop.f32.mrb[5].mxu0 }
 0x253   : > { %3896 = vmatprep.subr.bf16.mxu1 %v4313_v17  ;;  %v4559_v47 = vpack.c.bf16 %v1012_v45, %v1009_v41  ;;  %v968_v38 = vadd.f32 %v967_v37, %v4533_v25  ;;  %v969_v39 = vpop.f32.mrb[6].mxu0 }
 0x254   : > { %v970_v40 = vadd.f32 %v969_v39, %v4529_v23  ;;  %v971_v41 = vpop.f32.mrb[7].mxu0  ;;  %v4598_v23 = vld [vmem:[%s4426_s17 + $0x18] sm:$0xff]  }
 0x255   : > { %1153 = vrot.lane.b32.xlu0 %v4539_v33, %s4315_s18  ;;  %3891 = vmatpush3.bf16.msra.mxu0 %v4559_v47  ;;  %v972_v42 = vadd.f32 %v971_v41, %v4533_v25 }
 0x256   : > { %3902 = vmatprep.subr.bf16.mxu0 %v4313_v17  ;;  %v4586_v43 = vpack.c.bf16 %v970_v40, %v966_v35 }
 0x257   : > { %v4588_v45 = vpack.c.bf16 %v972_v42, %v968_v38 }
 0x259   : > { %3887 = vmatmul.mubr.msk.bf16.vlgmr.msra.gmra.mrb[4].mxu1 %vm1029_vm1, %v4539_v33 }
 0x25a   : > { %3898 = vmatprep.mubr.msk.bf16.mxu1 %vm4314_vm0, %v4313_v17 }
 0x2c3   : > { %v1157_v48 = vpop.permute.xlu0 %1156 }
 0x2c4   : > { %v1162_v49 = vsel %vm1029_vm1, %v1157_v48, 0 }
 0x2c5   : > { %3897 = vmatpush3.bf16.xpose.msra.mxu1 %v1162_v49 }
 0x2c6   : > { %3908 = vmatprep.subr.bf16.mxu1 %v4313_v17 }
 0x2c7   : > { %v1154_v50 = vpop.permute.xlu0 %1153 }
 0x2cc   : > { %3899 = vmatmul.mubr.msk.bf16.vlgmr.msra.gmra.mrb[8].mxu1 %vm1029_vm1, %v1154_v50 }
 0x2cd   : > { %3912 = vmatprep.mubr.msk.bf16.mxu1 %vm4314_vm0, %v4313_v17 }
 0x32c   : > { %v1070_v51 = vpop.f32.mrb[4].mxu1 }
 0x32d   : > { %v1077_v53 = vmul.f32 0.17677669, %v1070_v51  ;;  %v3888_v54 = vpop.f32.mrb[5].mxu1 }
 0x32e   : > { %v1073_v55 = vpop.f32.mrb[6].mxu1 }
 0x32f   : > { %v1078_v56 = vmul.f32 0.17677669, %v1073_v55  ;;  %v3889_v57 = vpop.f32.mrb[7].mxu1  ;;  %v1080_v58 = vsel %vm1079_vm2, %v1077_v53, -inf }
 0x330   : > { %1081 = vmax.xlane.f32.xlu1 %v1080_v58 }
 0x331   : > { %v1083_v59 = vsel %vm1079_vm2, %v1078_v56, -inf }
 0x334   : > { %1084 = vmax.xlane.f32.xlu1 %v1083_v59 }
 0x39f   : > { %v1198_v60 = vpop.f32.mrb[8].mxu1 }
 0x3a0   : > { %v1205_v61 = vmul.f32 0.17677669, %v1198_v60  ;;  %v3900_v62 = vpop.f32.mrb[9].mxu1  ;;  %v4605_v60 = vld [vmem:[%s4426_s17] sm:$0xff]  }
 0x3a1   : > { %v1201_v63 = vpop.f32.mrb[10].mxu1  ;;  %v4610_v62 = vld [vmem:[%s4426_s17 + $0x8] sm:$0xff]  }
 0x3a2   : > { %v1206_v0 = vmul.f32 0.17677669, %v1201_v63  ;;  %v3901_v1 = vpop.f32.mrb[11].mxu1  ;;  %v1207_v2 = vsel %vm1079_vm2, %v1205_v61, -inf }
 0x3a3   : > { %1208 = vmax.xlane.f32.xlu0 %v1207_v2 }
 0x3a4   : > { %v1210_v3 = vsel %vm1079_vm2, %v1206_v0, -inf }
 0x3a5   : > { %1211 = vmax.xlane.f32.xlu1 %v1210_v3 }
 0x3b9   : > { %1397 = vrot.lane.b32.xlu0 %v4541_v34, %s4316_s26 }
 0x3bd   : > { %v1082_v4 = vpop.xlane.xlu1 %1081 }
 0x3be   : > { %v1086_v5 = vsub.f32 %v1077_v53, %v1082_v4  ;;  %v4594_v53 = vld [vmem:[%s4426_s17 + $0x10] sm:$0xff]  }
 0x3bf   : > { %3909 = vmatpush3.bf16.msra.mxu1 %v4594_v53 }
 0x3c0   : > { %v1088_v6 = vmul.f32 1.442695, %v1086_v5  ;;  %3910 = vmatprep.subr.bf16.mxu1 %v4313_v17 }
 0x3c1   : > { %v1085_v7 = vpop.xlane.xlu1 %1084 }
 0x3c2   : > { %4188 = vpow2.f32 %v1088_v6  ;;  %v1087_v8 = vsub.f32 %v1078_v56, %v1085_v7 }
 0x3c3   : > { %3911 = vmatpush3.bf16.msra.mxu1 %v4598_v23 }
 0x3c4   : > { %v1090_v9 = vmul.f32 1.442695, %v1087_v8  ;;  %3924 = vmatprep.subr.bf16.mxu1 %v4313_v17 }
 0x3c6   : > { %4190 = vpow2.f32 %v1090_v9 }
 0x3cc   : > { %v4189_v10 = vpop.eup %4188 }
 0x3cd   : > { %v1092_v11 = vsel %vm1079_vm2, %v4189_v10, 0.0 }
 0x3ce   : > { %1093 = vadd.xlane.f32.xlu1 %v1092_v11 }
 0x3d0   : > { %v4191_v12 = vpop.eup %4190 }
 0x3d1   : > { %v1095_v13 = vsel %vm1079_vm2, %v4191_v12, 0.0 }
 0x3d2   : > { %1096 = vadd.xlane.f32.xlu1 %v1095_v13 }
 0x430   : > { %v1209_v14 = vpop.xlane.xlu0 %1208 }
 0x431   : > { %v1213_v15 = vsub.f32 %v1205_v61, %v1209_v14 }
 0x432   : > { %v1212_v16 = vpop.xlane.xlu1 %1211 }
 0x433   : > { %v1215_v18 = vmul.f32 1.442695, %v1213_v15  ;;  %v1214_v21 = vsub.f32 %v1206_v0, %v1212_v16 }
 0x434   : > { %v1398_v6 = vpop.permute.xlu0 %1397 }
 0x435   : > { %4192 = vpow2.f32 %v1215_v18  ;;  %v1217_v24 = vmul.f32 1.442695, %v1214_v21 }
 0x437   : > { %4194 = vpow2.f32 %v1217_v24 }
 0x43f   : > { %v4193_v26 = vpop.eup %4192 }
 0x440   : > { %v1219_v27 = vsel %vm1079_vm2, %v4193_v26, 0.0 }
 0x441   : > { %v4195_v28 = vpop.eup %4194  ;;  %1220 = vadd.xlane.f32.xlu1 %v1219_v27 }
 0x442   : > { %v1222_v29 = vsel %vm1079_vm2, %v4195_v28, 0.0 }
 0x445   : > { %1223 = vadd.xlane.f32.xlu1 %v1222_v29 }
 0x456   : > { %1231 = vrot.lane.b32.xlu1 %v4559_v47, %s4315_s18 }
 0x45a   : > { %1395 = vrot.lane.b32.xlu1 %v4539_v33, %s4316_s26 }
 0x45b   : > { %v1094_v30 = vpop.xlane.xlu1 %1093 }
 0x45c   : > { %4196 = vrcp.f32 %v1094_v30 }
 0x45f   : > { %v1097_v31 = vpop.xlane.xlu1 %1096 }
 0x460   : > { %4198 = vrcp.f32 %v1097_v31 }
 0x466   : > { %v4197_v44 = vpop.eup %4196 }
 0x467   : > { %v1100_v49 = vmul.f32 %v4197_v44, %v4189_v10  ;;  %v1403_v10 = vsel %vm1029_vm1, %v1398_v6, 0 }
 0x46a   : > { %v4199_v48 = vpop.eup %4198 }
 0x46b   : > { %v1101_v50 = vmul.f32 %v4199_v48, %v4191_v12 }
 0x46d   : > { %v1102_v51 = vpack.c.bf16 %v1101_v50, %v1100_v49 }
 0x46f   : > { %3893 = vmatmul.mubr.msk.bf16.vlgmr.msra.gmra.mrb[8].mxu0 %vm1079_vm2, %v1102_v51 }
 0x470   : > { %3904 = vmatprep.mubr.msk.bf16.mxu0 %vm4314_vm0, %v4313_v17 }
 0x4ce   : > { %v1221_v25 = vpop.xlane.xlu1 %1220 }
 0x4cf   : > { %4200 = vrcp.f32 %v1221_v25 }
 0x4d2   : > { %v1224_v54 = vpop.xlane.xlu1 %1223 }
 0x4d3   : > { %4202 = vrcp.f32 %v1224_v54 }
 0x4d6   : > { %v1232_v55 = vpop.permute.xlu1 %1231 }
 0x4d7   : > { %3903 = vmatpush3.bf16.msra.mxu0 %v1232_v55  ;;  %v4644_v55 = vld [vmem:[%s4426_s17 + $0x20] sm:$0xff]  }
 0x4d8   : > { %3916 = vmatprep.subr.bf16.mxu0 %v4313_v17 }
 0x4d9   : > { %v4201_v56 = vpop.eup %4200 }
 0x4da   : > { %v1227_v58 = vmul.f32 %v4201_v56, %v4193_v26  ;;  %v1396_v11 = vpop.permute.xlu1 %1395 }
 0x4dd   : > { %v4203_v57 = vpop.eup %4202 }
 0x4de   : > { %v1228_v59 = vmul.f32 %v4203_v57, %v4195_v28 }
 0x4e0   : > { %v1229_v61 = vpack.c.bf16 %v1228_v59, %v1227_v58 }
 0x4e2   : > { %3905 = vmatmul.mubr.msk.bf16.vlgmr.msra.gmra.mrb[12].mxu0 %vm1079_vm2, %v1229_v61 }
 0x4e3   : > { %3917 = vmatpush3.bf16.msra.mxu0 %v4605_v60  ;;  %3920 = vmatprep.mubr.msk.bf16.mxu0 %vm4314_vm0, %v4313_v17 }
 0x4e4   : > { %3918 = vmatprep.subr.bf16.mxu0 %v4313_v17 }
 0x4e7   : > { %3919 = vmatpush3.bf16.msra.mxu0 %v4610_v62 }
 0x4e8   : > { %3930 = vmatprep.subr.bf16.mxu0 %v4313_v17 }
 0x542   : > { %v1140_v63 = vpop.f32.mrb[8].mxu0 }
 0x543   : > { %v3894_v0 = vpop.f32.mrb[9].mxu0 }
 0x544   : > { %v1143_v1 = vpop.f32.mrb[10].mxu0 }
 0x545   : > { %v1147_v2 = vpack.c.bf16 %v1143_v1, %v1140_v63  ;;  %v3895_v3 = vpop.f32.mrb[11].mxu0 }
 0x547   : > { %3921 = vmatmul.mubr.msk.bf16.vlgmr.msra.gmra.mrb[16].mxu0 %vm1029_vm1, %v1147_v2  ;;  %v4657_v2 = vld [vmem:[%s4426_s17 + $0x28] sm:$0xff]  }
 0x548   : > { %3932 = vmatprep.mubr.msk.bf16.mxu0 %vm4314_vm0, %v4313_v17 }
 0x5b5   : > { %v1271_v4 = vpop.f32.mrb[12].mxu0 }
 0x5b6   : > { %v3906_v5 = vpop.f32.mrb[13].mxu0 }
 0x5b7   : > { %v1274_v7 = vpop.f32.mrb[14].mxu0 }
 0x5b8   : > { %v1278_v8 = vpack.c.bf16 %v1274_v7, %v1271_v4  ;;  %v3907_v9 = vpop.f32.mrb[15].mxu0 }
 0x5ba   : > { %3913 = vmatmul.mubr.msk.bf16.vlgmr.msra.gmra.mrb[12].mxu1 %vm1029_vm1, %v1278_v8 }
 0x5bb   : > { %3925 = vmatpush3.bf16.xpose.msra.mxu1 %v1403_v10  ;;  %3926 = vmatprep.mubr.msk.bf16.mxu1 %vm4314_vm0, %v4313_v17 }
 0x5bc   : > { %3936 = vmatprep.subr.bf16.mxu1 %v4313_v17 }
 0x5c2   : > { %3927 = vmatmul.mubr.msk.bf16.vlgmr.msra.gmra.mrb[16].mxu1 %vm1029_vm1, %v1396_v11 }
 0x5c3   : > { %3940 = vmatprep.mubr.msk.bf16.mxu1 %vm4314_vm0, %v4313_v17  ;;  %3937 = vmatpush3.bf16.msra.mxu1 %v4644_v55 }
 0x5c4   : > { %3938 = vmatprep.subr.bf16.mxu1 %v4313_v17 }
 0x5c7   : > { %3939 = vmatpush3.bf16.msra.mxu1 %v4657_v2 }
 0x5c8   : > { %3950 = vmatprep.subr.bf16.mxu1 %v4313_v17 }
 0x61a   : > { %v1388_v12 = vpop.f32.mrb[16].mxu0 }
 0x61b   : > { %v3922_v13 = vpop.f32.mrb[17].mxu0 }
 0x61c   : > { %v1391_v14 = vpop.f32.mrb[18].mxu0 }
 0x61d   : > { %v3923_v15 = vpop.f32.mrb[19].mxu0 }
 0x68d   : > { %v1332_v16 = vpop.f32.mrb[12].mxu1 }
 0x68e   : > { %v4628_v18 = vadd.f32 %v1388_v12, %v1332_v16  ;;  %v3914_v21 = vpop.f32.mrb[13].mxu1 }
 0x68f   : > { %v1335_v24 = vpop.f32.mrb[14].mxu1 }
 0x690   : > { %v4630_v26 = vadd.f32 %v1391_v14, %v1335_v24  ;;  %v3915_v27 = vpop.f32.mrb[15].mxu1 }
 0x695   : > { %v1439_v28 = vpop.f32.mrb[16].mxu1 }
 0x696   : > { %v1446_v29 = vmul.f32 0.17677669, %v1439_v28  ;;  %v3928_v30 = vpop.f32.mrb[17].mxu1 }
 0x697   : > { %v1442_v31 = vpop.f32.mrb[18].mxu1 }
 0x698   : > { %v1447_v32 = vmul.f32 0.17677669, %v1442_v31  ;;  %v3929_v35 = vpop.f32.mrb[19].mxu1  ;;  %v1448_v37 = vsel %vm1079_vm2, %v1446_v29, -inf }
 0x699   : > { %1449 = vmax.xlane.f32.xlu1 %v1448_v37 }
 0x69a   : > { %v1451_v38 = vsel %vm1079_vm2, %v1447_v32, -inf }
 0x69b   : > { %1452 = vmax.xlane.f32.xlu0 %v1451_v38 }
 0x6b1   : > { %1471 = vrot.lane.b32.xlu0 %v4559_v47, %s4316_s26 }
 0x726   : > { %v1450_v39 = vpop.xlane.xlu1 %1449 }
 0x727   : > { %v1454_v40 = vsub.f32 %v1446_v29, %v1450_v39 }
 0x728   : > { %v1453_v41 = vpop.xlane.xlu0 %1452 }
 0x729   : > { %v1456_v42 = vmul.f32 1.442695, %v1454_v40  ;;  %v1455_v44 = vsub.f32 %v1447_v32, %v1453_v41 }
 0x72b   : > { %4204 = vpow2.f32 %v1456_v42  ;;  %v1458_v48 = vmul.f32 1.442695, %v1455_v44  ;;  %v4682_v44 = vld [vmem:[%s4426_s17 + $0x30] sm:$0xff]  }
 0x72c   : > { %v1472_v49 = vpop.permute.xlu0 %1471 }
 0x72d   : > { %4206 = vpow2.f32 %v1458_v48  ;;  %3931 = vmatpush3.bf16.msra.mxu0 %v1472_v49 }
 0x72e   : > { %3944 = vmatprep.subr.bf16.mxu0 %v4313_v17 }
 0x735   : > { %v4205_v50 = vpop.eup %4204 }
 0x736   : > { %v1460_v51 = vsel %vm1079_vm2, %v4205_v50, 0.0 }
 0x737   : > { %v4207_v25 = vpop.eup %4206  ;;  %1461 = vadd.xlane.f32.xlu1 %v1460_v51 }
 0x738   : > { %v1463_v54 = vsel %vm1079_vm2, %v4207_v25, 0.0 }
 0x73b   : > { %1464 = vadd.xlane.f32.xlu1 %v1463_v54 }
 0x74c   : > { %1583 = vrot.lane.b32.xlu1 %v4541_v34, %s4317_s22 }
 0x750   : > { %1581 = vrot.lane.b32.xlu1 %v4539_v33, %s4317_s22 }
 0x7c4   : > { %v1462_v56 = vpop.xlane.xlu1 %1461 }
 0x7c5   : > { %4208 = vrcp.f32 %v1462_v56 }
 0x7c8   : > { %v1465_v57 = vpop.xlane.xlu1 %1464 }
 0x7c9   : > { %4210 = vrcp.f32 %v1465_v57 }
 0x7cc   : > { %v1584_v0 = vpop.permute.xlu1 %1583 }
 0x7cd   : > { %v1589_v1 = vsel %vm1029_vm1, %v1584_v0, 0 }
 0x7cf   : > { %v4209_v58 = vpop.eup %4208 }
 0x7d0   : > { %v1468_v61 = vmul.f32 %v4209_v58, %v4205_v50  ;;  %v1582_v33 = vpop.permute.xlu1 %1581 }
 0x7d3   : > { %v4211_v59 = vpop.eup %4210 }
 0x7d4   : > { %v1469_v63 = vmul.f32 %v4211_v59, %v4207_v25  ;;  %v4706_v59 = vld [vmem:[%s4426_s17 + $0x38] sm:$0xff]  }
 0x7d6   : > { %v1470_v34 = vpack.c.bf16 %v1469_v63, %v1468_v61 }
 0x7d8   : > { %3933 = vmatmul.mubr.msk.bf16.vlgmr.msra.gmra.mrb[20].mxu0 %vm1079_vm2, %v1470_v34 }
 0x7d9   : > { %3945 = vmatpush3.bf16.xpose.msra.mxu0 %v1589_v1  ;;  %3946 = vmatprep.mubr.msk.bf16.mxu0 %vm4314_vm0, %v4313_v17 }
 0x7da   : > { %3956 = vmatprep.subr.bf16.mxu0 %v4313_v17 }
 0x7e0   : > { %3947 = vmatmul.mubr.msk.bf16.vlgmr.msra.gmra.mrb[24].mxu0 %vm1029_vm1, %v1582_v33 }
 0x7e1   : > { %3960 = vmatprep.mubr.msk.bf16.mxu0 %vm4314_vm0, %v4313_v17  ;;  %3957 = vmatpush3.bf16.msra.mxu0 %v4682_v44 }
 0x7e2   : > { %3958 = vmatprep.subr.bf16.mxu0 %v4313_v17 }
 0x7e5   : > { %3959 = vmatpush3.bf16.msra.mxu0 %v4706_v59 }
 0x7e6   : > { %3970 = vmatprep.subr.bf16.mxu0 %v4313_v17 }
 0x8ab   : > { %v1511_v3 = vpop.f32.mrb[20].mxu0 }
 0x8ac   : > { %v3934_v4 = vpop.f32.mrb[21].mxu0 }
 0x8ad   : > { %v1514_v5 = vpop.f32.mrb[22].mxu0 }
 0x8ae   : > { %v1518_v6 = vpack.c.bf16 %v1514_v5, %v1511_v3  ;;  %v3935_v7 = vpop.f32.mrb[23].mxu0 }
 0x8b0   : > { %3941 = vmatmul.mubr.msk.bf16.vlgmr.msra.gmra.mrb[20].mxu1 %vm1029_vm1, %v1518_v6 }
 0x8b1   : > { %3952 = vmatprep.mubr.msk.bf16.mxu1 %vm4314_vm0, %v4313_v17 }
 0x8b3   : > { %v1625_v8 = vpop.f32.mrb[24].mxu0 }
 0x8b4   : > { %v1632_v9 = vmul.f32 0.17677669, %v1625_v8  ;;  %v3948_v10 = vpop.f32.mrb[25].mxu0 }
 0x8b5   : > { %v1628_v11 = vpop.f32.mrb[26].mxu0 }
 0x8b6   : > { %v1633_v12 = vmul.f32 0.17677669, %v1628_v11  ;;  %v3949_v13 = vpop.f32.mrb[27].mxu0  ;;  %v1634_v14 = vsel %vm1079_vm2, %v1632_v9, -inf }
 0x8b7   : > { %1635 = vmax.xlane.f32.xlu0 %v1634_v14 }
 0x8b8   : > { %v1637_v15 = vsel %vm1079_vm2, %v1633_v12, -inf }
 0x8b9   : > { %1638 = vmax.xlane.f32.xlu1 %v1637_v15 }
 0x8ca   : > { %1657 = vrot.lane.b32.xlu1 %v4559_v47, %s4317_s22 }
 0x8ce   : > { %1885 = vrot.lane.b32.xlu1 %v4586_v43, %s4315_s18 }
 0x944   : > { %v1636_v16 = vpop.xlane.xlu0 %1635 }
 0x945   : > { %v1640_v21 = vsub.f32 %v1632_v9, %v1636_v16 }
 0x946   : > { %v1639_v24 = vpop.xlane.xlu1 %1638 }
 0x947   : > { %v1642_v27 = vmul.f32 1.442695, %v1640_v21  ;;  %v1641_v28 = vsub.f32 %v1633_v12, %v1639_v24 }
 0x949   : > { %4212 = vpow2.f32 %v1642_v27  ;;  %v1644_v29 = vmul.f32 1.442695, %v1641_v28 }
 0x94a   : > { %v1658_v30 = vpop.permute.xlu1 %1657 }
 0x94b   : > { %4214 = vpow2.f32 %v1644_v29  ;;  %3951 = vmatpush3.bf16.msra.mxu1 %v1658_v30 }
 0x94c   : > { %3964 = vmatprep.subr.bf16.mxu1 %v4313_v17 }
 0x94e   : > { %v1886_v58 = vpop.permute.xlu1 %1885 }
 0x953   : > { %v4213_v31 = vpop.eup %4212 }
 0x954   : > { %v1646_v32 = vsel %vm1079_vm2, %v4213_v31, 0.0 }
 0x955   : > { %v4215_v47 = vpop.eup %4214  ;;  %1647 = vadd.xlane.f32.xlu0 %v1646_v32 }
 0x956   : > { %v1649_v35 = vsel %vm1079_vm2, %v4215_v47, 0.0 }
 0x959   : > { %1650 = vadd.xlane.f32.xlu0 %v1649_v35 }
 0x96f   : > { %1888 = vrot.lane.b32.xlu0 %v4588_v45, %s4315_s18 }
 0x983   : > { %v1572_v37 = vpop.f32.mrb[20].mxu1 }
 0x984   : > { %v4676_v38 = vadd.f32 %v1572_v37, %v4628_v18  ;;  %v3942_v39 = vpop.f32.mrb[21].mxu1 }
 0x985   : > { %v1575_v40 = vpop.f32.mrb[22].mxu1 }
 0x986   : > { %v4679_v41 = vadd.f32 %v1575_v40, %v4630_v26  ;;  %v3943_v42 = vpop.f32.mrb[23].mxu1  ;;  %v1771_v26 = vsel %vm1029_vm1, %v4588_v45, 0 }
 0x9e2   : > { %v1648_v48 = vpop.xlane.xlu0 %1647 }
 0x9e3   : > { %4216 = vrcp.f32 %v1648_v48 }
 0x9e6   : > { %v1651_v49 = vpop.xlane.xlu0 %1650 }
 0x9e7   : > { %4218 = vrcp.f32 %v1651_v49 }
 0x9ea   : > { %v1889_v56 = vpop.permute.xlu0 %1888 }
 0x9eb   : > { %v1894_v57 = vsel %vm1029_vm1, %v1889_v56, 0 }
 0x9ed   : > { %v4217_v50 = vpop.eup %4216 }
 0x9ee   : > { %v1654_v18 = vmul.f32 %v4217_v50, %v4213_v31 }
 0x9f1   : > { %v4219_v51 = vpop.eup %4218 }
 0x9f2   : > { %v1655_v25 = vmul.f32 %v4219_v51, %v4215_v47 }
 0x9f4   : > { %v1656_v54 = vpack.c.bf16 %v1655_v25, %v1654_v18 }
 0x9f6   : > { %3953 = vmatmul.mubr.msk.bf16.vlgmr.msra.gmra.mrb[24].mxu1 %vm1079_vm2, %v1656_v54 }
 0x9f7   : > { %3965 = vmatpush3.bf16.xpose.msra.mxu1 %v1771_v26  ;;  %3966 = vmatprep.mubr.msk.bf16.mxu1 %vm4314_vm0, %v4313_v17 }
 0x9f8   : > { %3976 = vmatprep.subr.bf16.mxu1 %v4313_v17 }
 0x9fe   : > { %3967 = vmatmul.mubr.msk.bf16.vlgmr.msra.gmra.mrb[28].mxu1 %vm1029_vm1, %v4586_v43 }
 0x9ff   : > { %3977 = vmatpush3.bf16.xpose.msra.mxu1 %v1894_v57  ;;  %3978 = vmatprep.mubr.msk.bf16.mxu1 %vm4314_vm0, %v4313_v17 }
 0xa00   : > { %3988 = vmatprep.subr.bf16.mxu1 %v4313_v17 }
 0xa06   : > { %3979 = vmatmul.mubr.msk.bf16.vlgmr.msra.gmra.mrb[32].mxu1 %vm1029_vm1, %v1886_v58 }
 0xa07   : > { %3989 = vmatpush3.bf16.msra.mxu1 %v4594_v53  ;;  %3992 = vmatprep.mubr.msk.bf16.mxu1 %vm4314_vm0, %v4313_v17 }
 0xa08   : > { %3990 = vmatprep.subr.bf16.mxu1 %v4313_v17 }
 0xa0b   : > { %3991 = vmatpush3.bf16.msra.mxu1 %v4598_v23 }
 0xa0c   : > { %4004 = vmatprep.subr.bf16.mxu1 %v4313_v17 }
 0xac9   : > { %v1697_v61 = vpop.f32.mrb[24].mxu1 }
 0xaca   : > { %v3954_v63 = vpop.f32.mrb[25].mxu1 }
 0xacb   : > { %v1700_v0 = vpop.f32.mrb[26].mxu1 }
 0xacc   : > { %v1704_v34 = vpack.c.bf16 %v1700_v0, %v1697_v61  ;;  %v3955_v53 = vpop.f32.mrb[27].mxu1 }
 0xace   : > { %3961 = vmatmul.mubr.msk.bf16.vlgmr.msra.gmra.mrb[28].mxu0 %vm1029_vm1, %v1704_v34 }
 0xacf   : > { %3971 = vmatpush3.bf16.msra.mxu0 %v4557_v46  ;;  %3972 = vmatprep.mubr.msk.bf16.mxu0 %vm4314_vm0, %v4313_v17 }
 0xad0   : > { %3982 = vmatprep.subr.bf16.mxu0 %v4313_v17 }
 0xad1   : > { %v1807_v23 = vpop.f32.mrb[28].mxu1 }
 0xad2   : > { %v1814_v1 = vmul.f32 0.17677669, %v1807_v23  ;;  %v3968_v33 = vpop.f32.mrb[29].mxu1 }
 0xad3   : > { %v1810_v3 = vpop.f32.mrb[30].mxu1 }
 0xad4   : > { %v1815_v4 = vmul.f32 0.17677669, %v1810_v3  ;;  %v3969_v5 = vpop.f32.mrb[31].mxu1  ;;  %v1816_v6 = vsel %vm1079_vm2, %v1814_v1, -inf }
 0xad5   : > { %1817 = vmax.xlane.f32.xlu1 %v1816_v6 }
 0xad6   : > { %v1819_v7 = vsel %vm1079_vm2, %v1815_v4, -inf }
 0xad7   : > { %1820 = vmax.xlane.f32.xlu0 %v1819_v7 }
 0xad9   : > { %v1930_v8 = vpop.f32.mrb[32].mxu1 }
 0xada   : > { %v1937_v9 = vmul.f32 0.17677669, %v1930_v8  ;;  %v3980_v10 = vpop.f32.mrb[33].mxu1 }
 0xadb   : > { %v1933_v11 = vpop.f32.mrb[34].mxu1 }
 0xadc   : > { %v1938_v12 = vmul.f32 0.17677669, %v1933_v11  ;;  %v3981_v13 = vpop.f32.mrb[35].mxu1  ;;  %v1939_v14 = vsel %vm1079_vm2, %v1937_v9, -inf }
 0xadd   : > { %1940 = vmax.xlane.f32.xlu0 %v1939_v14 }
 0xade   : > { %v1942_v15 = vsel %vm1079_vm2, %v1938_v12, -inf }
 0xadf   : > { %1943 = vmax.xlane.f32.xlu1 %v1942_v15 }
 0xb62   : > { %v1818_v16 = vpop.xlane.xlu1 %1817 }
 0xb63   : > { %v1822_v21 = vsub.f32 %v1814_v1, %v1818_v16 }
 0xb64   : > { %v1821_v24 = vpop.xlane.xlu0 %1820 }
 0xb65   : > { %v1824_v27 = vmul.f32 1.442695, %v1822_v21  ;;  %v1823_v28 = vsub.f32 %v1815_v4, %v1821_v24 }
 0xb67   : > { %4220 = vpow2.f32 %v1824_v27  ;;  %v1826_v29 = vmul.f32 1.442695, %v1823_v28 }
 0xb69   : > { %4222 = vpow2.f32 %v1826_v29 }
 0xb6a   : > { %v1941_v30 = vpop.xlane.xlu0 %1940 }
 0xb6b   : > { %v1945_v31 = vsub.f32 %v1937_v9, %v1941_v30 }
 0xb6c   : > { %v1944_v32 = vpop.xlane.xlu1 %1943 }
 0xb6d   : > { %v1947_v47 = vmul.f32 1.442695, %v1945_v31  ;;  %v1946_v35 = vsub.f32 %v1938_v12, %v1944_v32 }
 0xb6f   : > { %4224 = vpow2.f32 %v1947_v47  ;;  %v1949_v37 = vmul.f32 1.442695, %v1946_v35 }
 0xb71   : > { %v4221_v39 = vpop.eup %4220  ;;  %4226 = vpow2.f32 %v1949_v37 }
 0xb72   : > { %v1828_v40 = vsel %vm1079_vm2, %v4221_v39, 0.0 }
 0xb73   : > { %v4223_v42 = vpop.eup %4222  ;;  %1829 = vadd.xlane.f32.xlu0 %v1828_v40 }
 0xb74   : > { %v1831_v48 = vsel %vm1079_vm2, %v4223_v42, 0.0 }
 0xb75   : > { %1832 = vadd.xlane.f32.xlu1 %v1831_v48 }
 0xb79   : > { %v4225_v49 = vpop.eup %4224 }
 0xb7a   : > { %v1951_v50 = vsel %vm1079_vm2, %v4225_v49, 0.0 }
 0xb7b   : > { %v4227_v51 = vpop.eup %4226  ;;  %1952 = vadd.xlane.f32.xlu0 %v1951_v50 }
 0xb7c   : > { %v1954_v18 = vsel %vm1079_vm2, %v4227_v51, 0.0 }
 0xb7d   : > { %1955 = vadd.xlane.f32.xlu1 %v1954_v18 }
 0xb8e   : > { %2101 = vrot.lane.b32.xlu1 %v4588_v45, %s4316_s26 }
 0xb91   : > { %1963 = vrot.lane.b32.xlu0 %v4557_v46, %s4315_s18 }
 0xb92   : > { %2099 = vrot.lane.b32.xlu1 %v4586_v43, %s4316_s26 }
 0xba1   : > { %v1758_v25 = vpop.f32.mrb[28].mxu0 }
 0xba2   : > { %v4730_v54 = vadd.f32 %v1758_v25, %v4676_v38  ;;  %v3962_v26 = vpop.f32.mrb[29].mxu0 }
 0xba3   : > { %v1761_v56 = vpop.f32.mrb[30].mxu0 }
 0xba4   : > { %v4733_v57 = vadd.f32 %v1761_v56, %v4679_v41  ;;  %v3963_v58 = vpop.f32.mrb[31].mxu0 }
 0xc00   : > { %v1830_v61 = vpop.xlane.xlu0 %1829 }
 0xc01   : > { %4228 = vrcp.f32 %v1830_v61 }
 0xc02   : > { %v1833_v63 = vpop.xlane.xlu1 %1832 }
 0xc03   : > { %4230 = vrcp.f32 %v1833_v63 }
 0xc08   : > { %v1953_v0 = vpop.xlane.xlu0 %1952 }
 0xc09   : > { %4232 = vrcp.f32 %v1953_v0 }
 0xc0a   : > { %v1956_v34 = vpop.xlane.xlu1 %1955 }
 0xc0b   : > { %v4229_v53 = vpop.eup %4228  ;;  %4234 = vrcp.f32 %v1956_v34 }
 0xc0c   : > { %v1836_v1 = vmul.f32 %v4229_v53, %v4221_v39  ;;  %v1964_v3 = vpop.permute.xlu0 %1963 }
 0xc0d   : > { %v4231_v23 = vpop.eup %4230 }
 0xc0e   : > { %v1837_v33 = vmul.f32 %v4231_v23, %v4223_v42  ;;  %v2102_v14 = vpop.permute.xlu1 %2101 }
 0xc10   : > { %v1838_v38 = vpack.c.bf16 %v1837_v33, %v1836_v1 }
 0xc12   : > { %3973 = vmatmul.mubr.msk.bf16.vlgmr.msra.gmra.mrb[32].mxu0 %vm1079_vm2, %v1838_v38  ;;  %v2100_v24 = vpop.permute.xlu1 %2099 }
 0xc13   : > { %v4233_v4 = vpop.eup %4232  ;;  %3983 = vmatpush3.bf16.msra.mxu0 %v1964_v3  ;;  %3984 = vmatprep.mubr.msk.bf16.mxu0 %vm4314_vm0, %v4313_v17 }
 0xc14   : > { %3996 = vmatprep.subr.bf16.mxu0 %v4313_v17  ;;  %v1959_v5 = vmul.f32 %v4233_v4, %v4225_v49 }
 0xc15   : > { %v4235_v41 = vpop.eup %4234 }
 0xc16   : > { %v1960_v6 = vmul.f32 %v4235_v41, %v4227_v51 }
 0xc18   : > { %v1961_v7 = vpack.c.bf16 %v1960_v6, %v1959_v5 }
 0xc1a   : > { %3985 = vmatmul.mubr.msk.bf16.vlgmr.msra.gmra.mrb[36].mxu0 %vm1079_vm2, %v1961_v7 }
 0xc1b   : > { %3997 = vmatpush3.bf16.msra.mxu0 %v4605_v60  ;;  %4000 = vmatprep.mubr.msk.bf16.mxu0 %vm4314_vm0, %v4313_v17 }
 0xc1c   : > { %3998 = vmatprep.subr.bf16.mxu0 %v4313_v17 }
 0xc1f   : > { %3999 = vmatpush3.bf16.msra.mxu0 %v4610_v62  ;;  %v2107_v62 = vsel %vm1029_vm1, %v2102_v14, 0 }
 0xc20   : > { %4010 = vmatprep.subr.bf16.mxu0 %v4313_v17 }
 0xce5   : > { %v1876_v8 = vpop.f32.mrb[32].mxu0 }
 0xce6   : > { %v3974_v9 = vpop.f32.mrb[33].mxu0 }
 0xce7   : > { %v1879_v10 = vpop.f32.mrb[34].mxu0 }
 0xce8   : > { %v1883_v11 = vpack.c.bf16 %v1879_v10, %v1876_v8  ;;  %v3975_v12 = vpop.f32.mrb[35].mxu0 }
 0xcea   : > { %4001 = vmatmul.mubr.msk.bf16.vlgmr.msra.gmra.mrb[40].mxu0 %vm1029_vm1, %v1883_v11 }
 0xceb   : > { %4012 = vmatprep.mubr.msk.bf16.mxu0 %vm4314_vm0, %v4313_v17 }
 0xced   : > { %v2003_v60 = vpop.f32.mrb[36].mxu0 }
 0xcee   : > { %v3986_v13 = vpop.f32.mrb[37].mxu0 }
 0xcef   : > { %v2006_v15 = vpop.f32.mrb[38].mxu0 }
 0xcf0   : > { %v2010_v16 = vpack.c.bf16 %v2006_v15, %v2003_v60  ;;  %v3987_v21 = vpop.f32.mrb[39].mxu0 }
 0xcf2   : > { %3993 = vmatmul.mubr.msk.bf16.vlgmr.msra.gmra.mrb[36].mxu1 %vm1029_vm1, %v2010_v16 }
 0xcf3   : > { %4005 = vmatpush3.bf16.xpose.msra.mxu1 %v2107_v62  ;;  %4006 = vmatprep.mubr.msk.bf16.mxu1 %vm4314_vm0, %v4313_v17 }
 0xcf4   : > { %4016 = vmatprep.subr.bf16.mxu1 %v4313_v17 }
 0xcfa   : > { %4007 = vmatmul.mubr.msk.bf16.vlgmr.msra.gmra.mrb[40].mxu1 %vm1029_vm1, %v2100_v24 }
 0xcfb   : > { %4017 = vmatpush3.bf16.msra.mxu1 %v4644_v55  ;;  %4020 = vmatprep.mubr.msk.bf16.mxu1 %vm4314_vm0, %v4313_v17 }
 0xcfc   : > { %4018 = vmatprep.subr.bf16.mxu1 %v4313_v17 }
 0xcff   : > { %4019 = vmatpush3.bf16.msra.mxu1 %v4657_v2 }
 0xd00   : > { %4030 = vmatprep.subr.bf16.mxu1 %v4313_v17 }
 0xdbd   : > { %v2092_v27 = vpop.f32.mrb[40].mxu0 }
 0xdbe   : > { %v4002_v28 = vpop.f32.mrb[41].mxu0 }
 0xdbf   : > { %v2095_v29 = vpop.f32.mrb[42].mxu0 }
 0xdc0   : > { %v4003_v30 = vpop.f32.mrb[43].mxu0 }
 0xdc5   : > { %v2048_v31 = vpop.f32.mrb[36].mxu1 }
 0xdc6   : > { %v4761_v32 = vadd.f32 %v2092_v27, %v2048_v31  ;;  %v3994_v47 = vpop.f32.mrb[37].mxu1 }
 0xdc7   : > { %v2051_v35 = vpop.f32.mrb[38].mxu1 }
 0xdc8   : > { %v4763_v37 = vadd.f32 %v2095_v29, %v2051_v35  ;;  %v3995_v55 = vpop.f32.mrb[39].mxu1  ;;  %v3666_v29 = vld [vmem:[%s5136_s15] ss:$0 sm:$0xff] }
 0xdc9   : > { %v2446_v35 = vadd.f32 %v3666_v29, %v4730_v54 }
 0xdcd   : > { %v2143_v39 = vpop.f32.mrb[40].mxu1 }
 0xdce   : > { %v2150_v40 = vmul.f32 0.17677669, %v2143_v39  ;;  %v4008_v42 = vpop.f32.mrb[41].mxu1  ;;  %v2447_v39 = vadd.f32 %v3666_v29, %v4733_v57 }
 0xdcf   : > { %v2146_v48 = vpop.f32.mrb[42].mxu1 }
 0xdd0   : > { %v2151_v49 = vmul.f32 0.17677669, %v2146_v48  ;;  %v4009_v2 = vpop.f32.mrb[43].mxu1  ;;  %v2152_v50 = vsel %vm1079_vm2, %v2150_v40, -inf  ;;  %v4301_v48 = vld [vmem:[#allocation2 + $0x8] sm:$0xff] }
 0xdd1   : > { %2153 = vmax.xlane.f32.xlu0 %v2152_v50 }
 0xdd2   : > { %v2155_v51 = vsel %vm1079_vm2, %v2151_v49, -inf }
 0xdd3   : > { %2156 = vmax.xlane.f32.xlu1 %v2155_v51 }
 0xde4   : > { %2175 = vrot.lane.b32.xlu1 %v4557_v46, %s4316_s26 }
 0xde8   : > { %2269 = vrot.lane.b32.xlu1 %v4586_v43, %s4317_s22 }
 0xe5e   : > { %v2154_v18 = vpop.xlane.xlu0 %2153 }
 0xe5f   : > { %v2158_v25 = vsub.f32 %v2150_v40, %v2154_v18  ;;  %v4300_v40 = vld [vmem:[#allocation2] sm:$0xff] }
 0xe60   : > { %v2157_v26 = vpop.xlane.xlu1 %2156  ;;  %v2450_v42 = vadd.f32 %v4300_v40, %v2446_v35  ;;  %v4131_v35 = vld [vmem:[%s4454_s5 + $0x6c] ss:$16 sps:$4 sm:$0xff]   ;;  %v4134_v40 = vld [vmem:[%s4454_s5 + $0x84] ss:$16 sps:$4 sm:$0xff]  }
 0xe61   : > { %v2160_v56 = vmul.f32 1.442695, %v2158_v25  ;;  %v2159_v58 = vsub.f32 %v2151_v49, %v2157_v26  ;;  %v2451_v49 = vadd.f32 %v4301_v48, %v2447_v39  ;;  %v4129_v39 = vld [vmem:[%s4454_s5 + $0x68] ss:$16 sps:$4 sm:$0xff]   ;;  %v4132_v48 = vld [vmem:[%s4454_s5 + $0x80] ss:$16 sps:$4 sm:$0xff]  }
 0xe63   : > { %4236 = vpow2.f32 %v2160_v56  ;;  %v2162_v61 = vmul.f32 1.442695, %v2159_v58 }
 0xe64   : > { %v2176_v63 = vpop.permute.xlu1 %2175 }
 0xe65   : > { %4238 = vpow2.f32 %v2162_v61  ;;  %4011 = vmatpush3.bf16.msra.mxu0 %v2176_v63 }
 0xe66   : > { %4024 = vmatprep.subr.bf16.mxu0 %v4313_v17 }
 0xe6d   : > { %v4237_v0 = vpop.eup %4236 }
 0xe6e   : > { %v2164_v34 = vsel %vm1079_vm2, %v4237_v0, 0.0 }
 0xe6f   : > { %v4239_v53 = vpop.eup %4238  ;;  %2165 = vadd.xlane.f32.xlu0 %v2164_v34 }
 0xe70   : > { %v2167_v23 = vsel %vm1079_vm2, %v4239_v53, 0.0 }
 0xe73   : > { %2168 = vadd.xlane.f32.xlu0 %v2167_v23 }
 0xe89   : > { %2271 = vrot.lane.b32.xlu0 %v4588_v45, %s4317_s22  ;;  %v2270_v45 = vpop.permute.xlu1 %2269 }
 0xefc   : > { %v2166_v43 = vpop.xlane.xlu0 %2165 }
 0xefd   : > { %4240 = vrcp.f32 %v2166_v43 }
 0xf00   : > { %v2169_v1 = vpop.xlane.xlu0 %2168 }
 0xf01   : > { %4242 = vrcp.f32 %v2169_v1 }
 0xf04   : > { %v2272_v41 = vpop.permute.xlu0 %2271 }
 0xf05   : > { %v2277_v6 = vsel %vm1029_vm1, %v2272_v41, 0 }
 0xf07   : > { %v4241_v33 = vpop.eup %4240 }
 0xf08   : > { %v2172_v3 = vmul.f32 %v4241_v33, %v4237_v0 }
 0xf0b   : > { %v4243_v38 = vpop.eup %4242 }
 0xf0c   : > { %v2173_v4 = vmul.f32 %v4243_v38, %v4239_v53 }
 0xf0e   : > { %v2174_v5 = vpack.c.bf16 %v2173_v4, %v2172_v3 }
 0xf10   : > { %4013 = vmatmul.mubr.msk.bf16.vlgmr.msra.gmra.mrb[44].mxu0 %vm1079_vm2, %v2174_v5 }
 0xf11   : > { %4025 = vmatpush3.bf16.xpose.msra.mxu0 %v2277_v6  ;;  %4026 = vmatprep.mubr.msk.bf16.mxu0 %vm4314_vm0, %v4313_v17 }
 0xf12   : > { %4036 = vmatprep.subr.bf16.mxu0 %v4313_v17 }
 0xf18   : > { %4027 = vmatmul.mubr.msk.bf16.vlgmr.msra.gmra.mrb[48].mxu0 %vm1029_vm1, %v2270_v45 }
 0xf19   : > { %4037 = vmatpush3.bf16.msra.mxu0 %v4682_v44  ;;  %4040 = vmatprep.mubr.msk.bf16.mxu0 %vm4314_vm0, %v4313_v17 }
 0xf1a   : > { %4038 = vmatprep.subr.bf16.mxu0 %v4313_v17 }
 0xf1d   : > { %4039 = vmatpush3.bf16.msra.mxu0 %v4706_v59 }
 0xfe3   : > { %v2215_v7 = vpop.f32.mrb[44].mxu0 }
 0xfe4   : > { %v4014_v8 = vpop.f32.mrb[45].mxu0 }
 0xfe5   : > { %v2218_v9 = vpop.f32.mrb[46].mxu0 }
 0xfe6   : > { %v2222_v10 = vpack.c.bf16 %v2218_v9, %v2215_v7  ;;  %v4015_v11 = vpop.f32.mrb[47].mxu0  ;;  %v4302_v7 = vld [vmem:[#allocation2 + $0x10] sm:$0xff] }
 0xfe8   : > { %4021 = vmatmul.mubr.msk.bf16.vlgmr.msra.gmra.mrb[44].mxu1 %vm1029_vm1, %v2222_v10 }
 0xfe9   : > { %4032 = vmatprep.mubr.msk.bf16.mxu1 %vm4314_vm0, %v4313_v17 }
 0xfeb   : > { %v2313_v12 = vpop.f32.mrb[48].mxu0 }
 0xfec   : > { %v2320_v60 = vmul.f32 0.17677669, %v2313_v12  ;;  %v4028_v44 = vpop.f32.mrb[49].mxu0  ;;  %v4303_v12 = vld [vmem:[#allocation2 + $0x18] sm:$0xff] }
 0xfed   : > { %v2316_v13 = vpop.f32.mrb[50].mxu0 }
 0xfee   : > { %v2321_v14 = vmul.f32 0.17677669, %v2316_v13  ;;  %v4029_v15 = vpop.f32.mrb[51].mxu0  ;;  %v2322_v16 = vsel %vm1079_vm2, %v2320_v60, -inf }
 0xfef   : > { %2323 = vmax.xlane.f32.xlu1 %v2322_v16  ;;  %v4108_v15 = vld [vmem:[%s4454_s5] ss:$16 sps:$4 sm:$0xff]   ;;  %v4110_v16 = vld [vmem:[%s4454_s5 + $0x4] ss:$16 sps:$4 sm:$0xff]  }
 0xff0   : > { %v2325_v59 = vsel %vm1079_vm2, %v2321_v14, -inf }
 0xff1   : > { %2326 = vmax.xlane.f32.xlu0 %v2325_v59  ;;  %v4111_v59 = vld [vmem:[%s4454_s5 + $0x8] ss:$16 sps:$4 sm:$0xff]  }
0x107c   : > { %v2324_v21 = vpop.xlane.xlu1 %2323 }
0x107d   : > { %v2328_v62 = vsub.f32 %v2320_v60, %v2324_v21  ;;  %v4113_v21 = vld [vmem:[%s4454_s5 + $0xc] ss:$16 sps:$4 sm:$0xff]  }
0x107e   : > { %v2327_v24 = vpop.xlane.xlu0 %2326  ;;  %2790 = vmatprep.subr.bf16.mxu0 %v4113_v21  ;;  %v4161_v21 = vld [vmem:[%s4465_s2 + $0xc8] sm:$0xff]  }
0x107f   : > { %v2330_v27 = vmul.f32 1.442695, %v2328_v62  ;;  %v2329_v28 = vsub.f32 %v2321_v14, %v2327_v24  ;;  %v4114_v62 = vld [vmem:[%s4454_s5 + $0x20] ss:$16 sps:$4 sm:$0xff]   ;;  %v4116_v24 = vld [vmem:[%s4454_s5 + $0x24] ss:$16 sps:$4 sm:$0xff]  }
0x1081   : > { %4244 = vpow2.f32 %v2330_v27  ;;  %v2332_v17 = vmul.f32 1.442695, %v2329_v28  ;;  %v4117_v27 = vld [vmem:[%s4454_s5 + $0x28] ss:$16 sps:$4 sm:$0xff]   ;;  %v4119_v28 = vld [vmem:[%s4454_s5 + $0x2c] ss:$16 sps:$4 sm:$0xff]  }
0x1083   : > { %4246 = vpow2.f32 %v2332_v17  ;;  %v4122_v17 = vld [vmem:[%s4454_s5 + $0x44] ss:$16 sps:$4 sm:$0xff]  }
0x108b   : > { %v4245_v30 = vpop.eup %4244 }
0x108c   : > { %v2334_v31 = vsel %vm1079_vm2, %v4245_v30, 0.0 }
0x108d   : > { %v4247_v47 = vpop.eup %4246  ;;  %2335 = vadd.xlane.f32.xlu0 %v2334_v31  ;;  %v4123_v31 = vld [vmem:[%s4454_s5 + $0x48] ss:$16 sps:$4 sm:$0xff]  }
0x108e   : > { %v2337_v55 = vsel %vm1079_vm2, %v4247_v47, 0.0 }
0x108f   : > { %2338 = vadd.xlane.f32.xlu1 %v2337_v55  ;;  %v4126_v55 = vld [vmem:[%s4454_s5 + $0x60] ss:$16 sps:$4 sm:$0xff]  }
0x1093   : > { %2454 = vadd.xlane.f32.xlu1 %v2450_v42 }
0x1097   : > { %2456 = vadd.xlane.f32.xlu1 %v2451_v49 }
0x10a3   : > { %2345 = vrot.lane.b32.xlu0 %v4557_v46, %s4317_s22  ;;  %s5141_s22 = scalar_lea.vmem %s5117_s10, %s4410_s20 }
0x10bb   : > { %v2260_v2 = vpop.f32.mrb[44].mxu1 }
0x10bc   : > { %v2267_v50 = vadd.f32 %v2260_v2, %v4761_v32  ;;  %v4022_v51 = vpop.f32.mrb[45].mxu1  ;;  %v4140_v2 = vld [vmem:[%s4454_s5 + $0xa4] ss:$16 sps:$4 sm:$0xff]  }
0x10bd   : > { %v2263_v54 = vpop.f32.mrb[46].mxu1  ;;  %v4138_v51 = vld [vmem:[%s4454_s5 + $0xa0] ss:$16 sps:$4 sm:$0xff]  }
0x10be   : > { %v2268_v18 = vadd.f32 %v2263_v54, %v4763_v37  ;;  %v4023_v25 = vpop.f32.mrb[47].mxu1  ;;  %v4141_v54 = vld [vmem:[%s4454_s5 + $0xa8] ss:$16 sps:$4 sm:$0xff]  }
0x10bf   : > { %v4149_v25 = vld [vmem:[%s4454_s5 + $0xcc] ss:$16 sps:$4 sm:$0xff]  }
0x111a   : > { %v2336_v26 = vpop.xlane.xlu0 %2335 }
0x111b   : > { %4248 = vrcp.f32 %v2336_v26  ;;  %v4144_v26 = vld [vmem:[%s4454_s5 + $0xc0] ss:$16 sps:$4 sm:$0xff]  }
0x111c   : > { %v2339_v57 = vpop.xlane.xlu1 %2338 }
0x111d   : > { %4250 = vrcp.f32 %v2339_v57  ;;  %v4147_v57 = vld [vmem:[%s4454_s5 + $0xc8] ss:$16 sps:$4 sm:$0xff]  }
0x111e   : > { %v2346_v56 = vpop.permute.xlu0 %2345 }
0x111f   : > { %4031 = vmatpush3.bf16.msra.mxu1 %v2346_v56  ;;  %v4152_v56 = vld [vmem:[%s4454_s5 + $0xe4] ss:$16 sps:$4 sm:$0xff]  }
0x1120   : > { %v2455_v43 = vpop.xlane.xlu1 %2454  ;;  %2737 = vmatprep.subr.bf16.mxu1 %v4110_v16  ;;  %v4159_v16 = vld [vmem:[%s4465_s2 + $0x80] sm:$0xff]  }
0x1121   : > { %v2463_v6 = vmul.f32 0.0078125, %v2455_v43 }
0x1123   : > { %v4812_v10 = vsub.f32 %v2450_v42, %v2463_v6  ;;  %v4137_v42 = vld [vmem:[%s4454_s5 + $0x8c] ss:$16 sps:$4 sm:$0xff]  }
0x1124   : > { %v2457_v9 = vpop.xlane.xlu1 %2456 }
0x1125   : > { %v4249_v58 = vpop.eup %4248  ;;  %v2464_v11 = vmul.f32 0.0078125, %v2457_v9  ;;  %v2471_v13 = vmul.f32 %v4812_v10, %v4812_v10 }
0x1126   : > { %v2342_v63 = vmul.f32 %v4249_v58, %v4245_v30  ;;  %v4120_v30 = vld [vmem:[%s4454_s5 + $0x40] ss:$16 sps:$4 sm:$0xff]   ;;  %v4155_v58 = vld [vmem:[%s4454_s5 + $0xec] ss:$16 sps:$4 sm:$0xff]  }
0x1127   : > { %v4251_v61 = vpop.eup %4250  ;;  %v4817_v44 = vsub.f32 %v2451_v49, %v2464_v11  ;;  %v4135_v49 = vld [vmem:[%s4454_s5 + $0x88] ss:$16 sps:$4 sm:$0xff]   ;;  %v4880_v11 = vld [vmem:[%s5140_s28] ss:$0 sm:$0xff] }
0x1128   : > { %v2343_v0 = vmul.f32 %v4251_v61, %v4247_v47  ;;  %v4128_v47 = vld [vmem:[%s4454_s5 + $0x64] ss:$16 sps:$4 sm:$0xff]   ;;  %v4150_v61 = vld [vmem:[%s4454_s5 + $0xe0] ss:$16 sps:$4 sm:$0xff]  }
0x1129   : > { %v2472_v14 = vmul.f32 %v4817_v44, %v4817_v44 }
0x112a   : > { %v2344_v34 = vpack.c.bf16 %v2343_v0, %v2342_v63  ;;  %v4153_v63 = vld [vmem:[%s4454_s5 + $0xe8] ss:$16 sps:$4 sm:$0xff]  }
0x112c   : > { %4033 = vmatmul.mubr.msk.bf16.vlgmr.msra.gmra.mrb[48].mxu1 %vm1079_vm2, %v2344_v34 }
0x112d   : > { %2769 = vmatprep.mubr.bf16.mxu1 %v4312_v52  ;;  %2738 = vmatpush1.bf16.msra.mxu1 %v4108_v15  ;;  %v4158_v15 = vld [vmem:[%s4465_s2] sm:$0xff]  }
0x112e   : > { %2739 = vmatprep.subr.bf16.mxu1 %v4116_v24  ;;  %v4163_v24 = vld [vmem:[%s4465_s2 + $0x88] sm:$0xff]  }
0x1131   : > { %2740 = vmatpush1.bf16.msra.mxu1 %v4114_v62  ;;  %v4162_v62 = vld [vmem:[%s4465_s2 + $0x8] sm:$0xff]  }
0x1132   : > { %2741 = vmatprep.subr.bf16.mxu1 %v4122_v17  ;;  %v4167_v17 = vld [vmem:[%s4465_s2 + $0x90] sm:$0xff]  }
0x1135   : > { %2742 = vmatpush1.bf16.msra.mxu1 %v4120_v30  ;;  %v4169_v30 = vld [vmem:[%s4465_s2 + $0xd8] sm:$0xff]  }
0x1136   : > { %2743 = vmatprep.subr.bf16.mxu1 %v4128_v47  ;;  %v4171_v47 = vld [vmem:[%s4465_s2 + $0x98] sm:$0xff]  }
0x1139   : > { %2744 = vmatpush1.bf16.msra.mxu1 %v4126_v55  ;;  %v4173_v55 = vld [vmem:[%s4465_s2 + $0xe0] sm:$0xff]  }
0x113a   : > { %2745 = vmatprep.subr.bf16.mxu1 %v4134_v40  ;;  %v4175_v40 = vld [vmem:[%s4465_s2 + $0xa0] sm:$0xff]  }
0x113d   : > { %2746 = vmatpush1.bf16.msra.mxu1 %v4132_v48  ;;  %v4177_v48 = vld [vmem:[%s4465_s2 + $0xe8] sm:$0xff]  }
0x113e   : > { %2747 = vmatprep.subr.bf16.mxu1 %v4140_v2  ;;  %v4179_v2 = vld [vmem:[%s4465_s2 + $0xa8] sm:$0xff]  }
0x1141   : > { %2748 = vmatpush1.bf16.msra.mxu1 %v4138_v51 }
0x11ff   : > { %v2385_v46 = vpop.f32.mrb[48].mxu1 }
0x1200   : > { %v4034_v32 = vpop.f32.mrb[49].mxu1 }
0x1201   : > { %v2388_v53 = vpop.f32.mrb[50].mxu1 }
0x1202   : > { %v2392_v37 = vpack.c.bf16 %v2388_v53, %v2385_v46  ;;  %v4035_v23 = vpop.f32.mrb[51].mxu1 }
0x1204   : > { %4041 = vmatmul.mubr.msk.bf16.vlgmr.msra.gmra.mrb[52].mxu0 %vm1029_vm1, %v2392_v37 }
0x1205   : > { %2822 = vmatprep.mubr.bf16.mxu0 %v4312_v52  ;;  %2791 = vmatpush1.bf16.msra.mxu0 %v4111_v59  ;;  %v4160_v59 = vld [vmem:[%s4465_s2 + $0x48] sm:$0xff]  }
0x1206   : > { %2792 = vmatprep.subr.bf16.mxu0 %v4119_v28  ;;  %v4166_v28 = vld [vmem:[%s4465_s2 + $0x10] sm:$0xff]  }
0x1209   : > { %2793 = vmatpush1.bf16.msra.mxu0 %v4117_v27  ;;  %v4165_v27 = vld [vmem:[%s4465_s2 + $0xd0] sm:$0xff]  }
0x12d7   : > { %v2430_v1 = vpop.f32.mrb[52].mxu0 }
0x12d8   : > { %v2437_v33 = vadd.f32 %v2430_v1, %v2267_v50  ;;  %v4042_v38 = vpop.f32.mrb[53].mxu0  ;;  %v4143_v50 = vld [vmem:[%s4454_s5 + $0xac] ss:$16 sps:$4 sm:$0xff]  }
0x12d9   : > { %v2433_v3 = vpop.f32.mrb[54].mxu0 }
0x12da   : > { %v2448_v4 = vadd.f32 %v3666_v29, %v2437_v33  ;;  %v2438_v41 = vadd.f32 %v2433_v3, %v2268_v18  ;;  %v4043_v5 = vpop.f32.mrb[55].mxu0  ;;  %v4146_v18 = vld [vmem:[%s4454_s5 + $0xc4] ss:$16 sps:$4 sm:$0xff]  }
0x12db   : > { %2749 = vmatprep.subr.bf16.mxu1 %v4146_v18  ;;  %v4181_v18 = vld [vmem:[%s4465_s2 + $0xf0] sm:$0xff]  }
0x12dc   : > { %v2449_v45 = vadd.f32 %v3666_v29, %v2438_v41  ;;  %v4809_v8 = vadd.f32 %v4302_v7, %v2448_v4  ;;  %v4125_v29 = vld [vmem:[%s4454_s5 + $0x4c] ss:$16 sps:$4 sm:$0xff]   ;;  %2750 = vmatpush1.bf16.msra.mxu1 %v4144_v26  ;;  %v4183_v26 = vld [vmem:[%s4465_s2 + $0xb0] sm:$0xff]  }
0x12dd   : > { %2794 = vmatprep.subr.bf16.mxu0 %v4125_v29  ;;  %2751 = vmatprep.subr.bf16.mxu1 %v4152_v56  ;;  %v4168_v29 = vld [vmem:[%s4465_s2 + $0x58] sm:$0xff]  }
0x12de   : > { %2458 = vadd.xlane.f32.xlu1 %v4809_v8  ;;  %v4814_v60 = vadd.f32 %v4303_v12, %v2449_v45  ;;  %2795 = vmatpush1.bf16.msra.mxu0 %v4123_v31  ;;  %v4871_v45 = vld [vmem:[%s5138_s24] ss:$0 sm:$0xff]  ;;  %v4170_v31 = vld [vmem:[%s4465_s2 + $0x18] sm:$0xff]  }
0x12df   : > { %2796 = vmatprep.subr.bf16.mxu0 %v4131_v35  ;;  %v4172_v35 = vld [vmem:[%s4465_s2 + $0x60] sm:$0xff]  }
0x12e0   : > { %2752 = vmatpush1.bf16.msra.mxu1 %v4150_v61  ;;  %v4184_v61 = vld [vmem:[%s4465_s2 + $0x78] sm:$0xff]  }
0x12e2   : > { %2460 = vadd.xlane.f32.xlu1 %v4814_v60  ;;  %2797 = vmatpush1.bf16.msra.mxu0 %v4129_v39  ;;  %v4174_v39 = vld [vmem:[%s4465_s2 + $0x20] sm:$0xff]  }
0x12e3   : > { %2798 = vmatprep.subr.bf16.mxu0 %v4137_v42  ;;  %v4176_v42 = vld [vmem:[%s4465_s2 + $0x68] sm:$0xff]  }
0x12e6   : > { %2475 = vadd.xlane.f32.xlu1 %v2471_v13  ;;  %2799 = vmatpush1.bf16.msra.mxu0 %v4135_v49  ;;  %v4156_v13 = vld [vmem:[%s4465_s2 + $0x40] sm:$0xff]   ;;  %v4178_v49 = vld [vmem:[%s4465_s2 + $0x28] sm:$0xff]  }
0x12e7   : > { %2800 = vmatprep.subr.bf16.mxu0 %v4143_v50  ;;  %3808 = vmatprep.subr.bf16.mxu1 %v4156_v13 }
0x12ea   : > { %2477 = vadd.xlane.f32.xlu1 %v2472_v14  ;;  %2801 = vmatpush1.bf16.msra.mxu0 %v4141_v54  ;;  %v4157_v14 = vld [vmem:[%s4465_s2 + $0xc0] sm:$0xff]   ;;  %v4180_v54 = vld [vmem:[%s4465_s2 + $0x70] sm:$0xff]  }
0x12eb   : > { %2802 = vmatprep.subr.bf16.mxu0 %v4149_v25  ;;  %v4182_v25 = vld [vmem:[%s4465_s2 + $0x30] sm:$0xff]  }
0x12ee   : > { %2803 = vmatpush1.bf16.msra.mxu0 %v4147_v57 }
0x12ef   : > { %2804 = vmatprep.subr.bf16.mxu0 %v4155_v58 }
0x12f2   : > { %2805 = vmatpush1.bf16.msra.mxu0 %v4153_v63  ;;  %v4185_v63 = vld [vmem:[%s4465_s2 + $0xf8] sm:$0xff]  }
0x12f3   : > { %3836 = vmatprep.subr.bf16.mxu0 %v4157_v14 }
0x136b   : > { %v2459_v0 = vpop.xlane.xlu1 %2458 }
0x136c   : > { %v2465_v34 = vmul.f32 0.0078125, %v2459_v0  ;;  %v4186_v0 = vld [vmem:[%s4465_s2 + $0x38] sm:$0xff]  }
0x136e   : > { %v4856_v46 = vsub.f32 %v4809_v8, %v2465_v34  ;;  %v4187_v34 = vld [vmem:[%s4465_s2 + $0xb8] sm:$0xff]  }
0x136f   : > { %v2461_v32 = vpop.xlane.xlu1 %2460 }
0x1370   : > { %v2466_v53 = vmul.f32 0.0078125, %v2461_v32  ;;  %v2473_v37 = vmul.f32 %v4856_v46, %v4856_v46 }
0x1372   : > { %v4861_v23 = vsub.f32 %v4814_v60, %v2466_v53  ;;  %2479 = vadd.xlane.f32.xlu0 %v2473_v37 }
0x1373   : > { %v2476_v43 = vpop.xlane.xlu1 %2475 }
0x1374   : > { %v2483_v1 = vmul.f32 0.0078125, %v2476_v43  ;;  %v2474_v33 = vmul.f32 %v4861_v23, %v4861_v23 }
0x1376   : > { %v2487_v38 = vadd.f32 1e-12, %v2483_v1  ;;  %2481 = vadd.xlane.f32.xlu1 %v2474_v33 }
0x1377   : > { %v2478_v3 = vpop.xlane.xlu1 %2477 }
0x1378   : > { %4252 = vrsqrt.f32 %v2487_v38  ;;  %v2484_v4 = vmul.f32 0.0078125, %v2478_v3 }
0x137a   : > { %v2488_v41 = vadd.f32 1e-12, %v2484_v4 }
0x137c   : > { %4254 = vrsqrt.f32 %v2488_v41 }
0x1382   : > { %v4253_v5 = vpop.eup %4252 }
0x1383   : > { %v2495_v6 = vmul.f32 %v4253_v5, %v4812_v10  ;;  %v2555_v5 = vld [vmem:[%s4460_s29] sm:$0xf] }
0x1385   : > { %v2506_v9 = vmul.f32 %v4871_v45, %v2495_v6  ;;  %v4945_v6 = vrot.slane %v2555_v5, %v788_v36 }
0x1386   : > { %v4255_v7 = vpop.eup %4254 }
0x1387   : > { %v2496_v8 = vmul.f32 %v4255_v7, %v4817_v44  ;;  %v4884_v12 = vadd.f32 %v4880_v11, %v2506_v9 }
0x1389   : > { %v2507_v10 = vmul.f32 %v4871_v45, %v2496_v8 }
0x138b   : > { %v4887_v60 = vadd.f32 %v4880_v11, %v2507_v10 }
0x138d   : > { %v2521_v44 = vpack.c.bf16 %v4887_v60, %v4884_v12 }
0x138f   : > { %2770 = vmatmul.mubr.bf16.vlgmr.msra.gmra.mrb[52].mxu1 %v2521_v44  ;;  %2823 = vmatmul.mubr.bf16.vlgmr.msra.gmra.mrb[56].mxu0 %v2521_v44 }
0x1390   : > { %2779 = vmatprep.mubr.bf16.mxu1 %v4312_v52  ;;  %2832 = vmatprep.mubr.bf16.mxu0 %v4312_v52  ;;  %v4164_v52 = vld [vmem:[%s4465_s2 + $0x50] sm:$0xff]  }
0x1391   : > { %3809 = vmatpush3.bf16.msra.mxu1 %v4158_v15  ;;  %3837 = vmatpush3.bf16.msra.mxu0 %v4159_v16 }
0x1392   : > { %3810 = vmatprep.subr.bf16.mxu1 %v4160_v59  ;;  %3838 = vmatprep.subr.bf16.mxu0 %v4161_v21 }
0x1395   : > { %3811 = vmatpush3.bf16.msra.mxu1 %v4162_v62  ;;  %3839 = vmatpush3.bf16.msra.mxu0 %v4163_v24 }
0x1396   : > { %3812 = vmatprep.subr.bf16.mxu1 %v4164_v52  ;;  %3840 = vmatprep.subr.bf16.mxu0 %v4165_v27 }
0x1399   : > { %3813 = vmatpush3.bf16.msra.mxu1 %v4166_v28  ;;  %3841 = vmatpush3.bf16.msra.mxu0 %v4167_v17 }
0x139a   : > { %3814 = vmatprep.subr.bf16.mxu1 %v4168_v29  ;;  %3842 = vmatprep.subr.bf16.mxu0 %v4169_v30 }
0x139d   : > { %3815 = vmatpush3.bf16.msra.mxu1 %v4170_v31  ;;  %3843 = vmatpush3.bf16.msra.mxu0 %v4171_v47 }
0x139e   : > { %3816 = vmatprep.subr.bf16.mxu1 %v4172_v35  ;;  %3844 = vmatprep.subr.bf16.mxu0 %v4173_v55 }
0x13a1   : > { %3817 = vmatpush3.bf16.msra.mxu1 %v4174_v39  ;;  %3845 = vmatpush3.bf16.msra.mxu0 %v4175_v40 }
0x13a2   : > { %3818 = vmatprep.subr.bf16.mxu1 %v4176_v42  ;;  %3846 = vmatprep.subr.bf16.mxu0 %v4177_v48 }
0x13a5   : > { %3819 = vmatpush3.bf16.msra.mxu1 %v4178_v49  ;;  %3847 = vmatpush3.bf16.msra.mxu0 %v4179_v2 }
0x13a6   : > { %3820 = vmatprep.subr.bf16.mxu1 %v4180_v54  ;;  %3848 = vmatprep.subr.bf16.mxu0 %v4181_v18 }
0x13a9   : > { %3821 = vmatpush3.bf16.msra.mxu1 %v4182_v25  ;;  %3849 = vmatpush3.bf16.msra.mxu0 %v4183_v26 }
0x13aa   : > { %3822 = vmatprep.subr.bf16.mxu1 %v4184_v61  ;;  %3850 = vmatprep.subr.bf16.mxu0 %v4185_v63 }
0x13ad   : > { %3823 = vmatpush3.bf16.msra.mxu1 %v4186_v0  ;;  %3851 = vmatpush3.bf16.msra.mxu0 %v4187_v34 }
0x13ff   : > { %v2480_v50 = vpop.xlane.xlu0 %2479 }
0x1400   : > { %v2485_v51 = vmul.f32 0.0078125, %v2480_v50 }
0x1402   : > { %v2489_v57 = vadd.f32 1e-12, %v2485_v51 }
0x1403   : > { %v2482_v56 = vpop.xlane.xlu1 %2481 }
0x1404   : > { %4256 = vrsqrt.f32 %v2489_v57  ;;  %v2486_v58 = vmul.f32 0.0078125, %v2482_v56 }
0x1406   : > { %v2490_v32 = vadd.f32 1e-12, %v2486_v58 }
0x1408   : > { %4258 = vrsqrt.f32 %v2490_v32 }
0x140e   : > { %v4257_v53 = vpop.eup %4256 }
0x140f   : > { %v2497_v37 = vmul.f32 %v4257_v53, %v4856_v46  ;;  %v2571_v46 = vsub.s32 3, %v4522_v19 }
0x1411   : > { %v2508_v33 = vmul.f32 %v4871_v45, %v2497_v37  ;;  %v4951_v7 = vrot.slane %v2555_v5, %v2571_v46 }
0x1412   : > { %v4259_v43 = vpop.eup %4258 }
0x1413   : > { %v2498_v1 = vmul.f32 %v4259_v43, %v4861_v23  ;;  %v4930_v3 = vadd.f32 %v4880_v11, %v2508_v33  ;;  %v4941_v23 = vrot.slane %v2555_v5, %v780_v20 }
0x1415   : > { %v2509_v38 = vmul.f32 %v4871_v45, %v2498_v1  ;;  %v4949_v45 = vrot.slane %v2555_v5, %v784_v22 }
0x1417   : > { %v4933_v4 = vadd.f32 %v4880_v11, %v2509_v38 }
0x1419   : > { %v2522_v41 = vpack.c.bf16 %v4933_v4, %v4930_v3 }
0x141b   : > { %2780 = vmatmul.mubr.bf16.gmra.mrb[56].mxu1 %v2522_v41  ;;  %2833 = vmatmul.mubr.bf16.gmra.mrb[60].mxu0 %v2522_v41 }
0x1462   : > { %v2771_v8 = vpop.f32.mrb[52].mxu1  ;;  %v2824_v9 = vpop.f32.mrb[56].mxu0 }
0x1463   : > { %v4954_v11 = vadd.f32 %v2771_v8, %v4941_v23  ;;  %v4957_v10 = vadd.f32 %v2824_v9, %v4945_v6  ;;  %v2773_v20 = vpop.f32.mrb[53].mxu1  ;;  %v2826_v44 = vpop.f32.mrb[57].mxu0 }
0x1464   : > { %v4960_v13 = vadd.f32 %v2773_v20, %v4949_v45  ;;  %v4963_v36 = vadd.f32 %v2826_v44, %v4951_v7  ;;  %v2775_v19 = vpop.f32.mrb[54].mxu1  ;;  %v2828_v22 = vpop.f32.mrb[58].mxu0 }
0x1465   : > { %v2843_v14 = vmul.f32 %v4954_v11, %v4954_v11  ;;  %v2845_v15 = vmul.f32 %v4957_v10, %v4957_v10  ;;  %v4970_v16 = vadd.f32 %v2775_v19, %v4941_v23  ;;  %v4973_v59 = vadd.f32 %v2828_v22, %v4945_v6  ;;  %v2777_v21 = vpop.f32.mrb[55].mxu1  ;;  %v2830_v62 = vpop.f32.mrb[59].mxu0 }
0x1466   : > { %v2844_v24 = vmul.f32 %v4960_v13, %v4960_v13  ;;  %v2846_v52 = vmul.f32 %v4963_v36, %v4963_v36  ;;  %v4980_v27 = vadd.f32 %v2777_v21, %v4949_v45  ;;  %v4983_v28 = vadd.f32 %v2830_v62, %v4951_v7 }
0x1467   : > { %v2859_v17 = vmul.f32 %v2843_v14, %v4954_v11  ;;  %v2861_v29 = vmul.f32 %v2845_v15, %v4957_v10  ;;  %v2847_v30 = vmul.f32 %v4970_v16, %v4970_v16  ;;  %v2849_v31 = vmul.f32 %v4973_v59, %v4973_v59 }
0x1468   : > { %v2860_v47 = vmul.f32 %v2844_v24, %v4960_v13  ;;  %v2862_v35 = vmul.f32 %v2846_v52, %v4963_v36  ;;  %v2848_v55 = vmul.f32 %v4980_v27, %v4980_v27  ;;  %v2850_v39 = vmul.f32 %v4983_v28, %v4983_v28 }
0x1469   : > { %v2875_v40 = vmul.f32 0.044715, %v2859_v17  ;;  %v2877_v42 = vmul.f32 0.044715, %v2861_v29  ;;  %v2863_v48 = vmul.f32 %v2847_v30, %v4970_v16  ;;  %v2865_v49 = vmul.f32 %v2849_v31, %v4973_v59 }
0x146a   : > { %v2876_v2 = vmul.f32 0.044715, %v2860_v47  ;;  %v2878_v50 = vmul.f32 0.044715, %v2862_v35  ;;  %v2864_v51 = vmul.f32 %v2848_v55, %v4980_v27  ;;  %v2866_v54 = vmul.f32 %v2850_v39, %v4983_v28 }
0x146b   : > { %v2891_v18 = vadd.f32 %v2875_v40, %v4954_v11  ;;  %v2893_v25 = vadd.f32 %v2877_v42, %v4957_v10  ;;  %v2879_v26 = vmul.f32 0.044715, %v2863_v48  ;;  %v2881_v57 = vmul.f32 0.044715, %v2865_v49 }
0x146c   : > { %v2892_v56 = vadd.f32 %v2876_v2, %v4960_v13  ;;  %v2894_v58 = vadd.f32 %v2878_v50, %v4963_v36  ;;  %v2880_v61 = vmul.f32 0.044715, %v2864_v51  ;;  %v2882_v63 = vmul.f32 0.044715, %v2866_v54 }
0x146d   : > { %v2907_v0 = vmul.f32 0.7978846, %v2891_v18  ;;  %v2909_v34 = vmul.f32 0.7978846, %v2893_v25  ;;  %v2895_v32 = vadd.f32 %v2879_v26, %v4970_v16  ;;  %v2897_v53 = vadd.f32 %v2881_v57, %v4973_v59 }
0x146e   : > { %v2908_v37 = vmul.f32 0.7978846, %v2892_v56  ;;  %v2910_v43 = vmul.f32 0.7978846, %v2894_v58  ;;  %v2896_v1 = vadd.f32 %v2880_v61, %v4980_v27  ;;  %v2898_v33 = vadd.f32 %v2882_v63, %v4983_v28 }
0x146f   : > { %4260 = vtanh.f32 %v2907_v0  ;;  %v2911_v38 = vmul.f32 0.7978846, %v2895_v32  ;;  %v2913_v41 = vmul.f32 0.7978846, %v2897_v53 }
0x1470   : > { %4262 = vtanh.f32 %v2909_v34  ;;  %v2912_v5 = vmul.f32 0.7978846, %v2896_v1  ;;  %v2914_v46 = vmul.f32 0.7978846, %v2898_v33 }
0x1471   : > { %4264 = vtanh.f32 %v2908_v37 }
0x1472   : > { %4266 = vtanh.f32 %v2910_v43 }
0x1473   : > { %4268 = vtanh.f32 %v2911_v38 }
0x1474   : > { %4270 = vtanh.f32 %v2913_v41 }
0x1475   : > { %4272 = vtanh.f32 %v2912_v5 }
0x1476   : > { %4274 = vtanh.f32 %v2914_v46 }
0x1479   : > { %v4261_v8 = vpop.eup %4260 }
0x147a   : > { %v4263_v9 = vpop.eup %4262  ;;  %v2939_v20 = vadd.f32 1.0, %v4261_v8 }
0x147b   : > { %v4265_v44 = vpop.eup %4264  ;;  %v2941_v19 = vadd.f32 1.0, %v4263_v9 }
0x147c   : > { %v4267_v22 = vpop.eup %4266  ;;  %v2940_v14 = vadd.f32 1.0, %v4265_v44  ;;  %v2955_v24 = vmul.f32 0.5, %v2939_v20 }
0x147d   : > { %v4269_v15 = vpop.eup %4268  ;;  %v2942_v21 = vadd.f32 1.0, %v4267_v22  ;;  %v2957_v29 = vmul.f32 0.5, %v2941_v19 }
0x147e   : > { %v4271_v62 = vpop.eup %4270  ;;  %v2943_v52 = vadd.f32 1.0, %v4269_v15  ;;  %v2956_v55 = vmul.f32 0.5, %v2940_v14  ;;  %v2971_v48 = vmul.f32 %v2955_v24, %v4954_v11 }
0x147f   : > { %v4273_v17 = vpop.eup %4272  ;;  %v2945_v30 = vadd.f32 1.0, %v4271_v62  ;;  %v2958_v42 = vmul.f32 0.5, %v2942_v21  ;;  %v2973_v50 = vmul.f32 %v2957_v29, %v4957_v10 }
0x1480   : > { %v4275_v31 = vpop.eup %4274  ;;  %v2959_v47 = vmul.f32 0.5, %v2943_v52  ;;  %v2944_v35 = vadd.f32 1.0, %v4273_v17  ;;  %v2972_v25 = vmul.f32 %v2956_v55, %v4960_v13 }
0x1481   : > { %v2961_v39 = vmul.f32 0.5, %v2945_v30  ;;  %v2946_v40 = vadd.f32 1.0, %v4275_v31  ;;  %v2974_v56 = vmul.f32 %v2958_v42, %v4963_v36 }
0x1482   : > { %v2975_v49 = vmul.f32 %v2959_v47, %v4970_v16  ;;  %v2960_v2 = vmul.f32 0.5, %v2944_v35 }
0x1483   : > { %v2977_v51 = vmul.f32 %v2961_v39, %v4973_v59  ;;  %v2962_v54 = vmul.f32 0.5, %v2946_v40 }
0x1484   : > { %v2987_v18 = vpack.c.bf16 %v2975_v49, %v2971_v48  ;;  %v2976_v26 = vmul.f32 %v2960_v2, %v4980_v27 }
0x1485   : > { %v2989_v57 = vpack.c.bf16 %v2977_v51, %v2973_v50  ;;  %v2978_v58 = vmul.f32 %v2962_v54, %v4983_v28 }
0x1486   : > { %v2988_v61 = vpack.c.bf16 %v2976_v26, %v2972_v25 }
0x1487   : > { %v2990_v11 = vpack.c.bf16 %v2978_v58, %v2974_v56 }
0x1488   : > { %3290 = vmatprep.mubr.bf16.mxu1 %v2988_v61 }
0x1489   : > { %3339 = vmatprep.mubr.bf16.mxu0 %v2990_v11  ;;  %3291 = vmatmul.mubr.bf16.vlgmr.msra.gmra.mrb[60].mxu1 %v2987_v18 }
0x148a   : > { %3340 = vmatmul.mubr.bf16.vlgmr.msra.gmra.mrb[64].mxu0 %v2989_v57 }
0x14ee   : > { %v2781_v10 = vpop.f32.mrb[56].mxu1  ;;  %v2834_v16 = vpop.f32.mrb[60].mxu0 }
0x14ef   : > { %v5018_v59 = vadd.f32 %v2781_v10, %v4941_v23  ;;  %v5021_v13 = vadd.f32 %v2834_v16, %v4945_v6  ;;  %v2783_v27 = vpop.f32.mrb[57].mxu1  ;;  %v2836_v63 = vpop.f32.mrb[61].mxu0 }
0x14f0   : > { %v5024_v36 = vadd.f32 %v2783_v27, %v4949_v45  ;;  %v5027_v28 = vadd.f32 %v2836_v63, %v4951_v7  ;;  %v2785_v0 = vpop.f32.mrb[58].mxu1  ;;  %v2838_v34 = vpop.f32.mrb[62].mxu0 }
0x14f1   : > { %v2851_v32 = vmul.f32 %v5018_v59, %v5018_v59  ;;  %v2853_v53 = vmul.f32 %v5021_v13, %v5021_v13  ;;  %v5034_v37 = vadd.f32 %v2785_v0, %v4941_v23  ;;  %v5037_v43 = vadd.f32 %v2838_v34, %v4945_v6  ;;  %v2787_v1 = vpop.f32.mrb[59].mxu1  ;;  %v2840_v33 = vpop.f32.mrb[63].mxu0 }
0x14f2   : > { %v2852_v38 = vmul.f32 %v5024_v36, %v5024_v36  ;;  %v2854_v41 = vmul.f32 %v5027_v28, %v5027_v28  ;;  %v5044_v5 = vadd.f32 %v2787_v1, %v4949_v45  ;;  %v5047_v46 = vadd.f32 %v2840_v33, %v4951_v7 }
0x14f3   : > { %v2867_v23 = vmul.f32 %v2851_v32, %v5018_v59  ;;  %v2869_v8 = vmul.f32 %v2853_v53, %v5021_v13  ;;  %v2855_v6 = vmul.f32 %v5034_v37, %v5034_v37  ;;  %v2857_v9 = vmul.f32 %v5037_v43, %v5037_v43 }
0x14f4   : > { %v2868_v20 = vmul.f32 %v2852_v38, %v5024_v36  ;;  %v2870_v44 = vmul.f32 %v2854_v41, %v5027_v28  ;;  %v2856_v45 = vmul.f32 %v5044_v5, %v5044_v5  ;;  %v2858_v7 = vmul.f32 %v5047_v46, %v5047_v46 }
0x14f5   : > { %v2883_v19 = vmul.f32 0.044715, %v2867_v23  ;;  %v2885_v22 = vmul.f32 0.044715, %v2869_v8  ;;  %v2871_v14 = vmul.f32 %v2855_v6, %v5034_v37  ;;  %v2873_v15 = vmul.f32 %v2857_v9, %v5037_v43 }
0x14f6   : > { %v2884_v21 = vmul.f32 0.044715, %v2868_v20  ;;  %v2886_v62 = vmul.f32 0.044715, %v2870_v44  ;;  %v2872_v24 = vmul.f32 %v2856_v45, %v5044_v5  ;;  %v2874_v52 = vmul.f32 %v2858_v7, %v5047_v46 }
0x14f7   : > { %v2899_v17 = vadd.f32 %v2883_v19, %v5018_v59  ;;  %v2901_v29 = vadd.f32 %v2885_v22, %v5021_v13  ;;  %v2887_v30 = vmul.f32 0.044715, %v2871_v14  ;;  %v2889_v31 = vmul.f32 0.044715, %v2873_v15 }
0x14f8   : > { %v2900_v47 = vadd.f32 %v2884_v21, %v5024_v36  ;;  %v2902_v35 = vadd.f32 %v2886_v62, %v5027_v28  ;;  %v2888_v55 = vmul.f32 0.044715, %v2872_v24  ;;  %v2890_v39 = vmul.f32 0.044715, %v2874_v52 }
0x14f9   : > { %v2915_v40 = vmul.f32 0.7978846, %v2899_v17  ;;  %v2917_v42 = vmul.f32 0.7978846, %v2901_v29  ;;  %v2903_v48 = vadd.f32 %v2887_v30, %v5034_v37  ;;  %v2905_v49 = vadd.f32 %v2889_v31, %v5037_v43 }
0x14fa   : > { %v2916_v2 = vmul.f32 0.7978846, %v2900_v47  ;;  %v2918_v50 = vmul.f32 0.7978846, %v2902_v35  ;;  %v2904_v51 = vadd.f32 %v2888_v55, %v5044_v5  ;;  %v2906_v54 = vadd.f32 %v2890_v39, %v5047_v46 }
0x14fb   : > { %4276 = vtanh.f32 %v2915_v40  ;;  %v2919_v18 = vmul.f32 0.7978846, %v2903_v48  ;;  %v2921_v25 = vmul.f32 0.7978846, %v2905_v49 }
0x14fc   : > { %4278 = vtanh.f32 %v2917_v42  ;;  %v2920_v26 = vmul.f32 0.7978846, %v2904_v51  ;;  %v2922_v57 = vmul.f32 0.7978846, %v2906_v54 }
0x14fd   : > { %4280 = vtanh.f32 %v2916_v2 }
0x14fe   : > { %4282 = vtanh.f32 %v2918_v50 }
0x14ff   : > { %4284 = vtanh.f32 %v2919_v18 }
0x1500   : > { %4286 = vtanh.f32 %v2921_v25 }
0x1501   : > { %4288 = vtanh.f32 %v2920_v26 }
0x1502   : > { %4290 = vtanh.f32 %v2922_v57 }
0x1505   : > { %v4277_v56 = vpop.eup %4276 }
0x1506   : > { %v4279_v58 = vpop.eup %4278  ;;  %v2947_v61 = vadd.f32 1.0, %v4277_v56 }
0x1507   : > { %v4281_v11 = vpop.eup %4280  ;;  %v2949_v10 = vadd.f32 1.0, %v4279_v58 }
0x1508   : > { %v4283_v16 = vpop.eup %4282  ;;  %v2948_v27 = vadd.f32 1.0, %v4281_v11  ;;  %v2963_v53 = vmul.f32 0.5, %v2947_v61 }
0x1509   : > { %v4285_v63 = vpop.eup %4284  ;;  %v2950_v0 = vadd.f32 1.0, %v4283_v16  ;;  %v2965_v38 = vmul.f32 0.5, %v2949_v10 }
0x150a   : > { %v4287_v34 = vpop.eup %4286  ;;  %v2951_v32 = vadd.f32 1.0, %v4285_v63  ;;  %v2964_v8 = vmul.f32 0.5, %v2948_v27  ;;  %v2979_v7 = vmul.f32 %v2963_v53, %v5018_v59 }
0x150b   : > { %v4289_v1 = vpop.eup %4288  ;;  %v2953_v33 = vadd.f32 1.0, %v4287_v34  ;;  %v2966_v20 = vmul.f32 0.5, %v2950_v0  ;;  %v2981_v14 = vmul.f32 %v2965_v38, %v5021_v13 }
0x150c   : > { %v4291_v41 = vpop.eup %4290  ;;  %v2952_v23 = vadd.f32 1.0, %v4289_v1  ;;  %v2967_v6 = vmul.f32 0.5, %v2951_v32  ;;  %v2980_v21 = vmul.f32 %v2964_v8, %v5024_v36  ;;  %v3701_v36 = vld [vmem:[%s657_s16] ss:$0 sm:$0xff] }
0x150d   : > { %v2954_v9 = vadd.f32 1.0, %v4291_v41  ;;  %v2969_v44 = vmul.f32 0.5, %v2953_v33  ;;  %v2982_v52 = vmul.f32 %v2966_v20, %v5027_v28 }
0x150e   : > { %v2968_v45 = vmul.f32 0.5, %v2952_v23  ;;  %v2983_v19 = vmul.f32 %v2967_v6, %v5034_v37 }
0x150f   : > { %v2970_v22 = vmul.f32 0.5, %v2954_v9  ;;  %v2985_v15 = vmul.f32 %v2969_v44, %v5037_v43 }
0x1510   : > { %v2984_v62 = vmul.f32 %v2968_v45, %v5044_v5  ;;  %v2991_v24 = vpack.c.bf16 %v2983_v19, %v2979_v7 }
0x1511   : > { %v2986_v17 = vmul.f32 %v2970_v22, %v5047_v46  ;;  %v2993_v29 = vpack.c.bf16 %v2985_v15, %v2981_v14 }
0x1512   : > { %v2992_v30 = vpack.c.bf16 %v2984_v62, %v2980_v21 }
0x1513   : > { %v2994_v59 = vpack.c.bf16 %v2986_v17, %v2982_v52  ;;  %v3734_v17 = vld [vmem:[%s637_s30] ss:$0 sm:$0xff]  ;;  %s5142_s30 = sld [smem:[#allocation9_spill]] (!%p3736_p5) }
0x1514   : > { %3298 = vmatprep.mubr.bf16.mxu1 %v2992_v30  ;;  %v3735_v30 = vld [vmem:[%s5141_s22] ss:$0 sm:$0xff] }
0x1515   : > { %3347 = vmatprep.mubr.bf16.mxu0 %v2994_v59  ;;  %3299 = vmatmul.mubr.bf16.gmra.mrb[64].mxu1 %v2991_v24 }
0x1516   : > { %3348 = vmatmul.mubr.bf16.gmra.mrb[68].mxu0 %v2993_v29 }
0x155c   : > { %v3824_v13 = vpop.f32.mrb[60].mxu1 }
0x155d   : > { %v3852_v37 = vpop.f32.mrb[64].mxu0  ;;  %v3825_v43 = vpop.f32.mrb[61].mxu1 }
0x155e   : > { %v3826_v5 = vadd.f32 %v3825_v43, %v3824_v13  ;;  %v3853_v31 = vpop.f32.mrb[65].mxu0  ;;  %v3827_v28 = vpop.f32.mrb[62].mxu1 }
0x155f   : > { %v3854_v47 = vadd.f32 %v3853_v31, %v3852_v37  ;;  %v3855_v46 = vpop.f32.mrb[66].mxu0  ;;  %v3828_v35 = vpop.f32.mrb[63].mxu1 }
0x1560   : > { %v3293_v55 = vadd.f32 %v3826_v5, %v3701_v36  ;;  %v3829_v39 = vadd.f32 %v3828_v35, %v3827_v28  ;;  %v3856_v40 = vpop.f32.mrb[67].mxu0 }
0x1561   : > { %v3857_v42 = vadd.f32 %v3856_v40, %v3855_v46 }
0x1562   : > { %v3342_v48 = vadd.f32 %v3854_v47, %v3293_v55  ;;  %v3296_v49 = vadd.f32 %v3829_v39, %v3701_v36 }
0x1564   : > { %v3345_v2 = vadd.f32 %v3857_v42, %v3296_v49  ;;  %v3356_v50 = vadd.f32 %v3342_v48, %v4884_v12 }
0x1566   : > { %3360 = vadd.xlane.f32.xlu1 %v3356_v50  ;;  %v3357_v51 = vadd.f32 %v3345_v2, %v4887_v60 }
0x156a   : > { %3362 = vadd.xlane.f32.xlu1 %v3357_v51 }
0x15e8   : > { %v3830_v54 = vpop.f32.mrb[64].mxu1 }
0x15e9   : > { %v3858_v18 = vpop.f32.mrb[68].mxu0  ;;  %v3831_v25 = vpop.f32.mrb[65].mxu1 }
0x15ea   : > { %v3832_v26 = vadd.f32 %v3831_v25, %v3830_v54  ;;  %v3859_v57 = vpop.f32.mrb[69].mxu0  ;;  %v3833_v56 = vpop.f32.mrb[66].mxu1 }
0x15eb   : > { %v3860_v58 = vadd.f32 %v3859_v57, %v3858_v18  ;;  %v3861_v61 = vpop.f32.mrb[70].mxu0  ;;  %v3834_v11 = vpop.f32.mrb[67].mxu1 }
0x15ec   : > { %v3301_v10 = vadd.f32 %v3832_v26, %v3701_v36  ;;  %v3835_v16 = vadd.f32 %v3834_v11, %v3833_v56  ;;  %v3862_v27 = vpop.f32.mrb[71].mxu0 }
0x15ed   : > { %v3863_v63 = vadd.f32 %v3862_v27, %v3861_v61 }
0x15ee   : > { %v3350_v0 = vadd.f32 %v3860_v58, %v3301_v10  ;;  %v3304_v34 = vadd.f32 %v3835_v16, %v3701_v36 }
0x15f0   : > { %v3353_v12 = vadd.f32 %v3863_v63, %v3304_v34  ;;  %v3358_v32 = vadd.f32 %v3350_v0, %v4930_v3 }
0x15f2   : > { %3364 = vadd.xlane.f32.xlu1 %v3358_v32  ;;  %v3359_v1 = vadd.f32 %v3353_v12, %v4933_v4 }
0x15f3   : > { %v3361_v60 = vpop.xlane.xlu1 %3360 }
0x15f4   : > { %v3368_v53 = vmul.f32 0.0078125, %v3361_v60 }
0x15f6   : > { %v3372_v33 = vsub.f32 %v3356_v50, %v3368_v53  ;;  %3366 = vadd.xlane.f32.xlu1 %v3359_v1 }
0x15f7   : > { %v3363_v38 = vpop.xlane.xlu1 %3362 }
0x15f8   : > { %v3369_v41 = vmul.f32 0.0078125, %v3363_v38  ;;  %v3376_v23 = vmul.f32 %v3372_v33, %v3372_v33 }
0x15fa   : > { %v3373_v8 = vsub.f32 %v3357_v51, %v3369_v41  ;;  %3380 = vadd.xlane.f32.xlu1 %v3376_v23 }
0x15fc   : > { %v3377_v6 = vmul.f32 %v3373_v8, %v3373_v8 }
0x15fe   : > { %3382 = vadd.xlane.f32.xlu1 %v3377_v6 }
0x167f   : > { %v3365_v9 = vpop.xlane.xlu1 %3364 }
0x1680   : > { %v3370_v20 = vmul.f32 0.0078125, %v3365_v9 }
0x1682   : > { %v3374_v44 = vsub.f32 %v3358_v32, %v3370_v20 }
0x1683   : > { %v3367_v45 = vpop.xlane.xlu1 %3366 }
0x1684   : > { %v3371_v3 = vmul.f32 0.0078125, %v3367_v45  ;;  %v3378_v7 = vmul.f32 %v3374_v44, %v3374_v44 }
0x1686   : > { %v3375_v19 = vsub.f32 %v3359_v1, %v3371_v3  ;;  %3384 = vadd.xlane.f32.xlu0 %v3378_v7 }
0x1687   : > { %v3381_v4 = vpop.xlane.xlu1 %3380 }
0x1688   : > { %v3388_v22 = vmul.f32 0.0078125, %v3381_v4  ;;  %v3379_v14 = vmul.f32 %v3375_v19, %v3375_v19 }
0x168a   : > { %v3392_v15 = vadd.f32 1e-12, %v3388_v22  ;;  %3386 = vadd.xlane.f32.xlu1 %v3379_v14 }
0x168b   : > { %v3383_v21 = vpop.xlane.xlu1 %3382 }
0x168c   : > { %4292 = vrsqrt.f32 %v3392_v15  ;;  %v3389_v62 = vmul.f32 0.0078125, %v3383_v21 }
0x168e   : > { %v3393_v24 = vadd.f32 1e-12, %v3389_v62 }
0x1690   : > { %4294 = vrsqrt.f32 %v3393_v24 }
0x1696   : > { %v4293_v52 = vpop.eup %4292 }
0x1697   : > { %v3400_v29 = vmul.f32 %v4293_v52, %v3372_v33 }
0x1699   : > { %v3411_v59 = vmul.f32 %v3734_v17, %v3400_v29 }
0x169a   : > { %v4295_v13 = vpop.eup %4294 }
0x169b   : > { %v3422_v37 = vadd.f32 %v3735_v30, %v3411_v59  ;;  %v3401_v36 = vmul.f32 %v4295_v13, %v3373_v8 }
0x169d   : > { %3426 = vst [vmem:[#allocation2] sm:$0xff] %v3422_v37  ;;  %v3412_v43 = vmul.f32 %v3734_v17, %v3401_v36 }
0x169f   : > { %v3423_v5 = vadd.f32 %v3735_v30, %v3412_v43 }
0x16a1   : > { %3427 = vst [vmem:[#allocation2 + $0x8] sm:$0xff] %v3423_v5  ;;  %v3434_v54 = vadd.f32 (!%p3736_p5), %v3423_v5, %v3422_v37 }
0x16a3   : > { %v3435_v25 = vrot.slane (!%p3736_p5), %v3434_v54, 4 }
0x16a5   : > { %v3436_v57 = vadd.f32 (!%p3736_p5), %v3435_v25, %v3434_v54 }
0x16a7   : > { %v3437_v58 = vrot.slane (!%p3736_p5), %v3436_v57, 2 }
0x16a9   : > { %v3438_v11 = vadd.f32 (!%p3736_p5), %v3437_v58, %v3436_v57 }
0x16ab   : > { %v3439_v16 = vrot.slane (!%p3736_p5), %v3438_v11, 1 }
0x16ad   : > { %v3440_v63 = vadd.f32 (!%p3736_p5), %v3439_v16, %v3438_v11 }
0x16af   : > { %v3441_v34 = vmul.f32 (!%p3736_p5), 0.0625, %v3440_v63 }
0x1713   : > { %v3385_v31 = vpop.xlane.xlu0 %3384 }
0x1714   : > { %v3390_v28 = vmul.f32 0.0078125, %v3385_v31 }
0x1716   : > { %v3394_v47 = vadd.f32 1e-12, %v3390_v28 }
0x1717   : > { %v3387_v46 = vpop.xlane.xlu1 %3386 }
0x1718   : > { %4296 = vrsqrt.f32 %v3394_v47  ;;  %v3391_v35 = vmul.f32 0.0078125, %v3387_v46 }
0x171a   : > { %v3395_v55 = vadd.f32 1e-12, %v3391_v35 }
0x171c   : > { %4298 = vrsqrt.f32 %v3395_v55 }
0x1722   : > { %v4297_v39 = vpop.eup %4296 }
0x1723   : > { %v3402_v40 = vmul.f32 %v4297_v39, %v3374_v44 }
0x1725   : > { %v3413_v42 = vmul.f32 %v3734_v17, %v3402_v40 }
0x1726   : > { %v4299_v48 = vpop.eup %4298 }
0x1727   : > { %v3424_v49 = vadd.f32 %v3735_v30, %v3413_v42  ;;  %v3403_v2 = vmul.f32 %v4299_v48, %v3375_v19  ;;  %3433 = sbr.rel (%p3736_p5) target bundleno = 5951 (0x173f), region = 88 }
0x1729   : > { %3428 = vst [vmem:[#allocation2 + $0x10] sm:$0xff] %v3424_v49  ;;  %v3414_v50 = vmul.f32 %v3734_v17, %v3403_v2 }
0x172b   : > { %v3425_v51 = vadd.f32 %v3735_v30, %v3414_v50 }
0x172d   : > { %3429 = vst [vmem:[#allocation2 + $0x18] sm:$0xff] %v3425_v51  ;;  %v3442_v18 = vadd.f32 (!%p3736_p5), %v3425_v51, %v3424_v49 }
0x172f   : > { %v3443_v26 = vrot.slane %v3442_v18, 4 }
0x1731   : > { %v3444_v56 = vadd.f32 %v3443_v26, %v3442_v18 }
0x1733   : > { %v3445_v61 = vrot.slane %v3444_v56, 2 }
0x1735   : > { %v3446_v10 = vadd.f32 %v3445_v61, %v3444_v56 }
0x1737   : > { %v3447_v27 = vrot.slane %v3446_v10, 1 }
0x1739   : > { %v3448_v0 = vadd.f32 %v3447_v27, %v3446_v10 }
0x173b   : > { %v3449_v12 = vmul.f32 0.0625, %v3448_v0 }
0x173d   : > { %v3451_v32 = vsel %vm3450_vm3, %v3441_v34, %v3449_v12 }
0x173e   : > { %3452 = vst [vmem:[%s5142_s30] sm:$0x3] %v3451_v32 }
0x173f PF: > { %s5143_s17 = sld [smem:[#allocation3_spill]] }
0x1745   : > { %s25_s18 = sadd.s32 1, %s5143_s17  }
0x1746   : > { %p22_p6 = scmp.ge.s32.totalorder %s25_s18, 4  }
0x1748   :  { %24 = sbr.rel (!%p22_p6) target bundleno = 7 (0x7), region = 147 }

// kernel: multimodal_vivit_forward.5
= control target key start
LH: loop header
LB: loop body
LE: loop exit
PB: predicated region body
PF: predicated region fallthrough
CT: control target
= control target key end

     0   :  { %vm35_vm0 = vcmask 1041408   ;;  %s767_s0 = inlined_call_operand.vmem [shape: f32[2,128], index: 0, kind: input, shape index: {}]   ;;  %s768_s1 = inlined_call_operand.vmem [shape: f32[1,128], index: 1, kind: input, shape index: {}]   ;;  %s769_s2 = inlined_call_operand.vmem [shape: f32[1,128], index: 2, kind: input, shape index: {}]   ;;  %s770_s3 = inlined_call_operand.vmem [shape: bf16[128,128], index: 3, kind: input, shape index: {}]   ;;  %s771_s4 = inlined_call_operand.vmem [shape: f32[1,128], index: 4, kind: input, shape index: {}]   ;;  %s772_s5 = inlined_call_operand.vmem [shape: f32[2,128], index: 5, kind: input, shape index: {}]   ;;  %s773_s6 = inlined_call_operand.vmem [shape: bf16[128,128], index: 6, kind: input, shape index: {}]   ;;  %s774_s7 = inlined_call_operand.vmem [shape: bf16[128,128], index: 7, kind: input, shape index: {}]   ;;  %s775_s8 = inlined_call_operand.vmem [shape: f32[1,128], index: 8, kind: input, shape index: {}]   ;;  %s776_s9 = inlined_call_operand.hbm [shape: f32[2,128], index: 9, kind: output, shape index: {}]  }
   0x1   :  { %v34_v0 = vld [vmem:[%s767_s0] sm:$0x3] }
   0x2   :  { %v36_v1 = vsel %vm35_vm0, %v34_v0, 0.0 }
   0x3   :  { %37 = vadd.xlane.f32.xlu0 %v36_v1 }
   0x4   :  { %14 = vsyncpa [#allocation3], 0  ;;  %v530_v2 = vld [vmem:[%s770_s3] sm:$0xff]   ;;  %v580_v3 = vmov 0.0   ;;  %v531_v4 = vld [vmem:[%s770_s3 + $0x8] sm:$0xff]   ;;  %vm581_vm1 = vmmov 0  }
   0x5   :  { %467 = vmatprep.subr.bf16.mxu0 %v580_v3  ;;  %487 = vmatprep.subr.bf16.mxu1 %v580_v3  ;;  %v532_v10 = vld [vmem:[%s770_s3 + $0x10] sm:$0xff]   ;;  %v533_v11 = vld [vmem:[%s770_s3 + $0x18] sm:$0xff]   ;;  %v534_v12 = vld [vmem:[%s770_s3 + $0x20] sm:$0xff]  }
   0x6   :  { %468 = vmatpush3.bf16.msra.mxu0 %v530_v2  ;;  %483 = vmatprep.mubr.msk.bf16.mxu0 %vm581_vm1, %v580_v3  ;;  %v535_v13 = vld [vmem:[%s770_s3 + $0x28] sm:$0xff]   ;;  %v536_v14 = vld [vmem:[%s770_s3 + $0x30] sm:$0xff]   ;;  %v537_v15 = vld [vmem:[%s770_s3 + $0x38] sm:$0xff]  }
   0x7   :  { %469 = vmatprep.subr.bf16.mxu0 %v580_v3  ;;  %503 = vmatprep.mubr.msk.bf16.mxu1 %vm581_vm1, %v580_v3  ;;  %v539_v16 = vld [vmem:[%s774_s7] sm:$0xff]   ;;  %v541_v17 = vld [vmem:[%s774_s7 + $0x8] sm:$0xff]   ;;  %v543_v18 = vld [vmem:[%s774_s7 + $0x10] sm:$0xff]  }
   0x8   :  { %488 = vmatpush3.bf16.msra.mxu1 %v539_v16  ;;  %v545_v19 = vld [vmem:[%s774_s7 + $0x18] sm:$0xff]   ;;  %v547_v20 = vld [vmem:[%s774_s7 + $0x20] sm:$0xff]   ;;  %v549_v21 = vld [vmem:[%s774_s7 + $0x28] sm:$0xff]  }
   0x9   :  { %489 = vmatprep.subr.bf16.mxu1 %v580_v3  ;;  %v551_v22 = vld [vmem:[%s774_s7 + $0x30] sm:$0xff]   ;;  %v412_v27 = vld [vmem:[%s768_s1] ss:$0 sm:$0xff]  ;;  %v540_v34 = vld [vmem:[%s773_s6 + $0x8] sm:$0xff]  }
   0xa   :  { %470 = vmatpush3.bf16.msra.mxu0 %v531_v4  ;;  %v413_v29 = vld [vmem:[%s769_s2] ss:$0 sm:$0xff]  ;;  %v542_v35 = vld [vmem:[%s773_s6 + $0x10] sm:$0xff]   ;;  %v544_v36 = vld [vmem:[%s773_s6 + $0x18] sm:$0xff]  }
   0xb   :  { %471 = vmatprep.subr.bf16.mxu0 %v580_v3  ;;  %v538_v32 = vld [vmem:[%s773_s6] sm:$0xff]   ;;  %v548_v38 = vld [vmem:[%s773_s6 + $0x28] sm:$0xff]   ;;  %v550_v39 = vld [vmem:[%s773_s6 + $0x30] sm:$0xff]  }
   0xc   :  { %490 = vmatpush3.bf16.msra.mxu1 %v541_v17  ;;  %v546_v37 = vld [vmem:[%s773_s6 + $0x20] sm:$0xff]   ;;  %v552_v40 = vld [vmem:[%s773_s6 + $0x38] sm:$0xff]  }
   0xd   :  { %491 = vmatprep.subr.bf16.mxu1 %v580_v3  ;;  %v178_v41 = vld [vmem:[%s772_s5] sm:$0x3]  ;;  %v553_v42 = vld [vmem:[%s774_s7 + $0x38] sm:$0xff]   ;;  %s582_s7 = smov [#allocation2]  }
   0xe   :  { %472 = vmatpush3.bf16.msra.mxu0 %v532_v10  ;;  %v179_v43 = vpack.c.bf16 %v178_v41, %v178_v41  ;;  %v414_v44 = vld [vmem:[%s771_s4] ss:$0 sm:$0xff]  ;;  %s404_s18 = sshll.u32 %s582_s7, 4  ;;  %s405_s18 = int_to_ptr.vmem [resolvable:$true] %s404_s18 }
   0xf   :  { %473 = vmatprep.subr.bf16.mxu0 %v580_v3  ;;  %v439_v56 = vld [vmem:[%s775_s8] ss:$0 sm:$0xff]  ;;  %s556_s4 = scalar_lea.vmem %s405_s18, 32  ;;  %p561_p1 = scmp.lt.s32.totalorder %s405_s18, %s405_s18 }
  0x10   :  { %492 = vmatpush3.bf16.msra.mxu1 %v543_v18  ;;  %p557_p0 = scmp.ne.s32.totalorder %s405_s18, %s556_s4  ;;  %p562_p2 = scmp.lt.s32.totalorder %s556_s4, %s556_s4 }
  0x11   :  { %493 = vmatprep.subr.bf16.mxu1 %v580_v3 }
  0x12   :  { %474 = vmatpush3.bf16.msra.mxu0 %v533_v11  ;;  %p563_p3 = por %p562_p2, %p561_p1 }
  0x13   :  { %475 = vmatprep.subr.bf16.mxu0 %v580_v3 }
  0x14   :  { %494 = vmatpush3.bf16.msra.mxu1 %v545_v19  ;;  %p564_p4 = pnand %p563_p3, %p557_p0 }
  0x15   :  { %495 = vmatprep.subr.bf16.mxu1 %v580_v3 }
  0x16   :  { %476 = vmatpush3.bf16.msra.mxu0 %v534_v12 }
  0x17   :  { %477 = vmatprep.subr.bf16.mxu0 %v580_v3 }
  0x18   :  { %496 = vmatpush3.bf16.msra.mxu1 %v547_v20 }
  0x19   :  { %497 = vmatprep.subr.bf16.mxu1 %v580_v3 }
  0x1a   :  { %478 = vmatpush3.bf16.msra.mxu0 %v535_v13 }
  0x1b   :  { %479 = vmatprep.subr.bf16.mxu0 %v580_v3 }
  0x1c   :  { %498 = vmatpush3.bf16.msra.mxu1 %v549_v21 }
  0x1d   :  { %499 = vmatprep.subr.bf16.mxu1 %v580_v3 }
  0x1e   :  { %480 = vmatpush3.bf16.msra.mxu0 %v536_v14 }
  0x1f   :  { %481 = vmatprep.subr.bf16.mxu0 %v580_v3 }
  0x20   :  { %500 = vmatpush3.bf16.msra.mxu1 %v551_v22 }
  0x21   :  { %501 = vmatprep.subr.bf16.mxu1 %v580_v3 }
  0x22   :  { %482 = vmatpush3.bf16.msra.mxu0 %v537_v15 }
  0x23   :  { %507 = vmatprep.subr.bf16.mxu0 %v580_v3 }
  0x24   :  { %502 = vmatpush3.bf16.msra.mxu1 %v553_v42 }
  0x90   :  { %v38_v5 = vpop.xlane.xlu0 %37 }
  0x91   :  { %v40_v6 = vmul.f32 0.0078125, %v38_v5 }
  0x93   :  { %v41_v7 = vsub.f32 %v34_v0, %v40_v6 }
  0x95   :  { %v42_v8 = vmul.f32 %v41_v7, %v41_v7 }
  0x97   :  { %v43_v9 = vsel %vm35_vm0, %v42_v8, 0.0 }
  0x98   :  { %44 = vadd.xlane.f32.xlu0 %v43_v9 }
 0x125   :  { %v45_v23 = vpop.xlane.xlu0 %44 }
 0x126   :  { %v46_v24 = vmul.f32 0.0078125, %v45_v23 }
 0x128   :  { %v47_v25 = vadd.f32 1e-06, %v46_v24 }
 0x12a   :  { %554 = vrsqrt.f32 %v47_v25 }
 0x134   :  { %v555_v26 = vpop.eup %554 }
 0x135   :  { %v49_v28 = vmul.f32 %v555_v26, %v41_v7 }
 0x137   :  { %v57_v30 = vmul.f32 %v412_v27, %v49_v28 }
 0x139   :  { %v65_v31 = vadd.f32 %v413_v29, %v57_v30 }
 0x13b   :  { %v66_v33 = vpack.c.bf16 %v65_v31, %v65_v31 }
 0x13d   :  { %484 = vmatmul.mubr.bf16.vlgmr.msra.gmra.mrb[0].mxu0 %v66_v33 }
 0x13e   :  { %508 = vmatpush3.bf16.msra.mxu0 %v538_v32  ;;  %523 = vmatprep.mubr.msk.bf16.mxu0 %vm581_vm1, %v580_v3 }
 0x13f   :  { %509 = vmatprep.subr.bf16.mxu0 %v580_v3 }
 0x142   :  { %510 = vmatpush3.bf16.msra.mxu0 %v540_v34 }
 0x143   :  { %511 = vmatprep.subr.bf16.mxu0 %v580_v3 }
 0x146   :  { %512 = vmatpush3.bf16.msra.mxu0 %v542_v35 }
 0x147   :  { %513 = vmatprep.subr.bf16.mxu0 %v580_v3 }
 0x14a   :  { %514 = vmatpush3.bf16.msra.mxu0 %v544_v36 }
 0x14b   :  { %515 = vmatprep.subr.bf16.mxu0 %v580_v3 }
 0x14e   :  { %516 = vmatpush3.bf16.msra.mxu0 %v546_v37 }
 0x14f   :  { %517 = vmatprep.subr.bf16.mxu0 %v580_v3 }
 0x152   :  { %518 = vmatpush3.bf16.msra.mxu0 %v548_v38 }
 0x153   :  { %519 = vmatprep.subr.bf16.mxu0 %v580_v3 }
 0x156   :  { %520 = vmatpush3.bf16.msra.mxu0 %v550_v39 }
 0x157   :  { %521 = vmatprep.subr.bf16.mxu0 %v580_v3 }
 0x15a   :  { %522 = vmatpush3.bf16.msra.mxu0 %v552_v40 }
 0x15d   :  { %524 = vmatmul.mubr.bf16.vlgmr.msra.gmra.mrb[4].mxu0 %v179_v43 }
 0x210   :  { %v172_v45 = vpop.f32.mrb[0].mxu0 }
 0x211   :  { %v173_v46 = vadd.f32 %v414_v44, %v172_v45  ;;  %v485_v47 = vpop.f32.mrb[1].mxu0 }
 0x212   :  { %v175_v48 = vpop.f32.mrb[2].mxu0 }
 0x213   :  { %v196_v49 = vpack.c.bf16 %v173_v46, %v173_v46  ;;  %v486_v50 = vpop.f32.mrb[3].mxu0 }
 0x215   :  { %504 = vmatmul.mubr.bf16.vlgmr.msra.gmra.mrb[0].mxu1 %v196_v49 }
 0x230   :  { %v383_v51 = vpop.f32.mrb[4].mxu0 }
 0x231   :  { %v525_v52 = vpop.f32.mrb[5].mxu0 }
 0x232   :  { %v386_v53 = vpop.f32.mrb[6].mxu0 }
 0x233   :  { %v526_v54 = vpop.f32.mrb[7].mxu0 }
 0x2e8   :  { %v295_v55 = vpop.f32.mrb[0].mxu1 }
 0x2e9   :  { %v384_v57 = vadd.f32 %v383_v51, %v295_v55  ;;  %v505_v58 = vpop.f32.mrb[1].mxu1 }
 0x2ea   :  { %v298_v59 = vpop.f32.mrb[2].mxu1 }
 0x2eb   :  { %v506_v60 = vpop.f32.mrb[3].mxu1  ;;  %v396_v61 = vadd.f32 %v439_v56, %v384_v57 }
 0x2ed   :  { %397 = vst [vmem:[#allocation2] sm:$0x3] %v396_v61 }
 0x2ee   :  { %567 = shalt.err (!%p564_p4)
}
 0x2ef   :  { %s568_s8 = scalar_lea.hbm %s776_s9, 32 }
 0x2f0   :  { %p569_p5 = scmp.ne.s32.totalorder %s776_s9, %s568_s8  ;;  %p572_p6 = scmp.lt.u32.totalorder %s568_s8, %s776_s9 }
 0x2f2   :  { %p574_p7 = pnand %p572_p6, %p569_p5 }
 0x2f4   :  { %577 = shalt.err (!%p574_p7)
}
 0x2f5   :  { %407 = dma.vmem_to_hbm [thread:$0]  %s405_s18, 32, %s776_s9, [#allocation3]  }
 0x2f6   :  { %578 = dma.done.wait [#allocation3], 32  }
 0x2f7   :  { %579 = vsyncadd [#allocation3], 4294967264 }
 0x2f8   :  { %411 = vsyncpa [#allocation3], 1 }

</bundles_post_ra>
